<compile_context>
chip_gen: v5e
topology: v5e:2x2
jax: 0.10.0
libtpu: 0.0.40
codegen_flags: <defaults>
</compile_context>

<pallas_src>
import functools

import jax
import jax.numpy as jnp
from jax.experimental import pallas as pl
from jax.experimental.pallas import tpu as pltpu

C_PAD = 128  # conv output channels padded to one full lane width


def _round_up(x, m):
    return (x + m - 1) // m * m


# ---------------------------------------------------------------------------
# Fused matmul + bias (+ ReLU / dueling-combine) Pallas kernel.
# ---------------------------------------------------------------------------
def _matmul_kernel(x_ref, w_ref, b_ref, o_ref, *, apply_relu, dueling_actions):
    acc = jnp.dot(x_ref[...], w_ref[...], preferred_element_type=jnp.float32)
    acc = acc + b_ref[...].astype(jnp.float32)
    if apply_relu:
        acc = jnp.maximum(acc, 0.0)
    if dueling_actions is not None:
        # Columns [0, A) hold the advantage stream, column A the value stream,
        # remaining lanes are zero padding.  Q = A - mean(A) + V.
        a = dueling_actions
        col = jax.lax.broadcasted_iota(jnp.int32, acc.shape, 1)
        adv_mean = jnp.sum(jnp.where(col < a, acc, 0.0),
                           axis=-1, keepdims=True) / float(a)
        value = jnp.sum(jnp.where(col == a, acc, 0.0), axis=-1, keepdims=True)
        acc = acc - adv_mean + value
    o_ref[...] = acc.astype(o_ref.dtype)


def fused_matmul(x, w, b, *, relu, out_dtype, dueling_actions=None):
    """act(x @ w + b).  x: (M, K), w: (K, N), b: (1, N).  N is a multiple of 128."""
    m, k = x.shape
    k2, n = w.shape
    assert k == k2, (k, k2)
    # Pad M to >= 8 sublanes; large M is tiled at 256 rows per grid step.
    tm = 256 if m >= 256 else _round_up(m, 8)
    m_pad = _round_up(m, tm)
    if m_pad != m:
        x = jnp.pad(x, ((0, m_pad - m), (0, 0)))
    tn = n  # N <= 1024 everywhere: one lane-dense pass, weights stay resident
    if dueling_actions is not None:
        assert tn == n, "dueling epilogue reduces across the full head width"

    kernel = functools.partial(
        _matmul_kernel, apply_relu=relu, dueling_actions=dueling_actions)
    out = pl.pallas_call(
        kernel,
        out_shape=jax.ShapeDtypeStruct((m_pad, n), out_dtype),
        grid=(m_pad // tm, n // tn),
        in_specs=[
            pl.BlockSpec((tm, k), lambda i, j: (i, 0)),  # activations: vary with M
            pl.BlockSpec((k, tn), lambda i, j: (0, j)),  # weights: constant over M
            pl.BlockSpec((1, tn), lambda i, j: (0, j)),  # bias
        ],
        out_specs=pl.BlockSpec((tm, tn), lambda i, j: (i, j)),
        compiler_params=pltpu.CompilerParams(
            dimension_semantics=("parallel", "parallel")),
    )(x, w, b)
    return out[:m]


# ---------------------------------------------------------------------------
# im2col glue (NHWC, feature order = (ky, kx, c) to match the GEMM weights).
# ---------------------------------------------------------------------------
def _im2col_nhwc(x, kh, kw, stride):
    # TODO(synk): move this patch gather inside the Pallas kernel (strided
    # pl.ds loads from a VMEM-resident input tile) to avoid the materialized
    # im2col HBM round trip.
    b, h, w, c = x.shape
    oh = (h - kh) // stride + 1
    ow = (w - kw) // stride + 1
    cols = []
    for ky in range(kh):
        for kx in range(kw):
            cols.append(x[:, ky:ky + stride * (oh - 1) + 1:stride,
                            kx:kx + stride * (ow - 1) + 1:stride, :])
    patches = jnp.concatenate(cols, axis=-1)          # (B, OH, OW, kh*kw*C)
    return patches.reshape(b * oh * ow, kh * kw * c), oh, ow


# ---------------------------------------------------------------------------
# Parameter construction (PyTorch layouts) and one-time GEMM-layout folding.
# ---------------------------------------------------------------------------
def init_torch_layout_params(key, n_actions, n_input_channels, bias=0.1):
    """Random parameters in the PyTorch module's native layouts."""
    ks = jax.random.split(key, 7)

    def lecun(k, shape, fan_in):
        return jax.random.normal(k, shape, jnp.float32) / jnp.sqrt(float(fan_in))

    return {
        "conv1_w": lecun(ks[0], (32, n_input_channels, 8, 8), n_input_channels * 64),
        "conv1_b": jnp.full((32,), bias, jnp.float32),
        "conv2_w": lecun(ks[1], (64, 32, 4, 4), 32 * 16),
        "conv2_b": jnp.full((64,), bias, jnp.float32),
        "conv3_w": lecun(ks[2], (64, 64, 3, 3), 64 * 9),
        "conv3_b": jnp.full((64,), bias, jnp.float32),
        # a_stream = MLP(1024, n_actions, [512]); v_stream = MLP(1024, 1, [512])
        "a_fc1_w": lecun(ks[3], (512, 1024), 1024),
        "a_fc1_b": jnp.zeros((512,), jnp.float32),
        "a_fc2_w": lecun(ks[4], (n_actions, 512), 512),
        "a_fc2_b": jnp.zeros((n_actions,), jnp.float32),
        "v_fc1_w": lecun(ks[5], (512, 1024), 1024),
        "v_fc1_b": jnp.zeros((512,), jnp.float32),
        "v_fc2_w": lecun(ks[6], (1, 512), 512),
        "v_fc2_b": jnp.zeros((1,), jnp.float32),
    }


def _conv_weight_to_gemm(w, cin_pad, cout_pad):
    """(Cout, Cin, kh, kw) -> (kh*kw*cin_pad, cout_pad), patch order (ky, kx, c)."""
    cout, cin, kh, kw = w.shape
    wt = jnp.transpose(w, (2, 3, 1, 0))               # (kh, kw, cin, cout)
    wt = jnp.pad(wt, ((0, 0), (0, 0), (0, cin_pad - cin), (0, cout_pad - cout)))
    return wt.reshape(kh * kw * cin_pad, cout_pad)


def _pad_bias(b, n_pad):
    return jnp.pad(b, (0, n_pad - b.shape[0])).reshape(1, n_pad)


def _fc1_rows_nhwc(w_t, oh, ow, c_real, c_pad):
    """Permute + zero-pad FC rows so they consume the NHWC / lane-padded flatten
    directly (replaces the runtime NHWC->NCHW transpose).
    w_t: (c_real*oh*ow, N) with rows in PyTorch's (c, h, w) flatten order."""
    n = w_t.shape[1]
    w = w_t.reshape(c_real, oh, ow, n)                # [c, h, w, :]
    w = jnp.transpose(w, (1, 2, 0, 3))                # [h, w, c, :]
    w = jnp.pad(w, ((0, 0), (0, 0), (0, c_pad - c_real), (0, 0)))
    return w.reshape(oh * ow * c_pad, n)


def prepare_gemm_params(tp, n_actions):
    """One-time fold of PyTorch-layout params into fused / padded / permuted
    GEMM operands for the Pallas kernels (done at init, not per forward)."""
    n_head = _round_up(n_actions + 1, 128)

    # Fused hidden FC: columns [0,512) advantage stream, [512,1024) value stream.
    # The module hard-codes MLP(1024, ...) => conv3 output is (64, 4, 4).
    a1 = _fc1_rows_nhwc(tp["a_fc1_w"].T, 4, 4, 64, C_PAD)    # (2048, 512)
    v1 = _fc1_rows_nhwc(tp["v_fc1_w"].T, 4, 4, 64, C_PAD)    # (2048, 512)
    fc1_w = jnp.concatenate([a1, v1], axis=1)                # (2048, 1024)
    fc1_b = jnp.concatenate([tp["a_fc1_b"], tp["v_fc1_b"]]).reshape(1, -1)

    # Fused dueling head: cols [0,A) advantage, col A value, rest zero padding.
    head_w = jnp.zeros((1024, n_head), jnp.float32)
    head_w = head_w.at[0:512, 0:n_actions].set(tp["a_fc2_w"].T)
    head_w = head_w.at[512:1024, n_actions].set(tp["v_fc2_w"][0])
    head_b = jnp.zeros((n_head,), jnp.float32)
    head_b = head_b.at[0:n_actions].set(tp["a_fc2_b"])
    head_b = head_b.at[n_actions].set(tp["v_fc2_b"][0])

    bf16 = jnp.bfloat16
    n_in = tp["conv1_w"].shape[1]
    return {
        "conv1_w": _conv_weight_to_gemm(tp["conv1_w"], n_in, C_PAD).astype(bf16),
        "conv1_b": _pad_bias(tp["conv1_b"], C_PAD),
        "conv2_w": _conv_weight_to_gemm(tp["conv2_w"], C_PAD, C_PAD).astype(bf16),
        "conv2_b": _pad_bias(tp["conv2_b"], C_PAD),
        "conv3_w": _conv_weight_to_gemm(tp["conv3_w"], C_PAD, C_PAD).astype(bf16),
        "conv3_b": _pad_bias(tp["conv3_b"], C_PAD),
        "fc1_w": fc1_w.astype(bf16),
        "fc1_b": fc1_b,
        "head_w": head_w.astype(bf16),
        "head_b": head_b.reshape(1, -1),
    }


# ---------------------------------------------------------------------------
# Forward pass.
# ---------------------------------------------------------------------------
def dueling_dqn_forward(params, x, *, n_actions):
    """x: (B, C_in, H, W) in PyTorch NCHW.  Returns Q-values (B, n_actions)."""
    batch = x.shape[0]
    # NCHW -> NHWC once at the input; bf16 for MXU operands.
    h = jnp.transpose(x, (0, 2, 3, 1)).astype(jnp.bfloat16)

    for layer, (ksz, stride) in zip(("conv1", "conv2", "conv3"),
                                    ((8, 4), (4, 2), (3, 1))):
        patches, oh, ow = _im2col_nhwc(h, ksz, ksz, stride)
        out = fused_matmul(patches, params[layer + "_w"], params[layer + "_b"],
                           relu=True, out_dtype=jnp.bfloat16)
        h = out.reshape(batch, oh, ow, C_PAD)

    # Flatten NHWC (lane-padded channels included); fc1_w rows were permuted
    # at init to reproduce PyTorch's (c, h, w) flatten order.
    feat = h.reshape(batch, -1)
    hidden = fused_matmul(feat, params["fc1_w"], params["fc1_b"],
                          relu=True, out_dtype=jnp.bfloat16)
    q_pad = fused_matmul(hidden, params["head_w"], params["head_b"],
                         relu=False, out_dtype=jnp.float32,
                         dueling_actions=n_actions)
    # TODO(synk): action_value.DiscreteActionValue wrapper has no Pallas
    # equivalent; return raw Q-values.
    return q_pad[:, :n_actions]


if __name__ == "__main__":
    n_actions = 6
    n_input_channels = 4
    batch = 2
    spatial = 60  # (60-8)/4+1=14 -> (14-4)/2+1=6 -> (6-3)+1=4 => 64*4*4 = 1024

    key = jax.random.PRNGKey(0)
    k_params, k_x = jax.random.split(key)
    torch_params = init_torch_layout_params(k_params, n_actions, n_input_channels)
    params = prepare_gemm_params(torch_params, n_actions)
    x = jax.random.normal(k_x, (batch, n_input_channels, spatial, spatial),
                          jnp.float32)

    fwd = jax.jit(functools.partial(dueling_dqn_forward, n_actions=n_actions))
    q = fwd(params, x)
    jax.block_until_ready(q)
    assert q.shape == (batch, n_actions)
    print("KERNEL_OK")
</pallas_src>

<mosaic_0001>
module attributes {stable_mosaic.version = 11 : i64} {
  func.func @_matmul_kernel(%arg0: i32, %arg1: i32, %arg2: memref<256x256xbf16, #tpu.memory_space<vmem>>, %arg3: memref<256x128xbf16, #tpu.memory_space<vmem>>, %arg4: memref<1x128xf32, #tpu.memory_space<vmem>>, %arg5: memref<256x128xbf16, #tpu.memory_space<vmem>>) attributes {dimension_semantics = [#tpu.dimension_semantics<parallel>, #tpu.dimension_semantics<parallel>], iteration_bounds = array<i64: 2, 1>, scalar_prefetch = 0 : i64, scratch_operands = 0 : i64, tpu.core_type = #tpu.core_type<tc>, window_params = [{transform_indices = @transform_0, window_bounds = array<i64: 256, 256>}, {transform_indices = @transform_1, window_bounds = array<i64: 256, 128>}, {transform_indices = @transform_2, window_bounds = array<i64: 1, 128>}, {transform_indices = @transform_3, window_bounds = array<i64: 256, 128>}]} {
    %c0 = arith.constant 0 : index
    %c0_0 = arith.constant 0 : index
    %0 = vector.load %arg2[%c0, %c0_0] : memref<256x256xbf16, #tpu.memory_space<vmem>>, vector<256x256xbf16>
    %c0_1 = arith.constant 0 : index
    %c0_2 = arith.constant 0 : index
    %1 = vector.load %arg3[%c0_1, %c0_2] : memref<256x128xbf16, #tpu.memory_space<vmem>>, vector<256x128xbf16>
    %cst = arith.constant dense<0.000000e+00> : vector<256x128xf32>
    %2 = tpu.matmul %0, %1, %cst {dimension_numbers = #tpu.dot_dimension_numbers<[1], [0], [0], [1], [0, 0, 1, 1], [], []>} : vector<256x256xbf16>, vector<256x128xbf16>, vector<256x128xf32> -> vector<256x128xf32>
    %c0_3 = arith.constant 0 : index
    %c0_4 = arith.constant 0 : index
    %3 = vector.load %arg4[%c0_3, %c0_4] : memref<1x128xf32, #tpu.memory_space<vmem>>, vector<1x128xf32>
    %4 = vector.broadcast %3 : vector<1x128xf32> to vector<256x128xf32>
    %5 = arith.addf %2, %4 : vector<256x128xf32>
    %cst_5 = arith.constant 0.000000e+00 : f32
    %6 = vector.broadcast %cst_5 : f32 to vector<256x128xf32>
    %7 = arith.maximumf %5, %6 : vector<256x128xf32>
    %8 = arith.truncf %7 : vector<256x128xf32> to vector<256x128xbf16>
    %c0_6 = arith.constant 0 : index
    %c0_7 = arith.constant 0 : index
    %9 = vector.load %arg5[%c0_6, %c0_7] : memref<256x128xbf16, #tpu.memory_space<vmem>>, vector<256x128xbf16>
    tpu.vector_store %arg5[%c0_6, %c0_7], %8 {strides = array<i32>} : memref<256x128xbf16, #tpu.memory_space<vmem>>, vector<256x128xbf16>,
    return
  }
  func.func @transform_0(%arg0: i32, %arg1: i32) -> (i32, i32) {
    %c0_i32 = arith.constant 0 : i32
    %c0_i32_0 = arith.constant 0 : i32
    return %arg0, %c0_i32 : i32, i32
  }
  func.func @transform_1(%arg0: i32, %arg1: i32) -> (i32, i32) {
    %c0_i32 = arith.constant 0 : i32
    %c0_i32_0 = arith.constant 0 : i32
    return %c0_i32, %arg1 : i32, i32
  }
  func.func @transform_2(%arg0: i32, %arg1: i32) -> (i32, i32) {
    %c0_i32 = arith.constant 0 : i32
    %c0_i32_0 = arith.constant 0 : i32
    return %c0_i32, %arg1 : i32, i32
  }
  func.func @transform_3(%arg0: i32, %arg1: i32) -> (i32, i32) {
    %c0_i32 = arith.constant 0 : i32
    return %arg0, %arg1 : i32, i32
  }
}

module attributes {stable_mosaic.version = 11 : i64} {
  func.func @_matmul_kernel(%arg0: i32, %arg1: i32, %arg2: memref<72x2048xbf16, #tpu.memory_space<vmem>>, %arg3: memref<2048x128xbf16, #tpu.memory_space<vmem>>, %arg4: memref<1x128xf32, #tpu.memory_space<vmem>>, %arg5: memref<72x128xbf16, #tpu.memory_space<vmem>>) attributes {dimension_semantics = [#tpu.dimension_semantics<parallel>, #tpu.dimension_semantics<parallel>], iteration_bounds = array<i64: 1, 1>, scalar_prefetch = 0 : i64, scratch_operands = 0 : i64, tpu.core_type = #tpu.core_type<tc>, window_params = [{transform_indices = @transform_0, window_bounds = array<i64: 72, 2048>}, {transform_indices = @transform_1, window_bounds = array<i64: 2048, 128>}, {transform_indices = @transform_2, window_bounds = array<i64: 1, 128>}, {transform_indices = @transform_3, window_bounds = array<i64: 72, 128>}]} {
    %c0 = arith.constant 0 : index
    %c0_0 = arith.constant 0 : index
    %0 = vector.load %arg2[%c0, %c0_0] : memref<72x2048xbf16, #tpu.memory_space<vmem>>, vector<72x2048xbf16>
    %c0_1 = arith.constant 0 : index
    %c0_2 = arith.constant 0 : index
    %1 = vector.load %arg3[%c0_1, %c0_2] : memref<2048x128xbf16, #tpu.memory_space<vmem>>, vector<2048x128xbf16>
    %cst = arith.constant dense<0.000000e+00> : vector<72x128xf32>
    %2 = tpu.matmul %0, %1, %cst {dimension_numbers = #tpu.dot_dimension_numbers<[1], [0], [0], [1], [0, 0, 1, 1], [], []>} : vector<72x2048xbf16>, vector<2048x128xbf16>, vector<72x128xf32> -> vector<72x128xf32>
    %c0_3 = arith.constant 0 : index
    %c0_4 = arith.constant 0 : index
    %3 = vector.load %arg4[%c0_3, %c0_4] : memref<1x128xf32, #tpu.memory_space<vmem>>, vector<1x128xf32>
    %4 = vector.broadcast %3 : vector<1x128xf32> to vector<72x128xf32>
    %5 = arith.addf %2, %4 : vector<72x128xf32>
    %cst_5 = arith.constant 0.000000e+00 : f32
    %6 = vector.broadcast %cst_5 : f32 to vector<72x128xf32>
    %7 = arith.maximumf %5, %6 : vector<72x128xf32>
    %8 = arith.truncf %7 : vector<72x128xf32> to vector<72x128xbf16>
    %c0_6 = arith.constant 0 : index
    %c0_7 = arith.constant 0 : index
    %9 = vector.load %arg5[%c0_6, %c0_7] : memref<72x128xbf16, #tpu.memory_space<vmem>>, vector<72x128xbf16>
    tpu.vector_store %arg5[%c0_6, %c0_7], %8 {strides = array<i32>} : memref<72x128xbf16, #tpu.memory_space<vmem>>, vector<72x128xbf16>,
    return
  }
  func.func @transform_0(%arg0: i32, %arg1: i32) -> (i32, i32) {
    %c0_i32 = arith.constant 0 : i32
    %c0_i32_0 = arith.constant 0 : i32
    return %arg0, %c0_i32 : i32, i32
  }
  func.func @transform_1(%arg0: i32, %arg1: i32) -> (i32, i32) {
    %c0_i32 = arith.constant 0 : i32
    %c0_i32_0 = arith.constant 0 : i32
    return %c0_i32, %arg1 : i32, i32
  }
  func.func @transform_2(%arg0: i32, %arg1: i32) -> (i32, i32) {
    %c0_i32 = arith.constant 0 : i32
    %c0_i32_0 = arith.constant 0 : i32
    return %c0_i32, %arg1 : i32, i32
  }
  func.func @transform_3(%arg0: i32, %arg1: i32) -> (i32, i32) {
    %c0_i32 = arith.constant 0 : i32
    return %arg0, %arg1 : i32, i32
  }
}

module attributes {stable_mosaic.version = 11 : i64} {
  func.func @_matmul_kernel(%arg0: i32, %arg1: i32, %arg2: memref<32x1152xbf16, #tpu.memory_space<vmem>>, %arg3: memref<1152x128xbf16, #tpu.memory_space<vmem>>, %arg4: memref<1x128xf32, #tpu.memory_space<vmem>>, %arg5: memref<32x128xbf16, #tpu.memory_space<vmem>>) attributes {dimension_semantics = [#tpu.dimension_semantics<parallel>, #tpu.dimension_semantics<parallel>], iteration_bounds = array<i64: 1, 1>, scalar_prefetch = 0 : i64, scratch_operands = 0 : i64, tpu.core_type = #tpu.core_type<tc>, window_params = [{transform_indices = @transform_0, window_bounds = array<i64: 32, 1152>}, {transform_indices = @transform_1, window_bounds = array<i64: 1152, 128>}, {transform_indices = @transform_2, window_bounds = array<i64: 1, 128>}, {transform_indices = @transform_3, window_bounds = array<i64: 32, 128>}]} {
    %c0 = arith.constant 0 : index
    %c0_0 = arith.constant 0 : index
    %0 = vector.load %arg2[%c0, %c0_0] : memref<32x1152xbf16, #tpu.memory_space<vmem>>, vector<32x1152xbf16>
    %c0_1 = arith.constant 0 : index
    %c0_2 = arith.constant 0 : index
    %1 = vector.load %arg3[%c0_1, %c0_2] : memref<1152x128xbf16, #tpu.memory_space<vmem>>, vector<1152x128xbf16>
    %cst = arith.constant dense<0.000000e+00> : vector<32x128xf32>
    %2 = tpu.matmul %0, %1, %cst {dimension_numbers = #tpu.dot_dimension_numbers<[1], [0], [0], [1], [0, 0, 1, 1], [], []>} : vector<32x1152xbf16>, vector<1152x128xbf16>, vector<32x128xf32> -> vector<32x128xf32>
    %c0_3 = arith.constant 0 : index
    %c0_4 = arith.constant 0 : index
    %3 = vector.load %arg4[%c0_3, %c0_4] : memref<1x128xf32, #tpu.memory_space<vmem>>, vector<1x128xf32>
    %4 = vector.broadcast %3 : vector<1x128xf32> to vector<32x128xf32>
    %5 = arith.addf %2, %4 : vector<32x128xf32>
    %cst_5 = arith.constant 0.000000e+00 : f32
    %6 = vector.broadcast %cst_5 : f32 to vector<32x128xf32>
    %7 = arith.maximumf %5, %6 : vector<32x128xf32>
    %8 = arith.truncf %7 : vector<32x128xf32> to vector<32x128xbf16>
    %c0_6 = arith.constant 0 : index
    %c0_7 = arith.constant 0 : index
    %9 = vector.load %arg5[%c0_6, %c0_7] : memref<32x128xbf16, #tpu.memory_space<vmem>>, vector<32x128xbf16>
    tpu.vector_store %arg5[%c0_6, %c0_7], %8 {strides = array<i32>} : memref<32x128xbf16, #tpu.memory_space<vmem>>, vector<32x128xbf16>,
    return
  }
  func.func @transform_0(%arg0: i32, %arg1: i32) -> (i32, i32) {
    %c0_i32 = arith.constant 0 : i32
    %c0_i32_0 = arith.constant 0 : i32
    return %arg0, %c0_i32 : i32, i32
  }
  func.func @transform_1(%arg0: i32, %arg1: i32) -> (i32, i32) {
    %c0_i32 = arith.constant 0 : i32
    %c0_i32_0 = arith.constant 0 : i32
    return %c0_i32, %arg1 : i32, i32
  }
  func.func @transform_2(%arg0: i32, %arg1: i32) -> (i32, i32) {
    %c0_i32 = arith.constant 0 : i32
    %c0_i32_0 = arith.constant 0 : i32
    return %c0_i32, %arg1 : i32, i32
  }
  func.func @transform_3(%arg0: i32, %arg1: i32) -> (i32, i32) {
    %c0_i32 = arith.constant 0 : i32
    return %arg0, %arg1 : i32, i32
  }
}

module attributes {stable_mosaic.version = 11 : i64} {
  func.func @_matmul_kernel(%arg0: i32, %arg1: i32, %arg2: memref<8x2048xbf16, #tpu.memory_space<vmem>>, %arg3: memref<2048x1024xbf16, #tpu.memory_space<vmem>>, %arg4: memref<1x1024xf32, #tpu.memory_space<vmem>>, %arg5: memref<8x1024xbf16, #tpu.memory_space<vmem>>) attributes {dimension_semantics = [#tpu.dimension_semantics<parallel>, #tpu.dimension_semantics<parallel>], iteration_bounds = array<i64: 1, 1>, scalar_prefetch = 0 : i64, scratch_operands = 0 : i64, tpu.core_type = #tpu.core_type<tc>, window_params = [{transform_indices = @transform_0, window_bounds = array<i64: 8, 2048>}, {transform_indices = @transform_1, window_bounds = array<i64: 2048, 1024>}, {transform_indices = @transform_2, window_bounds = array<i64: 1, 1024>}, {transform_indices = @transform_3, window_bounds = array<i64: 8, 1024>}]} {
    %c0 = arith.constant 0 : index
    %c0_0 = arith.constant 0 : index
    %0 = vector.load %arg2[%c0, %c0_0] : memref<8x2048xbf16, #tpu.memory_space<vmem>>, vector<8x2048xbf16>
    %c0_1 = arith.constant 0 : index
    %c0_2 = arith.constant 0 : index
    %1 = vector.load %arg3[%c0_1, %c0_2] : memref<2048x1024xbf16, #tpu.memory_space<vmem>>, vector<2048x1024xbf16>
    %cst = arith.constant dense<0.000000e+00> : vector<8x1024xf32>
    %2 = tpu.matmul %0, %1, %cst {dimension_numbers = #tpu.dot_dimension_numbers<[1], [0], [0], [1], [0, 0, 1, 1], [], []>} : vector<8x2048xbf16>, vector<2048x1024xbf16>, vector<8x1024xf32> -> vector<8x1024xf32>
    %c0_3 = arith.constant 0 : index
    %c0_4 = arith.constant 0 : index
    %3 = vector.load %arg4[%c0_3, %c0_4] : memref<1x1024xf32, #tpu.memory_space<vmem>>, vector<1x1024xf32>
    %4 = vector.broadcast %3 : vector<1x1024xf32> to vector<8x1024xf32>
    %5 = arith.addf %2, %4 : vector<8x1024xf32>
    %cst_5 = arith.constant 0.000000e+00 : f32
    %6 = vector.broadcast %cst_5 : f32 to vector<8x1024xf32>
    %7 = arith.maximumf %5, %6 : vector<8x1024xf32>
    %8 = arith.truncf %7 : vector<8x1024xf32> to vector<8x1024xbf16>
    %c0_6 = arith.constant 0 : index
    %c0_7 = arith.constant 0 : index
    %9 = vector.load %arg5[%c0_6, %c0_7] : memref<8x1024xbf16, #tpu.memory_space<vmem>>, vector<8x1024xbf16>
    tpu.vector_store %arg5[%c0_6, %c0_7], %8 {strides = array<i32>} : memref<8x1024xbf16, #tpu.memory_space<vmem>>, vector<8x1024xbf16>,
    return
  }
  func.func @transform_0(%arg0: i32, %arg1: i32) -> (i32, i32) {
    %c0_i32 = arith.constant 0 : i32
    %c0_i32_0 = arith.constant 0 : i32
    return %arg0, %c0_i32 : i32, i32
  }
  func.func @transform_1(%arg0: i32, %arg1: i32) -> (i32, i32) {
    %c0_i32 = arith.constant 0 : i32
    %c0_i32_0 = arith.constant 0 : i32
    return %c0_i32, %arg1 : i32, i32
  }
  func.func @transform_2(%arg0: i32, %arg1: i32) -> (i32, i32) {
    %c0_i32 = arith.constant 0 : i32
    %c0_i32_0 = arith.constant 0 : i32
    return %c0_i32, %arg1 : i32, i32
  }
  func.func @transform_3(%arg0: i32, %arg1: i32) -> (i32, i32) {
    %c0_i32 = arith.constant 0 : i32
    return %arg0, %arg1 : i32, i32
  }
}

module attributes {stable_mosaic.version = 11 : i64} {
  func.func @_matmul_kernel(%arg0: i32, %arg1: i32, %arg2: memref<8x1024xbf16, #tpu.memory_space<vmem>>, %arg3: memref<1024x128xbf16, #tpu.memory_space<vmem>>, %arg4: memref<1x128xf32, #tpu.memory_space<vmem>>, %arg5: memref<8x128xf32, #tpu.memory_space<vmem>>) attributes {dimension_semantics = [#tpu.dimension_semantics<parallel>, #tpu.dimension_semantics<parallel>], iteration_bounds = array<i64: 1, 1>, scalar_prefetch = 0 : i64, scratch_operands = 0 : i64, tpu.core_type = #tpu.core_type<tc>, window_params = [{transform_indices = @transform_0, window_bounds = array<i64: 8, 1024>}, {transform_indices = @transform_1, window_bounds = array<i64: 1024, 128>}, {transform_indices = @transform_2, window_bounds = array<i64: 1, 128>}, {transform_indices = @transform_3, window_bounds = array<i64: 8, 128>}]} {
    %c0 = arith.constant 0 : index
    %c0_0 = arith.constant 0 : index
    %0 = vector.load %arg2[%c0, %c0_0] : memref<8x1024xbf16, #tpu.memory_space<vmem>>, vector<8x1024xbf16>
    %c0_1 = arith.constant 0 : index
    %c0_2 = arith.constant 0 : index
    %1 = vector.load %arg3[%c0_1, %c0_2] : memref<1024x128xbf16, #tpu.memory_space<vmem>>, vector<1024x128xbf16>
    %cst = arith.constant dense<0.000000e+00> : vector<8x128xf32>
    %2 = tpu.matmul %0, %1, %cst {dimension_numbers = #tpu.dot_dimension_numbers<[1], [0], [0], [1], [0, 0, 1, 1], [], []>} : vector<8x1024xbf16>, vector<1024x128xbf16>, vector<8x128xf32> -> vector<8x128xf32>
    %c0_3 = arith.constant 0 : index
    %c0_4 = arith.constant 0 : index
    %3 = vector.load %arg4[%c0_3, %c0_4] : memref<1x128xf32, #tpu.memory_space<vmem>>, vector<1x128xf32>
    %4 = vector.broadcast %3 : vector<1x128xf32> to vector<8x128xf32>
    %5 = arith.addf %2, %4 : vector<8x128xf32>
    %6 = tpu.iota {dimensions = array<i32: 1>} : vector<8x128xi32>
    %c6_i32 = arith.constant 6 : i32
    %7 = vector.broadcast %c6_i32 : i32 to vector<8x128xi32>
    %8 = arith.cmpi slt, %6, %7 : vector<8x128xi32>
    %cst_5 = arith.constant 0.000000e+00 : f32
    %9 = vector.broadcast %cst_5 : f32 to vector<8x128xf32>
    %10 = arith.select %8, %5, %9 : vector<8x128xi1>, vector<8x128xf32>
    %cst_6 = arith.constant dense<0.000000e+00> : vector<8xf32>
    %11 = vector.multi_reduction <add>, %10, %cst_6 [1] : vector<8x128xf32> to vector<8xf32>
    %12 = vector.shape_cast %11 : vector<8xf32> to vector<8x1xf32>
    %cst_7 = arith.constant 6.000000e+00 : f32
    %13 = vector.broadcast %cst_7 : f32 to vector<8x1xf32>
    %14 = arith.divf %12, %13 : vector<8x1xf32>
    %c6_i32_8 = arith.constant 6 : i32
    %15 = vector.broadcast %c6_i32_8 : i32 to vector<8x128xi32>
    %16 = arith.cmpi eq, %6, %15 : vector<8x128xi32>
    %cst_9 = arith.constant 0.000000e+00 : f32
    %17 = vector.broadcast %cst_9 : f32 to vector<8x128xf32>
    %18 = arith.select %16, %5, %17 : vector<8x128xi1>, vector<8x128xf32>
    %cst_10 = arith.constant dense<0.000000e+00> : vector<8xf32>
    %19 = vector.multi_reduction <add>, %18, %cst_10 [1] : vector<8x128xf32> to vector<8xf32>
    %20 = vector.shape_cast %19 : vector<8xf32> to vector<8x1xf32>
    %21 = vector.broadcast %14 : vector<8x1xf32> to vector<8x128xf32>
    %22 = arith.subf %5, %21 : vector<8x128xf32>
    %23 = vector.broadcast %20 : vector<8x1xf32> to vector<8x128xf32>
    %24 = arith.addf %22, %23 : vector<8x128xf32>
    %c0_11 = arith.constant 0 : index
    %c0_12 = arith.constant 0 : index
    %25 = vector.load %arg5[%c0_11, %c0_12] : memref<8x128xf32, #tpu.memory_space<vmem>>, vector<8x128xf32>
    tpu.vector_store %arg5[%c0_11, %c0_12], %24 {strides = array<i32>} : memref<8x128xf32, #tpu.memory_space<vmem>>, vector<8x128xf32>,
    return
  }
  func.func @transform_0(%arg0: i32, %arg1: i32) -> (i32, i32) {
    %c0_i32 = arith.constant 0 : i32
    %c0_i32_0 = arith.constant 0 : i32
    return %arg0, %c0_i32 : i32, i32
  }
  func.func @transform_1(%arg0: i32, %arg1: i32) -> (i32, i32) {
    %c0_i32 = arith.constant 0 : i32
    %c0_i32_0 = arith.constant 0 : i32
    return %c0_i32, %arg1 : i32, i32
  }
  func.func @transform_2(%arg0: i32, %arg1: i32) -> (i32, i32) {
    %c0_i32 = arith.constant 0 : i32
    %c0_i32_0 = arith.constant 0 : i32
    return %c0_i32, %arg1 : i32, i32
  }
  func.func @transform_3(%arg0: i32, %arg1: i32) -> (i32, i32) {
    %c0_i32 = arith.constant 0 : i32
    return %arg0, %arg1 : i32, i32
  }
}

</mosaic_0001>

<bundles_post_ra>
// kernel: dueling_dqn_forward.5
= control target key start
LH: loop header
LB: loop body
LE: loop exit
PB: predicated region body
PF: predicated region fallthrough
CT: control target
= control target key end

     0   :  { %s1363_s12 = smov 0   ;;  %s1365_s13 = smov 0   ;;  %s1572_s0 = inlined_call_operand.vmem [shape: bf16[512,256], index: 0, kind: input, shape index: {}]   ;;  %s1573_s1 = inlined_call_operand.vmem [shape: bf16[256,128], index: 1, kind: input, shape index: {}]   ;;  %s1574_s2 = inlined_call_operand.vmem [shape: f32[1,128], index: 2, kind: input, shape index: {}]   ;;  %s1575_s3 = inlined_call_operand.vmem [shape: bf16[512,128], index: 3, kind: output, shape index: {}]  }
   0x1   :  { %s1367_s14 = smov 0  }
   0x2 LB: > { %s25_s15 = sadd.s32 1, %s1337_s13  ;;  %p934_p0 = scmp.ge.s32.totalorder %s1341_s14, 1  ;;  %s1341_s14 = sphi %s1367_s14, %s13_s14   ;;  %s1337_s13 = sphi %s1365_s13, %s1577_s13   ;;  %s1333_s12 = sphi %s1363_s12, %s1576_s12  }
   0x3   : > { %p27_p1 = scmp.ge.s32.totalorder %s25_s15, 2  ;;  %p170_p2 = scmp.lt.s32.totalorder %s1341_s14, 3 }
   0x5   : > { %s1579_s15 = smov (%p27_p1, %s25_s15), 0  ;;  %p171_p3 = pnand %p934_p0, %p170_p2 }
   0x6   : > { %s935_s28 = sshll.u32 (!%p171_p3), %s1333_s12, 5 }
   0x7   : > { %174 = sbr.rel (%p171_p3) target bundleno = 305 (0x131), region = 32  ;;  %p206_p4 = scmp.lt.s32.totalorder (!%p171_p3), %s935_s28, 63 }
   0xc   : > { %v1174_v0 = vld [vmem:[%s1573_s1 + $0x38] sm:$0xff]  ;;  %v1173_v2 = vld [vmem:[%s1573_s1 + $0x30] sm:$0xff]  ;;  %v1172_v4 = vld [vmem:[%s1573_s1 + $0x28] sm:$0xff]  ;;  %s1581_s28 = smov (!%p206_p4, %s935_s28), 63 }
   0xd   : > { %v1182_v1 = vld [vmem:[%s1573_s1 + $0x78] sm:$0xff]  ;;  %552 = vmatpush.bf16.msra.mxu0 %v1174_v0  ;;  %1278 = vmatpush.bf16.msra.mxu2 %v1174_v0  ;;  %v1181_v3 = vld [vmem:[%s1573_s1 + $0x70] sm:$0xff]  ;;  %v1180_v5 = vld [vmem:[%s1573_s1 + $0x68] sm:$0xff]  ;;  %s1134_s17 = sshll.u32 %s1581_s28, 3  ;;  %s939_s5 = sshll.u32 %s1581_s28, 2 }
   0xe   : > { %641 = vmatpush.bf16.msra.mxu1 %v1182_v1  ;;  %1286 = vmatpush.bf16.msra.mxu3 %v1182_v1  ;;  %v1171_v6 = vld [vmem:[%s1573_s1 + $0x20] sm:$0xff]  ;;  %v1170_v8 = vld [vmem:[%s1573_s1 + $0x18] sm:$0xff]  ;;  %v1169_v10 = vld [vmem:[%s1573_s1 + $0x10] sm:$0xff]  ;;  %s1429_s22 = scalar_lea.vmem %s1572_s0, %s1134_s17  ;;  %s1516_s8 = scalar_lea.vmem %s1575_s3, %s939_s5 }
   0xf   : > { %v1179_v7 = vld [vmem:[%s1573_s1 + $0x60] sm:$0xff]  ;;  %v1178_v9 = vld [vmem:[%s1573_s1 + $0x58] sm:$0xff]  ;;  %v1177_v11 = vld [vmem:[%s1573_s1 + $0x50] sm:$0xff] }
  0x10   : > { %v1168_v12 = vld [vmem:[%s1573_s1 + $0x8] sm:$0xff]  ;;  %v1167_v14 = vld [vmem:[%s1573_s1] sm:$0xff]  ;;  %v950_v28 = vld [vmem:[%s1429_s22 + $0x10] sm:$0xf] }
  0x11   : > { %553 = vmatpush.bf16.msra.mxu0 %v1173_v2  ;;  %1279 = vmatpush.bf16.msra.mxu2 %v1173_v2  ;;  %v1176_v13 = vld [vmem:[%s1573_s1 + $0x48] sm:$0xff]  ;;  %v1175_v15 = vld [vmem:[%s1573_s1 + $0x40] sm:$0xff]  ;;  %v1138_v29 = vld [vmem:[%s1429_s22 + $0x14] sm:$0xf0] }
  0x12   : > { %642 = vmatpush.bf16.msra.mxu1 %v1181_v3  ;;  %1287 = vmatpush.bf16.msra.mxu3 %v1181_v3  ;;  %v942_v16 = vld [vmem:[%s1429_s22] sm:$0xf]  ;;  %v1136_v17 = vld [vmem:[%s1429_s22 + $0x4] sm:$0xf0]  ;;  %v1135_v20 = vld [vmem:[%s1429_s22 + $0x4] sm:$0xf]  ;;  %v951_v36 = vor.u32 %v1138_v29, %v950_v28 }
  0x13   : > { %v1006_v18 = vld [vmem:[%s1429_s22 + $0x80] sm:$0xf]  ;;  %v1152_v19 = vld [vmem:[%s1429_s22 + $0x84] sm:$0xf0]  ;;  %v944_v21 = vld [vmem:[%s1429_s22 + $0x8] sm:$0xf0]  ;;  %v943_v24 = vor.u32 %v1136_v17, %v942_v16 }
  0x14   : > { %v1151_v22 = vld [vmem:[%s1429_s22 + $0x84] sm:$0xf]  ;;  %v1008_v23 = vld [vmem:[%s1429_s22 + $0x88] sm:$0xf0]  ;;  %v1007_v25 = vor.u32 %v1152_v19, %v1006_v18  ;;  %v947_v26 = vor.u32 %v1135_v20, %v944_v21  ;;  %v1014_v30 = vld [vmem:[%s1429_s22 + $0x90] sm:$0xf] }
  0x15   : > { %554 = vmatpush.bf16.msra.mxu0 %v1172_v4  ;;  %1280 = vmatpush.bf16.msra.mxu2 %v1172_v4  ;;  %v1011_v27 = vor.u32 %v1151_v22, %v1008_v23  ;;  %v1154_v31 = vld [vmem:[%s1429_s22 + $0x94] sm:$0xf0]  ;;  %v1137_v32 = vld [vmem:[%s1429_s22 + $0x14] sm:$0xf]  ;;  %v952_v33 = vld [vmem:[%s1429_s22 + $0x18] sm:$0xf0] }
  0x16   : > { %643 = vmatpush.bf16.msra.mxu1 %v1180_v5  ;;  %1288 = vmatpush.bf16.msra.mxu3 %v1180_v5  ;;  %v1153_v34 = vld [vmem:[%s1429_s22 + $0x94] sm:$0xf]  ;;  %v1016_v35 = vld [vmem:[%s1429_s22 + $0x98] sm:$0xf0]  ;;  %v1015_v37 = vor.u32 %v1154_v31, %v1014_v30  ;;  %v955_v38 = vor.u32 %v1137_v32, %v952_v33  ;;  %v958_v40 = vld [vmem:[%s1429_s22 + $0x20] sm:$0xf] }
  0x17   : > { %v1019_v39 = vor.u32 %v1153_v34, %v1016_v35  ;;  %v1140_v41 = vld [vmem:[%s1429_s22 + $0x24] sm:$0xf0]  ;;  %v1022_v42 = vld [vmem:[%s1429_s22 + $0xa0] sm:$0xf]  ;;  %v1139_v44 = vld [vmem:[%s1429_s22 + $0x24] sm:$0xf] }
  0x18   : > { %v1156_v43 = vld [vmem:[%s1429_s22 + $0xa4] sm:$0xf0]  ;;  %v960_v45 = vld [vmem:[%s1429_s22 + $0x28] sm:$0xf0]  ;;  %v1155_v46 = vld [vmem:[%s1429_s22 + $0xa4] sm:$0xf]  ;;  %v959_v48 = vor.u32 %v1140_v41, %v958_v40 }
  0x19   : > { %555 = vmatpush.bf16.msra.mxu0 %v1171_v6  ;;  %1281 = vmatpush.bf16.msra.mxu2 %v1171_v6  ;;  %v1024_v47 = vld [vmem:[%s1429_s22 + $0xa8] sm:$0xf0]  ;;  %v1023_v49 = vor.u32 %v1156_v43, %v1022_v42  ;;  %v963_v50 = vor.u32 %v1139_v44, %v960_v45  ;;  %v966_v52 = vld [vmem:[%s1429_s22 + $0x30] sm:$0xf]  ;;  %v1142_v53 = vld [vmem:[%s1429_s22 + $0x34] sm:$0xf0] }
  0x1a   : > { %644 = vmatpush.bf16.msra.mxu1 %v1179_v7  ;;  %1289 = vmatpush.bf16.msra.mxu3 %v1179_v7  ;;  %v1027_v51 = vor.u32 %v1155_v46, %v1024_v47  ;;  %v1030_v54 = vld [vmem:[%s1429_s22 + $0xb0] sm:$0xf]  ;;  %v1158_v55 = vld [vmem:[%s1429_s22 + $0xb4] sm:$0xf0]  ;;  %v1141_v56 = vld [vmem:[%s1429_s22 + $0x34] sm:$0xf]  ;;  %v967_v60 = vor.u32 %v1142_v53, %v966_v52 }
  0x1b   : > { %v968_v57 = vld [vmem:[%s1429_s22 + $0x38] sm:$0xf0]  ;;  %v1157_v58 = vld [vmem:[%s1429_s22 + $0xb4] sm:$0xf]  ;;  %v1031_v61 = vor.u32 %v1158_v55, %v1030_v54  ;;  %v974_v0 = vld [vmem:[%s1429_s22 + $0x40] sm:$0xf] }
  0x1c   : > { %v1032_v59 = vld [vmem:[%s1429_s22 + $0xb8] sm:$0xf0]  ;;  %v971_v62 = vor.u32 %v1141_v56, %v968_v57  ;;  %v1144_v1 = vld [vmem:[%s1429_s22 + $0x44] sm:$0xf0]  ;;  %v1038_v2 = vld [vmem:[%s1429_s22 + $0xc0] sm:$0xf] }
  0x1d   : > { %556 = vmatpush.bf16.msra.mxu0 %v1170_v8  ;;  %1282 = vmatpush.bf16.msra.mxu2 %v1170_v8  ;;  %v1035_v63 = vor.u32 %v1157_v58, %v1032_v59  ;;  %v1160_v3 = vld [vmem:[%s1429_s22 + $0xc4] sm:$0xf0]  ;;  %v1143_v4 = vld [vmem:[%s1429_s22 + $0x44] sm:$0xf]  ;;  %v976_v5 = vld [vmem:[%s1429_s22 + $0x48] sm:$0xf0]  ;;  %v975_v8 = vor.u32 %v1144_v1, %v974_v0 }
  0x1e   : > { %645 = vmatpush.bf16.msra.mxu1 %v1178_v9  ;;  %1290 = vmatpush.bf16.msra.mxu3 %v1178_v9  ;;  %v1159_v6 = vld [vmem:[%s1429_s22 + $0xc4] sm:$0xf]  ;;  %v1040_v7 = vld [vmem:[%s1429_s22 + $0xc8] sm:$0xf0]  ;;  %v1039_v9 = vor.u32 %v1160_v3, %v1038_v2  ;;  %v1145_v16 = vld [vmem:[%s1429_s22 + $0x54] sm:$0xf] }
  0x1f   : > { %v984_v17 = vld [vmem:[%s1429_s22 + $0x58] sm:$0xf0]  ;;  %v1161_v18 = vld [vmem:[%s1429_s22 + $0xd4] sm:$0xf]  ;;  %v1147_v28 = vld [vmem:[%s1429_s22 + $0x64] sm:$0xf] }
  0x20   : > { %v1048_v19 = vld [vmem:[%s1429_s22 + $0xd8] sm:$0xf0]  ;;  %v987_v22 = vor.u32 %v1145_v16, %v984_v17  ;;  %v992_v29 = vld [vmem:[%s1429_s22 + $0x68] sm:$0xf0]  ;;  %v1163_v30 = vld [vmem:[%s1429_s22 + $0xe4] sm:$0xf] }
  0x21   : > { %557 = vmatpush.bf16.msra.mxu0 %v1169_v10  ;;  %1283 = vmatpush.bf16.msra.mxu2 %v1169_v10  ;;  %v979_v10 = vor.u32 %v1143_v4, %v976_v5  ;;  %v1051_v23 = vor.u32 %v1161_v18, %v1048_v19  ;;  %v1056_v31 = vld [vmem:[%s1429_s22 + $0xe8] sm:$0xf0]  ;;  %v995_v34 = vor.u32 %v1147_v28, %v992_v29  ;;  %v1149_v40 = vld [vmem:[%s1429_s22 + $0x74] sm:$0xf]  ;;  %v1000_v41 = vld [vmem:[%s1429_s22 + $0x78] sm:$0xf0] }
  0x22   : > { %646 = vmatpush.bf16.msra.mxu1 %v1177_v11  ;;  %1291 = vmatpush.bf16.msra.mxu3 %v1177_v11  ;;  %v1043_v11 = vor.u32 %v1159_v6, %v1040_v7  ;;  %v1059_v35 = vor.u32 %v1163_v30, %v1056_v31  ;;  %v1165_v42 = vld [vmem:[%s1429_s22 + $0xf4] sm:$0xf]  ;;  %v1064_v43 = vld [vmem:[%s1429_s22 + $0xf8] sm:$0xf0]  ;;  %v1003_v46 = vor.u32 %v1149_v40, %v1000_v41 }
  0x23   : > { %v1067_v47 = vor.u32 %v1165_v42, %v1064_v43 }
  0x25   : > { %558 = vmatpush.bf16.msra.mxu0 %v1168_v12  ;;  %1284 = vmatpush.bf16.msra.mxu2 %v1168_v12  ;;  %v982_v12 = vld [vmem:[%s1429_s22 + $0x50] sm:$0xf] }
  0x26   : > { %647 = vmatpush.bf16.msra.mxu1 %v1176_v13  ;;  %1292 = vmatpush.bf16.msra.mxu3 %v1176_v13  ;;  %v1146_v13 = vld [vmem:[%s1429_s22 + $0x54] sm:$0xf0] }
  0x27   : > { %v983_v20 = vor.u32 %v1146_v13, %v982_v12 }
  0x29   : > { %559 = vmatpush.bf16.msra.mxu0 %v1167_v14  ;;  %1285 = vmatpush.bf16.msra.mxu2 %v1167_v14  ;;  %v1046_v14 = vld [vmem:[%s1429_s22 + $0xd0] sm:$0xf] }
  0x2a   : > { %648 = vmatpush.bf16.msra.mxu1 %v1175_v15  ;;  %1293 = vmatpush.bf16.msra.mxu3 %v1175_v15  ;;  %v1162_v15 = vld [vmem:[%s1429_s22 + $0xd4] sm:$0xf0] }
  0x2b   : > { %v1047_v21 = vor.u32 %v1162_v15, %v1046_v14 }
  0x2c   : > { %560 = vmatmul.bf16.vlgmr.msra.gmra.mxu0 %v943_v24  ;;  %600 = vmatmul.bf16.vlgmr.msra.gmra.mxu2 %v1007_v25  ;;  %v990_v24 = vld [vmem:[%s1429_s22 + $0x60] sm:$0xf]  ;;  %v1148_v25 = vld [vmem:[%s1429_s22 + $0x64] sm:$0xf0] }
  0x2d   : > { %649 = vmatmul.bf16.vlgmr.msra.gmra.mxu1 %v947_v26  ;;  %689 = vmatmul.bf16.vlgmr.msra.gmra.mxu3 %v1011_v27  ;;  %v1054_v26 = vld [vmem:[%s1429_s22 + $0xe0] sm:$0xf]  ;;  %v1164_v27 = vld [vmem:[%s1429_s22 + $0xe4] sm:$0xf0]  ;;  %v991_v32 = vor.u32 %v1148_v25, %v990_v24 }
  0x2e   : > { %v1055_v33 = vor.u32 %v1164_v27, %v1054_v26 }
  0x3c   : > { %565 = vmatmul.bf16.gmra.mxu0 %v951_v36  ;;  %605 = vmatmul.bf16.gmra.mxu2 %v1015_v37  ;;  %v998_v36 = vld [vmem:[%s1429_s22 + $0x70] sm:$0xf]  ;;  %v1150_v37 = vld [vmem:[%s1429_s22 + $0x74] sm:$0xf0] }
  0x3d   : > { %654 = vmatmul.bf16.gmra.mxu1 %v955_v38  ;;  %694 = vmatmul.bf16.gmra.mxu3 %v1019_v39  ;;  %v1062_v38 = vld [vmem:[%s1429_s22 + $0xf0] sm:$0xf]  ;;  %v1166_v39 = vld [vmem:[%s1429_s22 + $0xf4] sm:$0xf0]  ;;  %v999_v44 = vor.u32 %v1150_v37, %v998_v36 }
  0x3e   : > { %v1063_v45 = vor.u32 %v1166_v39, %v1062_v38 }
  0x4c   : > { %570 = vmatmul.bf16.gmra.mxu0 %v959_v48  ;;  %610 = vmatmul.bf16.gmra.mxu2 %v1023_v49  ;;  %v1507_v49 = vld [vmem:[%s1574_s2] ss:$0 sm:$0xff] }
  0x4d   : > { %659 = vmatmul.bf16.gmra.mxu1 %v963_v50  ;;  %699 = vmatmul.bf16.gmra.mxu3 %v1027_v51 }
  0x5c   : > { %575 = vmatmul.bf16.gmra.mxu0 %v967_v60  ;;  %615 = vmatmul.bf16.gmra.mxu2 %v1031_v61 }
  0x5d   : > { %664 = vmatmul.bf16.gmra.mxu1 %v971_v62  ;;  %704 = vmatmul.bf16.gmra.mxu3 %v1035_v63 }
  0x6c   : > { %580 = vmatmul.bf16.gmra.mxu0 %v975_v8  ;;  %620 = vmatmul.bf16.gmra.mxu2 %v1039_v9 }
  0x6d   : > { %669 = vmatmul.bf16.gmra.mxu1 %v979_v10  ;;  %709 = vmatmul.bf16.gmra.mxu3 %v1043_v11 }
  0x7c   : > { %585 = vmatmul.bf16.gmra.mxu0 %v983_v20  ;;  %625 = vmatmul.bf16.gmra.mxu2 %v1047_v21 }
  0x7d   : > { %674 = vmatmul.bf16.gmra.mxu1 %v987_v22  ;;  %714 = vmatmul.bf16.gmra.mxu3 %v1051_v23 }
  0x8c   : > { %590 = vmatmul.bf16.gmra.mxu0 %v991_v32  ;;  %630 = vmatmul.bf16.gmra.mxu2 %v1055_v33 }
  0x8d   : > { %679 = vmatmul.bf16.gmra.mxu1 %v995_v34  ;;  %719 = vmatmul.bf16.gmra.mxu3 %v1059_v35 }
  0x9c   : > { %595 = vmatmul.bf16.gmra.mxu0 %v999_v44  ;;  %635 = vmatmul.bf16.gmra.mxu2 %v1063_v45 }
  0x9d   : > { %684 = vmatmul.bf16.gmra.mxu1 %v1003_v46  ;;  %724 = vmatmul.bf16.gmra.mxu3 %v1067_v47 }
  0xa9   : > { %v561_v48 = vpop.f32.mrf.mxu0 }
  0xaa   : > { %v650_v50 = vpop.f32.mrf.mxu1  ;;  %v562_v51 = vadd.f32 %v1507_v49, %v561_v48 }
  0xac   : > { %v651_v55 = vadd.f32 %v650_v50, %v562_v51 }
  0xae   : > { %v730_v60 = vmax.f32 %v651_v55, 0.0 }
  0xaf   : > { %v601_v52 = vpop.f32.mrf.mxu2 }
  0xb0   : > { %v690_v53 = vpop.f32.mrf.mxu3  ;;  %v602_v58 = vadd.f32 %v1507_v49, %v601_v52 }
  0xb1   : > { %v563_v54 = vpop.f32.mrf.mxu0 }
  0xb2   : > { %v564_v56 = vadd.f32 %v1507_v49, %v563_v54  ;;  %v652_v57 = vpop.f32.mrf.mxu1  ;;  %v691_v63 = vadd.f32 %v690_v53, %v602_v58 }
  0xb4   : > { %v653_v59 = vadd.f32 %v652_v57, %v564_v56  ;;  %v746_v6 = vmax.f32 %v691_v63, 0.0 }
  0xb6   : > { %v731_v61 = vmax.f32 %v653_v59, 0.0 }
  0xb7   : > { %v603_v62 = vpop.f32.mrf.mxu2 }
  0xb8   : > { %v1186_v0 = vpack.c.bf16 %v731_v61, %v730_v60  ;;  %v604_v1 = vadd.f32 %v1507_v49, %v603_v62  ;;  %v692_v2 = vpop.f32.mrf.mxu3 }
  0xb9   : > { %v566_v3 = vpop.f32.mrf.mxu0 }
  0xba   : > { %1187 = vst [vmem:[%s1516_s8] sm:$0xff] %v1186_v0   ;;  %v693_v4 = vadd.f32 %v692_v2, %v604_v1  ;;  %v655_v5 = vpop.f32.mrf.mxu1  ;;  %v567_v9 = vadd.f32 %v1507_v49, %v566_v3 }
  0xbc   : > { %v747_v7 = vmax.f32 %v693_v4, 0.0  ;;  %v656_v13 = vadd.f32 %v655_v5, %v567_v9 }
  0xbe   : > { %v1226_v8 = vpack.c.bf16 %v747_v7, %v746_v6  ;;  %v732_v18 = vmax.f32 %v656_v13, 0.0 }
  0xbf   : > { %v606_v10 = vpop.f32.mrf.mxu2 }
  0xc0   : > { %1270 = vst [vmem:[%s1516_s8 + $0x40] sm:$0xff] %v1226_v8   ;;  %v695_v11 = vpop.f32.mrf.mxu3  ;;  %v607_v16 = vadd.f32 %v1507_v49, %v606_v10 }
  0xc1   : > { %v568_v12 = vpop.f32.mrf.mxu0 }
  0xc2   : > { %v569_v14 = vadd.f32 %v1507_v49, %v568_v12  ;;  %v657_v15 = vpop.f32.mrf.mxu1  ;;  %v696_v21 = vadd.f32 %v695_v11, %v607_v16 }
  0xc4   : > { %v658_v17 = vadd.f32 %v657_v15, %v569_v14  ;;  %v748_v28 = vmax.f32 %v696_v21, 0.0 }
  0xc6   : > { %v733_v19 = vmax.f32 %v658_v17, 0.0 }
  0xc7   : > { %v608_v20 = vpop.f32.mrf.mxu2 }
  0xc8   : > { %v1191_v22 = vpack.c.bf16 %v733_v19, %v732_v18  ;;  %v609_v23 = vadd.f32 %v1507_v49, %v608_v20  ;;  %v697_v24 = vpop.f32.mrf.mxu3 }
  0xc9   : > { %v571_v25 = vpop.f32.mrf.mxu0 }
  0xca   : > { %1263 = vst [vmem:[%s1516_s8 + $0x8] sm:$0xff] %v1191_v22   ;;  %v698_v26 = vadd.f32 %v697_v24, %v609_v23  ;;  %v660_v27 = vpop.f32.mrf.mxu1  ;;  %v572_v31 = vadd.f32 %v1507_v49, %v571_v25 }
  0xcc   : > { %v749_v29 = vmax.f32 %v698_v26, 0.0  ;;  %v661_v35 = vadd.f32 %v660_v27, %v572_v31 }
  0xce   : > { %v1231_v30 = vpack.c.bf16 %v749_v29, %v748_v28  ;;  %v734_v40 = vmax.f32 %v661_v35, 0.0 }
  0xcf   : > { %v611_v32 = vpop.f32.mrf.mxu2 }
  0xd0   : > { %1271 = vst [vmem:[%s1516_s8 + $0x48] sm:$0xff] %v1231_v30   ;;  %v700_v33 = vpop.f32.mrf.mxu3  ;;  %v612_v38 = vadd.f32 %v1507_v49, %v611_v32 }
  0xd1   : > { %v573_v34 = vpop.f32.mrf.mxu0 }
  0xd2   : > { %v574_v36 = vadd.f32 %v1507_v49, %v573_v34  ;;  %v662_v37 = vpop.f32.mrf.mxu1  ;;  %v701_v43 = vadd.f32 %v700_v33, %v612_v38 }
  0xd4   : > { %v663_v39 = vadd.f32 %v662_v37, %v574_v36  ;;  %v750_v51 = vmax.f32 %v701_v43, 0.0 }
  0xd6   : > { %v735_v41 = vmax.f32 %v663_v39, 0.0 }
  0xd7   : > { %v613_v42 = vpop.f32.mrf.mxu2 }
  0xd8   : > { %v1196_v44 = vpack.c.bf16 %v735_v41, %v734_v40  ;;  %v614_v45 = vadd.f32 %v1507_v49, %v613_v42  ;;  %v702_v46 = vpop.f32.mrf.mxu3 }
  0xd9   : > { %v576_v47 = vpop.f32.mrf.mxu0 }
  0xda   : > { %1264 = vst [vmem:[%s1516_s8 + $0x10] sm:$0xff] %v1196_v44   ;;  %v703_v48 = vadd.f32 %v702_v46, %v614_v45  ;;  %v665_v50 = vpop.f32.mrf.mxu1  ;;  %v577_v54 = vadd.f32 %v1507_v49, %v576_v47 }
  0xdc   : > { %v751_v52 = vmax.f32 %v703_v48, 0.0  ;;  %v666_v58 = vadd.f32 %v665_v50, %v577_v54 }
  0xde   : > { %v1236_v53 = vpack.c.bf16 %v751_v52, %v750_v51  ;;  %v736_v63 = vmax.f32 %v666_v58, 0.0 }
  0xdf   : > { %v616_v55 = vpop.f32.mrf.mxu2 }
  0xe0   : > { %1272 = vst [vmem:[%s1516_s8 + $0x50] sm:$0xff] %v1236_v53   ;;  %v705_v56 = vpop.f32.mrf.mxu3  ;;  %v617_v61 = vadd.f32 %v1507_v49, %v616_v55 }
  0xe1   : > { %v578_v57 = vpop.f32.mrf.mxu0 }
  0xe2   : > { %v579_v59 = vadd.f32 %v1507_v49, %v578_v57  ;;  %v667_v60 = vpop.f32.mrf.mxu1  ;;  %v706_v2 = vadd.f32 %v705_v56, %v617_v61 }
  0xe4   : > { %v668_v62 = vadd.f32 %v667_v60, %v579_v59  ;;  %v752_v9 = vmax.f32 %v706_v2, 0.0 }
  0xe6   : > { %v737_v0 = vmax.f32 %v668_v62, 0.0 }
  0xe7   : > { %v618_v1 = vpop.f32.mrf.mxu2 }
  0xe8   : > { %v1201_v3 = vpack.c.bf16 %v737_v0, %v736_v63  ;;  %v619_v4 = vadd.f32 %v1507_v49, %v618_v1  ;;  %v707_v5 = vpop.f32.mrf.mxu3 }
  0xe9   : > { %v581_v6 = vpop.f32.mrf.mxu0 }
  0xea   : > { %1265 = vst [vmem:[%s1516_s8 + $0x18] sm:$0xff] %v1201_v3   ;;  %v708_v7 = vadd.f32 %v707_v5, %v619_v4  ;;  %v670_v8 = vpop.f32.mrf.mxu1  ;;  %v582_v12 = vadd.f32 %v1507_v49, %v581_v6 }
  0xec   : > { %v753_v10 = vmax.f32 %v708_v7, 0.0  ;;  %v671_v16 = vadd.f32 %v670_v8, %v582_v12 }
  0xee   : > { %v1241_v11 = vpack.c.bf16 %v753_v10, %v752_v9  ;;  %v738_v21 = vmax.f32 %v671_v16, 0.0 }
  0xef   : > { %v621_v13 = vpop.f32.mrf.mxu2 }
  0xf0   : > { %1273 = vst [vmem:[%s1516_s8 + $0x58] sm:$0xff] %v1241_v11   ;;  %v710_v14 = vpop.f32.mrf.mxu3  ;;  %v622_v19 = vadd.f32 %v1507_v49, %v621_v13 }
  0xf1   : > { %v583_v15 = vpop.f32.mrf.mxu0 }
  0xf2   : > { %v584_v17 = vadd.f32 %v1507_v49, %v583_v15  ;;  %v672_v18 = vpop.f32.mrf.mxu1  ;;  %v711_v24 = vadd.f32 %v710_v14, %v622_v19 }
  0xf4   : > { %v673_v20 = vadd.f32 %v672_v18, %v584_v17  ;;  %v754_v31 = vmax.f32 %v711_v24, 0.0 }
  0xf6   : > { %v739_v22 = vmax.f32 %v673_v20, 0.0 }
  0xf7   : > { %v623_v23 = vpop.f32.mrf.mxu2 }
  0xf8   : > { %v1206_v25 = vpack.c.bf16 %v739_v22, %v738_v21  ;;  %v624_v26 = vadd.f32 %v1507_v49, %v623_v23  ;;  %v712_v27 = vpop.f32.mrf.mxu3 }
  0xf9   : > { %v586_v28 = vpop.f32.mrf.mxu0 }
  0xfa   : > { %1266 = vst [vmem:[%s1516_s8 + $0x20] sm:$0xff] %v1206_v25   ;;  %v713_v29 = vadd.f32 %v712_v27, %v624_v26  ;;  %v675_v30 = vpop.f32.mrf.mxu1  ;;  %v587_v34 = vadd.f32 %v1507_v49, %v586_v28 }
  0xfc   : > { %v755_v32 = vmax.f32 %v713_v29, 0.0  ;;  %v676_v38 = vadd.f32 %v675_v30, %v587_v34 }
  0xfe   : > { %v1246_v33 = vpack.c.bf16 %v755_v32, %v754_v31  ;;  %v740_v43 = vmax.f32 %v676_v38, 0.0 }
  0xff   : > { %v626_v35 = vpop.f32.mrf.mxu2 }
 0x100   : > { %1274 = vst [vmem:[%s1516_s8 + $0x60] sm:$0xff] %v1246_v33   ;;  %v715_v36 = vpop.f32.mrf.mxu3  ;;  %v627_v41 = vadd.f32 %v1507_v49, %v626_v35 }
 0x101   : > { %v588_v37 = vpop.f32.mrf.mxu0 }
 0x102   : > { %v589_v39 = vadd.f32 %v1507_v49, %v588_v37  ;;  %v677_v40 = vpop.f32.mrf.mxu1  ;;  %v716_v46 = vadd.f32 %v715_v36, %v627_v41 }
 0x104   : > { %v678_v42 = vadd.f32 %v677_v40, %v589_v39  ;;  %v756_v54 = vmax.f32 %v716_v46, 0.0 }
 0x106   : > { %v741_v44 = vmax.f32 %v678_v42, 0.0 }
 0x107   : > { %v628_v45 = vpop.f32.mrf.mxu2 }
 0x108   : > { %v1211_v47 = vpack.c.bf16 %v741_v44, %v740_v43  ;;  %v629_v48 = vadd.f32 %v1507_v49, %v628_v45  ;;  %v717_v50 = vpop.f32.mrf.mxu3 }
 0x109   : > { %v591_v51 = vpop.f32.mrf.mxu0 }
 0x10a   : > { %1267 = vst [vmem:[%s1516_s8 + $0x28] sm:$0xff] %v1211_v47   ;;  %v718_v52 = vadd.f32 %v717_v50, %v629_v48  ;;  %v680_v53 = vpop.f32.mrf.mxu1  ;;  %v592_v57 = vadd.f32 %v1507_v49, %v591_v51 }
 0x10c   : > { %v757_v55 = vmax.f32 %v718_v52, 0.0  ;;  %v681_v61 = vadd.f32 %v680_v53, %v592_v57 }
 0x10e   : > { %v1251_v56 = vpack.c.bf16 %v757_v55, %v756_v54  ;;  %v742_v2 = vmax.f32 %v681_v61, 0.0 }
 0x10f   : > { %v631_v58 = vpop.f32.mrf.mxu2 }
 0x110   : > { %1275 = vst [vmem:[%s1516_s8 + $0x68] sm:$0xff] %v1251_v56   ;;  %v720_v59 = vpop.f32.mrf.mxu3  ;;  %v632_v0 = vadd.f32 %v1507_v49, %v631_v58 }
 0x111   : > { %v593_v60 = vpop.f32.mrf.mxu0 }
 0x112   : > { %v594_v62 = vadd.f32 %v1507_v49, %v593_v60  ;;  %v682_v63 = vpop.f32.mrf.mxu1  ;;  %v721_v5 = vadd.f32 %v720_v59, %v632_v0 }
 0x114   : > { %v683_v1 = vadd.f32 %v682_v63, %v594_v62  ;;  %v758_v12 = vmax.f32 %v721_v5, 0.0 }
 0x116   : > { %v743_v3 = vmax.f32 %v683_v1, 0.0 }
 0x117   : > { %v633_v4 = vpop.f32.mrf.mxu2 }
 0x118   : > { %v1216_v6 = vpack.c.bf16 %v743_v3, %v742_v2  ;;  %v634_v7 = vadd.f32 %v1507_v49, %v633_v4  ;;  %v722_v8 = vpop.f32.mrf.mxu3 }
 0x119   : > { %v596_v9 = vpop.f32.mrf.mxu0 }
 0x11a   : > { %1268 = vst [vmem:[%s1516_s8 + $0x30] sm:$0xff] %v1216_v6   ;;  %v723_v10 = vadd.f32 %v722_v8, %v634_v7  ;;  %v685_v11 = vpop.f32.mrf.mxu1  ;;  %v597_v15 = vadd.f32 %v1507_v49, %v596_v9 }
 0x11c   : > { %v759_v13 = vmax.f32 %v723_v10, 0.0  ;;  %v686_v19 = vadd.f32 %v685_v11, %v597_v15 }
 0x11e   : > { %v1256_v14 = vpack.c.bf16 %v759_v13, %v758_v12  ;;  %v744_v24 = vmax.f32 %v686_v19, 0.0 }
 0x11f   : > { %v636_v16 = vpop.f32.mrf.mxu2 }
 0x120   : > { %1276 = vst [vmem:[%s1516_s8 + $0x70] sm:$0xff] %v1256_v14   ;;  %v725_v17 = vpop.f32.mrf.mxu3  ;;  %v637_v22 = vadd.f32 %v1507_v49, %v636_v16 }
 0x121   : > { %v598_v18 = vpop.f32.mrf.mxu0 }
 0x122   : > { %v599_v20 = vadd.f32 %v1507_v49, %v598_v18  ;;  %v687_v21 = vpop.f32.mrf.mxu1  ;;  %v726_v27 = vadd.f32 %v725_v17, %v637_v22 }
 0x124   : > { %v688_v23 = vadd.f32 %v687_v21, %v599_v20  ;;  %v760_v32 = vmax.f32 %v726_v27, 0.0 }
 0x126   : > { %v745_v25 = vmax.f32 %v688_v23, 0.0 }
 0x127   : > { %v638_v26 = vpop.f32.mrf.mxu2 }
 0x128   : > { %v1221_v28 = vpack.c.bf16 %v745_v25, %v744_v24  ;;  %v639_v29 = vadd.f32 %v1507_v49, %v638_v26  ;;  %v727_v30 = vpop.f32.mrf.mxu3 }
 0x12a   : > { %1269 = vst [vmem:[%s1516_s8 + $0x38] sm:$0xff] %v1221_v28   ;;  %v728_v31 = vadd.f32 %v727_v30, %v639_v29 }
 0x12c   : > { %v761_v33 = vmax.f32 %v728_v31, 0.0 }
 0x12e   : > { %v1261_v34 = vpack.c.bf16 %v761_v33, %v760_v32 }
 0x130   : > { %1277 = vst [vmem:[%s1516_s8 + $0x78] sm:$0xff] %v1261_v34  }
 0x131 PF: > { %s13_s14 = sadd.s32 1, %s1341_s14   ;;  %s1576_s12 = smov %s1337_s13 }
 0x132   : > { %p10_p5 = scmp.ge.s32.totalorder %s13_s14, 4   ;;  %s1577_s13 = smov %s1579_s15 }
 0x134   :  { %12 = sbr.rel (!%p10_p5) target bundleno = 2 (0x2), region = 68 }

// kernel: dueling_dqn_forward.6
= control target key start
LH: loop header
LB: loop body
LE: loop exit
PB: predicated region body
PF: predicated region fallthrough
CT: control target
= control target key end

     0   :  { %s3955_s1 = inlined_call_operand.vmem [shape: bf16[2048,128], index: 1, kind: input, shape index: {}]   ;;  %s3956_s2 = inlined_call_operand.vmem [shape: f32[1,128], index: 2, kind: input, shape index: {}]   ;;  %s3957_s0 = inlined_call_operand.vmem [shape: bf16[72,2048], index: 0, kind: input, shape index: {}]   ;;  %s3958_s3 = inlined_call_operand.vmem [shape: bf16[72,128], index: 3, kind: output, shape index: {}]  }
   0x1   :  { %v2888_v0 = vld [vmem:[%s3955_s1 + $0x38] sm:$0xff]  ;;  %v2887_v4 = vld [vmem:[%s3955_s1 + $0x30] sm:$0xff]  ;;  %v2886_v8 = vld [vmem:[%s3955_s1 + $0x28] sm:$0xff] }
   0x2   :  { %v2896_v1 = vld [vmem:[%s3955_s1 + $0x78] sm:$0xff]  ;;  %1490 = vmatpush.bf16.msra.mxu0 %v2888_v0  ;;  %v2895_v5 = vld [vmem:[%s3955_s1 + $0x70] sm:$0xff]  ;;  %v2894_v9 = vld [vmem:[%s3955_s1 + $0x68] sm:$0xff] }
   0x3   :  { %v2904_v2 = vld [vmem:[%s3955_s1 + $0xb8] sm:$0xff]  ;;  %1523 = vmatpush.bf16.msra.mxu1 %v2896_v1  ;;  %v2903_v6 = vld [vmem:[%s3955_s1 + $0xb0] sm:$0xff]  ;;  %v2902_v10 = vld [vmem:[%s3955_s1 + $0xa8] sm:$0xff] }
   0x4   :  { %v2912_v3 = vld [vmem:[%s3955_s1 + $0xf8] sm:$0xff]  ;;  %1556 = vmatpush.bf16.msra.mxu2 %v2904_v2  ;;  %v2911_v7 = vld [vmem:[%s3955_s1 + $0xf0] sm:$0xff]  ;;  %v2910_v11 = vld [vmem:[%s3955_s1 + $0xe8] sm:$0xff] }
   0x5   :  { %1589 = vmatpush.bf16.msra.mxu3 %v2912_v3  ;;  %v2885_v12 = vld [vmem:[%s3955_s1 + $0x20] sm:$0xff]  ;;  %v2884_v16 = vld [vmem:[%s3955_s1 + $0x18] sm:$0xff]  ;;  %v2883_v20 = vld [vmem:[%s3955_s1 + $0x10] sm:$0xff] }
   0x6   :  { %1491 = vmatpush.bf16.msra.mxu0 %v2887_v4  ;;  %v2893_v13 = vld [vmem:[%s3955_s1 + $0x60] sm:$0xff]  ;;  %v2892_v17 = vld [vmem:[%s3955_s1 + $0x58] sm:$0xff]  ;;  %v2891_v21 = vld [vmem:[%s3955_s1 + $0x50] sm:$0xff] }
   0x7   :  { %1524 = vmatpush.bf16.msra.mxu1 %v2895_v5  ;;  %v2901_v14 = vld [vmem:[%s3955_s1 + $0xa0] sm:$0xff]  ;;  %v2900_v18 = vld [vmem:[%s3955_s1 + $0x98] sm:$0xff]  ;;  %v2899_v22 = vld [vmem:[%s3955_s1 + $0x90] sm:$0xff] }
   0x8   :  { %1557 = vmatpush.bf16.msra.mxu2 %v2903_v6  ;;  %v2909_v15 = vld [vmem:[%s3955_s1 + $0xe0] sm:$0xff]  ;;  %v2908_v19 = vld [vmem:[%s3955_s1 + $0xd8] sm:$0xff]  ;;  %v2907_v23 = vld [vmem:[%s3955_s1 + $0xd0] sm:$0xff] }
   0x9   :  { %1590 = vmatpush.bf16.msra.mxu3 %v2911_v7  ;;  %v2882_v24 = vld [vmem:[%s3955_s1 + $0x8] sm:$0xff]  ;;  %v2881_v28 = vld [vmem:[%s3955_s1] sm:$0xff]  ;;  %v2936_v40 = vld [vmem:[%s3955_s1 + $0x1b8] sm:$0xff] }
   0xa   :  { %1492 = vmatpush.bf16.msra.mxu0 %v2886_v8  ;;  %v2890_v25 = vld [vmem:[%s3955_s1 + $0x48] sm:$0xff]  ;;  %v2889_v29 = vld [vmem:[%s3955_s1 + $0x40] sm:$0xff]  ;;  %v2944_v41 = vld [vmem:[%s3955_s1 + $0x1f8] sm:$0xff] }
   0xb   :  { %1525 = vmatpush.bf16.msra.mxu1 %v2894_v9  ;;  %v2898_v26 = vld [vmem:[%s3955_s1 + $0x88] sm:$0xff]  ;;  %v2897_v30 = vld [vmem:[%s3955_s1 + $0x80] sm:$0xff]  ;;  %v2920_v46 = vld [vmem:[%s3955_s1 + $0x138] sm:$0xff] }
   0xc   :  { %1558 = vmatpush.bf16.msra.mxu2 %v2902_v10  ;;  %v2906_v27 = vld [vmem:[%s3955_s1 + $0xc8] sm:$0xff]  ;;  %v2905_v31 = vld [vmem:[%s3955_s1 + $0xc0] sm:$0xff]  ;;  %v2928_v47 = vld [vmem:[%s3955_s1 + $0x178] sm:$0xff] }
   0xd   :  { %1591 = vmatpush.bf16.msra.mxu3 %v2910_v11  ;;  %v2051_v32 = vld [vmem:[%s3957_s0] sm:$0xf]  ;;  %v2817_v34 = vld [vmem:[%s3957_s0 + $0x4] sm:$0xf]  ;;  %v2059_v36 = vld [vmem:[%s3957_s0 + $0x8] sm:$0xf] }
   0xe   :  { %1493 = vmatpush.bf16.msra.mxu0 %v2885_v12  ;;  %v2825_v33 = vld [vmem:[%s3957_s0 + $0x3c] sm:$0xf0]  ;;  %v2053_v35 = vld [vmem:[%s3957_s0 + $0x40] sm:$0xf0]  ;;  %v2826_v37 = vld [vmem:[%s3957_s0 + $0x44] sm:$0xf0] }
   0xf   :  { %1526 = vmatpush.bf16.msra.mxu1 %v2893_v13  ;;  %v2818_v38 = vld [vmem:[%s3957_s0 + $0xc] sm:$0xf]  ;;  %v2052_v42 = vor.u32 %v2825_v33, %v2051_v32  ;;  %v2056_v43 = vor.u32 %v2817_v34, %v2053_v35  ;;  %v2060_v44 = vor.u32 %v2826_v37, %v2059_v36  ;;  %v2935_v48 = vld [vmem:[%s3955_s1 + $0x1b0] sm:$0xff]  ;;  %v2115_v56 = vld [vmem:[%s3957_s0 + $0x80] sm:$0xf] }
  0x10   :  { %1559 = vmatpush.bf16.msra.mxu2 %v2901_v14  ;;  %v2061_v39 = vld [vmem:[%s3957_s0 + $0x48] sm:$0xf0]  ;;  %v2943_v49 = vld [vmem:[%s3955_s1 + $0x1f0] sm:$0xff]  ;;  %v2933_v57 = vld [vmem:[%s3955_s1 + $0x1a0] sm:$0xff] }
  0x11   :  { %1592 = vmatpush.bf16.msra.mxu3 %v2909_v15  ;;  %v2064_v45 = vor.u32 %v2818_v38, %v2061_v39  ;;  %v2919_v50 = vld [vmem:[%s3955_s1 + $0x130] sm:$0xff]  ;;  %v2934_v52 = vld [vmem:[%s3955_s1 + $0x1a8] sm:$0xff]  ;;  %v2941_v58 = vld [vmem:[%s3955_s1 + $0x1e0] sm:$0xff] }
  0x12   :  { %1494 = vmatpush.bf16.msra.mxu0 %v2884_v16  ;;  %v2927_v51 = vld [vmem:[%s3955_s1 + $0x170] sm:$0xff]  ;;  %v2942_v53 = vld [vmem:[%s3955_s1 + $0x1e8] sm:$0xff]  ;;  %v2841_v59 = vld [vmem:[%s3957_s0 + $0xbc] sm:$0xf0] }
  0x13   :  { %1527 = vmatpush.bf16.msra.mxu1 %v2892_v17  ;;  %v2918_v54 = vld [vmem:[%s3955_s1 + $0x128] sm:$0xff]  ;;  %v2833_v60 = vld [vmem:[%s3957_s0 + $0x84] sm:$0xf]  ;;  %v2932_v4 = vld [vmem:[%s3955_s1 + $0x198] sm:$0xff]  ;;  %v2116_v6 = vor.u32 %v2841_v59, %v2115_v56 }
  0x14   :  { %1560 = vmatpush.bf16.msra.mxu2 %v2900_v18  ;;  %v2926_v55 = vld [vmem:[%s3955_s1 + $0x168] sm:$0xff]  ;;  %v2117_v61 = vld [vmem:[%s3957_s0 + $0xc0] sm:$0xf0]  ;;  %v2940_v5 = vld [vmem:[%s3955_s1 + $0x1d8] sm:$0xff] }
  0x15   :  { %1593 = vmatpush.bf16.msra.mxu3 %v2908_v19  ;;  %v2123_v62 = vld [vmem:[%s3957_s0 + $0x88] sm:$0xf]  ;;  %v2834_v0 = vld [vmem:[%s3957_s0 + $0x8c] sm:$0xf]  ;;  %v2917_v2 = vld [vmem:[%s3955_s1 + $0x120] sm:$0xff]  ;;  %v2120_v7 = vor.u32 %v2833_v60, %v2117_v61 }
  0x16   :  { %1495 = vmatpush.bf16.msra.mxu0 %v2883_v20  ;;  %v2842_v63 = vld [vmem:[%s3957_s0 + $0xc4] sm:$0xf0]  ;;  %v2125_v1 = vld [vmem:[%s3957_s0 + $0xc8] sm:$0xf0]  ;;  %v2925_v3 = vld [vmem:[%s3955_s1 + $0x160] sm:$0xff] }
  0x17   :  { %1528 = vmatpush.bf16.msra.mxu1 %v2891_v21  ;;  %v2124_v8 = vor.u32 %v2842_v63, %v2123_v62  ;;  %v2128_v9 = vor.u32 %v2834_v0, %v2125_v1  ;;  %v2916_v10 = vld [vmem:[%s3955_s1 + $0x118] sm:$0xff]  ;;  %v2931_v12 = vld [vmem:[%s3955_s1 + $0x190] sm:$0xff]  ;;  %v2930_v16 = vld [vmem:[%s3955_s1 + $0x188] sm:$0xff] }
  0x18   :  { %1561 = vmatpush.bf16.msra.mxu2 %v2899_v22  ;;  %v2924_v11 = vld [vmem:[%s3955_s1 + $0x158] sm:$0xff]  ;;  %v2939_v13 = vld [vmem:[%s3955_s1 + $0x1d0] sm:$0xff]  ;;  %v2938_v17 = vld [vmem:[%s3955_s1 + $0x1c8] sm:$0xff] }
  0x19   :  { %1594 = vmatpush.bf16.msra.mxu3 %v2907_v23  ;;  %v2915_v14 = vld [vmem:[%s3955_s1 + $0x110] sm:$0xff]  ;;  %v2914_v18 = vld [vmem:[%s3955_s1 + $0x108] sm:$0xff]  ;;  %v2179_v19 = vld [vmem:[%s3957_s0 + $0x100] sm:$0xf] }
  0x1a   :  { %1496 = vmatpush.bf16.msra.mxu0 %v2882_v24  ;;  %v2923_v15 = vld [vmem:[%s3955_s1 + $0x150] sm:$0xff]  ;;  %v2857_v20 = vld [vmem:[%s3957_s0 + $0x13c] sm:$0xf0]  ;;  %v2849_v21 = vld [vmem:[%s3957_s0 + $0x104] sm:$0xf] }
  0x1b   :  { %1529 = vmatpush.bf16.msra.mxu1 %v2890_v25  ;;  %v2181_v22 = vld [vmem:[%s3957_s0 + $0x140] sm:$0xf0]  ;;  %v2187_v23 = vld [vmem:[%s3957_s0 + $0x108] sm:$0xf]  ;;  %v2850_v25 = vld [vmem:[%s3957_s0 + $0x10c] sm:$0xf] }
  0x1c   :  { %1562 = vmatpush.bf16.msra.mxu2 %v2898_v26  ;;  %v2858_v24 = vld [vmem:[%s3957_s0 + $0x144] sm:$0xf0]  ;;  %v2189_v26 = vld [vmem:[%s3957_s0 + $0x148] sm:$0xf0]  ;;  %v2929_v32 = vld [vmem:[%s3955_s1 + $0x180] sm:$0xff] }
  0x1d   :  { %1595 = vmatpush.bf16.msra.mxu3 %v2906_v27  ;;  %v2180_v27 = vor.u32 %v2857_v20, %v2179_v19  ;;  %v2937_v33 = vld [vmem:[%s3955_s1 + $0x1c0] sm:$0xff] }
  0x1e   :  { %1497 = vmatpush.bf16.msra.mxu0 %v2881_v28  ;;  %v2184_v28 = vor.u32 %v2849_v21, %v2181_v22  ;;  %v2913_v34 = vld [vmem:[%s3955_s1 + $0x100] sm:$0xff]  ;;  %v2964_v22 = vld [vmem:[%s3955_s1 + $0x298] sm:$0xff] }
  0x1f   :  { %1530 = vmatpush.bf16.msra.mxu1 %v2889_v29  ;;  %v2188_v29 = vor.u32 %v2858_v24, %v2187_v23  ;;  %v2921_v35 = vld [vmem:[%s3955_s1 + $0x140] sm:$0xff]  ;;  %v2972_v23 = vld [vmem:[%s3955_s1 + $0x2d8] sm:$0xff] }
  0x20   :  { %1563 = vmatpush.bf16.msra.mxu2 %v2897_v30  ;;  %v2192_v30 = vor.u32 %v2850_v25, %v2189_v26  ;;  %v2243_v36 = vld [vmem:[%s3957_s0 + $0x180] sm:$0xf]  ;;  %v2865_v38 = vld [vmem:[%s3957_s0 + $0x184] sm:$0xf]  ;;  %v2948_v24 = vld [vmem:[%s3955_s1 + $0x218] sm:$0xff] }
  0x21   :  { %1596 = vmatpush.bf16.msra.mxu3 %v2905_v31  ;;  %1498 = vmatmul.bf16.vlgmr.msra.gmra.mxu0 %v2052_v42  ;;  %v2922_v31 = vld [vmem:[%s3955_s1 + $0x148] sm:$0xff]  ;;  %v2873_v37 = vld [vmem:[%s3957_s0 + $0x1bc] sm:$0xf0]  ;;  %v2245_v39 = vld [vmem:[%s3957_s0 + $0x1c0] sm:$0xf0] }
  0x22   :  { %1531 = vmatmul.bf16.vlgmr.msra.gmra.mxu1 %v2056_v43  ;;  %1622 = vmatpush.bf16.msrb.mxu0 %v2920_v46  ;;  %v2866_v42 = vld [vmem:[%s3957_s0 + $0x18c] sm:$0xf]  ;;  %v78_v56 = vld [vmem:[%s3957_s0 + $0x200] sm:$0xff]  ;;  %v2956_v25 = vld [vmem:[%s3955_s1 + $0x258] sm:$0xff] }
  0x23   :  { %1564 = vmatmul.bf16.vlgmr.msra.gmra.mxu2 %v2060_v44  ;;  %1655 = vmatpush.bf16.msrb.mxu1 %v2928_v47  ;;  %v2253_v43 = vld [vmem:[%s3957_s0 + $0x1c8] sm:$0xf0]  ;;  %v2244_v44 = vor.u32 %v2873_v37, %v2243_v36  ;;  %v547_v59 = vunpack.c.h.b16 %v78_v56  ;;  %v2949_v20 = vld [vmem:[%s3955_s1 + $0x220] sm:$0xff]  ;;  %v2131_v26 = vld [vmem:[%s3957_s0 + $0x90] sm:$0xf] }
  0x24   :  { %1688 = vmatpush.bf16.msrb.mxu2 %v2936_v40  ;;  %1597 = vmatmul.bf16.vlgmr.msra.gmra.mxu3 %v2064_v45  ;;  %v2251_v40 = vld [vmem:[%s3957_s0 + $0x188] sm:$0xf]  ;;  %v2248_v45 = vor.u32 %v2865_v38, %v2245_v39  ;;  %v2256_v47 = vor.u32 %v2866_v42, %v2253_v43  ;;  %v2957_v21 = vld [vmem:[%s3955_s1 + $0x260] sm:$0xff]  ;;  %v2963_v38 = vld [vmem:[%s3955_s1 + $0x290] sm:$0xff] }
  0x25   :  { %1721 = vmatpush.bf16.msrb.mxu3 %v2944_v41  ;;  %v2874_v41 = vld [vmem:[%s3957_s0 + $0x1c4] sm:$0xf0]  ;;  %v627_v63 = vpack.c.b16 %v547_v59, %v547_v59  ;;  %v2971_v39 = vld [vmem:[%s3955_s1 + $0x2d0] sm:$0xff] }
  0x26   :  { %1623 = vmatpush.bf16.msrb.mxu0 %v2919_v50  ;;  %v2252_v46 = vor.u32 %v2874_v41, %v2251_v40  ;;  %v2952_v50 = vld [vmem:[%s3955_s1 + $0x238] sm:$0xff]  ;;  %v2947_v40 = vld [vmem:[%s3955_s1 + $0x210] sm:$0xff] }
  0x27   :  { %1656 = vmatpush.bf16.msrb.mxu1 %v2927_v51  ;;  %v2960_v51 = vld [vmem:[%s3955_s1 + $0x278] sm:$0xff]  ;;  %v2195_v41 = vld [vmem:[%s3957_s0 + $0x110] sm:$0xf] }
  0x28   :  { %1689 = vmatpush.bf16.msrb.mxu2 %v2935_v48  ;;  %v2968_v48 = vld [vmem:[%s3955_s1 + $0x2b8] sm:$0xff]  ;;  %v2859_v42 = vld [vmem:[%s3957_s0 + $0x14c] sm:$0xf0] }
  0x29   :  { %1722 = vmatpush.bf16.msrb.mxu3 %v2943_v49  ;;  %v2976_v49 = vld [vmem:[%s3955_s1 + $0x2f8] sm:$0xff]  ;;  %v2955_v43 = vld [vmem:[%s3955_s1 + $0x250] sm:$0xff] }
  0x2a   :  { %1624 = vmatpush.bf16.msrb.mxu0 %v2918_v54  ;;  %v2951_v54 = vld [vmem:[%s3955_s1 + $0x230] sm:$0xff] }
  0x2b   :  { %1657 = vmatpush.bf16.msrb.mxu1 %v2926_v55  ;;  %v2959_v55 = vld [vmem:[%s3955_s1 + $0x270] sm:$0xff] }
  0x2c   :  { %1690 = vmatpush.bf16.msrb.mxu2 %v2934_v52  ;;  %v2967_v52 = vld [vmem:[%s3955_s1 + $0x2b0] sm:$0xff] }
  0x2d   :  { %1723 = vmatpush.bf16.msrb.mxu3 %v2942_v53  ;;  %v2975_v53 = vld [vmem:[%s3955_s1 + $0x2f0] sm:$0xff] }
  0x2e   :  { %1625 = vmatpush.bf16.msrb.mxu0 %v2917_v2  ;;  %v2966_v2 = vld [vmem:[%s3955_s1 + $0x2a8] sm:$0xff]  ;;  %v2875_v59 = vld [vmem:[%s3957_s0 + $0x1cc] sm:$0xf0] }
  0x2f   :  { %1658 = vmatpush.bf16.msrb.mxu1 %v2925_v3  ;;  %v2974_v3 = vld [vmem:[%s3955_s1 + $0x2e8] sm:$0xff] }
  0x30   :  { %1691 = vmatpush.bf16.msrb.mxu2 %v2933_v57  ;;  %v79_v57 = vld [vmem:[%s3957_s0 + $0x208] sm:$0xff] }
  0x31   :  { %1724 = vmatpush.bf16.msrb.mxu3 %v2941_v58  ;;  %1503 = vmatmul.bf16.gmra.mxu0 %v2116_v6  ;;  %v546_v58 = vunpack.c.l.b16 %v78_v56  ;;  %v548_v60 = vunpack.c.l.b16 %v79_v57  ;;  %v549_v61 = vunpack.c.h.b16 %v79_v57  ;;  %v2965_v6 = vld [vmem:[%s3955_s1 + $0x2a0] sm:$0xff]  ;;  %v2946_v56 = vld [vmem:[%s3955_s1 + $0x208] sm:$0xff] }
  0x32   :  { %1536 = vmatmul.bf16.gmra.mxu1 %v2120_v7  ;;  %1626 = vmatpush.bf16.msrb.mxu0 %v2916_v10  ;;  %v2973_v7 = vld [vmem:[%s3955_s1 + $0x2e0] sm:$0xff]  ;;  %v2819_v10 = vld [vmem:[%s3957_s0 + $0x14] sm:$0xf]  ;;  %v2954_v57 = vld [vmem:[%s3955_s1 + $0x248] sm:$0xff] }
  0x33   :  { %1569 = vmatmul.bf16.gmra.mxu2 %v2124_v8  ;;  %1659 = vmatpush.bf16.msrb.mxu1 %v2924_v11  ;;  %v626_v62 = vpack.c.b16 %v546_v58, %v546_v58  ;;  %v628_v0 = vpack.c.b16 %v548_v60, %v548_v60  ;;  %v629_v1 = vpack.c.b16 %v549_v61, %v549_v61  ;;  %v2067_v8 = vld [vmem:[%s3957_s0 + $0x10] sm:$0xf]  ;;  %v2069_v11 = vld [vmem:[%s3957_s0 + $0x50] sm:$0xf0]  ;;  %v3515_v61 = vld [vmem:[%s3956_s2] ss:$0 sm:$0xff] }
  0x34   :  { %1692 = vmatpush.bf16.msrb.mxu2 %v2932_v4  ;;  %1602 = vmatmul.bf16.gmra.mxu3 %v2128_v9  ;;  %v2950_v4 = vld [vmem:[%s3955_s1 + $0x228] sm:$0xff]  ;;  %v2827_v9 = vld [vmem:[%s3957_s0 + $0x4c] sm:$0xf0]  ;;  %v2867_v60 = vld [vmem:[%s3957_s0 + $0x194] sm:$0xf] }
  0x35   :  { %1725 = vmatpush.bf16.msrb.mxu3 %v2940_v5  ;;  %v2958_v5 = vld [vmem:[%s3955_s1 + $0x268] sm:$0xff]  ;;  %v2259_v58 = vld [vmem:[%s3957_s0 + $0x190] sm:$0xf] }
  0x36   :  { %1627 = vmatpush.bf16.msrb.mxu0 %v2915_v14  ;;  %v2820_v14 = vld [vmem:[%s3957_s0 + $0x1c] sm:$0xf] }
  0x37   :  { %1660 = vmatpush.bf16.msrb.mxu1 %v2923_v15  ;;  %v2077_v15 = vld [vmem:[%s3957_s0 + $0x58] sm:$0xf0] }
  0x38   :  { %1693 = vmatpush.bf16.msrb.mxu2 %v2931_v12  ;;  %v2075_v12 = vld [vmem:[%s3957_s0 + $0x18] sm:$0xf]  ;;  %v2080_v19 = vor.u32 %v2820_v14, %v2077_v15 }
  0x39   :  { %1726 = vmatpush.bf16.msrb.mxu3 %v2939_v13  ;;  %v2828_v13 = vld [vmem:[%s3957_s0 + $0x54] sm:$0xf0] }
  0x3a   :  { %1628 = vmatpush.bf16.msrb.mxu0 %v2914_v18  ;;  %v2076_v18 = vor.u32 %v2828_v13, %v2075_v12  ;;  %v3000_v15 = vld [vmem:[%s3955_s1 + $0x3b8] sm:$0xff] }
  0x3b   :  { %1661 = vmatpush.bf16.msrb.mxu1 %v2922_v31  ;;  %v2844_v31 = vld [vmem:[%s3957_s0 + $0xd4] sm:$0xf0] }
  0x3c   :  { %1694 = vmatpush.bf16.msrb.mxu2 %v2930_v16  ;;  %v2068_v16 = vor.u32 %v2827_v9, %v2067_v8 }
  0x3d   :  { %1727 = vmatpush.bf16.msrb.mxu3 %v2938_v17  ;;  %v2072_v17 = vor.u32 %v2819_v10, %v2069_v11 }
  0x3e   :  { %1629 = vmatpush.bf16.msrb.mxu0 %v2913_v34 }
  0x3f   :  { %1662 = vmatpush.bf16.msrb.mxu1 %v2921_v35 }
  0x40   :  { %1695 = vmatpush.bf16.msrb.mxu2 %v2929_v32  ;;  %v2836_v32 = vld [vmem:[%s3957_s0 + $0x9c] sm:$0xf] }
  0x41   :  { %1508 = vmatmul.bf16.gmra.mxu0 %v2180_v27  ;;  %1728 = vmatpush.bf16.msrb.mxu3 %v2937_v33  ;;  %v2843_v27 = vld [vmem:[%s3957_s0 + $0xcc] sm:$0xf0]  ;;  %v2141_v33 = vld [vmem:[%s3957_s0 + $0xd8] sm:$0xf0] }
  0x42   :  { %1541 = vmatmul.bf16.gmra.mxu1 %v2184_v28  ;;  %1754 = vmatpush.bf16.msra.mxu0 %v2952_v50  ;;  %v2835_v28 = vld [vmem:[%s3957_s0 + $0x94] sm:$0xf]  ;;  %v2132_v34 = vor.u32 %v2843_v27, %v2131_v26  ;;  %v2144_v37 = vor.u32 %v2836_v32, %v2141_v33  ;;  %v2196_v50 = vor.u32 %v2859_v42, %v2195_v41  ;;  %v2992_v27 = vld [vmem:[%s3955_s1 + $0x378] sm:$0xff] }
  0x43   :  { %1574 = vmatmul.bf16.gmra.mxu2 %v2188_v29  ;;  %1787 = vmatpush.bf16.msra.mxu1 %v2960_v51  ;;  %v2133_v29 = vld [vmem:[%s3957_s0 + $0xd0] sm:$0xf0] }
  0x44   :  { %1607 = vmatmul.bf16.gmra.mxu3 %v2192_v30  ;;  %1820 = vmatpush.bf16.msra.mxu2 %v2968_v48  ;;  %v2139_v30 = vld [vmem:[%s3957_s0 + $0x98] sm:$0xf]  ;;  %v2136_v35 = vor.u32 %v2835_v28, %v2133_v29  ;;  %v2852_v48 = vld [vmem:[%s3957_s0 + $0x11c] sm:$0xf] }
  0x45   :  { %1853 = vmatpush.bf16.msra.mxu3 %v2976_v49  ;;  %v2140_v36 = vor.u32 %v2844_v31, %v2139_v30  ;;  %v2205_v49 = vld [vmem:[%s3957_s0 + $0x158] sm:$0xf0]  ;;  %v2999_v31 = vld [vmem:[%s3955_s1 + $0x3b0] sm:$0xff] }
  0x46   :  { %1755 = vmatpush.bf16.msra.mxu0 %v2951_v54  ;;  %v2962_v54 = vld [vmem:[%s3955_s1 + $0x288] sm:$0xff] }
  0x47   :  { %1788 = vmatpush.bf16.msra.mxu1 %v2959_v55  ;;  %v2970_v55 = vld [vmem:[%s3955_s1 + $0x2c8] sm:$0xff] }
  0x48   :  { %1821 = vmatpush.bf16.msra.mxu2 %v2967_v52 }
  0x49   :  { %1854 = vmatpush.bf16.msra.mxu3 %v2975_v53  ;;  %v2208_v53 = vor.u32 %v2852_v48, %v2205_v49  ;;  %v2991_v48 = vld [vmem:[%s3955_s1 + $0x370] sm:$0xff] }
  0x4a   :  { %1756 = vmatpush.bf16.msra.mxu0 %v2950_v4  ;;  %v2876_v4 = vld [vmem:[%s3957_s0 + $0x1d4] sm:$0xf0] }
  0x4b   :  { %1789 = vmatpush.bf16.msra.mxu1 %v2958_v5  ;;  %v2868_v5 = vld [vmem:[%s3957_s0 + $0x19c] sm:$0xf] }
  0x4c   :  { %1822 = vmatpush.bf16.msra.mxu2 %v2966_v2  ;;  %v2267_v2 = vld [vmem:[%s3957_s0 + $0x198] sm:$0xf] }
  0x4d   :  { %1855 = vmatpush.bf16.msra.mxu3 %v2974_v3  ;;  %v2953_v3 = vld [vmem:[%s3955_s1 + $0x240] sm:$0xff]  ;;  %v2268_v11 = vor.u32 %v2876_v4, %v2267_v2  ;;  %v2091_v2 = vld [vmem:[%s3957_s0 + $0x28] sm:$0xf]  ;;  %v2822_v4 = vld [vmem:[%s3957_s0 + $0x2c] sm:$0xf] }
  0x4e   :  { %1757 = vmatpush.bf16.msra.mxu0 %v2949_v20 }
  0x4f   :  { %1790 = vmatpush.bf16.msra.mxu1 %v2957_v21 }
  0x50   :  { %1823 = vmatpush.bf16.msra.mxu2 %v2965_v6  ;;  %v2269_v6 = vld [vmem:[%s3957_s0 + $0x1d8] sm:$0xf0] }
  0x51   :  { %1513 = vmatmul.bf16.gmra.mxu0 %v2244_v44  ;;  %1856 = vmatpush.bf16.msra.mxu3 %v2973_v7  ;;  %v2851_v44 = vld [vmem:[%s3957_s0 + $0x114] sm:$0xf]  ;;  %v2260_v7 = vor.u32 %v2875_v59, %v2259_v58  ;;  %v2272_v12 = vor.u32 %v2868_v5, %v2269_v6  ;;  %v2998_v58 = vld [vmem:[%s3955_s1 + $0x3a8] sm:$0xff] }
  0x52   :  { %1546 = vmatmul.bf16.gmra.mxu1 %v2248_v45  ;;  %1758 = vmatpush.bf16.msra.mxu0 %v2948_v24  ;;  %v2197_v45 = vld [vmem:[%s3957_s0 + $0x150] sm:$0xf0]  ;;  %v2093_v5 = vld [vmem:[%s3957_s0 + $0x68] sm:$0xf0] }
  0x53   :  { %1579 = vmatmul.bf16.gmra.mxu2 %v2252_v46  ;;  %1791 = vmatpush.bf16.msra.mxu1 %v2956_v25  ;;  %v2203_v46 = vld [vmem:[%s3957_s0 + $0x118] sm:$0xf]  ;;  %v2200_v51 = vor.u32 %v2851_v44, %v2197_v45  ;;  %v3007_v45 = vld [vmem:[%s3955_s1 + $0x3f0] sm:$0xff] }
  0x54   :  { %1612 = vmatmul.bf16.gmra.mxu3 %v2256_v47  ;;  %1824 = vmatpush.bf16.msra.mxu2 %v2964_v22  ;;  %v2860_v47 = vld [vmem:[%s3957_s0 + $0x154] sm:$0xf0] }
  0x55   :  { %1857 = vmatpush.bf16.msra.mxu3 %v2972_v23  ;;  %v2204_v52 = vor.u32 %v2860_v47, %v2203_v46  ;;  %v80_v23 = vld [vmem:[%s3957_s0 + $0x210] sm:$0xff]  ;;  %v81_v25 = vld [vmem:[%s3957_s0 + $0x218] sm:$0xff] }
  0x56   :  { %1759 = vmatpush.bf16.msra.mxu0 %v2947_v40  ;;  %v550_v29 = vunpack.c.l.b16 %v80_v23  ;;  %v551_v30 = vunpack.c.h.b16 %v80_v23  ;;  %v552_v32 = vunpack.c.l.b16 %v81_v25  ;;  %v553_v33 = vunpack.c.h.b16 %v81_v25  ;;  %v2983_v46 = vld [vmem:[%s3955_s1 + $0x330] sm:$0xff] }
  0x57   :  { %1792 = vmatpush.bf16.msra.mxu1 %v2955_v43 }
  0x58   :  { %1825 = vmatpush.bf16.msra.mxu2 %v2963_v38  ;;  %v632_v41 = vpack.c.b16 %v552_v32, %v552_v32  ;;  %v633_v42 = vpack.c.b16 %v553_v33, %v553_v33  ;;  %v2980_v32 = vld [vmem:[%s3955_s1 + $0x318] sm:$0xff] }
  0x59   :  { %1858 = vmatpush.bf16.msra.mxu3 %v2971_v39 }
  0x5a   :  { %1760 = vmatpush.bf16.msra.mxu0 %v2946_v56  ;;  %v2083_v56 = vld [vmem:[%s3957_s0 + $0x20] sm:$0xf] }
  0x5b   :  { %1793 = vmatpush.bf16.msra.mxu1 %v2954_v57  ;;  %v2829_v57 = vld [vmem:[%s3957_s0 + $0x5c] sm:$0xf0] }
  0x5c   :  { %1826 = vmatpush.bf16.msra.mxu2 %v2962_v54 }
  0x5d   :  { %1859 = vmatpush.bf16.msra.mxu3 %v2970_v55 }
  0x5f   :  { %1794 = vmatpush.bf16.msra.mxu1 %v2953_v3  ;;  %v2830_v3 = vld [vmem:[%s3957_s0 + $0x64] sm:$0xf0] }
  0x61   :  { %1518 = vmatmul.bf16.gmra.mxu0 %v626_v62  ;;  %v2961_v62 = vld [vmem:[%s3955_s1 + $0x280] sm:$0xff] }
  0x62   :  { %1551 = vmatmul.bf16.gmra.mxu1 %v627_v63  ;;  %v2969_v63 = vld [vmem:[%s3955_s1 + $0x2c0] sm:$0xff]  ;;  %1827 = vmatpush.bf16.msra.mxu2 %v2961_v62  ;;  %v2982_v62 = vld [vmem:[%s3955_s1 + $0x328] sm:$0xff] }
  0x63   :  { %1584 = vmatmul.bf16.gmra.mxu2 %v628_v0  ;;  %v2945_v0 = vld [vmem:[%s3955_s1 + $0x200] sm:$0xff]  ;;  %1860 = vmatpush.bf16.msra.mxu3 %v2969_v63  ;;  %v2990_v63 = vld [vmem:[%s3955_s1 + $0x368] sm:$0xff] }
  0x64   :  { %1617 = vmatmul.bf16.gmra.mxu3 %v629_v1  ;;  %v2261_v1 = vld [vmem:[%s3957_s0 + $0x1d0] sm:$0xf0]  ;;  %1761 = vmatpush.bf16.msra.mxu0 %v2945_v0  ;;  %v2821_v0 = vld [vmem:[%s3957_s0 + $0x24] sm:$0xf] }
  0x65   :  { %v2264_v8 = vor.u32 %v2867_v60, %v2261_v1  ;;  %v3006_v60 = vld [vmem:[%s3955_s1 + $0x3e8] sm:$0xff]  ;;  %v2085_v1 = vld [vmem:[%s3957_s0 + $0x60] sm:$0xf0] }
  0x71   :  { %1630 = vmatmul.bf16.vlgmr.msrb.gmra.mxu0 %v2068_v16  ;;  %v3008_v16 = vld [vmem:[%s3955_s1 + $0x3f8] sm:$0xff] }
  0x72   :  { %1663 = vmatmul.bf16.vlgmr.msrb.gmra.mxu1 %v2072_v17  ;;  %v2984_v17 = vld [vmem:[%s3955_s1 + $0x338] sm:$0xff] }
  0x73   :  { %1696 = vmatmul.bf16.vlgmr.msrb.gmra.mxu2 %v2076_v18  ;;  %1886 = vmatpush.bf16.msrb.mxu0 %v2984_v17 }
  0x74   :  { %1729 = vmatmul.bf16.vlgmr.msrb.gmra.mxu3 %v2080_v19  ;;  %1952 = vmatpush.bf16.msrb.mxu2 %v3000_v15 }
  0x75   :  { %1985 = vmatpush.bf16.msrb.mxu3 %v3008_v16  ;;  %1919 = vmatpush.bf16.msrb.mxu1 %v2992_v27 }
  0x77   :  { %1887 = vmatpush.bf16.msrb.mxu0 %v2983_v46 }
  0x78   :  { %1953 = vmatpush.bf16.msrb.mxu2 %v2999_v31  ;;  %v3004_v31 = vld [vmem:[%s3955_s1 + $0x3d8] sm:$0xff] }
  0x79   :  { %1986 = vmatpush.bf16.msrb.mxu3 %v3007_v45  ;;  %1920 = vmatpush.bf16.msrb.mxu1 %v2991_v48 }
  0x7b   :  { %1888 = vmatpush.bf16.msrb.mxu0 %v2982_v62 }
  0x7c   :  { %1954 = vmatpush.bf16.msrb.mxu2 %v2998_v58 }
  0x7d   :  { %1987 = vmatpush.bf16.msrb.mxu3 %v3006_v60  ;;  %1921 = vmatpush.bf16.msrb.mxu1 %v2990_v63 }
  0x81   :  { %1635 = vmatmul.bf16.gmra.mxu0 %v2132_v34 }
  0x82   :  { %1668 = vmatmul.bf16.gmra.mxu1 %v2136_v35 }
  0x83   :  { %1701 = vmatmul.bf16.gmra.mxu2 %v2140_v36  ;;  %v630_v36 = vpack.c.b16 %v550_v29, %v550_v29 }
  0x84   :  { %1734 = vmatmul.bf16.gmra.mxu3 %v2144_v37  ;;  %v631_v37 = vpack.c.b16 %v551_v30, %v551_v30  ;;  %v2996_v30 = vld [vmem:[%s3955_s1 + $0x398] sm:$0xff] }
  0x91   :  { %1640 = vmatmul.bf16.gmra.mxu0 %v2196_v50 }
  0x92   :  { %1673 = vmatmul.bf16.gmra.mxu1 %v2200_v51 }
  0x93   :  { %1706 = vmatmul.bf16.gmra.mxu2 %v2204_v52 }
  0x94   :  { %1739 = vmatmul.bf16.gmra.mxu3 %v2208_v53 }
  0x9e   :  { %v1499_v9 = vpop.f32.mrf.mxu0 }
  0x9f   :  { %v1532_v10 = vpop.f32.mrf.mxu1  ;;  %v1500_v13 = vadd.f32 %v3515_v61, %v1499_v9  ;;  %v2088_v9 = vor.u32 %v2821_v0, %v2085_v1 }
  0xa1   :  { %v1533_v14 = vadd.f32 %v1532_v10, %v1500_v13  ;;  %1645 = vmatmul.bf16.gmra.mxu0 %v2260_v7  ;;  %v2092_v13 = vor.u32 %v2830_v3, %v2091_v2  ;;  %v3003_v2 = vld [vmem:[%s3955_s1 + $0x3d0] sm:$0xff] }
  0xa2   :  { %1678 = vmatmul.bf16.gmra.mxu1 %v2264_v8  ;;  %v2084_v8 = vor.u32 %v2829_v57, %v2083_v56  ;;  %v2995_v57 = vld [vmem:[%s3955_s1 + $0x390] sm:$0xff] }
  0xa3   :  { %1711 = vmatmul.bf16.gmra.mxu2 %v2268_v11  ;;  %v2979_v3 = vld [vmem:[%s3955_s1 + $0x310] sm:$0xff] }
  0xa4   :  { %1744 = vmatmul.bf16.gmra.mxu3 %v2272_v12 }
  0xa6   :  { %v1565_v18 = vpop.f32.mrf.mxu2  ;;  %v1501_v21 = vpop.f32.mrf.mxu0 }
  0xa7   :  { %v1598_v19 = vpop.f32.mrf.mxu3  ;;  %v1566_v20 = vadd.f32 %v1565_v18, %v1533_v14  ;;  %v1534_v22 = vpop.f32.mrf.mxu1  ;;  %v1502_v24 = vadd.f32 %v3515_v61, %v1501_v21  ;;  %v2096_v14 = vor.u32 %v2822_v4, %v2093_v5  ;;  %v2997_v18 = vld [vmem:[%s3955_s1 + $0x3a0] sm:$0xff] }
  0xa8   :  { %v2989_v21 = vld [vmem:[%s3955_s1 + $0x360] sm:$0xff]  ;;  %1955 = vmatpush.bf16.msrb.mxu2 %v2997_v18 }
  0xa9   :  { %v3561_v26 = vadd.f32 %v1598_v19, %v1566_v20  ;;  %v1535_v28 = vadd.f32 %v1534_v22, %v1502_v24  ;;  %v3005_v19 = vld [vmem:[%s3955_s1 + $0x3e0] sm:$0xff]  ;;  %1922 = vmatpush.bf16.msrb.mxu1 %v2989_v21 }
  0xaa   :  { %v2981_v20 = vld [vmem:[%s3955_s1 + $0x320] sm:$0xff]  ;;  %1988 = vmatpush.bf16.msrb.mxu3 %v3005_v19 }
  0xab   :  { %1889 = vmatpush.bf16.msrb.mxu0 %v2981_v20  ;;  %v2211_v5 = vld [vmem:[%s3957_s0 + $0x120] sm:$0xf] }
  0xac   :  { %1956 = vmatpush.bf16.msrb.mxu2 %v2996_v30  ;;  %v3002_v30 = vld [vmem:[%s3955_s1 + $0x3c8] sm:$0xff] }
  0xae   :  { %v1567_v34 = vpop.f32.mrf.mxu2  ;;  %v1504_v39 = vpop.f32.mrf.mxu0  ;;  %1989 = vmatpush.bf16.msrb.mxu3 %v3004_v31  ;;  %v2978_v31 = vld [vmem:[%s3955_s1 + $0x308] sm:$0xff] }
  0xaf   :  { %v1600_v35 = vpop.f32.mrf.mxu3  ;;  %v1568_v38 = vadd.f32 %v1567_v34, %v1535_v28  ;;  %v1537_v40 = vpop.f32.mrf.mxu1  ;;  %v1505_v43 = vadd.f32 %v3515_v61, %v1504_v39  ;;  %v2147_v34 = vld [vmem:[%s3957_s0 + $0xa0] sm:$0xf]  ;;  %v2846_v39 = vld [vmem:[%s3957_s0 + $0xe4] sm:$0xf0]  ;;  %1890 = vmatpush.bf16.msrb.mxu0 %v2980_v32 }
  0xb0   :  { %1957 = vmatpush.bf16.msrb.mxu2 %v2995_v57 }
  0xb1   :  { %v3570_v44 = vadd.f32 %v1600_v35, %v1568_v38  ;;  %v1538_v47 = vadd.f32 %v1537_v40, %v1505_v43  ;;  %1650 = vmatmul.bf16.gmra.mxu0 %v630_v36  ;;  %v2845_v35 = vld [vmem:[%s3957_s0 + $0xdc] sm:$0xf0]  ;;  %v2837_v36 = vld [vmem:[%s3957_s0 + $0xa4] sm:$0xf]  ;;  %v2155_v38 = vld [vmem:[%s3957_s0 + $0xa8] sm:$0xf] }
  0xb2   :  { %1683 = vmatmul.bf16.gmra.mxu1 %v631_v37  ;;  %v2149_v37 = vld [vmem:[%s3957_s0 + $0xe0] sm:$0xf0]  ;;  %v2838_v40 = vld [vmem:[%s3957_s0 + $0xac] sm:$0xf]  ;;  %v2148_v45 = vor.u32 %v2845_v35, %v2147_v34  ;;  %1990 = vmatpush.bf16.msrb.mxu3 %v3003_v2 }
  0xb3   :  { %1716 = vmatmul.bf16.gmra.mxu2 %v632_v41  ;;  %v2157_v41 = vld [vmem:[%s3957_s0 + $0xe8] sm:$0xf0]  ;;  %v2152_v46 = vor.u32 %v2837_v36, %v2149_v37  ;;  %1891 = vmatpush.bf16.msrb.mxu0 %v2979_v3 }
  0xb4   :  { %1749 = vmatmul.bf16.gmra.mxu3 %v633_v42 }
  0xb6   :  { %v1570_v49 = vpop.f32.mrf.mxu2  ;;  %v1506_v52 = vpop.f32.mrf.mxu0  ;;  %1991 = vmatpush.bf16.msrb.mxu3 %v3002_v30 }
  0xb7   :  { %v1603_v50 = vpop.f32.mrf.mxu3  ;;  %v1571_v51 = vadd.f32 %v1570_v49, %v1538_v47  ;;  %v1539_v53 = vpop.f32.mrf.mxu1  ;;  %v1507_v54 = vadd.f32 %v3515_v61, %v1506_v52  ;;  %v2988_v47 = vld [vmem:[%s3955_s1 + $0x358] sm:$0xff]  ;;  %v2160_v52 = vor.u32 %v2838_v40, %v2157_v41  ;;  %1892 = vmatpush.bf16.msrb.mxu0 %v2978_v31  ;;  %v2869_v40 = vld [vmem:[%s3957_s0 + $0x1a4] sm:$0xf] }
  0xb8   :  { %1923 = vmatpush.bf16.msrb.mxu1 %v2988_v47  ;;  %v2993_v41 = vld [vmem:[%s3955_s1 + $0x380] sm:$0xff] }
  0xb9   :  { %v3582_v55 = vadd.f32 %v1603_v50, %v1571_v51  ;;  %v1540_v59 = vadd.f32 %v1539_v53, %v1507_v54  ;;  %v2156_v51 = vor.u32 %v2846_v39, %v2155_v38  ;;  %v2275_v38 = vld [vmem:[%s3957_s0 + $0x1a0] sm:$0xf] }
  0xba   :  { %v2877_v39 = vld [vmem:[%s3957_s0 + $0x1dc] sm:$0xf0] }
  0xbb   :  { %v2985_v47 = vld [vmem:[%s3955_s1 + $0x340] sm:$0xff] }
  0xbe   :  { %v1572_v6 = vpop.f32.mrf.mxu2  ;;  %v1509_v11 = vpop.f32.mrf.mxu0 }
  0xbf   :  { %v1605_v7 = vpop.f32.mrf.mxu3  ;;  %v1573_v10 = vadd.f32 %v1572_v6, %v1540_v59  ;;  %v1542_v12 = vpop.f32.mrf.mxu1  ;;  %v1510_v15 = vadd.f32 %v3515_v61, %v1509_v11  ;;  %v2861_v6 = vld [vmem:[%s3957_s0 + $0x15c] sm:$0xf0]  ;;  %v2862_v11 = vld [vmem:[%s3957_s0 + $0x164] sm:$0xf0] }
  0xc1   :  { %v3621_v16 = vadd.f32 %v1605_v7, %v1573_v10  ;;  %v1543_v17 = vadd.f32 %v1542_v12, %v1510_v15  ;;  %1762 = vmatmul.bf16.vlgmr.msra.gmra.mxu0 %v2084_v8  ;;  %v2987_v7 = vld [vmem:[%s3955_s1 + $0x350] sm:$0xff]  ;;  %v2853_v8 = vld [vmem:[%s3957_s0 + $0x124] sm:$0xf]  ;;  %v2219_v10 = vld [vmem:[%s3957_s0 + $0x128] sm:$0xf] }
  0xc2   :  { %1795 = vmatmul.bf16.vlgmr.msra.gmra.mxu1 %v2088_v9  ;;  %v2213_v9 = vld [vmem:[%s3957_s0 + $0x160] sm:$0xf0]  ;;  %v2854_v12 = vld [vmem:[%s3957_s0 + $0x12c] sm:$0xf] }
  0xc3   :  { %1828 = vmatmul.bf16.vlgmr.msra.gmra.mxu2 %v2092_v13  ;;  %v2221_v13 = vld [vmem:[%s3957_s0 + $0x168] sm:$0xf0]  ;;  %1924 = vmatpush.bf16.msrb.mxu1 %v2987_v7  ;;  %v2216_v18 = vor.u32 %v2853_v8, %v2213_v9 }
  0xc4   :  { %1861 = vmatmul.bf16.vlgmr.msra.gmra.mxu3 %v2096_v14 }
  0xc6   :  { %v1575_v22 = vpop.f32.mrf.mxu2  ;;  %v1511_v25 = vpop.f32.mrf.mxu0 }
  0xc7   :  { %v1608_v23 = vpop.f32.mrf.mxu3  ;;  %v1576_v24 = vadd.f32 %v1575_v22, %v1543_v17  ;;  %v1544_v27 = vpop.f32.mrf.mxu1  ;;  %v1512_v28 = vadd.f32 %v3515_v61, %v1511_v25  ;;  %v2212_v17 = vor.u32 %v2861_v6, %v2211_v5  ;;  %v2220_v22 = vor.u32 %v2862_v11, %v2219_v10  ;;  %v82_v6 = vld [vmem:[%s3957_s0 + $0x220] sm:$0xff] }
  0xc8   :  { %v554_v10 = vunpack.c.l.b16 %v82_v6  ;;  %v555_v11 = vunpack.c.h.b16 %v82_v6  ;;  %v2165_v6 = vld [vmem:[%s3957_s0 + $0xf0] sm:$0xf0] }
  0xc9   :  { %v3636_v29 = vadd.f32 %v1608_v23, %v1576_v24  ;;  %v1545_v33 = vadd.f32 %v1544_v27, %v1512_v28  ;;  %v2224_v23 = vor.u32 %v2854_v12, %v2221_v13  ;;  %v2994_v27 = vld [vmem:[%s3955_s1 + $0x388] sm:$0xff] }
  0xca   :  { %1958 = vmatpush.bf16.msrb.mxu2 %v2994_v27 }
  0xce   :  { %v1577_v42 = vpop.f32.mrf.mxu2  ;;  %v1514_v49 = vpop.f32.mrf.mxu0  ;;  %1959 = vmatpush.bf16.msrb.mxu2 %v2993_v41  ;;  %v2824_v41 = vld [vmem:[%s3957_s0 + $0x3c] sm:$0xf] }
  0xcf   :  { %v1610_v43 = vpop.f32.mrf.mxu3  ;;  %v1578_v48 = vadd.f32 %v1577_v42, %v1545_v33  ;;  %v1547_v50 = vpop.f32.mrf.mxu1  ;;  %v1515_v53 = vadd.f32 %v3515_v61, %v1514_v49  ;;  %v3001_v42 = vld [vmem:[%s3955_s1 + $0x3c0] sm:$0xff]  ;;  %v2870_v49 = vld [vmem:[%s3957_s0 + $0x1ac] sm:$0xf] }
  0xd0   :  { %1992 = vmatpush.bf16.msrb.mxu3 %v3001_v42  ;;  %v2109_v42 = vld [vmem:[%s3957_s0 + $0x78] sm:$0xf0] }
  0xd1   :  { %v3675_v54 = vadd.f32 %v1610_v43, %v1578_v48  ;;  %v1548_v56 = vadd.f32 %v1547_v50, %v1515_v53  ;;  %1767 = vmatmul.bf16.gmra.mxu0 %v2148_v45  ;;  %v2977_v43 = vld [vmem:[%s3955_s1 + $0x300] sm:$0xff]  ;;  %v2878_v48 = vld [vmem:[%s3957_s0 + $0x1e4] sm:$0xf0]  ;;  %v2285_v50 = vld [vmem:[%s3957_s0 + $0x1e8] sm:$0xf0]  ;;  %v2276_v53 = vor.u32 %v2877_v39, %v2275_v38 }
  0xd2   :  { %1800 = vmatmul.bf16.gmra.mxu1 %v2152_v46  ;;  %v2277_v45 = vld [vmem:[%s3957_s0 + $0x1e0] sm:$0xf0]  ;;  %v2283_v46 = vld [vmem:[%s3957_s0 + $0x1a8] sm:$0xf]  ;;  %1893 = vmatpush.bf16.msrb.mxu0 %v2977_v43  ;;  %v2823_v38 = vld [vmem:[%s3957_s0 + $0x34] sm:$0xf] }
  0xd3   :  { %1833 = vmatmul.bf16.gmra.mxu2 %v2156_v51  ;;  %v2101_v39 = vld [vmem:[%s3957_s0 + $0x70] sm:$0xf0] }
  0xd4   :  { %1866 = vmatmul.bf16.gmra.mxu3 %v2160_v52 }
  0xd6   :  { %v1580_v58 = vpop.f32.mrf.mxu2  ;;  %v1516_v62 = vpop.f32.mrf.mxu0 }
  0xd7   :  { %v1613_v59 = vpop.f32.mrf.mxu3  ;;  %v1581_v60 = vadd.f32 %v1580_v58, %v1548_v56  ;;  %v1549_v63 = vpop.f32.mrf.mxu1  ;;  %v1517_v0 = vadd.f32 %v3515_v61, %v1516_v62  ;;  %v2280_v56 = vor.u32 %v2869_v40, %v2277_v45  ;;  %v2832_v40 = vld [vmem:[%s3957_s0 + $0x74] sm:$0xf0] }
  0xd9   :  { %v3681_v1 = vadd.f32 %v1613_v59, %v1581_v60  ;;  %v1550_v4 = vadd.f32 %v1549_v63, %v1517_v0  ;;  %v2284_v59 = vor.u32 %v2878_v48, %v2283_v46  ;;  %v2288_v60 = vor.u32 %v2870_v49, %v2285_v50 }
  0xde   :  { %v1582_v14 = vpop.f32.mrf.mxu2  ;;  %v1519_v20 = vpop.f32.mrf.mxu0 }
  0xdf   :  { %v1615_v15 = vpop.f32.mrf.mxu3  ;;  %v1583_v19 = vadd.f32 %v1582_v14, %v1550_v4  ;;  %v1552_v21 = vpop.f32.mrf.mxu1  ;;  %v1520_v24 = vadd.f32 %v3515_v61, %v1519_v20  ;;  %v2986_v61 = vld [vmem:[%s3955_s1 + $0x348] sm:$0xff] }
  0xe0   :  { %1925 = vmatpush.bf16.msrb.mxu1 %v2986_v61 }
  0xe1   :  { %v3717_v25 = vadd.f32 %v1615_v15, %v1583_v19  ;;  %v1553_v28 = vadd.f32 %v1552_v21, %v1520_v24  ;;  %1772 = vmatmul.bf16.gmra.mxu0 %v2212_v17  ;;  %v634_v17 = vpack.c.b16 %v554_v10, %v554_v10 }
  0xe2   :  { %1805 = vmatmul.bf16.gmra.mxu1 %v2216_v18  ;;  %v635_v18 = vpack.c.b16 %v555_v11, %v555_v11 }
  0xe3   :  { %1838 = vmatmul.bf16.gmra.mxu2 %v2220_v22 }
  0xe4   :  { %1871 = vmatmul.bf16.gmra.mxu3 %v2224_v23  ;;  %1926 = vmatpush.bf16.msrb.mxu1 %v2985_v47  ;;  %v2104_v47 = vor.u32 %v2823_v38, %v2101_v39  ;;  %v2856_v38 = vld [vmem:[%s3957_s0 + $0x13c] sm:$0xf] }
  0xe5   :  { %v2237_v39 = vld [vmem:[%s3957_s0 + $0x178] sm:$0xf0] }
  0xe6   :  { %v1585_v32 = vpop.f32.mrf.mxu2  ;;  %v1521_v35 = vpop.f32.mrf.mxu0 }
  0xe7   :  { %v1618_v33 = vpop.f32.mrf.mxu3  ;;  %v1586_v34 = vadd.f32 %v1585_v32, %v1553_v28  ;;  %v1554_v36 = vpop.f32.mrf.mxu1 }
  0xe8   :  { %v2831_v36 = vld [vmem:[%s3957_s0 + $0x6c] sm:$0xf0] }
  0xe9   :  { %v3731_v37 = vadd.f32 %v1618_v33, %v1586_v34 }
  0xee   :  { %v1587_v51 = vpop.f32.mrf.mxu2  ;;  %v1631_v57 = vpop.f32.mrf.mxu0 }
  0xef   :  { %v1620_v52 = vpop.f32.mrf.mxu3  ;;  %v1664_v58 = vpop.f32.mrf.mxu1  ;;  %v1632_v62 = vadd.f32 %v1631_v57, %v3561_v26  ;;  %v83_v26 = vld [vmem:[%s3957_s0 + $0x228] sm:$0xff] }
  0xf0   :  { %v556_v12 = vunpack.c.l.b16 %v83_v26  ;;  %v557_v13 = vunpack.c.h.b16 %v83_v26  ;;  %v2112_v52 = vor.u32 %v2824_v41, %v2109_v42  ;;  %v2840_v26 = vld [vmem:[%s3957_s0 + $0xbc] sm:$0xf] }
  0xf1   :  { %v1665_v63 = vadd.f32 %v1664_v58, %v1632_v62  ;;  %1777 = vmatmul.bf16.gmra.mxu0 %v2276_v53 }
  0xf2   :  { %1810 = vmatmul.bf16.gmra.mxu1 %v2280_v56  ;;  %v636_v22 = vpack.c.b16 %v556_v12, %v556_v12 }
  0xf3   :  { %1843 = vmatmul.bf16.gmra.mxu2 %v2284_v59 }
  0xf4   :  { %1876 = vmatmul.bf16.gmra.mxu3 %v2288_v60 }
  0xf6   :  { %v1697_v0 = vpop.f32.mrf.mxu2  ;;  %v1633_v4 = vpop.f32.mrf.mxu0 }
  0xf7   :  { %v1730_v2 = vpop.f32.mrf.mxu3  ;;  %v1698_v3 = vadd.f32 %v1697_v0, %v1665_v63  ;;  %v1666_v5 = vpop.f32.mrf.mxu1  ;;  %v1634_v7 = vadd.f32 %v1633_v4, %v3570_v44  ;;  %v637_v44 = vpack.c.b16 %v557_v13, %v557_v13  ;;  %v2847_v4 = vld [vmem:[%s3957_s0 + $0xec] sm:$0xf0] }
  0xf9   :  { %v3777_v8 = vadd.f32 %v1730_v2, %v1698_v3  ;;  %v1667_v9 = vadd.f32 %v1666_v5, %v1634_v7  ;;  %v2839_v5 = vld [vmem:[%s3957_s0 + $0xb4] sm:$0xf]  ;;  %v2848_v7 = vld [vmem:[%s3957_s0 + $0xf4] sm:$0xf0] }
  0xfa   :  { %v2168_v13 = vor.u32 %v2839_v5, %v2165_v6  ;;  %v2301_v5 = vld [vmem:[%s3957_s0 + $0x1f8] sm:$0xf0] }
  0xfe   :  { %v1699_v14 = vpop.f32.mrf.mxu2  ;;  %v1636_v20 = vpop.f32.mrf.mxu0 }
  0xff   :  { %v1732_v15 = vpop.f32.mrf.mxu3  ;;  %v1700_v19 = vadd.f32 %v1699_v14, %v1667_v9  ;;  %v1669_v21 = vpop.f32.mrf.mxu1  ;;  %v1637_v23 = vadd.f32 %v1636_v20, %v3582_v55  ;;  %v2099_v55 = vld [vmem:[%s3957_s0 + $0x30] sm:$0xf]  ;;  %v2173_v9 = vld [vmem:[%s3957_s0 + $0xf8] sm:$0xf0] }
 0x100   :  { %v2100_v46 = vor.u32 %v2831_v36, %v2099_v55  ;;  %v2229_v55 = vld [vmem:[%s3957_s0 + $0x170] sm:$0xf0]  ;;  %v2864_v36 = vld [vmem:[%s3957_s0 + $0x174] sm:$0xf0] }
 0x101   :  { %v3780_v24 = vadd.f32 %v1732_v15, %v1700_v19  ;;  %v1670_v27 = vadd.f32 %v1669_v21, %v1637_v23  ;;  %1782 = vmatmul.bf16.gmra.mxu0 %v634_v17  ;;  %v2176_v19 = vor.u32 %v2840_v26, %v2173_v9 }
 0x102   :  { %1815 = vmatmul.bf16.gmra.mxu1 %v635_v18 }
 0x103   :  { %1848 = vmatmul.bf16.gmra.mxu2 %v636_v22 }
 0x104   :  { %1881 = vmatmul.bf16.gmra.mxu3 %v637_v44 }
 0x106   :  { %v1702_v28 = vpop.f32.mrf.mxu2  ;;  %v1638_v61 = vpop.f32.mrf.mxu0 }
 0x107   :  { %v1735_v30 = vpop.f32.mrf.mxu3  ;;  %v1703_v31 = vadd.f32 %v1702_v28, %v1670_v27  ;;  %v1671_v32 = vpop.f32.mrf.mxu1  ;;  %v1639_v33 = vadd.f32 %v1638_v61, %v3621_v16  ;;  %v2107_v16 = vld [vmem:[%s3957_s0 + $0x38] sm:$0xf] }
 0x108   :  { %v2108_v51 = vor.u32 %v2832_v40, %v2107_v16 }
 0x109   :  { %v3783_v34 = vadd.f32 %v1735_v30, %v1703_v31  ;;  %v1672_v35 = vadd.f32 %v1671_v32, %v1639_v33  ;;  %v2863_v33 = vld [vmem:[%s3957_s0 + $0x16c] sm:$0xf0] }
 0x10e   :  { %v1704_v43 = vpop.f32.mrf.mxu2  ;;  %v1641_v49 = vpop.f32.mrf.mxu0 }
 0x10f   :  { %v1737_v45 = vpop.f32.mrf.mxu3  ;;  %v1705_v48 = vadd.f32 %v1704_v43, %v1672_v35  ;;  %v1674_v50 = vpop.f32.mrf.mxu1  ;;  %v1642_v53 = vadd.f32 %v1641_v49, %v3636_v29  ;;  %v2163_v29 = vld [vmem:[%s3957_s0 + $0xb0] sm:$0xf]  ;;  %v2855_v35 = vld [vmem:[%s3957_s0 + $0x134] sm:$0xf] }
 0x110   :  { %v2164_v12 = vor.u32 %v2847_v4, %v2163_v29  ;;  %v2232_v42 = vor.u32 %v2855_v35, %v2229_v55  ;;  %v2880_v29 = vld [vmem:[%s3957_s0 + $0x1f4] sm:$0xf0]  ;;  %v2872_v4 = vld [vmem:[%s3957_s0 + $0x1bc] sm:$0xf] }
 0x111   :  { %v3810_v56 = vadd.f32 %v1737_v45, %v1705_v48  ;;  %v1675_v57 = vadd.f32 %v1674_v50, %v1642_v53  ;;  %1894 = vmatmul.bf16.vlgmr.msrb.gmra.mxu0 %v2100_v46  ;;  %v2240_v48 = vor.u32 %v2856_v38, %v2237_v39 }
 0x112   :  { %1927 = vmatmul.bf16.vlgmr.msrb.gmra.mxu1 %v2104_v47 }
 0x113   :  { %1960 = vmatmul.bf16.vlgmr.msrb.gmra.mxu2 %v2108_v51 }
 0x114   :  { %1993 = vmatmul.bf16.vlgmr.msrb.gmra.mxu3 %v2112_v52 }
 0x116   :  { %v1707_v58 = vpop.f32.mrf.mxu2  ;;  %v1643_v62 = vpop.f32.mrf.mxu0 }
 0x117   :  { %v1740_v59 = vpop.f32.mrf.mxu3  ;;  %v1708_v60 = vadd.f32 %v1707_v58, %v1675_v57  ;;  %v1676_v63 = vpop.f32.mrf.mxu1  ;;  %v1644_v0 = vadd.f32 %v1643_v62, %v3675_v54  ;;  %v2171_v54 = vld [vmem:[%s3957_s0 + $0xb8] sm:$0xf]  ;;  %v2291_v62 = vld [vmem:[%s3957_s0 + $0x1b0] sm:$0xf] }
 0x118   :  { %v2172_v18 = vor.u32 %v2848_v7, %v2171_v54 }
 0x119   :  { %v3813_v2 = vadd.f32 %v1740_v59, %v1708_v60  ;;  %v1677_v3 = vadd.f32 %v1676_v63, %v1644_v0  ;;  %v2871_v63 = vld [vmem:[%s3957_s0 + $0x1b4] sm:$0xf] }
 0x11a   :  { %v2293_v0 = vld [vmem:[%s3957_s0 + $0x1f0] sm:$0xf0] }
 0x11b   :  { %v2296_v26 = vor.u32 %v2871_v63, %v2293_v0 }
 0x11e   :  { %v1709_v10 = vpop.f32.mrf.mxu2  ;;  %v1646_v15 = vpop.f32.mrf.mxu0 }
 0x11f   :  { %v1742_v11 = vpop.f32.mrf.mxu3  ;;  %v1710_v14 = vadd.f32 %v1709_v10, %v1677_v3  ;;  %v1679_v17 = vpop.f32.mrf.mxu1  ;;  %v1647_v20 = vadd.f32 %v1646_v15, %v3681_v1  ;;  %v2227_v1 = vld [vmem:[%s3957_s0 + $0x130] sm:$0xf]  ;;  %v2299_v3 = vld [vmem:[%s3957_s0 + $0x1b8] sm:$0xf] }
 0x120   :  { %v2228_v41 = vor.u32 %v2863_v33, %v2227_v1 }
 0x121   :  { %v3840_v21 = vadd.f32 %v1742_v11, %v1710_v14  ;;  %v1680_v22 = vadd.f32 %v1679_v17, %v1647_v20  ;;  %1899 = vmatmul.bf16.gmra.mxu0 %v2164_v12  ;;  %v2300_v11 = vor.u32 %v2880_v29, %v2299_v3  ;;  %v2304_v12 = vor.u32 %v2872_v4, %v2301_v5 }
 0x122   :  { %1932 = vmatmul.bf16.gmra.mxu1 %v2168_v13 }
 0x123   :  { %1965 = vmatmul.bf16.gmra.mxu2 %v2172_v18 }
 0x124   :  { %1998 = vmatmul.bf16.gmra.mxu3 %v2176_v19 }
 0x126   :  { %v1712_v44 = vpop.f32.mrf.mxu2  ;;  %v1648_v28 = vpop.f32.mrf.mxu0 }
 0x127   :  { %v1745_v23 = vpop.f32.mrf.mxu3  ;;  %v1713_v27 = vadd.f32 %v1712_v44, %v1680_v22  ;;  %v1681_v30 = vpop.f32.mrf.mxu1  ;;  %v1649_v31 = vadd.f32 %v1648_v28, %v3717_v25  ;;  %v2235_v25 = vld [vmem:[%s3957_s0 + $0x138] sm:$0xf]  ;;  %v84_v22 = vld [vmem:[%s3957_s0 + $0x230] sm:$0xff] }
 0x128   :  { %v2236_v47 = vor.u32 %v2864_v36, %v2235_v25  ;;  %v558_v28 = vunpack.c.l.b16 %v84_v22 }
 0x129   :  { %v3843_v61 = vadd.f32 %v1745_v23, %v1713_v27  ;;  %v1682_v32 = vadd.f32 %v1681_v30, %v1649_v31  ;;  %v559_v30 = vunpack.c.h.b16 %v84_v22 }
 0x12a   :  { %v638_v35 = vpack.c.b16 %v558_v28, %v558_v28 }
 0x12b   :  { %v639_v55 = vpack.c.b16 %v559_v30, %v559_v30 }
 0x12e   :  { %v1714_v16 = vpop.f32.mrf.mxu2  ;;  %v1651_v45 = vpop.f32.mrf.mxu0 }
 0x12f   :  { %v1747_v40 = vpop.f32.mrf.mxu3  ;;  %v1715_v43 = vadd.f32 %v1714_v16, %v1682_v32  ;;  %v1684_v46 = vpop.f32.mrf.mxu1  ;;  %v1652_v49 = vadd.f32 %v1651_v45, %v3731_v37  ;;  %v2879_v37 = vld [vmem:[%s3957_s0 + $0x1ec] sm:$0xf0] }
 0x130   :  { %v2292_v7 = vor.u32 %v2879_v37, %v2291_v62 }
 0x131   :  { %v3870_v50 = vadd.f32 %v1747_v40, %v1715_v43  ;;  %v1685_v51 = vadd.f32 %v1684_v46, %v1652_v49  ;;  %1904 = vmatmul.bf16.gmra.mxu0 %v2228_v41 }
 0x132   :  { %1937 = vmatmul.bf16.gmra.mxu1 %v2232_v42 }
 0x133   :  { %1970 = vmatmul.bf16.gmra.mxu2 %v2236_v47 }
 0x134   :  { %2003 = vmatmul.bf16.gmra.mxu3 %v2240_v48 }
 0x136   :  { %v1717_v52 = vpop.f32.mrf.mxu2  ;;  %v1653_v58 = vpop.f32.mrf.mxu0 }
 0x137   :  { %v1750_v53 = vpop.f32.mrf.mxu3  ;;  %v1718_v57 = vadd.f32 %v1717_v52, %v1685_v51  ;;  %v1686_v59 = vpop.f32.mrf.mxu1 }
 0x139   :  { %v3872_v60 = vadd.f32 %v1750_v53, %v1718_v57 }
 0x13e   :  { %v1719_v6 = vpop.f32.mrf.mxu2  ;;  %v1763_v9 = vpop.f32.mrf.mxu0 }
 0x13f   :  { %v1752_v54 = vpop.f32.mrf.mxu3  ;;  %v1796_v10 = vpop.f32.mrf.mxu1  ;;  %v1764_v13 = vadd.f32 %v1763_v9, %v3777_v8  ;;  %v85_v8 = vld [vmem:[%s3957_s0 + $0x238] sm:$0xff] }
 0x140   :  { %v560_v31 = vunpack.c.l.b16 %v85_v8  ;;  %v561_v32 = vunpack.c.h.b16 %v85_v8 }
 0x141   :  { %v1797_v14 = vadd.f32 %v1796_v10, %v1764_v13  ;;  %1909 = vmatmul.bf16.gmra.mxu0 %v2292_v7 }
 0x142   :  { %1942 = vmatmul.bf16.gmra.mxu1 %v2296_v26  ;;  %v640_v39 = vpack.c.b16 %v560_v31, %v560_v31 }
 0x143   :  { %1975 = vmatmul.bf16.gmra.mxu2 %v2300_v11 }
 0x144   :  { %2008 = vmatmul.bf16.gmra.mxu3 %v2304_v12 }
 0x146   :  { %v1829_v15 = vpop.f32.mrf.mxu2  ;;  %v1765_v19 = vpop.f32.mrf.mxu0 }
 0x147   :  { %v1862_v17 = vpop.f32.mrf.mxu3  ;;  %v1830_v18 = vadd.f32 %v1829_v15, %v1797_v14  ;;  %v1798_v20 = vpop.f32.mrf.mxu1  ;;  %v1766_v44 = vadd.f32 %v1765_v19, %v3780_v24  ;;  %v641_v24 = vpack.c.b16 %v561_v32, %v561_v32 }
 0x149   :  { %v3906_v23 = vadd.f32 %v1862_v17, %v1830_v18  ;;  %v1799_v27 = vadd.f32 %v1798_v20, %v1766_v44 }
 0x14e   :  { %v1831_v1 = vpop.f32.mrf.mxu2  ;;  %v1768_v36 = vpop.f32.mrf.mxu0 }
 0x14f   :  { %v1864_v33 = vpop.f32.mrf.mxu3  ;;  %v1832_v25 = vadd.f32 %v1831_v1, %v1799_v27  ;;  %v1801_v38 = vpop.f32.mrf.mxu1  ;;  %v1769_v16 = vadd.f32 %v1768_v36, %v3783_v34 }
 0x151   :  { %v3909_v40 = vadd.f32 %v1864_v33, %v1832_v25  ;;  %v1802_v41 = vadd.f32 %v1801_v38, %v1769_v16  ;;  %1914 = vmatmul.bf16.gmra.mxu0 %v638_v35 }
 0x152   :  { %1947 = vmatmul.bf16.gmra.mxu1 %v639_v55 }
 0x153   :  { %1980 = vmatmul.bf16.gmra.mxu2 %v640_v39 }
 0x154   :  { %2013 = vmatmul.bf16.gmra.mxu3 %v641_v24 }
 0x156   :  { %v1834_v42 = vpop.f32.mrf.mxu2  ;;  %v1770_v46 = vpop.f32.mrf.mxu0 }
 0x157   :  { %v1867_v43 = vpop.f32.mrf.mxu3  ;;  %v1835_v45 = vadd.f32 %v1834_v42, %v1802_v41  ;;  %v1803_v47 = vpop.f32.mrf.mxu1  ;;  %v1771_v48 = vadd.f32 %v1770_v46, %v3810_v56 }
 0x159   :  { %v3912_v49 = vadd.f32 %v1867_v43, %v1835_v45  ;;  %v1804_v51 = vadd.f32 %v1803_v47, %v1771_v48 }
 0x15e   :  { %v1836_v52 = vpop.f32.mrf.mxu2  ;;  %v1773_v57 = vpop.f32.mrf.mxu0 }
 0x15f   :  { %v1869_v53 = vpop.f32.mrf.mxu3  ;;  %v1837_v34 = vadd.f32 %v1836_v52, %v1804_v51  ;;  %v1806_v58 = vpop.f32.mrf.mxu1  ;;  %v1774_v59 = vadd.f32 %v1773_v57, %v3813_v2 }
 0x161   :  { %v3915_v62 = vadd.f32 %v1869_v53, %v1837_v34  ;;  %v1807_v37 = vadd.f32 %v1806_v58, %v1774_v59 }
 0x166   :  { %v1839_v63 = vpop.f32.mrf.mxu2  ;;  %v1775_v29 = vpop.f32.mrf.mxu0 }
 0x167   :  { %v1872_v0 = vpop.f32.mrf.mxu3  ;;  %v1840_v3 = vadd.f32 %v1839_v63, %v1807_v37  ;;  %v1808_v4 = vpop.f32.mrf.mxu1  ;;  %v1776_v56 = vadd.f32 %v1775_v29, %v3840_v21 }
 0x169   :  { %v3918_v5 = vadd.f32 %v1872_v0, %v1840_v3  ;;  %v1809_v6 = vadd.f32 %v1808_v4, %v1776_v56 }
 0x16e   :  { %v1841_v54 = vpop.f32.mrf.mxu2  ;;  %v1778_v9 = vpop.f32.mrf.mxu0 }
 0x16f   :  { %v1874_v7 = vpop.f32.mrf.mxu3  ;;  %v1842_v26 = vadd.f32 %v1841_v54, %v1809_v6  ;;  %v1811_v10 = vpop.f32.mrf.mxu1  ;;  %v1779_v2 = vadd.f32 %v1778_v9, %v3843_v61 }
 0x171   :  { %v3921_v11 = vadd.f32 %v1874_v7, %v1842_v26  ;;  %v1812_v12 = vadd.f32 %v1811_v10, %v1779_v2 }
 0x176   :  { %v1844_v13 = vpop.f32.mrf.mxu2  ;;  %v1780_v17 = vpop.f32.mrf.mxu0 }
 0x177   :  { %v1877_v14 = vpop.f32.mrf.mxu3  ;;  %v1845_v15 = vadd.f32 %v1844_v13, %v1812_v12  ;;  %v1813_v18 = vpop.f32.mrf.mxu1  ;;  %v1781_v21 = vadd.f32 %v1780_v17, %v3870_v50 }
 0x179   :  { %v3924_v19 = vadd.f32 %v1877_v14, %v1845_v15  ;;  %v1814_v20 = vadd.f32 %v1813_v18, %v1781_v21 }
 0x17e   :  { %v1846_v22 = vpop.f32.mrf.mxu2  ;;  %v1783_v27 = vpop.f32.mrf.mxu0 }
 0x17f   :  { %v1879_v44 = vpop.f32.mrf.mxu3  ;;  %v1847_v8 = vadd.f32 %v1846_v22, %v1814_v20  ;;  %v1816_v28 = vpop.f32.mrf.mxu1  ;;  %v1784_v61 = vadd.f32 %v1783_v27, %v3872_v60 }
 0x181   :  { %v3927_v30 = vadd.f32 %v1879_v44, %v1847_v8  ;;  %v1817_v31 = vadd.f32 %v1816_v28, %v1784_v61 }
 0x186   :  { %v1849_v32 = vpop.f32.mrf.mxu2  ;;  %v1785_v35 = vpop.f32.mrf.mxu0 }
 0x187   :  { %v1882_v1 = vpop.f32.mrf.mxu3  ;;  %v1850_v33 = vadd.f32 %v1849_v32, %v1817_v31  ;;  %v1818_v55 = vpop.f32.mrf.mxu1 }
 0x189   :  { %v3929_v25 = vadd.f32 %v1882_v1, %v1850_v33 }
 0x18e   :  { %v1851_v50 = vpop.f32.mrf.mxu2  ;;  %v1895_v38 = vpop.f32.mrf.mxu0 }
 0x18f   :  { %v1884_v36 = vpop.f32.mrf.mxu3  ;;  %v1928_v39 = vpop.f32.mrf.mxu1  ;;  %v1896_v24 = vadd.f32 %v1895_v38, %v3906_v23 }
 0x191   :  { %v1929_v43 = vadd.f32 %v1928_v39, %v1896_v24 }
 0x196   :  { %v1961_v16 = vpop.f32.mrf.mxu2  ;;  %v1897_v42 = vpop.f32.mrf.mxu0 }
 0x197   :  { %v1994_v41 = vpop.f32.mrf.mxu3  ;;  %v1930_v60 = vpop.f32.mrf.mxu1  ;;  %v1898_v45 = vadd.f32 %v1897_v42, %v3909_v40  ;;  %v1962_v46 = vadd.f32 %v1961_v16, %v1929_v43 }
 0x199   :  { %v1931_v47 = vadd.f32 %v1930_v60, %v1898_v45  ;;  %v1995_v52 = vadd.f32 %v1994_v41, %v1962_v46 }
 0x19b   :  { %v2018_v59 = vmax.f32 %v1995_v52, 0.0 }
 0x19e   :  { %v1963_v48 = vpop.f32.mrf.mxu2  ;;  %v1900_v34 = vpop.f32.mrf.mxu0 }
 0x19f   :  { %v1996_v51 = vpop.f32.mrf.mxu3  ;;  %v1964_v53 = vadd.f32 %v1963_v48, %v1931_v47  ;;  %v1933_v57 = vpop.f32.mrf.mxu1  ;;  %v1901_v23 = vadd.f32 %v1900_v34, %v3912_v49 }
 0x1a1   :  { %v1997_v58 = vadd.f32 %v1996_v51, %v1964_v53  ;;  %v1934_v4 = vadd.f32 %v1933_v57, %v1901_v23 }
 0x1a3   :  { %v2019_v37 = vmax.f32 %v1997_v58, 0.0 }
 0x1a5   :  { %v3012_v63 = vpack.c.bf16 %v2019_v37, %v2018_v59 }
 0x1a6   :  { %v1966_v0 = vpop.f32.mrf.mxu2  ;;  %v1902_v40 = vpop.f32.mrf.mxu0 }
 0x1a7   :  { %v1999_v3 = vpop.f32.mrf.mxu3  ;;  %3013 = vst [vmem:[%s3958_s3] sm:$0xff] %v3012_v63   ;;  %v1935_v29 = vpop.f32.mrf.mxu1  ;;  %v1903_v56 = vadd.f32 %v1902_v40, %v3915_v62  ;;  %v1967_v6 = vadd.f32 %v1966_v0, %v1934_v4 }
 0x1a9   :  { %v1936_v54 = vadd.f32 %v1935_v29, %v1903_v56  ;;  %v2000_v9 = vadd.f32 %v1999_v3, %v1967_v6 }
 0x1ab   :  { %v2020_v13 = vmax.f32 %v2000_v9, 0.0 }
 0x1ae   :  { %v1968_v7 = vpop.f32.mrf.mxu2  ;;  %v1905_v2 = vpop.f32.mrf.mxu0 }
 0x1af   :  { %v2001_v26 = vpop.f32.mrf.mxu3  ;;  %v1969_v10 = vadd.f32 %v1968_v7, %v1936_v54  ;;  %v1938_v12 = vpop.f32.mrf.mxu1  ;;  %v1906_v17 = vadd.f32 %v1905_v2, %v3918_v5 }
 0x1b1   :  { %v2002_v49 = vadd.f32 %v2001_v26, %v1969_v10  ;;  %v1939_v22 = vadd.f32 %v1938_v12, %v1906_v17 }
 0x1b3   :  { %v2021_v14 = vmax.f32 %v2002_v49, 0.0 }
 0x1b5   :  { %v3017_v15 = vpack.c.bf16 %v2021_v14, %v2020_v13 }
 0x1b6   :  { %v1971_v18 = vpop.f32.mrf.mxu2  ;;  %v1907_v62 = vpop.f32.mrf.mxu0 }
 0x1b7   :  { %v2004_v21 = vpop.f32.mrf.mxu3  ;;  %3029 = vst [vmem:[%s3958_s3 + $0x8] sm:$0xff] %v3017_v15   ;;  %v1940_v20 = vpop.f32.mrf.mxu1  ;;  %v1908_v44 = vadd.f32 %v1907_v62, %v3921_v11  ;;  %v1972_v8 = vadd.f32 %v1971_v18, %v1939_v22 }
 0x1b9   :  { %v1941_v27 = vadd.f32 %v1940_v20, %v1908_v44  ;;  %v2005_v31 = vadd.f32 %v2004_v21, %v1972_v8 }
 0x1bb   :  { %v2022_v35 = vmax.f32 %v2005_v31, 0.0 }
 0x1be   :  { %v1973_v28 = vpop.f32.mrf.mxu2  ;;  %v1910_v1 = vpop.f32.mrf.mxu0 }
 0x1bf   :  { %v2006_v61 = vpop.f32.mrf.mxu3  ;;  %v1974_v32 = vadd.f32 %v1973_v28, %v1941_v27  ;;  %v1943_v33 = vpop.f32.mrf.mxu1  ;;  %v1911_v36 = vadd.f32 %v1910_v1, %v3924_v19 }
 0x1c1   :  { %v2007_v5 = vadd.f32 %v2006_v61, %v1974_v32  ;;  %v1944_v16 = vadd.f32 %v1943_v33, %v1911_v36 }
 0x1c3   :  { %v2023_v55 = vmax.f32 %v2007_v5, 0.0 }
 0x1c5   :  { %v3022_v50 = vpack.c.bf16 %v2023_v55, %v2022_v35 }
 0x1c6   :  { %v1976_v38 = vpop.f32.mrf.mxu2  ;;  %v1912_v11 = vpop.f32.mrf.mxu0 }
 0x1c7   :  { %v2009_v39 = vpop.f32.mrf.mxu3  ;;  %3030 = vst [vmem:[%s3958_s3 + $0x10] sm:$0xff] %v3022_v50   ;;  %v1945_v24 = vpop.f32.mrf.mxu1  ;;  %v1913_v41 = vadd.f32 %v1912_v11, %v3927_v30  ;;  %v1977_v42 = vadd.f32 %v1976_v38, %v1944_v16 }
 0x1c9   :  { %v1946_v60 = vadd.f32 %v1945_v24, %v1913_v41  ;;  %v2010_v46 = vadd.f32 %v2009_v39, %v1977_v42 }
 0x1cb   :  { %v2024_v53 = vmax.f32 %v2010_v46, 0.0 }
 0x1ce   :  { %v1978_v43 = vpop.f32.mrf.mxu2  ;;  %v1915_v48 = vpop.f32.mrf.mxu0 }
 0x1cf   :  { %v2011_v45 = vpop.f32.mrf.mxu3  ;;  %v1979_v47 = vadd.f32 %v1978_v43, %v1946_v60  ;;  %v1948_v51 = vpop.f32.mrf.mxu1  ;;  %v1916_v52 = vadd.f32 %v1915_v48, %v3929_v25 }
 0x1d1   :  { %v2012_v19 = vadd.f32 %v2011_v45, %v1979_v47  ;;  %v1949_v58 = vadd.f32 %v1948_v51, %v1916_v52 }
 0x1d3   :  { %v2025_v34 = vmax.f32 %v2012_v19, 0.0 }
 0x1d5   :  { %v3027_v57 = vpack.c.bf16 %v2025_v34, %v2024_v53 }
 0x1d6   :  { %v1981_v59 = vpop.f32.mrf.mxu2  ;;  %v1917_v63 = vpop.f32.mrf.mxu0 }
 0x1d7   :  { %v2014_v37 = vpop.f32.mrf.mxu3  ;;  %3031 = vst [vmem:[%s3958_s3 + $0x18] sm:$0xff] %v3027_v57   ;;  %v1982_v30 = vadd.f32 %v1981_v59, %v1949_v58  ;;  %v1950_v23 = vpop.f32.mrf.mxu1 }
 0x1d9   :  { %v2015_v0 = vadd.f32 %v2014_v37, %v1982_v30 }
 0x1db   :  { %v2026_v3 = vmax.f32 %v2015_v0, 0.0 }
 0x1dd   :  { %v2035_v40 = vpack.c.bf16 %v2026_v3, %v2026_v3 }
 0x1de   :  { %v1983_v29 = vpop.f32.mrf.mxu2 }
 0x1df   :  { %v2016_v4 = vpop.f32.mrf.mxu3  ;;  %2044 = vst [vmem:[%s3958_s3 + $0x20] sm:$0xf] %v2035_v40 }

// kernel: dueling_dqn_forward.7
= control target key start
LH: loop header
LB: loop body
LE: loop exit
PB: predicated region body
PF: predicated region fallthrough
CT: control target
= control target key end

     0   :  { %s1716_s1 = inlined_call_operand.vmem [shape: bf16[1152,128], index: 1, kind: input, shape index: {}]   ;;  %s1717_s0 = inlined_call_operand.vmem [shape: bf16[32,1152], index: 0, kind: input, shape index: {}]   ;;  %s1718_s2 = inlined_call_operand.vmem [shape: f32[1,128], index: 2, kind: input, shape index: {}]   ;;  %s1719_s3 = inlined_call_operand.vmem [shape: bf16[32,128], index: 3, kind: output, shape index: {}]  }
   0x1   :  { %v1278_v0 = vld [vmem:[%s1716_s1 + $0x38] sm:$0xff]  ;;  %v1277_v4 = vld [vmem:[%s1716_s1 + $0x30] sm:$0xff]  ;;  %v1276_v8 = vld [vmem:[%s1716_s1 + $0x28] sm:$0xff] }
   0x2   :  { %v1286_v1 = vld [vmem:[%s1716_s1 + $0x78] sm:$0xff]  ;;  %706 = vmatpush.bf16.msra.mxu0 %v1278_v0  ;;  %v1285_v5 = vld [vmem:[%s1716_s1 + $0x70] sm:$0xff]  ;;  %v1284_v9 = vld [vmem:[%s1716_s1 + $0x68] sm:$0xff] }
   0x3   :  { %v1294_v2 = vld [vmem:[%s1716_s1 + $0xb8] sm:$0xff]  ;;  %725 = vmatpush.bf16.msra.mxu1 %v1286_v1  ;;  %v1293_v6 = vld [vmem:[%s1716_s1 + $0xb0] sm:$0xff]  ;;  %v1292_v10 = vld [vmem:[%s1716_s1 + $0xa8] sm:$0xff] }
   0x4   :  { %v1302_v3 = vld [vmem:[%s1716_s1 + $0xf8] sm:$0xff]  ;;  %744 = vmatpush.bf16.msra.mxu2 %v1294_v2  ;;  %v1301_v7 = vld [vmem:[%s1716_s1 + $0xf0] sm:$0xff]  ;;  %v1300_v11 = vld [vmem:[%s1716_s1 + $0xe8] sm:$0xff] }
   0x5   :  { %763 = vmatpush.bf16.msra.mxu3 %v1302_v3  ;;  %v1275_v12 = vld [vmem:[%s1716_s1 + $0x20] sm:$0xff]  ;;  %v1274_v16 = vld [vmem:[%s1716_s1 + $0x18] sm:$0xff]  ;;  %v1273_v20 = vld [vmem:[%s1716_s1 + $0x10] sm:$0xff] }
   0x6   :  { %707 = vmatpush.bf16.msra.mxu0 %v1277_v4  ;;  %v1283_v13 = vld [vmem:[%s1716_s1 + $0x60] sm:$0xff]  ;;  %v1282_v17 = vld [vmem:[%s1716_s1 + $0x58] sm:$0xff]  ;;  %v1281_v21 = vld [vmem:[%s1716_s1 + $0x50] sm:$0xff] }
   0x7   :  { %726 = vmatpush.bf16.msra.mxu1 %v1285_v5  ;;  %v1291_v14 = vld [vmem:[%s1716_s1 + $0xa0] sm:$0xff]  ;;  %v1290_v18 = vld [vmem:[%s1716_s1 + $0x98] sm:$0xff]  ;;  %v1289_v22 = vld [vmem:[%s1716_s1 + $0x90] sm:$0xff] }
   0x8   :  { %745 = vmatpush.bf16.msra.mxu2 %v1293_v6  ;;  %v1299_v15 = vld [vmem:[%s1716_s1 + $0xe0] sm:$0xff]  ;;  %v1298_v19 = vld [vmem:[%s1716_s1 + $0xd8] sm:$0xff]  ;;  %v1297_v23 = vld [vmem:[%s1716_s1 + $0xd0] sm:$0xff] }
   0x9   :  { %764 = vmatpush.bf16.msra.mxu3 %v1301_v7  ;;  %v1272_v24 = vld [vmem:[%s1716_s1 + $0x8] sm:$0xff]  ;;  %v1271_v28 = vld [vmem:[%s1716_s1] sm:$0xff]  ;;  %v905_v39 = vld [vmem:[%s1717_s0 + $0x2c] sm:$0xf0] }
   0xa   :  { %708 = vmatpush.bf16.msra.mxu0 %v1276_v8  ;;  %v1280_v25 = vld [vmem:[%s1716_s1 + $0x48] sm:$0xff]  ;;  %v1279_v29 = vld [vmem:[%s1716_s1 + $0x40] sm:$0xff]  ;;  %v1310_v40 = vld [vmem:[%s1716_s1 + $0x138] sm:$0xff] }
   0xb   :  { %727 = vmatpush.bf16.msra.mxu1 %v1284_v9  ;;  %v1288_v26 = vld [vmem:[%s1716_s1 + $0x88] sm:$0xff]  ;;  %v1287_v30 = vld [vmem:[%s1716_s1 + $0x80] sm:$0xff]  ;;  %v1318_v41 = vld [vmem:[%s1716_s1 + $0x178] sm:$0xff] }
   0xc   :  { %746 = vmatpush.bf16.msra.mxu2 %v1292_v10  ;;  %v1296_v27 = vld [vmem:[%s1716_s1 + $0xc8] sm:$0xff]  ;;  %v1295_v31 = vld [vmem:[%s1716_s1 + $0xc0] sm:$0xff]  ;;  %v1326_v46 = vld [vmem:[%s1716_s1 + $0x1b8] sm:$0xff] }
   0xd   :  { %765 = vmatpush.bf16.msra.mxu3 %v1300_v11  ;;  %v895_v32 = vld [vmem:[%s1717_s0] sm:$0xf]  ;;  %v1257_v33 = vld [vmem:[%s1717_s0 + $0x20] sm:$0xf0]  ;;  %v897_v35 = vld [vmem:[%s1717_s0 + $0x24] sm:$0xf0] }
   0xe   :  { %709 = vmatpush.bf16.msra.mxu0 %v1275_v12  ;;  %v1253_v34 = vld [vmem:[%s1717_s0 + $0x4] sm:$0xf]  ;;  %v903_v36 = vld [vmem:[%s1717_s0 + $0x8] sm:$0xf]  ;;  %v1258_v37 = vld [vmem:[%s1717_s0 + $0x28] sm:$0xf0]  ;;  %v896_v42 = vor.u32 %v1257_v33, %v895_v32 }
   0xf   :  { %728 = vmatpush.bf16.msra.mxu1 %v1283_v13  ;;  %v1254_v38 = vld [vmem:[%s1717_s0 + $0xc] sm:$0xf]  ;;  %v900_v43 = vor.u32 %v1253_v34, %v897_v35  ;;  %v904_v44 = vor.u32 %v1258_v37, %v903_v36  ;;  %v1334_v47 = vld [vmem:[%s1716_s1 + $0x1f8] sm:$0xff]  ;;  %v1309_v48 = vld [vmem:[%s1716_s1 + $0x130] sm:$0xff] }
  0x10   :  { %747 = vmatpush.bf16.msra.mxu2 %v1291_v14  ;;  %v908_v45 = vor.u32 %v1254_v38, %v905_v39  ;;  %v1317_v49 = vld [vmem:[%s1716_s1 + $0x170] sm:$0xff]  ;;  %v1308_v52 = vld [vmem:[%s1716_s1 + $0x128] sm:$0xff]  ;;  %v1307_v56 = vld [vmem:[%s1716_s1 + $0x120] sm:$0xff] }
  0x11   :  { %766 = vmatpush.bf16.msra.mxu3 %v1299_v15  ;;  %v1325_v50 = vld [vmem:[%s1716_s1 + $0x1b0] sm:$0xff]  ;;  %v1316_v53 = vld [vmem:[%s1716_s1 + $0x168] sm:$0xff]  ;;  %v1315_v57 = vld [vmem:[%s1716_s1 + $0x160] sm:$0xff] }
  0x12   :  { %710 = vmatpush.bf16.msra.mxu0 %v1274_v16  ;;  %v1333_v51 = vld [vmem:[%s1716_s1 + $0x1f0] sm:$0xff]  ;;  %v1324_v54 = vld [vmem:[%s1716_s1 + $0x1a8] sm:$0xff]  ;;  %v1323_v58 = vld [vmem:[%s1716_s1 + $0x1a0] sm:$0xff] }
  0x13   :  { %729 = vmatpush.bf16.msra.mxu1 %v1282_v17  ;;  %v1332_v55 = vld [vmem:[%s1716_s1 + $0x1e8] sm:$0xff]  ;;  %v1331_v59 = vld [vmem:[%s1716_s1 + $0x1e0] sm:$0xff]  ;;  %v933_v63 = vld [vmem:[%s1717_s0 + $0x6c] sm:$0xf0] }
  0x14   :  { %748 = vmatpush.bf16.msra.mxu2 %v1290_v18  ;;  %v931_v60 = vld [vmem:[%s1717_s0 + $0x48] sm:$0xf]  ;;  %v1266_v61 = vld [vmem:[%s1717_s0 + $0x68] sm:$0xf0]  ;;  %v939_v0 = vld [vmem:[%s1717_s0 + $0x50] sm:$0xf] }
  0x15   :  { %767 = vmatpush.bf16.msra.mxu3 %v1298_v19  ;;  %v1262_v62 = vld [vmem:[%s1717_s0 + $0x4c] sm:$0xf]  ;;  %v1267_v1 = vld [vmem:[%s1717_s0 + $0x70] sm:$0xf0]  ;;  %v941_v3 = vld [vmem:[%s1717_s0 + $0x74] sm:$0xf0]  ;;  %v932_v6 = vor.u32 %v1266_v61, %v931_v60 }
  0x16   :  { %711 = vmatpush.bf16.msra.mxu0 %v1273_v20  ;;  %v1263_v2 = vld [vmem:[%s1717_s0 + $0x54] sm:$0xf]  ;;  %v1306_v4 = vld [vmem:[%s1716_s1 + $0x118] sm:$0xff]  ;;  %v936_v7 = vor.u32 %v1262_v62, %v933_v63  ;;  %v940_v8 = vor.u32 %v1267_v1, %v939_v0  ;;  %v1304_v16 = vld [vmem:[%s1716_s1 + $0x108] sm:$0xff] }
  0x17   :  { %730 = vmatpush.bf16.msra.mxu1 %v1281_v21  ;;  %v1314_v5 = vld [vmem:[%s1716_s1 + $0x158] sm:$0xff]  ;;  %v944_v9 = vor.u32 %v1263_v2, %v941_v3  ;;  %v1305_v12 = vld [vmem:[%s1716_s1 + $0x110] sm:$0xff]  ;;  %v1312_v17 = vld [vmem:[%s1716_s1 + $0x148] sm:$0xff] }
  0x18   :  { %749 = vmatpush.bf16.msra.mxu2 %v1289_v22  ;;  %v1322_v10 = vld [vmem:[%s1716_s1 + $0x198] sm:$0xff]  ;;  %v1313_v13 = vld [vmem:[%s1716_s1 + $0x150] sm:$0xff]  ;;  %v1320_v18 = vld [vmem:[%s1716_s1 + $0x188] sm:$0xff] }
  0x19   :  { %768 = vmatpush.bf16.msra.mxu3 %v1297_v23  ;;  %v1330_v11 = vld [vmem:[%s1716_s1 + $0x1d8] sm:$0xff]  ;;  %v1321_v14 = vld [vmem:[%s1716_s1 + $0x190] sm:$0xff]  ;;  %v1328_v19 = vld [vmem:[%s1716_s1 + $0x1c8] sm:$0xff] }
  0x1a   :  { %712 = vmatpush.bf16.msra.mxu0 %v1272_v24  ;;  %v1329_v15 = vld [vmem:[%s1716_s1 + $0x1d0] sm:$0xff]  ;;  %v1303_v20 = vld [vmem:[%s1716_s1 + $0x100] sm:$0xff]  ;;  %v1340_v38 = vld [vmem:[%s1716_s1 + $0x228] sm:$0xff] }
  0x1b   :  { %731 = vmatpush.bf16.msra.mxu1 %v1280_v25  ;;  %v1311_v21 = vld [vmem:[%s1716_s1 + $0x140] sm:$0xff]  ;;  %v911_v24 = vld [vmem:[%s1717_s0 + $0x10] sm:$0xf]  ;;  %v1259_v25 = vld [vmem:[%s1717_s0 + $0x30] sm:$0xf0] }
  0x1c   :  { %750 = vmatpush.bf16.msra.mxu2 %v1288_v26  ;;  %v1319_v22 = vld [vmem:[%s1716_s1 + $0x180] sm:$0xff]  ;;  %v1342_v26 = vld [vmem:[%s1716_s1 + $0x238] sm:$0xff]  ;;  %v912_v33 = vor.u32 %v1259_v25, %v911_v24  ;;  %v1341_v37 = vld [vmem:[%s1716_s1 + $0x230] sm:$0xff] }
  0x1d   :  { %769 = vmatpush.bf16.msra.mxu3 %v1296_v27  ;;  %v1327_v23 = vld [vmem:[%s1716_s1 + $0x1c0] sm:$0xff]  ;;  %v1255_v27 = vld [vmem:[%s1717_s0 + $0x14] sm:$0xf] }
  0x1e   :  { %713 = vmatpush.bf16.msra.mxu0 %v1271_v28  ;;  %v913_v28 = vld [vmem:[%s1717_s0 + $0x34] sm:$0xf0]  ;;  %v921_v32 = vld [vmem:[%s1717_s0 + $0x3c] sm:$0xf0] }
  0x1f   :  { %732 = vmatpush.bf16.msra.mxu1 %v1279_v29  ;;  %v919_v29 = vld [vmem:[%s1717_s0 + $0x18] sm:$0xf]  ;;  %v916_v34 = vor.u32 %v1255_v27, %v913_v28  ;;  %v1339_v39 = vld [vmem:[%s1716_s1 + $0x220] sm:$0xff] }
  0x20   :  { %751 = vmatpush.bf16.msra.mxu2 %v1287_v30  ;;  %v1260_v30 = vld [vmem:[%s1717_s0 + $0x38] sm:$0xf0] }
  0x21   :  { %770 = vmatpush.bf16.msra.mxu3 %v1295_v31  ;;  %714 = vmatmul.bf16.vlgmr.msra.gmra.mxu0 %v896_v42  ;;  %v1256_v31 = vld [vmem:[%s1717_s0 + $0x1c] sm:$0xf]  ;;  %v920_v35 = vor.u32 %v1260_v30, %v919_v29 }
  0x22   :  { %782 = vmatpush.bf16.msrb.mxu0 %v1310_v40  ;;  %733 = vmatmul.bf16.vlgmr.msra.gmra.mxu1 %v900_v43  ;;  %v924_v36 = vor.u32 %v1256_v31, %v921_v32  ;;  %v947_v40 = vld [vmem:[%s1717_s0 + $0x58] sm:$0xf]  ;;  %v1264_v42 = vld [vmem:[%s1717_s0 + $0x5c] sm:$0xf]  ;;  %v949_v43 = vld [vmem:[%s1717_s0 + $0x7c] sm:$0xf0] }
  0x23   :  { %801 = vmatpush.bf16.msrb.mxu1 %v1318_v41  ;;  %752 = vmatmul.bf16.vlgmr.msra.gmra.mxu2 %v904_v44  ;;  %v1268_v41 = vld [vmem:[%s1717_s0 + $0x78] sm:$0xf0]  ;;  %v955_v44 = vld [vmem:[%s1717_s0 + $0x60] sm:$0xf] }
  0x24   :  { %771 = vmatmul.bf16.vlgmr.msra.gmra.mxu3 %v908_v45  ;;  %820 = vmatpush.bf16.msrb.mxu2 %v1326_v46  ;;  %v1269_v45 = vld [vmem:[%s1717_s0 + $0x80] sm:$0xf0] }
  0x25   :  { %839 = vmatpush.bf16.msrb.mxu3 %v1334_v47  ;;  %v1265_v46 = vld [vmem:[%s1717_s0 + $0x64] sm:$0xf]  ;;  %v957_v47 = vld [vmem:[%s1717_s0 + $0x84] sm:$0xf0] }
  0x26   :  { %783 = vmatpush.bf16.msrb.mxu0 %v1309_v48  ;;  %v1338_v48 = vld [vmem:[%s1716_s1 + $0x218] sm:$0xff] }
  0x27   :  { %802 = vmatpush.bf16.msrb.mxu1 %v1317_v49  ;;  %v948_v49 = vor.u32 %v1268_v41, %v947_v40 }
  0x28   :  { %821 = vmatpush.bf16.msrb.mxu2 %v1325_v50  ;;  %v952_v50 = vor.u32 %v1264_v42, %v949_v43 }
  0x29   :  { %840 = vmatpush.bf16.msrb.mxu3 %v1333_v51  ;;  %v956_v51 = vor.u32 %v1269_v45, %v955_v44 }
  0x2a   :  { %784 = vmatpush.bf16.msrb.mxu0 %v1308_v52  ;;  %v960_v52 = vor.u32 %v1265_v46, %v957_v47 }
  0x2b   :  { %803 = vmatpush.bf16.msrb.mxu1 %v1316_v53  ;;  %v1337_v53 = vld [vmem:[%s1716_s1 + $0x210] sm:$0xff] }
  0x2c   :  { %822 = vmatpush.bf16.msrb.mxu2 %v1324_v54  ;;  %v1336_v54 = vld [vmem:[%s1716_s1 + $0x208] sm:$0xff] }
  0x2d   :  { %841 = vmatpush.bf16.msrb.mxu3 %v1332_v55  ;;  %v1335_v55 = vld [vmem:[%s1716_s1 + $0x200] sm:$0xff] }
  0x2e   :  { %785 = vmatpush.bf16.msrb.mxu0 %v1307_v56  ;;  %v927_v56 = vld [vmem:[%s1717_s0 + $0x20] sm:$0xf] }
  0x2f   :  { %804 = vmatpush.bf16.msrb.mxu1 %v1315_v57  ;;  %v1261_v57 = vld [vmem:[%s1717_s0 + $0x40] sm:$0xf0] }
  0x30   :  { %823 = vmatpush.bf16.msrb.mxu2 %v1323_v58  ;;  %v963_v58 = vld [vmem:[%s1717_s0 + $0x68] sm:$0xf]  ;;  %v928_v60 = vor.u32 %v1261_v57, %v927_v56 }
  0x31   :  { %842 = vmatpush.bf16.msrb.mxu3 %v1331_v59  ;;  %719 = vmatmul.bf16.gmra.mxu0 %v932_v6  ;;  %v1270_v59 = vld [vmem:[%s1717_s0 + $0x88] sm:$0xf0] }
  0x32   :  { %786 = vmatpush.bf16.msrb.mxu0 %v1306_v4  ;;  %738 = vmatmul.bf16.gmra.mxu1 %v936_v7  ;;  %v964_v61 = vor.u32 %v1270_v59, %v963_v58 }
  0x33   :  { %805 = vmatpush.bf16.msrb.mxu1 %v1314_v5  ;;  %757 = vmatmul.bf16.gmra.mxu2 %v940_v8 }
  0x34   :  { %776 = vmatmul.bf16.gmra.mxu3 %v944_v9  ;;  %824 = vmatpush.bf16.msrb.mxu2 %v1322_v10 }
  0x35   :  { %843 = vmatpush.bf16.msrb.mxu3 %v1330_v11 }
  0x36   :  { %787 = vmatpush.bf16.msrb.mxu0 %v1305_v12 }
  0x37   :  { %806 = vmatpush.bf16.msrb.mxu1 %v1313_v13 }
  0x38   :  { %825 = vmatpush.bf16.msrb.mxu2 %v1321_v14 }
  0x39   :  { %844 = vmatpush.bf16.msrb.mxu3 %v1329_v15 }
  0x3a   :  { %788 = vmatpush.bf16.msrb.mxu0 %v1304_v16 }
  0x3b   :  { %807 = vmatpush.bf16.msrb.mxu1 %v1312_v17 }
  0x3c   :  { %826 = vmatpush.bf16.msrb.mxu2 %v1320_v18 }
  0x3d   :  { %845 = vmatpush.bf16.msrb.mxu3 %v1328_v19 }
  0x3e   :  { %789 = vmatpush.bf16.msrb.mxu0 %v1303_v20  ;;  %v1362_v20 = vld [vmem:[%s1718_s2] ss:$0 sm:$0xff] }
  0x3f   :  { %808 = vmatpush.bf16.msrb.mxu1 %v1311_v21 }
  0x40   :  { %827 = vmatpush.bf16.msrb.mxu2 %v1319_v22 }
  0x41   :  { %846 = vmatpush.bf16.msrb.mxu3 %v1327_v23  ;;  %790 = vmatmul.bf16.vlgmr.msrb.gmra.mxu0 %v912_v33 }
  0x42   :  { %858 = vmatpush.bf16.msra.mxu0 %v1342_v26  ;;  %809 = vmatmul.bf16.vlgmr.msrb.gmra.mxu1 %v916_v34 }
  0x43   :  { %1354 = vmatpush.bf16.msra.mxu1 %v1342_v26  ;;  %828 = vmatmul.bf16.vlgmr.msrb.gmra.mxu2 %v920_v35 }
  0x44   :  { %847 = vmatmul.bf16.vlgmr.msrb.gmra.mxu3 %v924_v36 }
  0x46   :  { %859 = vmatpush.bf16.msra.mxu0 %v1341_v37 }
  0x47   :  { %1355 = vmatpush.bf16.msra.mxu1 %v1341_v37 }
  0x4a   :  { %860 = vmatpush.bf16.msra.mxu0 %v1340_v38 }
  0x4b   :  { %1356 = vmatpush.bf16.msra.mxu1 %v1340_v38 }
  0x4e   :  { %861 = vmatpush.bf16.msra.mxu0 %v1339_v39 }
  0x4f   :  { %1357 = vmatpush.bf16.msra.mxu1 %v1339_v39 }
  0x51   :  { %795 = vmatmul.bf16.gmra.mxu0 %v948_v49 }
  0x52   :  { %862 = vmatpush.bf16.msra.mxu0 %v1338_v48  ;;  %814 = vmatmul.bf16.gmra.mxu1 %v952_v50 }
  0x53   :  { %1358 = vmatpush.bf16.msra.mxu1 %v1338_v48  ;;  %833 = vmatmul.bf16.gmra.mxu2 %v956_v51 }
  0x54   :  { %852 = vmatmul.bf16.gmra.mxu3 %v960_v52 }
  0x56   :  { %863 = vmatpush.bf16.msra.mxu0 %v1337_v53 }
  0x57   :  { %1359 = vmatpush.bf16.msra.mxu1 %v1337_v53 }
  0x5a   :  { %864 = vmatpush.bf16.msra.mxu0 %v1336_v54 }
  0x5b   :  { %1360 = vmatpush.bf16.msra.mxu1 %v1336_v54 }
  0x5e   :  { %865 = vmatpush.bf16.msra.mxu0 %v1335_v55 }
  0x5f   :  { %1361 = vmatpush.bf16.msra.mxu1 %v1335_v55 }
  0x61   :  { %866 = vmatmul.bf16.vlgmr.msra.gmra.mxu0 %v928_v60 }
  0x62   :  { %871 = vmatmul.bf16.vlgmr.msra.gmra.mxu1 %v964_v61 }
  0x9e   :  { %v715_v62 = vpop.f32.mrf.mxu0 }
  0x9f   :  { %v734_v63 = vpop.f32.mrf.mxu1  ;;  %v716_v21 = vadd.f32 %v1362_v20, %v715_v62 }
  0xa1   :  { %v735_v29 = vadd.f32 %v734_v63, %v716_v21 }
  0xa6   :  { %v753_v0 = vpop.f32.mrf.mxu2  ;;  %v717_v2 = vpop.f32.mrf.mxu0 }
  0xa7   :  { %v772_v1 = vpop.f32.mrf.mxu3  ;;  %v736_v3 = vpop.f32.mrf.mxu1  ;;  %v718_v26 = vadd.f32 %v1362_v20, %v717_v2  ;;  %v754_v31 = vadd.f32 %v753_v0, %v735_v29 }
  0xa9   :  { %v737_v32 = vadd.f32 %v736_v3, %v718_v26  ;;  %v773_v40 = vadd.f32 %v772_v1, %v754_v31 }
  0xae   :  { %v755_v4 = vpop.f32.mrf.mxu2  ;;  %v720_v6 = vpop.f32.mrf.mxu0 }
  0xaf   :  { %v774_v5 = vpop.f32.mrf.mxu3  ;;  %v739_v7 = vpop.f32.mrf.mxu1  ;;  %v721_v22 = vadd.f32 %v1362_v20, %v720_v6  ;;  %v756_v35 = vadd.f32 %v755_v4, %v737_v32 }
  0xb1   :  { %v740_v30 = vadd.f32 %v739_v7, %v721_v22  ;;  %v775_v42 = vadd.f32 %v774_v5, %v756_v35 }
  0xb6   :  { %v758_v8 = vpop.f32.mrf.mxu2  ;;  %v722_v10 = vpop.f32.mrf.mxu0 }
  0xb7   :  { %v777_v9 = vpop.f32.mrf.mxu3  ;;  %v741_v11 = vpop.f32.mrf.mxu1  ;;  %v723_v27 = vadd.f32 %v1362_v20, %v722_v10  ;;  %v759_v33 = vadd.f32 %v758_v8, %v740_v30 }
  0xb9   :  { %v742_v34 = vadd.f32 %v741_v11, %v723_v27  ;;  %v778_v41 = vadd.f32 %v777_v9, %v759_v33 }
  0xbe   :  { %v760_v12 = vpop.f32.mrf.mxu2  ;;  %v791_v14 = vpop.f32.mrf.mxu0 }
  0xbf   :  { %v779_v13 = vpop.f32.mrf.mxu3  ;;  %v810_v15 = vpop.f32.mrf.mxu1  ;;  %v761_v36 = vadd.f32 %v760_v12, %v742_v34  ;;  %v792_v44 = vadd.f32 %v791_v14, %v773_v40 }
  0xc1   :  { %v780_v43 = vadd.f32 %v779_v13, %v761_v36  ;;  %v811_v49 = vadd.f32 %v810_v15, %v792_v44 }
  0xc6   :  { %v829_v16 = vpop.f32.mrf.mxu2  ;;  %v793_v18 = vpop.f32.mrf.mxu0 }
  0xc7   :  { %v848_v17 = vpop.f32.mrf.mxu3  ;;  %v812_v19 = vpop.f32.mrf.mxu1  ;;  %v794_v47 = vadd.f32 %v793_v18, %v775_v42  ;;  %v830_v54 = vadd.f32 %v829_v16, %v811_v49 }
  0xc9   :  { %v813_v55 = vadd.f32 %v812_v19, %v794_v47  ;;  %v849_v60 = vadd.f32 %v848_v17, %v830_v54 }
  0xce   :  { %v831_v23 = vpop.f32.mrf.mxu2  ;;  %v796_v24 = vpop.f32.mrf.mxu0 }
  0xcf   :  { %v815_v25 = vpop.f32.mrf.mxu1  ;;  %v850_v28 = vpop.f32.mrf.mxu3  ;;  %v797_v45 = vadd.f32 %v796_v24, %v778_v41  ;;  %v832_v58 = vadd.f32 %v831_v23, %v813_v55 }
  0xd1   :  { %v816_v50 = vadd.f32 %v815_v25, %v797_v45  ;;  %v851_v63 = vadd.f32 %v850_v28, %v832_v58 }
  0xd6   :  { %v834_v37 = vpop.f32.mrf.mxu2  ;;  %v798_v38 = vpop.f32.mrf.mxu0 }
  0xd7   :  { %v817_v39 = vpop.f32.mrf.mxu1  ;;  %v853_v46 = vpop.f32.mrf.mxu3  ;;  %v799_v48 = vadd.f32 %v798_v38, %v780_v43  ;;  %v835_v56 = vadd.f32 %v834_v37, %v816_v50 }
  0xd9   :  { %v818_v57 = vadd.f32 %v817_v39, %v799_v48  ;;  %v854_v61 = vadd.f32 %v853_v46, %v835_v56 }
  0xde   :  { %v836_v51 = vpop.f32.mrf.mxu2  ;;  %v867_v52 = vpop.f32.mrf.mxu0 }
  0xdf   :  { %v872_v53 = vpop.f32.mrf.mxu1  ;;  %v837_v59 = vadd.f32 %v836_v51, %v818_v57  ;;  %v855_v62 = vpop.f32.mrf.mxu3  ;;  %v868_v1 = vadd.f32 %v867_v52, %v849_v60 }
  0xe0   :  { %v873_v2 = vadd.f32 %v872_v53, %v854_v61 }
  0xe1   :  { %v856_v0 = vadd.f32 %v855_v62, %v837_v59  ;;  %v877_v7 = vmax.f32 %v868_v1, 0.0 }
  0xe2   :  { %v879_v8 = vmax.f32 %v873_v2, 0.0 }
  0xe6   :  { %v869_v3 = vpop.f32.mrf.mxu0 }
  0xe7   :  { %v874_v4 = vpop.f32.mrf.mxu1  ;;  %v870_v5 = vadd.f32 %v869_v3, %v851_v63 }
  0xe8   :  { %v875_v6 = vadd.f32 %v874_v4, %v856_v0 }
  0xe9   :  { %v878_v9 = vmax.f32 %v870_v5, 0.0 }
  0xea   :  { %v880_v10 = vmax.f32 %v875_v6, 0.0 }
  0xeb   :  { %v1346_v11 = vpack.c.bf16 %v878_v9, %v877_v7 }
  0xec   :  { %v1351_v12 = vpack.c.bf16 %v880_v10, %v879_v8 }
  0xed   :  { %1347 = vst [vmem:[%s1719_s3] sm:$0xff] %v1346_v11  }
  0xee   :  { %1353 = vst [vmem:[%s1719_s3 + $0x8] sm:$0xff] %v1351_v12  }

// kernel: dueling_dqn_forward.9
= control target key start
LH: loop header
LB: loop body
LE: loop exit
PB: predicated region body
PF: predicated region fallthrough
CT: control target
= control target key end

     0   :  { %s1246_s1 = inlined_call_operand.vmem [shape: bf16[1024,128], index: 1, kind: input, shape index: {}]   ;;  %s1247_s2 = inlined_call_operand.vmem [shape: f32[1,128], index: 2, kind: input, shape index: {}]   ;;  %s1248_s0 = inlined_call_operand.vmem [shape: bf16[8,1024], index: 0, kind: input, shape index: {}]   ;;  %s1249_s3 = inlined_call_operand.vmem [shape: f32[8,128], index: 3, kind: output, shape index: {}]  }
   0x1   :  { %v954_v0 = vld [vmem:[%s1246_s1 + $0x38] sm:$0xff]  ;;  %v953_v4 = vld [vmem:[%s1246_s1 + $0x30] sm:$0xff]  ;;  %v952_v8 = vld [vmem:[%s1246_s1 + $0x28] sm:$0xff] }
   0x2   :  { %v962_v1 = vld [vmem:[%s1246_s1 + $0x78] sm:$0xff]  ;;  %562 = vmatpush.bf16.msra.mxu0 %v954_v0  ;;  %v961_v5 = vld [vmem:[%s1246_s1 + $0x70] sm:$0xff]  ;;  %v960_v9 = vld [vmem:[%s1246_s1 + $0x68] sm:$0xff] }
   0x3   :  { %v970_v2 = vld [vmem:[%s1246_s1 + $0xb8] sm:$0xff]  ;;  %575 = vmatpush.bf16.msra.mxu1 %v962_v1  ;;  %v969_v6 = vld [vmem:[%s1246_s1 + $0xb0] sm:$0xff]  ;;  %v968_v10 = vld [vmem:[%s1246_s1 + $0xa8] sm:$0xff] }
   0x4   :  { %v978_v3 = vld [vmem:[%s1246_s1 + $0xf8] sm:$0xff]  ;;  %588 = vmatpush.bf16.msra.mxu2 %v970_v2  ;;  %v977_v7 = vld [vmem:[%s1246_s1 + $0xf0] sm:$0xff]  ;;  %v976_v11 = vld [vmem:[%s1246_s1 + $0xe8] sm:$0xff] }
   0x5   :  { %601 = vmatpush.bf16.msra.mxu3 %v978_v3  ;;  %v951_v12 = vld [vmem:[%s1246_s1 + $0x20] sm:$0xff]  ;;  %v950_v16 = vld [vmem:[%s1246_s1 + $0x18] sm:$0xff]  ;;  %v949_v20 = vld [vmem:[%s1246_s1 + $0x10] sm:$0xff] }
   0x6   :  { %563 = vmatpush.bf16.msra.mxu0 %v953_v4  ;;  %v959_v13 = vld [vmem:[%s1246_s1 + $0x60] sm:$0xff]  ;;  %v958_v17 = vld [vmem:[%s1246_s1 + $0x58] sm:$0xff]  ;;  %v957_v21 = vld [vmem:[%s1246_s1 + $0x50] sm:$0xff] }
   0x7   :  { %576 = vmatpush.bf16.msra.mxu1 %v961_v5  ;;  %v967_v14 = vld [vmem:[%s1246_s1 + $0xa0] sm:$0xff]  ;;  %v966_v18 = vld [vmem:[%s1246_s1 + $0x98] sm:$0xff]  ;;  %v965_v22 = vld [vmem:[%s1246_s1 + $0x90] sm:$0xff] }
   0x8   :  { %589 = vmatpush.bf16.msra.mxu2 %v969_v6  ;;  %v975_v15 = vld [vmem:[%s1246_s1 + $0xe0] sm:$0xff]  ;;  %v974_v19 = vld [vmem:[%s1246_s1 + $0xd8] sm:$0xff]  ;;  %v973_v23 = vld [vmem:[%s1246_s1 + $0xd0] sm:$0xff] }
   0x9   :  { %602 = vmatpush.bf16.msra.mxu3 %v977_v7  ;;  %v948_v24 = vld [vmem:[%s1246_s1 + $0x8] sm:$0xff]  ;;  %v14_v29 = vld [vmem:[%s1248_s0] sm:$0xff]  ;;  %v986_v38 = vld [vmem:[%s1246_s1 + $0x138] sm:$0xff] }
   0xa   :  { %564 = vmatpush.bf16.msra.mxu0 %v952_v8  ;;  %v956_v25 = vld [vmem:[%s1246_s1 + $0x48] sm:$0xff]  ;;  %v947_v30 = vld [vmem:[%s1246_s1] sm:$0xff]  ;;  %v154_v33 = vunpack.c.l.b16 %v14_v29  ;;  %v155_v37 = vunpack.c.h.b16 %v14_v29  ;;  %v994_v39 = vld [vmem:[%s1246_s1 + $0x178] sm:$0xff] }
   0xb   :  { %577 = vmatpush.bf16.msra.mxu1 %v960_v9  ;;  %v964_v26 = vld [vmem:[%s1246_s1 + $0x88] sm:$0xff]  ;;  %v955_v31 = vld [vmem:[%s1246_s1 + $0x40] sm:$0xff]  ;;  %v1002_v40 = vld [vmem:[%s1246_s1 + $0x1b8] sm:$0xff] }
   0xc   :  { %590 = vmatpush.bf16.msra.mxu2 %v968_v10  ;;  %v972_v27 = vld [vmem:[%s1246_s1 + $0xc8] sm:$0xff]  ;;  %v963_v34 = vld [vmem:[%s1246_s1 + $0x80] sm:$0xff]  ;;  %v1010_v41 = vld [vmem:[%s1246_s1 + $0x1f8] sm:$0xff]  ;;  %v162_v43 = vpack.c.b16 %v154_v33, %v154_v33  ;;  %v163_v45 = vpack.c.b16 %v155_v37, %v155_v37 }
   0xd   :  { %603 = vmatpush.bf16.msra.mxu3 %v976_v11  ;;  %v15_v28 = vld [vmem:[%s1248_s0 + $0x8] sm:$0xff]  ;;  %v971_v35 = vld [vmem:[%s1246_s1 + $0xc0] sm:$0xff]  ;;  %v985_v46 = vld [vmem:[%s1246_s1 + $0x130] sm:$0xff] }
   0xe   :  { %565 = vmatpush.bf16.msra.mxu0 %v951_v12  ;;  %v156_v32 = vunpack.c.l.b16 %v15_v28  ;;  %v157_v36 = vunpack.c.h.b16 %v15_v28  ;;  %v993_v47 = vld [vmem:[%s1246_s1 + $0x170] sm:$0xff]  ;;  %v984_v50 = vld [vmem:[%s1246_s1 + $0x128] sm:$0xff]  ;;  %v983_v54 = vld [vmem:[%s1246_s1 + $0x120] sm:$0xff] }
   0xf   :  { %578 = vmatpush.bf16.msra.mxu1 %v959_v13  ;;  %v1001_v48 = vld [vmem:[%s1246_s1 + $0x1b0] sm:$0xff]  ;;  %v992_v51 = vld [vmem:[%s1246_s1 + $0x168] sm:$0xff]  ;;  %v991_v55 = vld [vmem:[%s1246_s1 + $0x160] sm:$0xff] }
  0x10   :  { %591 = vmatpush.bf16.msra.mxu2 %v967_v14  ;;  %v164_v42 = vpack.c.b16 %v156_v32, %v156_v32  ;;  %v165_v44 = vpack.c.b16 %v157_v36, %v157_v36  ;;  %v1009_v49 = vld [vmem:[%s1246_s1 + $0x1f0] sm:$0xff]  ;;  %v1000_v52 = vld [vmem:[%s1246_s1 + $0x1a8] sm:$0xff]  ;;  %v999_v56 = vld [vmem:[%s1246_s1 + $0x1a0] sm:$0xff] }
  0x11   :  { %604 = vmatpush.bf16.msra.mxu3 %v975_v15  ;;  %v1008_v53 = vld [vmem:[%s1246_s1 + $0x1e8] sm:$0xff]  ;;  %v1007_v57 = vld [vmem:[%s1246_s1 + $0x1e0] sm:$0xff]  ;;  %v982_v58 = vld [vmem:[%s1246_s1 + $0x118] sm:$0xff] }
  0x12   :  { %566 = vmatpush.bf16.msra.mxu0 %v950_v16  ;;  %v990_v59 = vld [vmem:[%s1246_s1 + $0x158] sm:$0xff]  ;;  %v981_v62 = vld [vmem:[%s1246_s1 + $0x110] sm:$0xff]  ;;  %v980_v2 = vld [vmem:[%s1246_s1 + $0x108] sm:$0xff] }
  0x13   :  { %579 = vmatpush.bf16.msra.mxu1 %v958_v17  ;;  %v998_v60 = vld [vmem:[%s1246_s1 + $0x198] sm:$0xff]  ;;  %v989_v63 = vld [vmem:[%s1246_s1 + $0x150] sm:$0xff]  ;;  %v988_v3 = vld [vmem:[%s1246_s1 + $0x148] sm:$0xff] }
  0x14   :  { %592 = vmatpush.bf16.msra.mxu2 %v966_v18  ;;  %v1006_v61 = vld [vmem:[%s1246_s1 + $0x1d8] sm:$0xff]  ;;  %v997_v0 = vld [vmem:[%s1246_s1 + $0x190] sm:$0xff]  ;;  %v996_v5 = vld [vmem:[%s1246_s1 + $0x188] sm:$0xff] }
  0x15   :  { %605 = vmatpush.bf16.msra.mxu3 %v974_v19  ;;  %v1005_v1 = vld [vmem:[%s1246_s1 + $0x1d0] sm:$0xff]  ;;  %v1004_v6 = vld [vmem:[%s1246_s1 + $0x1c8] sm:$0xff]  ;;  %v17_v7 = vld [vmem:[%s1248_s0 + $0x18] sm:$0xff] }
  0x16   :  { %567 = vmatpush.bf16.msra.mxu0 %v949_v20  ;;  %v16_v4 = vld [vmem:[%s1248_s0 + $0x10] sm:$0xff]  ;;  %v979_v10 = vld [vmem:[%s1246_s1 + $0x100] sm:$0xff]  ;;  %v160_v12 = vunpack.c.l.b16 %v17_v7  ;;  %v161_v13 = vunpack.c.h.b16 %v17_v7 }
  0x17   :  { %580 = vmatpush.bf16.msra.mxu1 %v957_v21  ;;  %v158_v8 = vunpack.c.l.b16 %v16_v4  ;;  %v159_v9 = vunpack.c.h.b16 %v16_v4  ;;  %v987_v11 = vld [vmem:[%s1246_s1 + $0x140] sm:$0xff] }
  0x18   :  { %593 = vmatpush.bf16.msra.mxu2 %v965_v22  ;;  %v995_v14 = vld [vmem:[%s1246_s1 + $0x180] sm:$0xff]  ;;  %v168_v18 = vpack.c.b16 %v160_v12, %v160_v12  ;;  %v169_v19 = vpack.c.b16 %v161_v13, %v161_v13 }
  0x19   :  { %606 = vmatpush.bf16.msra.mxu3 %v973_v23  ;;  %v1003_v15 = vld [vmem:[%s1246_s1 + $0x1c0] sm:$0xff]  ;;  %v166_v16 = vpack.c.b16 %v158_v8, %v158_v8  ;;  %v167_v17 = vpack.c.b16 %v159_v9, %v159_v9 }
  0x1a   :  { %568 = vmatpush.bf16.msra.mxu0 %v948_v24 }
  0x1b   :  { %581 = vmatpush.bf16.msra.mxu1 %v956_v25 }
  0x1c   :  { %594 = vmatpush.bf16.msra.mxu2 %v964_v26  ;;  %v1012_v26 = vld [vmem:[%s1247_s2] ss:$0 sm:$0xff] }
  0x1d   :  { %607 = vmatpush.bf16.msra.mxu3 %v972_v27 }
  0x1e   :  { %569 = vmatpush.bf16.msra.mxu0 %v947_v30 }
  0x1f   :  { %582 = vmatpush.bf16.msra.mxu1 %v955_v31 }
  0x20   :  { %595 = vmatpush.bf16.msra.mxu2 %v963_v34 }
  0x21   :  { %608 = vmatpush.bf16.msra.mxu3 %v971_v35  ;;  %570 = vmatmul.bf16.vlgmr.msra.gmra.mxu0 %v162_v43  ;;  %v666_v35 = vlaneseq }
  0x22   :  { %614 = vmatpush.bf16.msrb.mxu0 %v986_v38  ;;  %583 = vmatmul.bf16.vlgmr.msra.gmra.mxu1 %v163_v45 }
  0x23   :  { %627 = vmatpush.bf16.msrb.mxu1 %v994_v39  ;;  %596 = vmatmul.bf16.vlgmr.msra.gmra.mxu2 %v164_v42  ;;  %v667_v37 = vand.u32 127, %v666_v35 }
  0x24   :  { %640 = vmatpush.bf16.msrb.mxu2 %v1002_v40  ;;  %609 = vmatmul.bf16.vlgmr.msra.gmra.mxu3 %v165_v44 }
  0x25   :  { %653 = vmatpush.bf16.msrb.mxu3 %v1010_v41  ;;  %vm668_vm0 = vcmp.lt.s32.totalorder %v667_v37, 6  ;;  %vm680_vm1 = vcmp.eq.s32.totalorder %v667_v37, 6 }
  0x26   :  { %615 = vmatpush.bf16.msrb.mxu0 %v985_v46 }
  0x27   :  { %628 = vmatpush.bf16.msrb.mxu1 %v993_v47 }
  0x28   :  { %641 = vmatpush.bf16.msrb.mxu2 %v1001_v48 }
  0x29   :  { %654 = vmatpush.bf16.msrb.mxu3 %v1009_v49  ;;  %v1015_v49 = vmov 6.0  }
  0x2a   :  { %616 = vmatpush.bf16.msrb.mxu0 %v984_v50  ;;  %1013 = vrcp.f32 %v1015_v49 }
  0x2b   :  { %629 = vmatpush.bf16.msrb.mxu1 %v992_v51 }
  0x2c   :  { %642 = vmatpush.bf16.msrb.mxu2 %v1000_v52 }
  0x2d   :  { %655 = vmatpush.bf16.msrb.mxu3 %v1008_v53 }
  0x2e   :  { %617 = vmatpush.bf16.msrb.mxu0 %v983_v54 }
  0x2f   :  { %630 = vmatpush.bf16.msrb.mxu1 %v991_v55 }
  0x30   :  { %643 = vmatpush.bf16.msrb.mxu2 %v999_v56  ;;  %v1014_v50 = vpop.eup %1013 }
  0x31   :  { %656 = vmatpush.bf16.msrb.mxu3 %v1007_v57  ;;  %v673_v51 = vmul.f32 6.0, %v1014_v50  ;;  %vm677_vm2 = vweird.f32 %v1014_v50 }
  0x32   :  { %618 = vmatpush.bf16.msrb.mxu0 %v982_v58 }
  0x33   :  { %631 = vmatpush.bf16.msrb.mxu1 %v990_v59  ;;  %v674_v52 = vsub.f32 1.0, %v673_v51 }
  0x34   :  { %644 = vmatpush.bf16.msrb.mxu2 %v998_v60 }
  0x35   :  { %657 = vmatpush.bf16.msrb.mxu3 %v1006_v61  ;;  %v675_v53 = vmul.f32 %v1014_v50, %v674_v52 }
  0x36   :  { %619 = vmatpush.bf16.msrb.mxu0 %v981_v62 }
  0x37   :  { %632 = vmatpush.bf16.msrb.mxu1 %v989_v63  ;;  %v676_v54 = vadd.f32 %v1014_v50, %v675_v53 }
  0x38   :  { %645 = vmatpush.bf16.msrb.mxu2 %v997_v0 }
  0x39   :  { %658 = vmatpush.bf16.msrb.mxu3 %v1005_v1  ;;  %v678_v55 = vsel %vm677_vm2, %v1014_v50, %v676_v54 }
  0x3a   :  { %620 = vmatpush.bf16.msrb.mxu0 %v980_v2 }
  0x3b   :  { %633 = vmatpush.bf16.msrb.mxu1 %v988_v3 }
  0x3c   :  { %646 = vmatpush.bf16.msrb.mxu2 %v996_v5 }
  0x3d   :  { %659 = vmatpush.bf16.msrb.mxu3 %v1004_v6 }
  0x3e   :  { %621 = vmatpush.bf16.msrb.mxu0 %v979_v10 }
  0x3f   :  { %634 = vmatpush.bf16.msrb.mxu1 %v987_v11 }
  0x40   :  { %647 = vmatpush.bf16.msrb.mxu2 %v995_v14 }
  0x41   :  { %660 = vmatpush.bf16.msrb.mxu3 %v1003_v15  ;;  %622 = vmatmul.bf16.vlgmr.msrb.gmra.mxu0 %v166_v16 }
  0x42   :  { %635 = vmatmul.bf16.vlgmr.msrb.gmra.mxu1 %v167_v17 }
  0x43   :  { %648 = vmatmul.bf16.vlgmr.msrb.gmra.mxu2 %v168_v18 }
  0x44   :  { %661 = vmatmul.bf16.vlgmr.msrb.gmra.mxu3 %v169_v19 }
  0x9e   :  { %v571_v20 = vpop.f32.mrf.mxu0 }
  0x9f   :  { %v584_v21 = vpop.f32.mrf.mxu1  ;;  %v572_v29 = vadd.f32 %v1012_v26, %v571_v20 }
  0xa1   :  { %v585_v30 = vadd.f32 %v584_v21, %v572_v29 }
  0xa6   :  { %v597_v22 = vpop.f32.mrf.mxu2  ;;  %v573_v24 = vpop.f32.mrf.mxu0 }
  0xa7   :  { %v610_v23 = vpop.f32.mrf.mxu3  ;;  %v586_v25 = vpop.f32.mrf.mxu1  ;;  %v598_v31 = vadd.f32 %v597_v22, %v585_v30 }
  0xa9   :  { %v611_v32 = vadd.f32 %v610_v23, %v598_v31 }
  0xae   :  { %v599_v27 = vpop.f32.mrf.mxu2 }
  0xaf   :  { %v612_v28 = vpop.f32.mrf.mxu3 }
  0xbe   :  { %v623_v33 = vpop.f32.mrf.mxu0 }
  0xbf   :  { %v636_v34 = vpop.f32.mrf.mxu1  ;;  %v624_v36 = vadd.f32 %v623_v33, %v611_v32 }
  0xc1   :  { %v637_v38 = vadd.f32 %v636_v34, %v624_v36 }
  0xc6   :  { %v649_v39 = vpop.f32.mrf.mxu2  ;;  %v625_v42 = vpop.f32.mrf.mxu0 }
  0xc7   :  { %v662_v40 = vpop.f32.mrf.mxu3  ;;  %v650_v41 = vadd.f32 %v649_v39, %v637_v38  ;;  %v638_v43 = vpop.f32.mrf.mxu1 }
  0xc9   :  { %v663_v44 = vadd.f32 %v662_v40, %v650_v41 }
  0xcb   :  { %v669_v45 = vsel %vm668_vm0, %v663_v44, 0.0  ;;  %v681_v48 = vsel %vm680_vm1, %v663_v44, 0.0 }
  0xcc   :  { %670 = vadd.xlane.f32.xlu0 %v669_v45 }
  0xce   :  { %v651_v46 = vpop.f32.mrf.mxu2 }
  0xcf   :  { %v664_v47 = vpop.f32.mrf.mxu3 }
  0xd4   :  { %682 = vadd.xlane.f32.xlu0 %v681_v48 }
 0x13f   :  { %v671_v56 = vpop.xlane.xlu0 %670 }
 0x140   :  { %v679_v57 = vmul.f32 %v678_v55, %v671_v56 }
 0x142   :  { %v684_v58 = vsub.f32 %v663_v44, %v679_v57 }
 0x147   :  { %v683_v59 = vpop.xlane.xlu0 %682 }
 0x148   :  { %v685_v60 = vadd.f32 %v684_v58, %v683_v59 }
 0x14a   :  { %686 = vst [vmem:[%s1249_s3] sm:$0xff] %v685_v60 }

// kernel: dueling_dqn_forward.8
= control target key start
LH: loop header
LB: loop body
LE: loop exit
PB: predicated region body
PF: predicated region fallthrough
CT: control target
= control target key end

     0   :  { %s19558_s1 = inlined_call_operand.vmem [shape: bf16[2048,1024], index: 1, kind: input, shape index: {}]   ;;  %s19559_s0 = inlined_call_operand.vmem [shape: bf16[8,2048], index: 0, kind: input, shape index: {}]   ;;  %s19560_s2 = inlined_call_operand.vmem [shape: f32[1,1024], index: 2, kind: input, shape index: {}]   ;;  %s19561_s3 = inlined_call_operand.vmem [shape: bf16[8,1024], index: 3, kind: output, shape index: {}]  }
   0x1   :  { %v8150_v0 = vld [vmem:[%s19558_s1 + $0x1c0] sm:$0xf] }
   0x2   :  { %v12080_v1 = vld [vmem:[%s19558_s1 + $0x1dc] sm:$0xf0] }
   0x3   :  { %v8406_v2 = vld [vmem:[%s19558_s1 + $0x3c0] sm:$0xf]  ;;  %v8151_v3 = vor.u32 %v12080_v1, %v8150_v0 }
   0x4   :  { %v12144_v4 = vld [vmem:[%s19558_s1 + $0x3dc] sm:$0xf0] }
   0x5   :  { %v8662_v5 = vld [vmem:[%s19558_s1 + $0x5c0] sm:$0xf]  ;;  %v8407_v7 = vor.u32 %v12144_v4, %v8406_v2  ;;  %6240 = vmatpush.bf16.msra.mxu0 %v8151_v3 }
   0x6   :  { %v12208_v6 = vld [vmem:[%s19558_s1 + $0x5dc] sm:$0xf0] }
   0x7   :  { %v8663_v8 = vor.u32 %v12208_v6, %v8662_v5  ;;  %v8918_v9 = vld [vmem:[%s19558_s1 + $0x7c0] sm:$0xf]  ;;  %6253 = vmatpush.bf16.msra.mxu1 %v8407_v7 }
   0x8   :  { %v12272_v10 = vld [vmem:[%s19558_s1 + $0x7dc] sm:$0xf0] }
   0x9   :  { %v8118_v11 = vld [vmem:[%s19558_s1 + $0x180] sm:$0xf]  ;;  %v8919_v12 = vor.u32 %v12272_v10, %v8918_v9  ;;  %6266 = vmatpush.bf16.msra.mxu2 %v8663_v8 }
   0xa   :  { %v12072_v13 = vld [vmem:[%s19558_s1 + $0x19c] sm:$0xf0] }
   0xb   :  { %v8374_v14 = vld [vmem:[%s19558_s1 + $0x380] sm:$0xf]  ;;  %v8119_v16 = vor.u32 %v12072_v13, %v8118_v11  ;;  %6279 = vmatpush.bf16.msra.mxu3 %v8919_v12 }
   0xc   :  { %v12136_v15 = vld [vmem:[%s19558_s1 + $0x39c] sm:$0xf0] }
   0xd   :  { %v8375_v17 = vor.u32 %v12136_v15, %v8374_v14  ;;  %v8630_v18 = vld [vmem:[%s19558_s1 + $0x580] sm:$0xf]  ;;  %6241 = vmatpush.bf16.msra.mxu0 %v8119_v16 }
   0xe   :  { %v12200_v19 = vld [vmem:[%s19558_s1 + $0x59c] sm:$0xf0] }
   0xf   :  { %v8886_v20 = vld [vmem:[%s19558_s1 + $0x780] sm:$0xf]  ;;  %v8631_v21 = vor.u32 %v12200_v19, %v8630_v18  ;;  %6254 = vmatpush.bf16.msra.mxu1 %v8375_v17 }
  0x10   :  { %v12264_v22 = vld [vmem:[%s19558_s1 + $0x79c] sm:$0xf0] }
  0x11   :  { %v8086_v23 = vld [vmem:[%s19558_s1 + $0x140] sm:$0xf]  ;;  %v8887_v25 = vor.u32 %v12264_v22, %v8886_v20  ;;  %6267 = vmatpush.bf16.msra.mxu2 %v8631_v21 }
  0x12   :  { %v12064_v24 = vld [vmem:[%s19558_s1 + $0x15c] sm:$0xf0] }
  0x13   :  { %v8342_v26 = vld [vmem:[%s19558_s1 + $0x340] sm:$0xf]  ;;  %v8087_v29 = vor.u32 %v12064_v24, %v8086_v23  ;;  %6280 = vmatpush.bf16.msra.mxu3 %v8887_v25 }
  0x14   :  { %v12128_v27 = vld [vmem:[%s19558_s1 + $0x35c] sm:$0xf0] }
  0x15   :  { %v8598_v28 = vld [vmem:[%s19558_s1 + $0x540] sm:$0xf]  ;;  %v8343_v33 = vor.u32 %v12128_v27, %v8342_v26  ;;  %6242 = vmatpush.bf16.msra.mxu0 %v8087_v29 }
  0x16   :  { %v12192_v30 = vld [vmem:[%s19558_s1 + $0x55c] sm:$0xf0] }
  0x17   :  { %v8854_v31 = vld [vmem:[%s19558_s1 + $0x740] sm:$0xf]  ;;  %v8599_v34 = vor.u32 %v12192_v30, %v8598_v28  ;;  %6255 = vmatpush.bf16.msra.mxu1 %v8343_v33 }
  0x18   :  { %v12256_v32 = vld [vmem:[%s19558_s1 + $0x75c] sm:$0xf0] }
  0x19   :  { %v8054_v35 = vld [vmem:[%s19558_s1 + $0x100] sm:$0xf]  ;;  %v8855_v38 = vor.u32 %v12256_v32, %v8854_v31  ;;  %6268 = vmatpush.bf16.msra.mxu2 %v8599_v34 }
  0x1a   :  { %v12056_v36 = vld [vmem:[%s19558_s1 + $0x11c] sm:$0xf0] }
  0x1b   :  { %v8310_v37 = vld [vmem:[%s19558_s1 + $0x300] sm:$0xf]  ;;  %v8055_v44 = vor.u32 %v12056_v36, %v8054_v35  ;;  %6281 = vmatpush.bf16.msra.mxu3 %v8855_v38 }
  0x1c   :  { %v12120_v39 = vld [vmem:[%s19558_s1 + $0x31c] sm:$0xf0] }
  0x1d   :  { %v8566_v40 = vld [vmem:[%s19558_s1 + $0x500] sm:$0xf]  ;;  %v8311_v45 = vor.u32 %v12120_v39, %v8310_v37  ;;  %6243 = vmatpush.bf16.msra.mxu0 %v8055_v44 }
  0x1e   :  { %v12184_v41 = vld [vmem:[%s19558_s1 + $0x51c] sm:$0xf0] }
  0x1f   :  { %v8822_v42 = vld [vmem:[%s19558_s1 + $0x700] sm:$0xf]  ;;  %v8567_v46 = vor.u32 %v12184_v41, %v8566_v40  ;;  %6256 = vmatpush.bf16.msra.mxu1 %v8311_v45 }
  0x20   :  { %v12248_v43 = vld [vmem:[%s19558_s1 + $0x71c] sm:$0xf0] }
  0x21   :  { %v8022_v47 = vld [vmem:[%s19558_s1 + $0xc0] sm:$0xf]  ;;  %v8823_v50 = vor.u32 %v12248_v43, %v8822_v42  ;;  %6269 = vmatpush.bf16.msra.mxu2 %v8567_v46 }
  0x22   :  { %v12048_v48 = vld [vmem:[%s19558_s1 + $0xdc] sm:$0xf0] }
  0x23   :  { %v8278_v49 = vld [vmem:[%s19558_s1 + $0x2c0] sm:$0xf]  ;;  %v8023_v56 = vor.u32 %v12048_v48, %v8022_v47  ;;  %6282 = vmatpush.bf16.msra.mxu3 %v8823_v50 }
  0x24   :  { %v12112_v51 = vld [vmem:[%s19558_s1 + $0x2dc] sm:$0xf0] }
  0x25   :  { %v8534_v52 = vld [vmem:[%s19558_s1 + $0x4c0] sm:$0xf]  ;;  %v8279_v57 = vor.u32 %v12112_v51, %v8278_v49  ;;  %6244 = vmatpush.bf16.msra.mxu0 %v8023_v56 }
  0x26   :  { %v12176_v53 = vld [vmem:[%s19558_s1 + $0x4dc] sm:$0xf0] }
  0x27   :  { %v8790_v54 = vld [vmem:[%s19558_s1 + $0x6c0] sm:$0xf]  ;;  %v8535_v58 = vor.u32 %v12176_v53, %v8534_v52  ;;  %6257 = vmatpush.bf16.msra.mxu1 %v8279_v57 }
  0x28   :  { %v12240_v55 = vld [vmem:[%s19558_s1 + $0x6dc] sm:$0xf0] }
  0x29   :  { %v7990_v59 = vld [vmem:[%s19558_s1 + $0x80] sm:$0xf]  ;;  %v8791_v62 = vor.u32 %v12240_v55, %v8790_v54  ;;  %6270 = vmatpush.bf16.msra.mxu2 %v8535_v58  ;;  %v15_v58 = vld [vmem:[%s19559_s0 + $0x8] sm:$0xff] }
  0x2a   :  { %v12040_v60 = vld [vmem:[%s19558_s1 + $0x9c] sm:$0xf0] }
  0x2b   :  { %v8246_v61 = vld [vmem:[%s19558_s1 + $0x280] sm:$0xf]  ;;  %v7991_v4 = vor.u32 %v12040_v60, %v7990_v59  ;;  %6283 = vmatpush.bf16.msra.mxu3 %v8791_v62 }
  0x2c   :  { %v12104_v63 = vld [vmem:[%s19558_s1 + $0x29c] sm:$0xf0] }
  0x2d   :  { %v8502_v0 = vld [vmem:[%s19558_s1 + $0x480] sm:$0xf]  ;;  %v8247_v5 = vor.u32 %v12104_v63, %v8246_v61  ;;  %6245 = vmatpush.bf16.msra.mxu0 %v7991_v4  ;;  %v1074_v63 = vunpack.c.l.b16 %v15_v58 }
  0x2e   :  { %v12168_v1 = vld [vmem:[%s19558_s1 + $0x49c] sm:$0xf0] }
  0x2f   :  { %v8758_v2 = vld [vmem:[%s19558_s1 + $0x680] sm:$0xf]  ;;  %v8503_v6 = vor.u32 %v12168_v1, %v8502_v0  ;;  %6258 = vmatpush.bf16.msra.mxu1 %v8247_v5  ;;  %v1075_v0 = vunpack.c.h.b16 %v15_v58  ;;  %v13337_v4 = vpack.c.b16 %v1074_v63, %v1074_v63 }
  0x30   :  { %v12232_v3 = vld [vmem:[%s19558_s1 + $0x69c] sm:$0xf0] }
  0x31   :  { %v7958_v7 = vld [vmem:[%s19558_s1 + $0x40] sm:$0xf]  ;;  %v8759_v10 = vor.u32 %v12232_v3, %v8758_v2  ;;  %6271 = vmatpush.bf16.msra.mxu2 %v8503_v6  ;;  %v13342_v6 = vpack.c.b16 %v1075_v0, %v1075_v0 }
  0x32   :  { %v12032_v8 = vld [vmem:[%s19558_s1 + $0x5c] sm:$0xf0] }
  0x33   :  { %v8214_v9 = vld [vmem:[%s19558_s1 + $0x240] sm:$0xf]  ;;  %v7959_v16 = vor.u32 %v12032_v8, %v7958_v7  ;;  %6284 = vmatpush.bf16.msra.mxu3 %v8759_v10 }
  0x34   :  { %v12096_v11 = vld [vmem:[%s19558_s1 + $0x25c] sm:$0xf0] }
  0x35   :  { %v8470_v12 = vld [vmem:[%s19558_s1 + $0x440] sm:$0xf]  ;;  %v8215_v19 = vor.u32 %v12096_v11, %v8214_v9  ;;  %6246 = vmatpush.bf16.msra.mxu0 %v7959_v16 }
  0x36   :  { %v12160_v13 = vld [vmem:[%s19558_s1 + $0x45c] sm:$0xf0] }
  0x37   :  { %v8726_v14 = vld [vmem:[%s19558_s1 + $0x640] sm:$0xf]  ;;  %v8471_v20 = vor.u32 %v12160_v13, %v8470_v12  ;;  %6259 = vmatpush.bf16.msra.mxu1 %v8215_v19 }
  0x38   :  { %v12224_v15 = vld [vmem:[%s19558_s1 + $0x65c] sm:$0xf0] }
  0x39   :  { %v7926_v17 = vld [vmem:[%s19558_s1] sm:$0xf]  ;;  %v8727_v24 = vor.u32 %v12224_v15, %v8726_v14  ;;  %6272 = vmatpush.bf16.msra.mxu2 %v8471_v20 }
  0x3a   :  { %v12024_v18 = vld [vmem:[%s19558_s1 + $0x1c] sm:$0xf0] }
  0x3b   :  { %v8182_v21 = vld [vmem:[%s19558_s1 + $0x200] sm:$0xf]  ;;  %v7927_v31 = vor.u32 %v12024_v18, %v7926_v17  ;;  %6285 = vmatpush.bf16.msra.mxu3 %v8727_v24 }
  0x3c   :  { %v12088_v22 = vld [vmem:[%s19558_s1 + $0x21c] sm:$0xf0] }
  0x3d   :  { %v8438_v23 = vld [vmem:[%s19558_s1 + $0x400] sm:$0xf]  ;;  %v8183_v35 = vor.u32 %v12088_v22, %v8182_v21  ;;  %6247 = vmatpush.bf16.msra.mxu0 %v7927_v31 }
  0x3e   :  { %v12152_v25 = vld [vmem:[%s19558_s1 + $0x41c] sm:$0xf0] }
  0x3f   :  { %v8694_v26 = vld [vmem:[%s19558_s1 + $0x600] sm:$0xf]  ;;  %v8439_v36 = vor.u32 %v12152_v25, %v8438_v23  ;;  %6260 = vmatpush.bf16.msra.mxu1 %v8183_v35 }
  0x40   :  { %v12216_v27 = vld [vmem:[%s19558_s1 + $0x61c] sm:$0xf0] }
  0x41   :  { %v9174_v28 = vld [vmem:[%s19558_s1 + $0x9c0] sm:$0xf]  ;;  %v8695_v39 = vor.u32 %v12216_v27, %v8694_v26  ;;  %6273 = vmatpush.bf16.msra.mxu2 %v8439_v36 }
  0x42   :  { %v12336_v29 = vld [vmem:[%s19558_s1 + $0x9dc] sm:$0xf0] }
  0x43   :  { %v9430_v30 = vld [vmem:[%s19558_s1 + $0xbc0] sm:$0xf]  ;;  %v9175_v40 = vor.u32 %v12336_v29, %v9174_v28  ;;  %6286 = vmatpush.bf16.msra.mxu3 %v8695_v39 }
  0x44   :  { %v12400_v32 = vld [vmem:[%s19558_s1 + $0xbdc] sm:$0xf0]  ;;  %6274 = vmatmul.bf16.vlgmr.msra.gmra.mxu2 %v13337_v4 }
  0x45   :  { %v9686_v33 = vld [vmem:[%s19558_s1 + $0xdc0] sm:$0xf]  ;;  %v9431_v41 = vor.u32 %v12400_v32, %v9430_v30  ;;  %6292 = vmatpush.bf16.msrb.mxu0 %v9175_v40 }
  0x46   :  { %v12464_v34 = vld [vmem:[%s19558_s1 + $0xddc] sm:$0xf0]  ;;  %6287 = vmatmul.bf16.vlgmr.msra.gmra.mxu3 %v13342_v6 }
  0x47   :  { %v9942_v37 = vld [vmem:[%s19558_s1 + $0xfc0] sm:$0xf]  ;;  %v9687_v42 = vor.u32 %v12464_v34, %v9686_v33  ;;  %6305 = vmatpush.bf16.msrb.mxu1 %v9431_v41 }
  0x48   :  { %v12528_v38 = vld [vmem:[%s19558_s1 + $0xfdc] sm:$0xf0] }
  0x49   :  { %v9142_v43 = vld [vmem:[%s19558_s1 + $0x980] sm:$0xf]  ;;  %v9943_v46 = vor.u32 %v12528_v38, %v9942_v37  ;;  %6318 = vmatpush.bf16.msrb.mxu2 %v9687_v42 }
  0x4a   :  { %v12328_v44 = vld [vmem:[%s19558_s1 + $0x99c] sm:$0xf0] }
  0x4b   :  { %v9398_v45 = vld [vmem:[%s19558_s1 + $0xb80] sm:$0xf]  ;;  %v9143_v52 = vor.u32 %v12328_v44, %v9142_v43  ;;  %6331 = vmatpush.bf16.msrb.mxu3 %v9943_v46 }
  0x4c   :  { %v12392_v47 = vld [vmem:[%s19558_s1 + $0xb9c] sm:$0xf0] }
  0x4d   :  { %v9654_v48 = vld [vmem:[%s19558_s1 + $0xd80] sm:$0xf]  ;;  %v9399_v54 = vor.u32 %v12392_v47, %v9398_v45  ;;  %6293 = vmatpush.bf16.msrb.mxu0 %v9143_v52 }
  0x4e   :  { %v12456_v49 = vld [vmem:[%s19558_s1 + $0xd9c] sm:$0xf0] }
  0x4f   :  { %v9910_v50 = vld [vmem:[%s19558_s1 + $0xf80] sm:$0xf]  ;;  %v9655_v55 = vor.u32 %v12456_v49, %v9654_v48  ;;  %6306 = vmatpush.bf16.msrb.mxu1 %v9399_v54 }
  0x50   :  { %v12520_v51 = vld [vmem:[%s19558_s1 + $0xf9c] sm:$0xf0] }
  0x51   :  { %v9110_v53 = vld [vmem:[%s19558_s1 + $0x940] sm:$0xf]  ;;  %v9911_v59 = vor.u32 %v12520_v51, %v9910_v50  ;;  %6319 = vmatpush.bf16.msrb.mxu2 %v9655_v55 }
  0x52   :  { %v12320_v56 = vld [vmem:[%s19558_s1 + $0x95c] sm:$0xf0] }
  0x53   :  { %v9366_v57 = vld [vmem:[%s19558_s1 + $0xb40] sm:$0xf]  ;;  %v9111_v3 = vor.u32 %v12320_v56, %v9110_v53  ;;  %6332 = vmatpush.bf16.msrb.mxu3 %v9911_v59 }
  0x54   :  { %v12384_v60 = vld [vmem:[%s19558_s1 + $0xb5c] sm:$0xf0] }
  0x55   :  { %v9622_v61 = vld [vmem:[%s19558_s1 + $0xd40] sm:$0xf]  ;;  %v9367_v7 = vor.u32 %v12384_v60, %v9366_v57  ;;  %6294 = vmatpush.bf16.msrb.mxu0 %v9111_v3  ;;  %v17_v3 = vld [vmem:[%s19559_s0 + $0x18] sm:$0xff] }
  0x56   :  { %v12448_v62 = vld [vmem:[%s19558_s1 + $0xd5c] sm:$0xf0] }
  0x57   :  { %v9878_v1 = vld [vmem:[%s19558_s1 + $0xf40] sm:$0xf]  ;;  %v9623_v8 = vor.u32 %v12448_v62, %v9622_v61  ;;  %6307 = vmatpush.bf16.msrb.mxu1 %v9367_v7 }
  0x58   :  { %v12512_v2 = vld [vmem:[%s19558_s1 + $0xf5c] sm:$0xf0] }
  0x59   :  { %v14_v5 = vld [vmem:[%s19559_s0] sm:$0xff]  ;;  %v9879_v14 = vor.u32 %v12512_v2, %v9878_v1  ;;  %6320 = vmatpush.bf16.msrb.mxu2 %v9623_v8 }
  0x5a   :  { %v9078_v9 = vld [vmem:[%s19558_s1 + $0x900] sm:$0xf]  ;;  %v1072_v12 = vunpack.c.l.b16 %v14_v5  ;;  %v1073_v13 = vunpack.c.h.b16 %v14_v5 }
  0x5b   :  { %v12312_v10 = vld [vmem:[%s19558_s1 + $0x91c] sm:$0xf0]  ;;  %6333 = vmatpush.bf16.msrb.mxu3 %v9879_v14 }
  0x5c   :  { %v9334_v11 = vld [vmem:[%s19558_s1 + $0xb00] sm:$0xf]  ;;  %v13369_v20 = vpack.c.b16 %v1072_v12, %v1072_v12  ;;  %v13372_v21 = vpack.c.b16 %v1073_v13, %v1073_v13  ;;  %v9079_v22 = vor.u32 %v12312_v10, %v9078_v9  ;;  %v16_v9 = vld [vmem:[%s19559_s0 + $0x10] sm:$0xff] }
  0x5d   :  { %v12376_v15 = vld [vmem:[%s19558_s1 + $0xb1c] sm:$0xf0] }
  0x5e   :  { %v9590_v16 = vld [vmem:[%s19558_s1 + $0xd00] sm:$0xf]  ;;  %v9335_v23 = vor.u32 %v12376_v15, %v9334_v11  ;;  %6248 = vmatmul.bf16.vlgmr.msra.gmra.mxu0 %v13369_v20  ;;  %6261 = vmatmul.bf16.vlgmr.msra.gmra.mxu1 %v13372_v21 }
  0x5f   :  { %v12440_v17 = vld [vmem:[%s19558_s1 + $0xd1c] sm:$0xf0]  ;;  %6295 = vmatpush.bf16.msrb.mxu0 %v9079_v22 }
  0x60   :  { %v9846_v18 = vld [vmem:[%s19558_s1 + $0xf00] sm:$0xf]  ;;  %v9591_v24 = vor.u32 %v12440_v17, %v9590_v16  ;;  %6308 = vmatpush.bf16.msrb.mxu1 %v9335_v23  ;;  %v1078_v17 = vunpack.c.l.b16 %v17_v3 }
  0x61   :  { %v12504_v19 = vld [vmem:[%s19558_s1 + $0xf1c] sm:$0xf0] }
  0x62   :  { %v9046_v25 = vld [vmem:[%s19558_s1 + $0x8c0] sm:$0xf]  ;;  %v9847_v28 = vor.u32 %v12504_v19, %v9846_v18  ;;  %6321 = vmatpush.bf16.msrb.mxu2 %v9591_v24  ;;  %v1076_v24 = vunpack.c.l.b16 %v16_v9 }
  0x63   :  { %v12304_v26 = vld [vmem:[%s19558_s1 + $0x8dc] sm:$0xf0] }
  0x64   :  { %v9302_v27 = vld [vmem:[%s19558_s1 + $0xac0] sm:$0xf]  ;;  %v9047_v34 = vor.u32 %v12304_v26, %v9046_v25  ;;  %6334 = vmatpush.bf16.msrb.mxu3 %v9847_v28  ;;  %v1079_v25 = vunpack.c.h.b16 %v17_v3  ;;  %v1077_v28 = vunpack.c.h.b16 %v16_v9 }
  0x65   :  { %v12368_v29 = vld [vmem:[%s19558_s1 + $0xadc] sm:$0xf0] }
  0x66   :  { %v9558_v30 = vld [vmem:[%s19558_s1 + $0xcc0] sm:$0xf]  ;;  %v9303_v35 = vor.u32 %v12368_v29, %v9302_v27  ;;  %6296 = vmatpush.bf16.msrb.mxu0 %v9047_v34 }
  0x67   :  { %v12432_v31 = vld [vmem:[%s19558_s1 + $0xcdc] sm:$0xf0] }
  0x68   :  { %v9814_v32 = vld [vmem:[%s19558_s1 + $0xec0] sm:$0xf]  ;;  %v9559_v36 = vor.u32 %v12432_v31, %v9558_v30  ;;  %6309 = vmatpush.bf16.msrb.mxu1 %v9303_v35 }
  0x69   :  { %v12496_v33 = vld [vmem:[%s19558_s1 + $0xedc] sm:$0xf0] }
  0x6a   :  { %v9014_v37 = vld [vmem:[%s19558_s1 + $0x880] sm:$0xf]  ;;  %v9815_v40 = vor.u32 %v12496_v33, %v9814_v32  ;;  %6322 = vmatpush.bf16.msrb.mxu2 %v9559_v36 }
  0x6b   :  { %v12296_v38 = vld [vmem:[%s19558_s1 + $0x89c] sm:$0xf0] }
  0x6c   :  { %v9270_v39 = vld [vmem:[%s19558_s1 + $0xa80] sm:$0xf]  ;;  %v9015_v46 = vor.u32 %v12296_v38, %v9014_v37  ;;  %6335 = vmatpush.bf16.msrb.mxu3 %v9815_v40  ;;  %v13520_v38 = vpack.c.b16 %v1078_v17, %v1078_v17 }
  0x6d   :  { %v12360_v41 = vld [vmem:[%s19558_s1 + $0xa9c] sm:$0xf0] }
  0x6e   :  { %v9526_v42 = vld [vmem:[%s19558_s1 + $0xc80] sm:$0xf]  ;;  %v9271_v47 = vor.u32 %v12360_v41, %v9270_v39  ;;  %6297 = vmatpush.bf16.msrb.mxu0 %v9015_v46  ;;  %v13528_v41 = vpack.c.b16 %v1076_v24, %v1076_v24 }
  0x6f   :  { %v12424_v43 = vld [vmem:[%s19558_s1 + $0xc9c] sm:$0xf0] }
  0x70   :  { %v9782_v44 = vld [vmem:[%s19558_s1 + $0xe80] sm:$0xf]  ;;  %v9527_v48 = vor.u32 %v12424_v43, %v9526_v42  ;;  %6310 = vmatpush.bf16.msrb.mxu1 %v9271_v47  ;;  %v13530_v42 = vpack.c.b16 %v1079_v25, %v1079_v25 }
  0x71   :  { %v12488_v45 = vld [vmem:[%s19558_s1 + $0xe9c] sm:$0xf0] }
  0x72   :  { %v8982_v49 = vld [vmem:[%s19558_s1 + $0x840] sm:$0xf]  ;;  %v9783_v52 = vor.u32 %v12488_v45, %v9782_v44  ;;  %6323 = vmatpush.bf16.msrb.mxu2 %v9527_v48  ;;  %v13532_v44 = vpack.c.b16 %v1077_v28, %v1077_v28 }
  0x73   :  { %v12288_v50 = vld [vmem:[%s19558_s1 + $0x85c] sm:$0xf0] }
  0x74   :  { %v9238_v51 = vld [vmem:[%s19558_s1 + $0xa40] sm:$0xf]  ;;  %v8983_v59 = vor.u32 %v12288_v50, %v8982_v49  ;;  %6336 = vmatpush.bf16.msrb.mxu3 %v9783_v52 }
  0x75   :  { %v12352_v53 = vld [vmem:[%s19558_s1 + $0xa5c] sm:$0xf0] }
  0x76   :  { %v9494_v54 = vld [vmem:[%s19558_s1 + $0xc40] sm:$0xf]  ;;  %v9239_v63 = vor.u32 %v12352_v53, %v9238_v51  ;;  %6298 = vmatpush.bf16.msrb.mxu0 %v8983_v59 }
  0x77   :  { %v12416_v55 = vld [vmem:[%s19558_s1 + $0xc5c] sm:$0xf0] }
  0x78   :  { %v9750_v56 = vld [vmem:[%s19558_s1 + $0xe40] sm:$0xf]  ;;  %v9495_v0 = vor.u32 %v12416_v55, %v9494_v54  ;;  %6311 = vmatpush.bf16.msrb.mxu1 %v9239_v63 }
  0x79   :  { %v12480_v57 = vld [vmem:[%s19558_s1 + $0xe5c] sm:$0xf0] }
  0x7a   :  { %v8950_v58 = vld [vmem:[%s19558_s1 + $0x800] sm:$0xf]  ;;  %v9751_v5 = vor.u32 %v12480_v57, %v9750_v56  ;;  %6324 = vmatpush.bf16.msrb.mxu2 %v9495_v0 }
  0x7b   :  { %v12280_v60 = vld [vmem:[%s19558_s1 + $0x81c] sm:$0xf0] }
  0x7c   :  { %v9206_v61 = vld [vmem:[%s19558_s1 + $0xa00] sm:$0xf]  ;;  %v8951_v13 = vor.u32 %v12280_v60, %v8950_v58  ;;  %6337 = vmatpush.bf16.msrb.mxu3 %v9751_v5 }
  0x7d   :  { %v12344_v62 = vld [vmem:[%s19558_s1 + $0xa1c] sm:$0xf0] }
  0x7e   :  { %v9462_v1 = vld [vmem:[%s19558_s1 + $0xc00] sm:$0xf]  ;;  %v9207_v18 = vor.u32 %v12344_v62, %v9206_v61  ;;  %6299 = vmatpush.bf16.msrb.mxu0 %v8951_v13 }
  0x7f   :  { %v12408_v2 = vld [vmem:[%s19558_s1 + $0xc1c] sm:$0xf0] }
  0x80   :  { %v9718_v7 = vld [vmem:[%s19558_s1 + $0xe00] sm:$0xf]  ;;  %v9463_v19 = vor.u32 %v12408_v2, %v9462_v1  ;;  %6312 = vmatpush.bf16.msrb.mxu1 %v9207_v18 }
  0x81   :  { %v12472_v8 = vld [vmem:[%s19558_s1 + $0xe1c] sm:$0xf0]  ;;  %6300 = vmatmul.bf16.vlgmr.msrb.gmra.mxu0 %v13528_v41 }
  0x82   :  { %v10198_v10 = vld [vmem:[%s19558_s1 + $0x11c0] sm:$0xf]  ;;  %v9719_v26 = vor.u32 %v12472_v8, %v9718_v7  ;;  %6325 = vmatpush.bf16.msrb.mxu2 %v9463_v19 }
  0x83   :  { %v12592_v11 = vld [vmem:[%s19558_s1 + $0x11dc] sm:$0xf0]  ;;  %6313 = vmatmul.bf16.vlgmr.msrb.gmra.mxu1 %v13532_v44 }
  0x84   :  { %v10454_v12 = vld [vmem:[%s19558_s1 + $0x13c0] sm:$0xf]  ;;  %v10199_v27 = vor.u32 %v12592_v11, %v10198_v10  ;;  %6338 = vmatpush.bf16.msrb.mxu3 %v9719_v26 }
  0x85   :  { %v12656_v14 = vld [vmem:[%s19558_s1 + $0x13dc] sm:$0xf0]  ;;  %6326 = vmatmul.bf16.vlgmr.msrb.gmra.mxu2 %v13520_v38 }
  0x86   :  { %v10710_v15 = vld [vmem:[%s19558_s1 + $0x15c0] sm:$0xf]  ;;  %v10455_v29 = vor.u32 %v12656_v14, %v10454_v12  ;;  %6344 = vmatpush.bf16.msra.mxu0 %v10199_v27 }
  0x87   :  { %v12720_v16 = vld [vmem:[%s19558_s1 + $0x15dc] sm:$0xf0]  ;;  %6339 = vmatmul.bf16.vlgmr.msrb.gmra.mxu3 %v13530_v42 }
  0x88   :  { %v10966_v22 = vld [vmem:[%s19558_s1 + $0x17c0] sm:$0xf]  ;;  %v10711_v30 = vor.u32 %v12720_v16, %v10710_v15  ;;  %6357 = vmatpush.bf16.msra.mxu1 %v10455_v29 }
  0x89   :  { %v12784_v23 = vld [vmem:[%s19558_s1 + $0x17dc] sm:$0xf0] }
  0x8a   :  { %v10166_v31 = vld [vmem:[%s19558_s1 + $0x1180] sm:$0xf]  ;;  %v10967_v34 = vor.u32 %v12784_v23, %v10966_v22  ;;  %6370 = vmatpush.bf16.msra.mxu2 %v10711_v30 }
  0x8b   :  { %v12584_v32 = vld [vmem:[%s19558_s1 + $0x119c] sm:$0xf0] }
  0x8c   :  { %v10422_v33 = vld [vmem:[%s19558_s1 + $0x1380] sm:$0xf]  ;;  %v10167_v43 = vor.u32 %v12584_v32, %v10166_v31  ;;  %6383 = vmatpush.bf16.msra.mxu3 %v10967_v34 }
  0x8d   :  { %v12648_v35 = vld [vmem:[%s19558_s1 + $0x139c] sm:$0xf0] }
  0x8e   :  { %v10678_v36 = vld [vmem:[%s19558_s1 + $0x1580] sm:$0xf]  ;;  %v10423_v45 = vor.u32 %v12648_v35, %v10422_v33  ;;  %6345 = vmatpush.bf16.msra.mxu0 %v10167_v43 }
  0x8f   :  { %v12712_v37 = vld [vmem:[%s19558_s1 + $0x159c] sm:$0xf0] }
  0x90   :  { %v10934_v39 = vld [vmem:[%s19558_s1 + $0x1780] sm:$0xf]  ;;  %v10679_v46 = vor.u32 %v12712_v37, %v10678_v36  ;;  %6358 = vmatpush.bf16.msra.mxu1 %v10423_v45 }
  0x91   :  { %v12776_v40 = vld [vmem:[%s19558_s1 + $0x179c] sm:$0xf0] }
  0x92   :  { %v10134_v47 = vld [vmem:[%s19558_s1 + $0x1140] sm:$0xf]  ;;  %v10935_v50 = vor.u32 %v12776_v40, %v10934_v39  ;;  %6371 = vmatpush.bf16.msra.mxu2 %v10679_v46 }
  0x93   :  { %v12576_v48 = vld [vmem:[%s19558_s1 + $0x115c] sm:$0xf0] }
  0x94   :  { %v10390_v49 = vld [vmem:[%s19558_s1 + $0x1340] sm:$0xf]  ;;  %v10135_v56 = vor.u32 %v12576_v48, %v10134_v47  ;;  %6384 = vmatpush.bf16.msra.mxu3 %v10935_v50 }
  0x95   :  { %v12640_v51 = vld [vmem:[%s19558_s1 + $0x135c] sm:$0xf0] }
  0x96   :  { %v10646_v52 = vld [vmem:[%s19558_s1 + $0x1540] sm:$0xf]  ;;  %v10391_v57 = vor.u32 %v12640_v51, %v10390_v49  ;;  %6346 = vmatpush.bf16.msra.mxu0 %v10135_v56 }
  0x97   :  { %v12704_v53 = vld [vmem:[%s19558_s1 + $0x155c] sm:$0xf0] }
  0x98   :  { %v10902_v54 = vld [vmem:[%s19558_s1 + $0x1740] sm:$0xf]  ;;  %v10647_v58 = vor.u32 %v12704_v53, %v10646_v52  ;;  %6359 = vmatpush.bf16.msra.mxu1 %v10391_v57 }
  0x99   :  { %v12768_v55 = vld [vmem:[%s19558_s1 + $0x175c] sm:$0xf0] }
  0x9a   :  { %v10102_v59 = vld [vmem:[%s19558_s1 + $0x1100] sm:$0xf]  ;;  %v10903_v62 = vor.u32 %v12768_v55, %v10902_v54  ;;  %6372 = vmatpush.bf16.msra.mxu2 %v10647_v58 }
  0x9b   :  { %v12568_v60 = vld [vmem:[%s19558_s1 + $0x111c] sm:$0xf0] }
  0x9c   :  { %v10358_v61 = vld [vmem:[%s19558_s1 + $0x1300] sm:$0xf]  ;;  %v10103_v5 = vor.u32 %v12568_v60, %v10102_v59  ;;  %6385 = vmatpush.bf16.msra.mxu3 %v10903_v62 }
  0x9d   :  { %v12632_v63 = vld [vmem:[%s19558_s1 + $0x131c] sm:$0xf0] }
  0x9e   :  { %v10614_v0 = vld [vmem:[%s19558_s1 + $0x1500] sm:$0xf]  ;;  %v10359_v7 = vor.u32 %v12632_v63, %v10358_v61  ;;  %6347 = vmatpush.bf16.msra.mxu0 %v10103_v5  ;;  %v19_v61 = vld [vmem:[%s19559_s0 + $0x28] sm:$0xff] }
  0x9f   :  { %v12696_v1 = vld [vmem:[%s19558_s1 + $0x151c] sm:$0xf0] }
  0xa0   :  { %v10870_v2 = vld [vmem:[%s19558_s1 + $0x1700] sm:$0xf]  ;;  %v10615_v8 = vor.u32 %v12696_v1, %v10614_v0  ;;  %6360 = vmatpush.bf16.msra.mxu1 %v10359_v7 }
  0xa1   :  { %v12760_v3 = vld [vmem:[%s19558_s1 + $0x171c] sm:$0xf0] }
  0xa2   :  { %v10070_v9 = vld [vmem:[%s19558_s1 + $0x10c0] sm:$0xf]  ;;  %v10871_v12 = vor.u32 %v12760_v3, %v10870_v2  ;;  %6373 = vmatpush.bf16.msra.mxu2 %v10615_v8 }
  0xa3   :  { %v12560_v10 = vld [vmem:[%s19558_s1 + $0x10dc] sm:$0xf0] }
  0xa4   :  { %v10326_v11 = vld [vmem:[%s19558_s1 + $0x12c0] sm:$0xf]  ;;  %v10071_v18 = vor.u32 %v12560_v10, %v10070_v9  ;;  %6386 = vmatpush.bf16.msra.mxu3 %v10871_v12  ;;  %v1082_v12 = vunpack.c.l.b16 %v19_v61 }
  0xa5   :  { %v12624_v13 = vld [vmem:[%s19558_s1 + $0x12dc] sm:$0xf0] }
  0xa6   :  { %v10582_v14 = vld [vmem:[%s19558_s1 + $0x14c0] sm:$0xf]  ;;  %v10327_v19 = vor.u32 %v12624_v13, %v10326_v11  ;;  %6348 = vmatpush.bf16.msra.mxu0 %v10071_v18 }
  0xa7   :  { %v12688_v15 = vld [vmem:[%s19558_s1 + $0x14dc] sm:$0xf0] }
  0xa8   :  { %v10838_v16 = vld [vmem:[%s19558_s1 + $0x16c0] sm:$0xf]  ;;  %v10583_v22 = vor.u32 %v12688_v15, %v10582_v14  ;;  %6361 = vmatpush.bf16.msra.mxu1 %v10327_v19 }
  0xa9   :  { %v12752_v17 = vld [vmem:[%s19558_s1 + $0x16dc] sm:$0xf0] }
  0xaa   :  { %v10038_v23 = vld [vmem:[%s19558_s1 + $0x1080] sm:$0xf]  ;;  %v10839_v26 = vor.u32 %v12752_v17, %v10838_v16  ;;  %6374 = vmatpush.bf16.msra.mxu2 %v10583_v22  ;;  %v1083_v16 = vunpack.c.h.b16 %v19_v61 }
  0xab   :  { %v12552_v24 = vld [vmem:[%s19558_s1 + $0x109c] sm:$0xf0] }
  0xac   :  { %v10294_v25 = vld [vmem:[%s19558_s1 + $0x1280] sm:$0xf]  ;;  %v10039_v32 = vor.u32 %v12552_v24, %v10038_v23  ;;  %6387 = vmatpush.bf16.msra.mxu3 %v10839_v26 }
  0xad   :  { %v12616_v27 = vld [vmem:[%s19558_s1 + $0x129c] sm:$0xf0] }
  0xae   :  { %v10550_v28 = vld [vmem:[%s19558_s1 + $0x1480] sm:$0xf]  ;;  %v10295_v33 = vor.u32 %v12616_v27, %v10294_v25  ;;  %6349 = vmatpush.bf16.msra.mxu0 %v10039_v32 }
  0xaf   :  { %v12680_v29 = vld [vmem:[%s19558_s1 + $0x149c] sm:$0xf0] }
  0xb0   :  { %v10806_v30 = vld [vmem:[%s19558_s1 + $0x1680] sm:$0xf]  ;;  %v10551_v34 = vor.u32 %v12680_v29, %v10550_v28  ;;  %6362 = vmatpush.bf16.msra.mxu1 %v10295_v33  ;;  %v13732_v29 = vpack.c.b16 %v1082_v12, %v1082_v12  ;;  %v13742_v33 = vpack.c.b16 %v1083_v16, %v1083_v16 }
  0xb1   :  { %v12744_v31 = vld [vmem:[%s19558_s1 + $0x169c] sm:$0xf0] }
  0xb2   :  { %v10006_v35 = vld [vmem:[%s19558_s1 + $0x1040] sm:$0xf]  ;;  %v10807_v39 = vor.u32 %v12744_v31, %v10806_v30  ;;  %6375 = vmatpush.bf16.msra.mxu2 %v10551_v34 }
  0xb3   :  { %v12544_v36 = vld [vmem:[%s19558_s1 + $0x105c] sm:$0xf0] }
  0xb4   :  { %v10262_v37 = vld [vmem:[%s19558_s1 + $0x1240] sm:$0xf]  ;;  %v10007_v49 = vor.u32 %v12544_v36, %v10006_v35  ;;  %6388 = vmatpush.bf16.msra.mxu3 %v10807_v39 }
  0xb5   :  { %v12608_v40 = vld [vmem:[%s19558_s1 + $0x125c] sm:$0xf0] }
  0xb6   :  { %v10518_v43 = vld [vmem:[%s19558_s1 + $0x1440] sm:$0xf]  ;;  %v10263_v53 = vor.u32 %v12608_v40, %v10262_v37  ;;  %6350 = vmatpush.bf16.msra.mxu0 %v10007_v49 }
  0xb7   :  { %v12672_v45 = vld [vmem:[%s19558_s1 + $0x145c] sm:$0xf0] }
  0xb8   :  { %v10774_v46 = vld [vmem:[%s19558_s1 + $0x1640] sm:$0xf]  ;;  %v10519_v54 = vor.u32 %v12672_v45, %v10518_v43  ;;  %6363 = vmatpush.bf16.msra.mxu1 %v10263_v53 }
  0xb9   :  { %v12736_v47 = vld [vmem:[%s19558_s1 + $0x165c] sm:$0xf0] }
  0xba   :  { %v9974_v48 = vld [vmem:[%s19558_s1 + $0x1000] sm:$0xf]  ;;  %v10775_v58 = vor.u32 %v12736_v47, %v10774_v46  ;;  %6376 = vmatpush.bf16.msra.mxu2 %v10519_v54 }
  0xbb   :  { %v12536_v50 = vld [vmem:[%s19558_s1 + $0x101c] sm:$0xf0] }
  0xbc   :  { %v10230_v51 = vld [vmem:[%s19558_s1 + $0x1200] sm:$0xf]  ;;  %v9975_v1 = vor.u32 %v12536_v50, %v9974_v48  ;;  %6389 = vmatpush.bf16.msra.mxu3 %v10775_v58 }
  0xbd   :  { %v12600_v52 = vld [vmem:[%s19558_s1 + $0x121c] sm:$0xf0] }
  0xbe   :  { %v10486_v55 = vld [vmem:[%s19558_s1 + $0x1400] sm:$0xf]  ;;  %v10231_v8 = vor.u32 %v12600_v52, %v10230_v51  ;;  %6351 = vmatpush.bf16.msra.mxu0 %v9975_v1 }
  0xbf   :  { %v12664_v56 = vld [vmem:[%s19558_s1 + $0x141c] sm:$0xf0] }
  0xc0   :  { %v18_v57 = vld [vmem:[%s19559_s0 + $0x20] sm:$0xff]  ;;  %v10487_v9 = vor.u32 %v12664_v56, %v10486_v55  ;;  %6364 = vmatpush.bf16.msra.mxu1 %v10231_v8 }
  0xc1   :  { %v10742_v59 = vld [vmem:[%s19558_s1 + $0x1600] sm:$0xf]  ;;  %v1080_v7 = vunpack.c.l.b16 %v18_v57  ;;  %v1081_v13 = vunpack.c.h.b16 %v18_v57 }
  0xc2   :  { %v12728_v60 = vld [vmem:[%s19558_s1 + $0x161c] sm:$0xf0]  ;;  %6377 = vmatpush.bf16.msra.mxu2 %v10487_v9 }
  0xc3   :  { %v11222_v62 = vld [vmem:[%s19558_s1 + $0x19c0] sm:$0xf]  ;;  %v10743_v14 = vor.u32 %v12728_v60, %v10742_v59  ;;  %v13721_v25 = vpack.c.b16 %v1080_v7, %v1080_v7  ;;  %v13734_v30 = vpack.c.b16 %v1081_v13, %v1081_v13 }
  0xc4   :  { %v12848_v63 = vld [vmem:[%s19558_s1 + $0x19dc] sm:$0xf0] }
  0xc5   :  { %v11478_v0 = vld [vmem:[%s19558_s1 + $0x1bc0] sm:$0xf]  ;;  %v11223_v15 = vor.u32 %v12848_v63, %v11222_v62  ;;  %6390 = vmatpush.bf16.msra.mxu3 %v10743_v14  ;;  %6352 = vmatmul.bf16.vlgmr.msra.gmra.mxu0 %v13721_v25 }
  0xc6   :  { %v12912_v2 = vld [vmem:[%s19558_s1 + $0x1bdc] sm:$0xf0]  ;;  %6378 = vmatmul.bf16.vlgmr.msra.gmra.mxu2 %v13732_v29  ;;  %6365 = vmatmul.bf16.vlgmr.msra.gmra.mxu1 %v13734_v30 }
  0xc7   :  { %v11734_v3 = vld [vmem:[%s19558_s1 + $0x1dc0] sm:$0xf]  ;;  %v11479_v17 = vor.u32 %v12912_v2, %v11478_v0  ;;  %6396 = vmatpush.bf16.msrb.mxu0 %v11223_v15 }
  0xc8   :  { %v12976_v5 = vld [vmem:[%s19558_s1 + $0x1ddc] sm:$0xf0]  ;;  %6391 = vmatmul.bf16.vlgmr.msra.gmra.mxu3 %v13742_v33 }
  0xc9   :  { %v11990_v10 = vld [vmem:[%s19558_s1 + $0x1fc0] sm:$0xf]  ;;  %v11735_v18 = vor.u32 %v12976_v5, %v11734_v3  ;;  %6409 = vmatpush.bf16.msrb.mxu1 %v11479_v17 }
  0xca   :  { %v13040_v11 = vld [vmem:[%s19558_s1 + $0x1fdc] sm:$0xf0] }
  0xcb   :  { %v11190_v19 = vld [vmem:[%s19558_s1 + $0x1980] sm:$0xf]  ;;  %v11991_v24 = vor.u32 %v13040_v11, %v11990_v10  ;;  %6422 = vmatpush.bf16.msrb.mxu2 %v11735_v18 }
  0xcc   :  { %v12840_v22 = vld [vmem:[%s19558_s1 + $0x199c] sm:$0xf0] }
  0xcd   :  { %v11446_v23 = vld [vmem:[%s19558_s1 + $0x1b80] sm:$0xf]  ;;  %v11191_v34 = vor.u32 %v12840_v22, %v11190_v19  ;;  %6435 = vmatpush.bf16.msrb.mxu3 %v11991_v24 }
  0xce   :  { %v12904_v26 = vld [vmem:[%s19558_s1 + $0x1b9c] sm:$0xf0] }
  0xcf   :  { %v11702_v27 = vld [vmem:[%s19558_s1 + $0x1d80] sm:$0xf]  ;;  %v11447_v35 = vor.u32 %v12904_v26, %v11446_v23  ;;  %6397 = vmatpush.bf16.msrb.mxu0 %v11191_v34 }
  0xd0   :  { %v12968_v28 = vld [vmem:[%s19558_s1 + $0x1d9c] sm:$0xf0] }
  0xd1   :  { %v11958_v31 = vld [vmem:[%s19558_s1 + $0x1f80] sm:$0xf]  ;;  %v11703_v36 = vor.u32 %v12968_v28, %v11702_v27  ;;  %6410 = vmatpush.bf16.msrb.mxu1 %v11447_v35 }
  0xd2   :  { %v13032_v32 = vld [vmem:[%s19558_s1 + $0x1f9c] sm:$0xf0] }
  0xd3   :  { %v11158_v37 = vld [vmem:[%s19558_s1 + $0x1940] sm:$0xf]  ;;  %v11959_v43 = vor.u32 %v13032_v32, %v11958_v31  ;;  %6423 = vmatpush.bf16.msrb.mxu2 %v11703_v36 }
  0xd4   :  { %v12832_v39 = vld [vmem:[%s19558_s1 + $0x195c] sm:$0xf0] }
  0xd5   :  { %v11414_v40 = vld [vmem:[%s19558_s1 + $0x1b40] sm:$0xf]  ;;  %v11159_v50 = vor.u32 %v12832_v39, %v11158_v37  ;;  %6436 = vmatpush.bf16.msrb.mxu3 %v11959_v43 }
  0xd6   :  { %v12896_v45 = vld [vmem:[%s19558_s1 + $0x1b5c] sm:$0xf0] }
  0xd7   :  { %v11670_v46 = vld [vmem:[%s19558_s1 + $0x1d40] sm:$0xf]  ;;  %v11415_v51 = vor.u32 %v12896_v45, %v11414_v40  ;;  %6398 = vmatpush.bf16.msrb.mxu0 %v11159_v50 }
  0xd8   :  { %v12960_v47 = vld [vmem:[%s19558_s1 + $0x1d5c] sm:$0xf0] }
  0xd9   :  { %v11926_v48 = vld [vmem:[%s19558_s1 + $0x1f40] sm:$0xf]  ;;  %v11671_v52 = vor.u32 %v12960_v47, %v11670_v46  ;;  %6411 = vmatpush.bf16.msrb.mxu1 %v11415_v51 }
  0xda   :  { %v13024_v49 = vld [vmem:[%s19558_s1 + $0x1f5c] sm:$0xf0] }
  0xdb   :  { %v11126_v53 = vld [vmem:[%s19558_s1 + $0x1900] sm:$0xf]  ;;  %v11927_v56 = vor.u32 %v13024_v49, %v11926_v48  ;;  %6424 = vmatpush.bf16.msrb.mxu2 %v11671_v52 }
  0xdc   :  { %v12824_v54 = vld [vmem:[%s19558_s1 + $0x191c] sm:$0xf0] }
  0xdd   :  { %v11382_v55 = vld [vmem:[%s19558_s1 + $0x1b00] sm:$0xf]  ;;  %v11127_v62 = vor.u32 %v12824_v54, %v11126_v53  ;;  %6437 = vmatpush.bf16.msrb.mxu3 %v11927_v56 }
  0xde   :  { %v12888_v57 = vld [vmem:[%s19558_s1 + $0x1b1c] sm:$0xf0] }
  0xdf   :  { %v11638_v58 = vld [vmem:[%s19558_s1 + $0x1d00] sm:$0xf]  ;;  %v11383_v63 = vor.u32 %v12888_v57, %v11382_v55  ;;  %6399 = vmatpush.bf16.msrb.mxu0 %v11127_v62  ;;  %v20_v55 = vld [vmem:[%s19559_s0 + $0x30] sm:$0xff]  ;;  %v12140_v62 = vld [vmem:[%s19558_s1 + $0x3c4] sm:$0xf] }
  0xe0   :  { %v12952_v59 = vld [vmem:[%s19558_s1 + $0x1d1c] sm:$0xf0] }
  0xe1   :  { %v11894_v60 = vld [vmem:[%s19558_s1 + $0x1f00] sm:$0xf]  ;;  %v11639_v0 = vor.u32 %v12952_v59, %v11638_v58  ;;  %6412 = vmatpush.bf16.msrb.mxu1 %v11383_v63  ;;  %v21_v59 = vld [vmem:[%s19559_s0 + $0x38] sm:$0xff] }
  0xe2   :  { %v13016_v61 = vld [vmem:[%s19558_s1 + $0x1f1c] sm:$0xf0] }
  0xe3   :  { %v11094_v1 = vld [vmem:[%s19558_s1 + $0x18c0] sm:$0xf]  ;;  %v11895_v5 = vor.u32 %v13016_v61, %v11894_v60  ;;  %6425 = vmatpush.bf16.msrb.mxu2 %v11639_v0  ;;  %v12076_v60 = vld [vmem:[%s19558_s1 + $0x1c4] sm:$0xf] }
  0xe4   :  { %v12816_v2 = vld [vmem:[%s19558_s1 + $0x18dc] sm:$0xf0]  ;;  %v8152_v61 = vld [vmem:[%s19558_s1 + $0x1e0] sm:$0xf0] }
  0xe5   :  { %v11350_v3 = vld [vmem:[%s19558_s1 + $0x1ac0] sm:$0xf]  ;;  %v11095_v12 = vor.u32 %v12816_v2, %v11094_v1  ;;  %6438 = vmatpush.bf16.msrb.mxu3 %v11895_v5  ;;  %v8408_v0 = vld [vmem:[%s19558_s1 + $0x3e0] sm:$0xf0] }
  0xe6   :  { %v12880_v7 = vld [vmem:[%s19558_s1 + $0x1adc] sm:$0xf0]  ;;  %v12204_v1 = vld [vmem:[%s19558_s1 + $0x5c4] sm:$0xf] }
  0xe7   :  { %v11606_v8 = vld [vmem:[%s19558_s1 + $0x1cc0] sm:$0xf]  ;;  %v11351_v13 = vor.u32 %v12880_v7, %v11350_v3  ;;  %6400 = vmatpush.bf16.msrb.mxu0 %v11095_v12  ;;  %v8664_v2 = vld [vmem:[%s19558_s1 + $0x5e0] sm:$0xf0]  ;;  %v1084_v3 = vunpack.c.l.b16 %v20_v55 }
  0xe8   :  { %v12944_v9 = vld [vmem:[%s19558_s1 + $0x1cdc] sm:$0xf0] }
  0xe9   :  { %v11862_v10 = vld [vmem:[%s19558_s1 + $0x1ec0] sm:$0xf]  ;;  %v11607_v14 = vor.u32 %v12944_v9, %v11606_v8  ;;  %6413 = vmatpush.bf16.msrb.mxu1 %v11351_v13  ;;  %v12268_v8 = vld [vmem:[%s19558_s1 + $0x7c4] sm:$0xf]  ;;  %v8155_v13 = vor.u32 %v12076_v60, %v8152_v61 }
  0xea   :  { %v13008_v11 = vld [vmem:[%s19558_s1 + $0x1edc] sm:$0xf0]  ;;  %v8920_v9 = vld [vmem:[%s19558_s1 + $0x7e0] sm:$0xf0] }
  0xeb   :  { %v11062_v15 = vld [vmem:[%s19558_s1 + $0x1880] sm:$0xf]  ;;  %v11863_v18 = vor.u32 %v13008_v11, %v11862_v10  ;;  %6426 = vmatpush.bf16.msrb.mxu2 %v11607_v14  ;;  %v1086_v10 = vunpack.c.l.b16 %v21_v59  ;;  %v1085_v11 = vunpack.c.h.b16 %v20_v55  ;;  %v1087_v14 = vunpack.c.h.b16 %v21_v59  ;;  %v12052_v55 = vld [vmem:[%s19558_s1 + $0x104] sm:$0xf] }
  0xec   :  { %v12808_v16 = vld [vmem:[%s19558_s1 + $0x189c] sm:$0xf0]  ;;  %v8312_v59 = vld [vmem:[%s19558_s1 + $0x320] sm:$0xf0] }
  0xed   :  { %v11318_v17 = vld [vmem:[%s19558_s1 + $0x1a80] sm:$0xf]  ;;  %v11063_v27 = vor.u32 %v12808_v16, %v11062_v15  ;;  %6439 = vmatpush.bf16.msrb.mxu3 %v11863_v18  ;;  %v8411_v15 = vor.u32 %v12140_v62, %v8408_v0  ;;  %v8667_v16 = vor.u32 %v12204_v1, %v8664_v2  ;;  %v8120_v18 = vld [vmem:[%s19558_s1 + $0x1a0] sm:$0xf0] }
  0xee   :  { %v12872_v19 = vld [vmem:[%s19558_s1 + $0x1a9c] sm:$0xf0]  ;;  %v12180_v60 = vld [vmem:[%s19558_s1 + $0x504] sm:$0xf] }
  0xef   :  { %v11574_v22 = vld [vmem:[%s19558_s1 + $0x1c80] sm:$0xf]  ;;  %v11319_v28 = vor.u32 %v12872_v19, %v11318_v17  ;;  %6401 = vmatpush.bf16.msrb.mxu0 %v11063_v27  ;;  %v12068_v17 = vld [vmem:[%s19558_s1 + $0x184] sm:$0xf] }
  0xf0   :  { %v12936_v23 = vld [vmem:[%s19558_s1 + $0x1c9c] sm:$0xf0]  ;;  %v12132_v19 = vld [vmem:[%s19558_s1 + $0x384] sm:$0xf] }
  0xf1   :  { %v11830_v24 = vld [vmem:[%s19558_s1 + $0x1e80] sm:$0xf]  ;;  %v11575_v31 = vor.u32 %v12936_v23, %v11574_v22  ;;  %6414 = vmatpush.bf16.msrb.mxu1 %v11319_v28  ;;  %v8923_v22 = vor.u32 %v12268_v8, %v8920_v9  ;;  %v13931_v23 = vpack.c.b16 %v1084_v3, %v1084_v3  ;;  %v8632_v27 = vld [vmem:[%s19558_s1 + $0x5a0] sm:$0xf0]  ;;  %v13942_v28 = vpack.c.b16 %v1086_v10, %v1086_v10 }
  0xf2   :  { %v13000_v26 = vld [vmem:[%s19558_s1 + $0x1e9c] sm:$0xf0]  ;;  %v8568_v61 = vld [vmem:[%s19558_s1 + $0x520] sm:$0xf0] }
  0xf3   :  { %v11030_v32 = vld [vmem:[%s19558_s1 + $0x1840] sm:$0xf]  ;;  %v11831_v36 = vor.u32 %v13000_v26, %v11830_v24  ;;  %6427 = vmatpush.bf16.msrb.mxu2 %v11575_v31  ;;  %v8376_v24 = vld [vmem:[%s19558_s1 + $0x3a0] sm:$0xf0]  ;;  %v13944_v31 = vpack.c.b16 %v1085_v11, %v1085_v11  ;;  %v8571_v2 = vor.u32 %v12180_v60, %v8568_v61 }
  0xf4   :  { %v12800_v34 = vld [vmem:[%s19558_s1 + $0x185c] sm:$0xf0]  ;;  %v12196_v26 = vld [vmem:[%s19558_s1 + $0x584] sm:$0xf] }
  0xf5   :  { %v11286_v35 = vld [vmem:[%s19558_s1 + $0x1a40] sm:$0xf]  ;;  %v11031_v47 = vor.u32 %v12800_v34, %v11030_v32  ;;  %6440 = vmatpush.bf16.msrb.mxu3 %v11831_v36  ;;  %v12260_v32 = vld [vmem:[%s19558_s1 + $0x784] sm:$0xf]  ;;  %v8123_v36 = vor.u32 %v12068_v17, %v8120_v18 }
  0xf6   :  { %v12864_v37 = vld [vmem:[%s19558_s1 + $0x1a5c] sm:$0xf0]  ;;  %v8888_v34 = vld [vmem:[%s19558_s1 + $0x7a0] sm:$0xf0] }
  0xf7   :  { %v11542_v39 = vld [vmem:[%s19558_s1 + $0x1c40] sm:$0xf]  ;;  %v11287_v51 = vor.u32 %v12864_v37, %v11286_v35  ;;  %6402 = vmatpush.bf16.msrb.mxu0 %v11031_v47  ;;  %v13952_v35 = vpack.c.b16 %v1087_v14, %v1087_v14  ;;  %v8379_v37 = vor.u32 %v12132_v19, %v8376_v24  ;;  %v8344_v47 = vld [vmem:[%s19558_s1 + $0x360] sm:$0xf0] }
  0xf8   :  { %v12928_v40 = vld [vmem:[%s19558_s1 + $0x1c5c] sm:$0xf0]  ;;  %v12244_v62 = vld [vmem:[%s19558_s1 + $0x704] sm:$0xf] }
  0xf9   :  { %v11798_v43 = vld [vmem:[%s19558_s1 + $0x1e40] sm:$0xf]  ;;  %v11543_v52 = vor.u32 %v12928_v40, %v11542_v39  ;;  %6415 = vmatpush.bf16.msrb.mxu1 %v11287_v51  ;;  %v8635_v39 = vor.u32 %v12196_v26, %v8632_v27  ;;  %v12060_v40 = vld [vmem:[%s19558_s1 + $0x144] sm:$0xf] }
  0xfa   :  { %v12992_v45 = vld [vmem:[%s19558_s1 + $0x1e5c] sm:$0xf0]  ;;  %v8856_v51 = vld [vmem:[%s19558_s1 + $0x760] sm:$0xf0] }
  0xfb   :  { %v10998_v46 = vld [vmem:[%s19558_s1 + $0x1800] sm:$0xf]  ;;  %v11799_v56 = vor.u32 %v12992_v45, %v11798_v43  ;;  %6428 = vmatpush.bf16.msrb.mxu2 %v11543_v52  ;;  %v8088_v43 = vld [vmem:[%s19558_s1 + $0x160] sm:$0xf0] }
  0xfc   :  { %v12792_v48 = vld [vmem:[%s19558_s1 + $0x181c] sm:$0xf0]  ;;  %v12124_v45 = vld [vmem:[%s19558_s1 + $0x344] sm:$0xf]  ;;  %v8091_v52 = vor.u32 %v12060_v40, %v8088_v43 }
  0xfd   :  { %v11254_v49 = vld [vmem:[%s19558_s1 + $0x1a00] sm:$0xf]  ;;  %v10999_v63 = vor.u32 %v12792_v48, %v10998_v46  ;;  %6441 = vmatpush.bf16.msrb.mxu3 %v11799_v56  ;;  %v8891_v46 = vor.u32 %v12260_v32, %v8888_v34  ;;  %v12188_v48 = vld [vmem:[%s19558_s1 + $0x544] sm:$0xf] }
  0xfe   :  { %v12856_v50 = vld [vmem:[%s19558_s1 + $0x1a1c] sm:$0xf0]  ;;  %v8056_v56 = vld [vmem:[%s19558_s1 + $0x120] sm:$0xf0] }
  0xff   :  { %v11510_v53 = vld [vmem:[%s19558_s1 + $0x1c00] sm:$0xf]  ;;  %v11255_v5 = vor.u32 %v12856_v50, %v11254_v49  ;;  %6403 = vmatpush.bf16.msrb.mxu0 %v10999_v63  ;;  %v8600_v49 = vld [vmem:[%s19558_s1 + $0x560] sm:$0xf0]  ;;  %v8059_v0 = vor.u32 %v12052_v55, %v8056_v56 }
 0x100   :  { %v12920_v54 = vld [vmem:[%s19558_s1 + $0x1c1c] sm:$0xf0]  ;;  %v12252_v50 = vld [vmem:[%s19558_s1 + $0x744] sm:$0xf] }
 0x101   :  { %v11766_v57 = vld [vmem:[%s19558_s1 + $0x1e00] sm:$0xf]  ;;  %v11511_v7 = vor.u32 %v12920_v54, %v11510_v53  ;;  %6416 = vmatpush.bf16.msrb.mxu1 %v11255_v5  ;;  %v8347_v53 = vor.u32 %v12124_v45, %v8344_v47  ;;  %v8603_v54 = vor.u32 %v12188_v48, %v8600_v49  ;;  %v8824_v63 = vld [vmem:[%s19558_s1 + $0x720] sm:$0xf0] }
 0x102   :  { %v12984_v58 = vld [vmem:[%s19558_s1 + $0x1e1c] sm:$0xf0]  ;;  %6404 = vmatmul.bf16.vlgmr.msrb.gmra.mxu0 %v13931_v23  ;;  %v12044_v3 = vld [vmem:[%s19558_s1 + $0xc4] sm:$0xf]  ;;  %v8827_v8 = vor.u32 %v12244_v62, %v8824_v63 }
 0x103   :  { %v11767_v12 = vor.u32 %v12984_v58, %v11766_v57  ;;  %6429 = vmatpush.bf16.msrb.mxu2 %v11511_v7  ;;  %6448 = vmatpush.bf16.msra.mxu0 %v8155_v13  ;;  %v12116_v57 = vld [vmem:[%s19558_s1 + $0x304] sm:$0xf]  ;;  %v8859_v58 = vor.u32 %v12252_v50, %v8856_v51 }
 0x104   :  { %6417 = vmatmul.bf16.vlgmr.msrb.gmra.mxu1 %v13944_v31  ;;  %v8315_v1 = vor.u32 %v12116_v57, %v8312_v59  ;;  %v8024_v5 = vld [vmem:[%s19558_s1 + $0xe0] sm:$0xf0] }
 0x105   :  { %6442 = vmatpush.bf16.msrb.mxu3 %v11767_v12  ;;  %6461 = vmatpush.bf16.msra.mxu1 %v8411_v15  ;;  %v12108_v7 = vld [vmem:[%s19558_s1 + $0x2c4] sm:$0xf]  ;;  %v8027_v14 = vor.u32 %v12044_v3, %v8024_v5 }
 0x106   :  { %6430 = vmatmul.bf16.vlgmr.msrb.gmra.mxu2 %v13942_v28  ;;  %v8280_v9 = vld [vmem:[%s19558_s1 + $0x2e0] sm:$0xf0] }
 0x107   :  { %6474 = vmatpush.bf16.msra.mxu2 %v8667_v16  ;;  %6449 = vmatpush.bf16.msra.mxu0 %v8123_v36  ;;  %v12172_v10 = vld [vmem:[%s19558_s1 + $0x4c4] sm:$0xf]  ;;  %v8283_v15 = vor.u32 %v12108_v7, %v8280_v9 }
 0x108   :  { %6443 = vmatmul.bf16.vlgmr.msrb.gmra.mxu3 %v13952_v35  ;;  %v8536_v11 = vld [vmem:[%s19558_s1 + $0x4e0] sm:$0xf0] }
 0x109   :  { %6487 = vmatpush.bf16.msra.mxu3 %v8923_v22  ;;  %6462 = vmatpush.bf16.msra.mxu1 %v8379_v37  ;;  %v12236_v12 = vld [vmem:[%s19558_s1 + $0x6c4] sm:$0xf]  ;;  %v8539_v16 = vor.u32 %v12172_v10, %v8536_v11 }
 0x10a   :  { %v8792_v13 = vld [vmem:[%s19558_s1 + $0x6e0] sm:$0xf0] }
 0x10b   :  { %6475 = vmatpush.bf16.msra.mxu2 %v8635_v39  ;;  %6450 = vmatpush.bf16.msra.mxu0 %v8091_v52  ;;  %v12036_v17 = vld [vmem:[%s19558_s1 + $0x84] sm:$0xf]  ;;  %v8795_v22 = vor.u32 %v12236_v12, %v8792_v13 }
 0x10c   :  { %v7992_v18 = vld [vmem:[%s19558_s1 + $0xa0] sm:$0xf0] }
 0x10d   :  { %6488 = vmatpush.bf16.msra.mxu3 %v8891_v46  ;;  %6463 = vmatpush.bf16.msra.mxu1 %v8347_v53  ;;  %v12100_v19 = vld [vmem:[%s19558_s1 + $0x284] sm:$0xf]  ;;  %v7995_v36 = vor.u32 %v12036_v17, %v7992_v18 }
 0x10e   :  { %v8248_v24 = vld [vmem:[%s19558_s1 + $0x2a0] sm:$0xf0] }
 0x10f   :  { %6476 = vmatpush.bf16.msra.mxu2 %v8603_v54  ;;  %6451 = vmatpush.bf16.msra.mxu0 %v8059_v0  ;;  %v12164_v26 = vld [vmem:[%s19558_s1 + $0x484] sm:$0xf]  ;;  %v8251_v37 = vor.u32 %v12100_v19, %v8248_v24 }
 0x110   :  { %v8504_v27 = vld [vmem:[%s19558_s1 + $0x4a0] sm:$0xf0] }
 0x111   :  { %6489 = vmatpush.bf16.msra.mxu3 %v8859_v58  ;;  %6464 = vmatpush.bf16.msra.mxu1 %v8315_v1  ;;  %v12228_v32 = vld [vmem:[%s19558_s1 + $0x684] sm:$0xf]  ;;  %v8507_v39 = vor.u32 %v12164_v26, %v8504_v27 }
 0x112   :  { %v8760_v34 = vld [vmem:[%s19558_s1 + $0x6a0] sm:$0xf0] }
 0x113   :  { %6477 = vmatpush.bf16.msra.mxu2 %v8571_v2  ;;  %6452 = vmatpush.bf16.msra.mxu0 %v8027_v14  ;;  %v12028_v40 = vld [vmem:[%s19558_s1 + $0x44] sm:$0xf]  ;;  %v8763_v46 = vor.u32 %v12228_v32, %v8760_v34 }
 0x114   :  { %v7960_v43 = vld [vmem:[%s19558_s1 + $0x60] sm:$0xf0] }
 0x115   :  { %6490 = vmatpush.bf16.msra.mxu3 %v8827_v8  ;;  %6465 = vmatpush.bf16.msra.mxu1 %v8283_v15  ;;  %v12092_v45 = vld [vmem:[%s19558_s1 + $0x244] sm:$0xf]  ;;  %v7963_v52 = vor.u32 %v12028_v40, %v7960_v43 }
 0x116   :  { %v8216_v47 = vld [vmem:[%s19558_s1 + $0x260] sm:$0xf0] }
 0x117   :  { %6478 = vmatpush.bf16.msra.mxu2 %v8539_v16  ;;  %v12156_v48 = vld [vmem:[%s19558_s1 + $0x444] sm:$0xf]  ;;  %6453 = vmatpush.bf16.msra.mxu0 %v7995_v36  ;;  %v8219_v55 = vor.u32 %v12092_v45, %v8216_v47 }
 0x118   :  { %v8472_v49 = vld [vmem:[%s19558_s1 + $0x460] sm:$0xf0] }
 0x119   :  { %6491 = vmatpush.bf16.msra.mxu3 %v8795_v22  ;;  %v12220_v50 = vld [vmem:[%s19558_s1 + $0x644] sm:$0xf]  ;;  %6466 = vmatpush.bf16.msra.mxu1 %v8251_v37  ;;  %v8475_v56 = vor.u32 %v12156_v48, %v8472_v49 }
 0x11a   :  { %v8728_v51 = vld [vmem:[%s19558_s1 + $0x660] sm:$0xf0] }
 0x11b   :  { %v12020_v53 = vld [vmem:[%s19558_s1 + $0x4] sm:$0xf]  ;;  %6479 = vmatpush.bf16.msra.mxu2 %v8507_v39  ;;  %v8731_v60 = vor.u32 %v12220_v50, %v8728_v51  ;;  %6454 = vmatpush.bf16.msra.mxu0 %v7963_v52 }
 0x11c   :  { %v7928_v54 = vld [vmem:[%s19558_s1 + $0x20] sm:$0xf0] }
 0x11d   :  { %v12084_v57 = vld [vmem:[%s19558_s1 + $0x204] sm:$0xf]  ;;  %6492 = vmatpush.bf16.msra.mxu3 %v8763_v46  ;;  %v7931_v3 = vor.u32 %v12020_v53, %v7928_v54  ;;  %6467 = vmatpush.bf16.msra.mxu1 %v8219_v55 }
 0x11e   :  { %v8184_v58 = vld [vmem:[%s19558_s1 + $0x220] sm:$0xf0] }
 0x11f   :  { %v12148_v59 = vld [vmem:[%s19558_s1 + $0x404] sm:$0xf]  ;;  %6480 = vmatpush.bf16.msra.mxu2 %v8475_v56  ;;  %v8187_v9 = vor.u32 %v12084_v57, %v8184_v58  ;;  %6455 = vmatpush.bf16.msra.mxu0 %v7931_v3 }
 0x120   :  { %v8440_v61 = vld [vmem:[%s19558_s1 + $0x420] sm:$0xf0] }
 0x121   :  { %v12212_v62 = vld [vmem:[%s19558_s1 + $0x604] sm:$0xf]  ;;  %v8443_v10 = vor.u32 %v12148_v59, %v8440_v61  ;;  %6493 = vmatpush.bf16.msra.mxu3 %v8731_v60  ;;  %6468 = vmatpush.bf16.msra.mxu1 %v8187_v9 }
 0x122   :  { %v8696_v63 = vld [vmem:[%s19558_s1 + $0x620] sm:$0xf0]  ;;  %6456 = vmatmul.bf16.vlgmr.msra.gmra.mxu0 %v13369_v20 }
 0x123   :  { %v12332_v0 = vld [vmem:[%s19558_s1 + $0x9c4] sm:$0xf]  ;;  %v8699_v13 = vor.u32 %v12212_v62, %v8696_v63  ;;  %6481 = vmatpush.bf16.msra.mxu2 %v8443_v10 }
 0x124   :  { %v9176_v1 = vld [vmem:[%s19558_s1 + $0x9e0] sm:$0xf0]  ;;  %6469 = vmatmul.bf16.vlgmr.msra.gmra.mxu1 %v13372_v21 }
 0x125   :  { %v12396_v2 = vld [vmem:[%s19558_s1 + $0xbc4] sm:$0xf]  ;;  %v9179_v14 = vor.u32 %v12332_v0, %v9176_v1  ;;  %6494 = vmatpush.bf16.msra.mxu3 %v8699_v13 }
 0x126   :  { %v9432_v5 = vld [vmem:[%s19558_s1 + $0xbe0] sm:$0xf0]  ;;  %6482 = vmatmul.bf16.vlgmr.msra.gmra.mxu2 %v13337_v4 }
 0x127   :  { %v12460_v7 = vld [vmem:[%s19558_s1 + $0xdc4] sm:$0xf]  ;;  %v9435_v15 = vor.u32 %v12396_v2, %v9432_v5  ;;  %6500 = vmatpush.bf16.msrb.mxu0 %v9179_v14 }
 0x128   :  { %v9688_v8 = vld [vmem:[%s19558_s1 + $0xde0] sm:$0xf0]  ;;  %6495 = vmatmul.bf16.vlgmr.msra.gmra.mxu3 %v13342_v6 }
 0x129   :  { %v12524_v11 = vld [vmem:[%s19558_s1 + $0xfc4] sm:$0xf]  ;;  %v9691_v16 = vor.u32 %v12460_v7, %v9688_v8  ;;  %6513 = vmatpush.bf16.msrb.mxu1 %v9435_v15 }
 0x12a   :  { %v9944_v12 = vld [vmem:[%s19558_s1 + $0xfe0] sm:$0xf0] }
 0x12b   :  { %v12324_v17 = vld [vmem:[%s19558_s1 + $0x984] sm:$0xf]  ;;  %v9947_v22 = vor.u32 %v12524_v11, %v9944_v12  ;;  %6526 = vmatpush.bf16.msrb.mxu2 %v9691_v16 }
 0x12c   :  { %v9144_v18 = vld [vmem:[%s19558_s1 + $0x9a0] sm:$0xf0] }
 0x12d   :  { %v12388_v19 = vld [vmem:[%s19558_s1 + $0xb84] sm:$0xf]  ;;  %v9147_v36 = vor.u32 %v12324_v17, %v9144_v18  ;;  %6539 = vmatpush.bf16.msrb.mxu3 %v9947_v22 }
 0x12e   :  { %v9400_v24 = vld [vmem:[%s19558_s1 + $0xba0] sm:$0xf0] }
 0x12f   :  { %v12452_v26 = vld [vmem:[%s19558_s1 + $0xd84] sm:$0xf]  ;;  %v9403_v37 = vor.u32 %v12388_v19, %v9400_v24  ;;  %6501 = vmatpush.bf16.msrb.mxu0 %v9147_v36 }
 0x130   :  { %v9656_v27 = vld [vmem:[%s19558_s1 + $0xda0] sm:$0xf0] }
 0x131   :  { %v12516_v32 = vld [vmem:[%s19558_s1 + $0xf84] sm:$0xf]  ;;  %v9659_v39 = vor.u32 %v12452_v26, %v9656_v27  ;;  %6514 = vmatpush.bf16.msrb.mxu1 %v9403_v37 }
 0x132   :  { %v9912_v34 = vld [vmem:[%s19558_s1 + $0xfa0] sm:$0xf0] }
 0x133   :  { %v12316_v40 = vld [vmem:[%s19558_s1 + $0x944] sm:$0xf]  ;;  %v9915_v46 = vor.u32 %v12516_v32, %v9912_v34  ;;  %6527 = vmatpush.bf16.msrb.mxu2 %v9659_v39  ;;  %v6249_v39 = vpop.f32.mrf.mxu0 }
 0x134   :  { %v9112_v43 = vld [vmem:[%s19558_s1 + $0x960] sm:$0xf0] }
 0x135   :  { %v12380_v45 = vld [vmem:[%s19558_s1 + $0xb44] sm:$0xf]  ;;  %v9115_v52 = vor.u32 %v12316_v40, %v9112_v43  ;;  %6540 = vmatpush.bf16.msrb.mxu3 %v9915_v46 }
 0x136   :  { %v9368_v47 = vld [vmem:[%s19558_s1 + $0xb60] sm:$0xf0] }
 0x137   :  { %v12444_v48 = vld [vmem:[%s19558_s1 + $0xd44] sm:$0xf]  ;;  %v9371_v53 = vor.u32 %v12380_v45, %v9368_v47  ;;  %6502 = vmatpush.bf16.msrb.mxu0 %v9115_v52  ;;  %v6262_v45 = vpop.f32.mrf.mxu1 }
 0x138   :  { %v9624_v49 = vld [vmem:[%s19558_s1 + $0xd60] sm:$0xf0] }
 0x139   :  { %v12508_v50 = vld [vmem:[%s19558_s1 + $0xf44] sm:$0xf]  ;;  %v9627_v54 = vor.u32 %v12444_v48, %v9624_v49  ;;  %6515 = vmatpush.bf16.msrb.mxu1 %v9371_v53 }
 0x13a   :  { %v9880_v51 = vld [vmem:[%s19558_s1 + $0xf60] sm:$0xf0] }
 0x13b   :  { %v12308_v55 = vld [vmem:[%s19558_s1 + $0x904] sm:$0xf]  ;;  %v9883_v58 = vor.u32 %v12508_v50, %v9880_v51  ;;  %6528 = vmatpush.bf16.msrb.mxu2 %v9627_v54  ;;  %v6275_v51 = vpop.f32.mrf.mxu2 }
 0x13c   :  { %v9080_v56 = vld [vmem:[%s19558_s1 + $0x920] sm:$0xf0] }
 0x13d   :  { %v12372_v57 = vld [vmem:[%s19558_s1 + $0xb04] sm:$0xf]  ;;  %v9083_v0 = vor.u32 %v12308_v55, %v9080_v56  ;;  %6541 = vmatpush.bf16.msrb.mxu3 %v9883_v58 }
 0x13e   :  { %v9336_v59 = vld [vmem:[%s19558_s1 + $0xb20] sm:$0xf0] }
 0x13f   :  { %v12436_v60 = vld [vmem:[%s19558_s1 + $0xd04] sm:$0xf]  ;;  %v9339_v2 = vor.u32 %v12372_v57, %v9336_v59  ;;  %6503 = vmatpush.bf16.msrb.mxu0 %v9083_v0  ;;  %v6288_v57 = vpop.f32.mrf.mxu3 }
 0x140   :  { %v9592_v61 = vld [vmem:[%s19558_s1 + $0xd20] sm:$0xf0] }
 0x141   :  { %v12500_v62 = vld [vmem:[%s19558_s1 + $0xf04] sm:$0xf]  ;;  %v9595_v3 = vor.u32 %v12436_v60, %v9592_v61  ;;  %6516 = vmatpush.bf16.msrb.mxu1 %v9339_v2 }
 0x142   :  { %v9848_v63 = vld [vmem:[%s19558_s1 + $0xf20] sm:$0xf0] }
 0x143   :  { %v12300_v1 = vld [vmem:[%s19558_s1 + $0x8c4] sm:$0xf]  ;;  %v9851_v9 = vor.u32 %v12500_v62, %v9848_v63  ;;  %6529 = vmatpush.bf16.msrb.mxu2 %v9595_v3 }
 0x144   :  { %v9048_v5 = vld [vmem:[%s19558_s1 + $0x8e0] sm:$0xf0] }
 0x145   :  { %v12364_v7 = vld [vmem:[%s19558_s1 + $0xac4] sm:$0xf]  ;;  %v9051_v15 = vor.u32 %v12300_v1, %v9048_v5  ;;  %6542 = vmatpush.bf16.msrb.mxu3 %v9851_v9 }
 0x146   :  { %v1046_v8 = vld [vmem:[%s19560_s2] sm:$0xff] }
 0x147   :  { %v9304_v10 = vld [vmem:[%s19558_s1 + $0xae0] sm:$0xf0]  ;;  %v1048_v16 = vperm.slane %v1046_v8, 0  ;;  %6504 = vmatpush.bf16.msrb.mxu0 %v9051_v15  ;;  %v6251_v15 = vpop.f32.mrf.mxu0 }
 0x148   :  { %v12428_v11 = vld [vmem:[%s19558_s1 + $0xcc4] sm:$0xf]  ;;  %v9307_v17 = vor.u32 %v12364_v7, %v9304_v10 }
 0x149   :  { %v9560_v12 = vld [vmem:[%s19558_s1 + $0xce0] sm:$0xf0]  ;;  %v6250_v43 = vadd.f32 %v6249_v39, %v1048_v16  ;;  %v6290_v39 = vpop.f32.mrf.mxu3 }
 0x14a   :  { %v12492_v13 = vld [vmem:[%s19558_s1 + $0xec4] sm:$0xf]  ;;  %v9563_v18 = vor.u32 %v12428_v11, %v9560_v12  ;;  %6517 = vmatpush.bf16.msrb.mxu1 %v9307_v17 }
 0x14b   :  { %v9816_v14 = vld [vmem:[%s19558_s1 + $0xee0] sm:$0xf0]  ;;  %v6263_v56 = vadd.f32 %v6262_v45, %v6250_v43 }
 0x14c   :  { %v12292_v19 = vld [vmem:[%s19558_s1 + $0x884] sm:$0xf]  ;;  %v9819_v26 = vor.u32 %v12492_v13, %v9816_v14  ;;  %6530 = vmatpush.bf16.msrb.mxu2 %v9563_v18 }
 0x14d   :  { %v9016_v22 = vld [vmem:[%s19558_s1 + $0x8a0] sm:$0xf0]  ;;  %v6276_v63 = vadd.f32 %v6275_v51, %v6263_v56 }
 0x14e   :  { %v12356_v24 = vld [vmem:[%s19558_s1 + $0xa84] sm:$0xf]  ;;  %v9019_v40 = vor.u32 %v12292_v19, %v9016_v22  ;;  %6543 = vmatpush.bf16.msrb.mxu3 %v9819_v26  ;;  %v6264_v22 = vpop.f32.mrf.mxu1 }
 0x14f   :  { %v9272_v27 = vld [vmem:[%s19558_s1 + $0xaa0] sm:$0xf0]  ;;  %v14301_v11 = vadd.f32 %v6288_v57, %v6276_v63 }
 0x150   :  { %v12420_v32 = vld [vmem:[%s19558_s1 + $0xc84] sm:$0xf]  ;;  %v9275_v46 = vor.u32 %v12356_v24, %v9272_v27  ;;  %6505 = vmatpush.bf16.msrb.mxu0 %v9019_v40 }
 0x151   :  { %v9528_v34 = vld [vmem:[%s19558_s1 + $0xca0] sm:$0xf0] }
 0x152   :  { %v12484_v36 = vld [vmem:[%s19558_s1 + $0xe84] sm:$0xf]  ;;  %v9531_v47 = vor.u32 %v12420_v32, %v9528_v34  ;;  %6518 = vmatpush.bf16.msrb.mxu1 %v9275_v46  ;;  %v6277_v34 = vpop.f32.mrf.mxu2 }
 0x153   :  { %v9784_v37 = vld [vmem:[%s19558_s1 + $0xea0] sm:$0xf0] }
 0x154   :  { %v12284_v48 = vld [vmem:[%s19558_s1 + $0x844] sm:$0xf]  ;;  %v9787_v52 = vor.u32 %v12484_v36, %v9784_v37  ;;  %6531 = vmatpush.bf16.msrb.mxu2 %v9531_v47 }
 0x155   :  { %v8984_v49 = vld [vmem:[%s19558_s1 + $0x860] sm:$0xf0] }
 0x156   :  { %v12348_v50 = vld [vmem:[%s19558_s1 + $0xa44] sm:$0xf]  ;;  %v8987_v60 = vor.u32 %v12284_v48, %v8984_v49  ;;  %6544 = vmatpush.bf16.msrb.mxu3 %v9787_v52  ;;  %v6314_v34 = vpop.f32.mrf.mxu1 }
 0x157   :  { %v9240_v53 = vld [vmem:[%s19558_s1 + $0xa60] sm:$0xf0] }
 0x158   :  { %v12412_v54 = vld [vmem:[%s19558_s1 + $0xc44] sm:$0xf]  ;;  %v9243_v0 = vor.u32 %v12348_v50, %v9240_v53  ;;  %6506 = vmatpush.bf16.msrb.mxu0 %v8987_v60 }
 0x159   :  { %v9496_v55 = vld [vmem:[%s19558_s1 + $0xc60] sm:$0xf0] }
 0x15a   :  { %v12476_v58 = vld [vmem:[%s19558_s1 + $0xe44] sm:$0xf]  ;;  %v9499_v1 = vor.u32 %v12412_v54, %v9496_v55  ;;  %6519 = vmatpush.bf16.msrb.mxu1 %v9243_v0 }
 0x15b   :  { %v9752_v59 = vld [vmem:[%s19558_s1 + $0xe60] sm:$0xf0] }
 0x15c   :  { %v12276_v61 = vld [vmem:[%s19558_s1 + $0x804] sm:$0xf]  ;;  %v9755_v7 = vor.u32 %v12476_v58, %v9752_v59  ;;  %6532 = vmatpush.bf16.msrb.mxu2 %v9499_v1 }
 0x15d   :  { %v8952_v62 = vld [vmem:[%s19558_s1 + $0x820] sm:$0xf0] }
 0x15e   :  { %v12340_v2 = vld [vmem:[%s19558_s1 + $0xa04] sm:$0xf]  ;;  %v8955_v16 = vor.u32 %v12276_v61, %v8952_v62  ;;  %6545 = vmatpush.bf16.msrb.mxu3 %v9755_v7 }
 0x15f   :  { %v9208_v3 = vld [vmem:[%s19558_s1 + $0xa20] sm:$0xf0] }
 0x160   :  { %v12404_v5 = vld [vmem:[%s19558_s1 + $0xc04] sm:$0xf]  ;;  %v9211_v24 = vor.u32 %v12340_v2, %v9208_v3  ;;  %6507 = vmatpush.bf16.msrb.mxu0 %v8955_v16 }
 0x161   :  { %v9464_v8 = vld [vmem:[%s19558_s1 + $0xc20] sm:$0xf0] }
 0x162   :  { %v12468_v9 = vld [vmem:[%s19558_s1 + $0xe04] sm:$0xf]  ;;  %v9467_v26 = vor.u32 %v12404_v5, %v9464_v8  ;;  %6520 = vmatpush.bf16.msrb.mxu1 %v9211_v24 }
 0x163   :  { %v9720_v10 = vld [vmem:[%s19558_s1 + $0xe20] sm:$0xf0]  ;;  %6508 = vmatmul.bf16.vlgmr.msrb.gmra.mxu0 %v13528_v41 }
 0x164   :  { %v12588_v12 = vld [vmem:[%s19558_s1 + $0x11c4] sm:$0xf]  ;;  %v9723_v36 = vor.u32 %v12468_v9, %v9720_v10  ;;  %6533 = vmatpush.bf16.msrb.mxu2 %v9467_v26 }
 0x165   :  { %v10200_v13 = vld [vmem:[%s19558_s1 + $0x11e0] sm:$0xf0]  ;;  %6521 = vmatmul.bf16.vlgmr.msrb.gmra.mxu1 %v13532_v44 }
 0x166   :  { %v12652_v14 = vld [vmem:[%s19558_s1 + $0x13c4] sm:$0xf]  ;;  %v10203_v37 = vor.u32 %v12588_v12, %v10200_v13  ;;  %6546 = vmatpush.bf16.msrb.mxu3 %v9723_v36 }
 0x167   :  { %v10456_v17 = vld [vmem:[%s19558_s1 + $0x13e0] sm:$0xf0]  ;;  %6534 = vmatmul.bf16.vlgmr.msrb.gmra.mxu2 %v13520_v38 }
 0x168   :  { %v12716_v18 = vld [vmem:[%s19558_s1 + $0x15c4] sm:$0xf]  ;;  %v10459_v40 = vor.u32 %v12652_v14, %v10456_v17  ;;  %6552 = vmatpush.bf16.msra.mxu0 %v10203_v37 }
 0x169   :  { %v10712_v19 = vld [vmem:[%s19558_s1 + $0x15e0] sm:$0xf0]  ;;  %6547 = vmatmul.bf16.vlgmr.msrb.gmra.mxu3 %v13530_v42 }
 0x16a   :  { %v12780_v27 = vld [vmem:[%s19558_s1 + $0x17c4] sm:$0xf]  ;;  %v10715_v43 = vor.u32 %v12716_v18, %v10712_v19  ;;  %6565 = vmatpush.bf16.msra.mxu1 %v10459_v40  ;;  %v6301_v18 = vpop.f32.mrf.mxu0 }
 0x16b   :  { %v10968_v32 = vld [vmem:[%s19558_s1 + $0x17e0] sm:$0xf0] }
 0x16c   :  { %v12580_v45 = vld [vmem:[%s19558_s1 + $0x1184] sm:$0xf]  ;;  %v10971_v48 = vor.u32 %v12780_v27, %v10968_v32  ;;  %6578 = vmatpush.bf16.msra.mxu2 %v10715_v43  ;;  %v6302_v32 = vadd.f32 %v6301_v18, %v14301_v11 }
 0x16d   :  { %v10168_v46 = vld [vmem:[%s19558_s1 + $0x11a0] sm:$0xf0] }
 0x16e   :  { %v12644_v47 = vld [vmem:[%s19558_s1 + $0x1384] sm:$0xf]  ;;  %v10171_v54 = vor.u32 %v12580_v45, %v10168_v46  ;;  %6591 = vmatpush.bf16.msra.mxu3 %v10971_v48  ;;  %v6315_v45 = vadd.f32 %v6314_v34, %v6302_v32 }
 0x16f   :  { %v10424_v49 = vld [vmem:[%s19558_s1 + $0x13a0] sm:$0xf0] }
 0x170   :  { %v12708_v50 = vld [vmem:[%s19558_s1 + $0x1584] sm:$0xf]  ;;  %v10427_v55 = vor.u32 %v12644_v47, %v10424_v49  ;;  %6553 = vmatpush.bf16.msra.mxu0 %v10171_v54 }
 0x171   :  { %v10680_v51 = vld [vmem:[%s19558_s1 + $0x15a0] sm:$0xf0] }
 0x172   :  { %v12772_v52 = vld [vmem:[%s19558_s1 + $0x1784] sm:$0xf]  ;;  %v10683_v56 = vor.u32 %v12708_v50, %v10680_v51  ;;  %6566 = vmatpush.bf16.msra.mxu1 %v10427_v55 }
 0x173   :  { %v10936_v53 = vld [vmem:[%s19558_s1 + $0x17a0] sm:$0xf0] }
 0x174   :  { %v12572_v57 = vld [vmem:[%s19558_s1 + $0x1144] sm:$0xf]  ;;  %v10939_v60 = vor.u32 %v12772_v52, %v10936_v53  ;;  %6579 = vmatpush.bf16.msra.mxu2 %v10683_v56  ;;  %v6327_v52 = vpop.f32.mrf.mxu2 }
 0x175   :  { %v10136_v58 = vld [vmem:[%s19558_s1 + $0x1160] sm:$0xf0] }
 0x176   :  { %v12636_v59 = vld [vmem:[%s19558_s1 + $0x1344] sm:$0xf]  ;;  %v10139_v2 = vor.u32 %v12572_v57, %v10136_v58  ;;  %6592 = vmatpush.bf16.msra.mxu3 %v10939_v60  ;;  %v6328_v57 = vadd.f32 %v6327_v52, %v6315_v45  ;;  %v6340_v58 = vpop.f32.mrf.mxu3 }
 0x177   :  { %v10392_v61 = vld [vmem:[%s19558_s1 + $0x1360] sm:$0xf0] }
 0x178   :  { %v12700_v62 = vld [vmem:[%s19558_s1 + $0x1544] sm:$0xf]  ;;  %v10395_v3 = vor.u32 %v12636_v59, %v10392_v61  ;;  %6554 = vmatpush.bf16.msra.mxu0 %v10139_v2 }
 0x179   :  { %v10648_v63 = vld [vmem:[%s19558_s1 + $0x1560] sm:$0xf0] }
 0x17a   :  { %v12764_v0 = vld [vmem:[%s19558_s1 + $0x1744] sm:$0xf]  ;;  %v10651_v5 = vor.u32 %v12700_v62, %v10648_v63  ;;  %6567 = vmatpush.bf16.msra.mxu1 %v10395_v3  ;;  %v14452_v62 = vadd.f32 %v6340_v58, %v6328_v57  ;;  %v6303_v63 = vpop.f32.mrf.mxu0 }
 0x17b   :  { %v10904_v1 = vld [vmem:[%s19558_s1 + $0x1760] sm:$0xf0] }
 0x17c   :  { %v12564_v7 = vld [vmem:[%s19558_s1 + $0x1104] sm:$0xf]  ;;  %v10907_v10 = vor.u32 %v12764_v0, %v10904_v1  ;;  %6580 = vmatpush.bf16.msra.mxu2 %v10651_v5 }
 0x17d   :  { %v10104_v8 = vld [vmem:[%s19558_s1 + $0x1120] sm:$0xf0] }
 0x17e   :  { %v12628_v9 = vld [vmem:[%s19558_s1 + $0x1304] sm:$0xf]  ;;  %v10107_v17 = vor.u32 %v12564_v7, %v10104_v8  ;;  %6593 = vmatpush.bf16.msra.mxu3 %v10907_v10  ;;  %v6316_v7 = vpop.f32.mrf.mxu1 }
 0x17f   :  { %v10360_v12 = vld [vmem:[%s19558_s1 + $0x1320] sm:$0xf0] }
 0x180   :  { %v12692_v13 = vld [vmem:[%s19558_s1 + $0x1504] sm:$0xf]  ;;  %v10363_v19 = vor.u32 %v12628_v9, %v10360_v12  ;;  %6555 = vmatpush.bf16.msra.mxu0 %v10107_v17 }
 0x181   :  { %v10616_v14 = vld [vmem:[%s19558_s1 + $0x1520] sm:$0xf0] }
 0x182   :  { %v12756_v15 = vld [vmem:[%s19558_s1 + $0x1704] sm:$0xf]  ;;  %v10619_v22 = vor.u32 %v12692_v13, %v10616_v14  ;;  %6568 = vmatpush.bf16.msra.mxu1 %v10363_v19 }
 0x183   :  { %v10872_v16 = vld [vmem:[%s19558_s1 + $0x1720] sm:$0xf0] }
 0x184   :  { %v12556_v24 = vld [vmem:[%s19558_s1 + $0x10c4] sm:$0xf]  ;;  %v10875_v36 = vor.u32 %v12756_v15, %v10872_v16  ;;  %6581 = vmatpush.bf16.msra.mxu2 %v10619_v22 }
 0x185   :  { %v10072_v26 = vld [vmem:[%s19558_s1 + $0x10e0] sm:$0xf0] }
 0x186   :  { %v12620_v27 = vld [vmem:[%s19558_s1 + $0x12c4] sm:$0xf]  ;;  %v10075_v46 = vor.u32 %v12556_v24, %v10072_v26  ;;  %6594 = vmatpush.bf16.msra.mxu3 %v10875_v36 }
 0x187   :  { %v10328_v37 = vld [vmem:[%s19558_s1 + $0x12e0] sm:$0xf0] }
 0x188   :  { %v12684_v39 = vld [vmem:[%s19558_s1 + $0x14c4] sm:$0xf]  ;;  %v10331_v47 = vor.u32 %v12620_v27, %v10328_v37  ;;  %6556 = vmatpush.bf16.msra.mxu0 %v10075_v46  ;;  %v6329_v27 = vpop.f32.mrf.mxu2 }
 0x189   :  { %v10584_v40 = vld [vmem:[%s19558_s1 + $0x14e0] sm:$0xf0] }
 0x18a   :  { %v12748_v43 = vld [vmem:[%s19558_s1 + $0x16c4] sm:$0xf]  ;;  %v10587_v48 = vor.u32 %v12684_v39, %v10584_v40  ;;  %6569 = vmatpush.bf16.msra.mxu1 %v10331_v47  ;;  %v6342_v39 = vpop.f32.mrf.mxu3 }
 0x18b   :  { %v10840_v11 = vld [vmem:[%s19558_s1 + $0x16e0] sm:$0xf0]  ;;  %v6353_v39 = vpop.f32.mrf.mxu0 }
 0x18c   :  { %v12548_v49 = vld [vmem:[%s19558_s1 + $0x1084] sm:$0xf]  ;;  %v10843_v53 = vor.u32 %v12748_v43, %v10840_v11  ;;  %6582 = vmatpush.bf16.msra.mxu2 %v10587_v48 }
 0x18d   :  { %v10040_v50 = vld [vmem:[%s19558_s1 + $0x10a0] sm:$0xf0] }
 0x18e   :  { %v12612_v51 = vld [vmem:[%s19558_s1 + $0x1284] sm:$0xf]  ;;  %v10043_v61 = vor.u32 %v12548_v49, %v10040_v50  ;;  %6595 = vmatpush.bf16.msra.mxu3 %v10843_v53 }
 0x18f   :  { %v10296_v54 = vld [vmem:[%s19558_s1 + $0x12a0] sm:$0xf0] }
 0x190   :  { %v12676_v55 = vld [vmem:[%s19558_s1 + $0x1484] sm:$0xf]  ;;  %v10299_v0 = vor.u32 %v12612_v51, %v10296_v54  ;;  %6557 = vmatpush.bf16.msra.mxu0 %v10043_v61 }
 0x191   :  { %v10552_v56 = vld [vmem:[%s19558_s1 + $0x14a0] sm:$0xf0] }
 0x192   :  { %v12740_v59 = vld [vmem:[%s19558_s1 + $0x1684] sm:$0xf]  ;;  %v10555_v1 = vor.u32 %v12676_v55, %v10552_v56  ;;  %6570 = vmatpush.bf16.msra.mxu1 %v10299_v0 }
 0x193   :  { %v10808_v60 = vld [vmem:[%s19558_s1 + $0x16a0] sm:$0xf0] }
 0x194   :  { %v12540_v2 = vld [vmem:[%s19558_s1 + $0x1044] sm:$0xf]  ;;  %v10811_v8 = vor.u32 %v12740_v59, %v10808_v60  ;;  %6583 = vmatpush.bf16.msra.mxu2 %v10555_v1 }
 0x195   :  { %v10008_v3 = vld [vmem:[%s19558_s1 + $0x1060] sm:$0xf0] }
 0x196   :  { %v12604_v5 = vld [vmem:[%s19558_s1 + $0x1244] sm:$0xf]  ;;  %v10011_v15 = vor.u32 %v12540_v2, %v10008_v3  ;;  %6596 = vmatpush.bf16.msra.mxu3 %v10811_v8 }
 0x197   :  { %v10264_v9 = vld [vmem:[%s19558_s1 + $0x1260] sm:$0xf0] }
 0x198   :  { %v12668_v10 = vld [vmem:[%s19558_s1 + $0x1444] sm:$0xf]  ;;  %v10267_v18 = vor.u32 %v12604_v5, %v10264_v9  ;;  %6558 = vmatpush.bf16.msra.mxu0 %v10011_v15 }
 0x199   :  { %v10520_v12 = vld [vmem:[%s19558_s1 + $0x1460] sm:$0xf0] }
 0x19a   :  { %v12732_v13 = vld [vmem:[%s19558_s1 + $0x1644] sm:$0xf]  ;;  %v10523_v19 = vor.u32 %v12668_v10, %v10520_v12  ;;  %6571 = vmatpush.bf16.msra.mxu1 %v10267_v18 }
 0x19b   :  { %v10776_v14 = vld [vmem:[%s19558_s1 + $0x1660] sm:$0xf0] }
 0x19c   :  { %v12532_v16 = vld [vmem:[%s19558_s1 + $0x1004] sm:$0xf]  ;;  %v10779_v32 = vor.u32 %v12732_v13, %v10776_v14  ;;  %6584 = vmatpush.bf16.msra.mxu2 %v10523_v19 }
 0x19d   :  { %v9976_v17 = vld [vmem:[%s19558_s1 + $0x1020] sm:$0xf0] }
 0x19e   :  { %v12596_v22 = vld [vmem:[%s19558_s1 + $0x1204] sm:$0xf]  ;;  %v9979_v45 = vor.u32 %v12532_v16, %v9976_v17  ;;  %6597 = vmatpush.bf16.msra.mxu3 %v10779_v32 }
 0x19f   :  { %v10232_v24 = vld [vmem:[%s19558_s1 + $0x1220] sm:$0xf0] }
 0x1a0   :  { %v12660_v26 = vld [vmem:[%s19558_s1 + $0x1404] sm:$0xf]  ;;  %v10235_v49 = vor.u32 %v12596_v22, %v10232_v24  ;;  %6559 = vmatpush.bf16.msra.mxu0 %v9979_v45 }
 0x1a1   :  { %v10488_v34 = vld [vmem:[%s19558_s1 + $0x1420] sm:$0xf0] }
 0x1a2   :  { %v12724_v36 = vld [vmem:[%s19558_s1 + $0x1604] sm:$0xf]  ;;  %v10491_v50 = vor.u32 %v12660_v26, %v10488_v34  ;;  %6572 = vmatpush.bf16.msra.mxu1 %v10235_v49 }
 0x1a3   :  { %v10744_v37 = vld [vmem:[%s19558_s1 + $0x1620] sm:$0xf0]  ;;  %6560 = vmatmul.bf16.vlgmr.msra.gmra.mxu0 %v13721_v25 }
 0x1a4   :  { %v12844_v40 = vld [vmem:[%s19558_s1 + $0x19c4] sm:$0xf]  ;;  %v10747_v53 = vor.u32 %v12724_v36, %v10744_v37  ;;  %6585 = vmatpush.bf16.msra.mxu2 %v10491_v50 }
 0x1a5   :  { %v11224_v43 = vld [vmem:[%s19558_s1 + $0x19e0] sm:$0xf0]  ;;  %6573 = vmatmul.bf16.vlgmr.msra.gmra.mxu1 %v13734_v30 }
 0x1a6   :  { %v12908_v11 = vld [vmem:[%s19558_s1 + $0x1bc4] sm:$0xf]  ;;  %v11227_v54 = vor.u32 %v12844_v40, %v11224_v43  ;;  %6598 = vmatpush.bf16.msra.mxu3 %v10747_v53 }
 0x1a7   :  { %v11480_v46 = vld [vmem:[%s19558_s1 + $0x1be0] sm:$0xf0]  ;;  %6586 = vmatmul.bf16.vlgmr.msra.gmra.mxu2 %v13732_v29 }
 0x1a8   :  { %v12972_v47 = vld [vmem:[%s19558_s1 + $0x1dc4] sm:$0xf]  ;;  %v11483_v55 = vor.u32 %v12908_v11, %v11480_v46  ;;  %6604 = vmatpush.bf16.msrb.mxu0 %v11227_v54  ;;  %v6354_v11 = vadd.f32 %v6353_v39, %v14452_v62  ;;  %v6366_v46 = vpop.f32.mrf.mxu1 }
 0x1a9   :  { %v11736_v48 = vld [vmem:[%s19558_s1 + $0x1de0] sm:$0xf0]  ;;  %6599 = vmatmul.bf16.vlgmr.msra.gmra.mxu3 %v13742_v33 }
 0x1aa   :  { %v13036_v51 = vld [vmem:[%s19558_s1 + $0x1fc4] sm:$0xf]  ;;  %v11739_v56 = vor.u32 %v12972_v47, %v11736_v48  ;;  %6617 = vmatpush.bf16.msrb.mxu1 %v11483_v55 }
 0x1ab   :  { %v11992_v52 = vld [vmem:[%s19558_s1 + $0x1fe0] sm:$0xf0] }
 0x1ac   :  { %v12836_v57 = vld [vmem:[%s19558_s1 + $0x1984] sm:$0xf]  ;;  %v11995_v60 = vor.u32 %v13036_v51, %v11992_v52  ;;  %6630 = vmatpush.bf16.msrb.mxu2 %v11739_v56  ;;  %v6367_v52 = vadd.f32 %v6366_v46, %v6354_v11 }
 0x1ad   :  { %v11192_v58 = vld [vmem:[%s19558_s1 + $0x19a0] sm:$0xf0] }
 0x1ae   :  { %v12900_v59 = vld [vmem:[%s19558_s1 + $0x1b84] sm:$0xf]  ;;  %v11195_v3 = vor.u32 %v12836_v57, %v11192_v58  ;;  %6643 = vmatpush.bf16.msrb.mxu3 %v11995_v60 }
 0x1af   :  { %v11448_v61 = vld [vmem:[%s19558_s1 + $0x1ba0] sm:$0xf0] }
 0x1b0   :  { %v12964_v63 = vld [vmem:[%s19558_s1 + $0x1d84] sm:$0xf]  ;;  %v11451_v5 = vor.u32 %v12900_v59, %v11448_v61  ;;  %6605 = vmatpush.bf16.msrb.mxu0 %v11195_v3 }
 0x1b1   :  { %v11704_v0 = vld [vmem:[%s19558_s1 + $0x1da0] sm:$0xf0] }
 0x1b2   :  { %v13028_v1 = vld [vmem:[%s19558_s1 + $0x1f84] sm:$0xf]  ;;  %v11707_v7 = vor.u32 %v12964_v63, %v11704_v0  ;;  %6618 = vmatpush.bf16.msrb.mxu1 %v11451_v5 }
 0x1b3   :  { %v11960_v2 = vld [vmem:[%s19558_s1 + $0x1fa0] sm:$0xf0] }
 0x1b4   :  { %v12828_v8 = vld [vmem:[%s19558_s1 + $0x1944] sm:$0xf]  ;;  %v11963_v12 = vor.u32 %v13028_v1, %v11960_v2  ;;  %6631 = vmatpush.bf16.msrb.mxu2 %v11707_v7  ;;  %v6379_v2 = vpop.f32.mrf.mxu2 }
 0x1b5   :  { %v11160_v9 = vld [vmem:[%s19558_s1 + $0x1960] sm:$0xf0] }
 0x1b6   :  { %v12892_v10 = vld [vmem:[%s19558_s1 + $0x1b44] sm:$0xf]  ;;  %v11163_v18 = vor.u32 %v12828_v8, %v11160_v9  ;;  %6644 = vmatpush.bf16.msrb.mxu3 %v11963_v12  ;;  %v6380_v8 = vadd.f32 %v6379_v2, %v6367_v52  ;;  %v6392_v9 = vpop.f32.mrf.mxu3 }
 0x1b7   :  { %v11416_v13 = vld [vmem:[%s19558_s1 + $0x1b60] sm:$0xf0] }
 0x1b8   :  { %v12956_v14 = vld [vmem:[%s19558_s1 + $0x1d44] sm:$0xf]  ;;  %v11419_v19 = vor.u32 %v12892_v10, %v11416_v13  ;;  %6606 = vmatpush.bf16.msrb.mxu0 %v11163_v18  ;;  %v6355_v13 = vpop.f32.mrf.mxu0 }
 0x1b9   :  { %v11672_v15 = vld [vmem:[%s19558_s1 + $0x1d60] sm:$0xf0]  ;;  %v12137_v13 = vld [vmem:[%s19558_s1 + $0x3a4] sm:$0xf0] }
 0x1ba   :  { %v13020_v16 = vld [vmem:[%s19558_s1 + $0x1f44] sm:$0xf]  ;;  %v11675_v22 = vor.u32 %v12956_v14, %v11672_v15  ;;  %6619 = vmatpush.bf16.msrb.mxu1 %v11419_v19  ;;  %v6368_v15 = vpop.f32.mrf.mxu1 }
 0x1bb   :  { %v11928_v17 = vld [vmem:[%s19558_s1 + $0x1f60] sm:$0xf0]  ;;  %v12201_v15 = vld [vmem:[%s19558_s1 + $0x5a4] sm:$0xf0] }
 0x1bc   :  { %v12820_v24 = vld [vmem:[%s19558_s1 + $0x1904] sm:$0xf]  ;;  %v11931_v32 = vor.u32 %v13020_v16, %v11928_v17  ;;  %6632 = vmatpush.bf16.msrb.mxu2 %v11675_v22  ;;  %v14651_v16 = vadd.f32 %v6392_v9, %v6380_v8  ;;  %v6381_v52 = vpop.f32.mrf.mxu2  ;;  %v8126_v8 = vld [vmem:[%s19558_s1 + $0x188] sm:$0xf] }
 0x1bd   :  { %v11128_v26 = vld [vmem:[%s19558_s1 + $0x1920] sm:$0xf0]  ;;  %v12073_v9 = vld [vmem:[%s19558_s1 + $0x1a4] sm:$0xf0] }
 0x1be   :  { %v12884_v27 = vld [vmem:[%s19558_s1 + $0x1b04] sm:$0xf]  ;;  %v11131_v45 = vor.u32 %v12820_v24, %v11128_v26  ;;  %6645 = vmatpush.bf16.msrb.mxu3 %v11931_v32  ;;  %v12185_v52 = vld [vmem:[%s19558_s1 + $0x524] sm:$0xf0] }
 0x1bf   :  { %v11384_v34 = vld [vmem:[%s19558_s1 + $0x1b20] sm:$0xf0] }
 0x1c0   :  { %v12948_v36 = vld [vmem:[%s19558_s1 + $0x1d04] sm:$0xf]  ;;  %v11387_v47 = vor.u32 %v12884_v27, %v11384_v34  ;;  %6607 = vmatpush.bf16.msrb.mxu0 %v11131_v45 }
 0x1c1   :  { %v11640_v37 = vld [vmem:[%s19558_s1 + $0x1d20] sm:$0xf0] }
 0x1c2   :  { %v13012_v40 = vld [vmem:[%s19558_s1 + $0x1f04] sm:$0xf]  ;;  %v11643_v48 = vor.u32 %v12948_v36, %v11640_v37  ;;  %6620 = vmatpush.bf16.msrb.mxu1 %v11387_v47 }
 0x1c3   :  { %v11896_v43 = vld [vmem:[%s19558_s1 + $0x1f20] sm:$0xf0] }
 0x1c4   :  { %v12812_v49 = vld [vmem:[%s19558_s1 + $0x18c4] sm:$0xf]  ;;  %v11899_v62 = vor.u32 %v13012_v40, %v11896_v43  ;;  %6633 = vmatpush.bf16.msrb.mxu2 %v11643_v48 }
 0x1c5   :  { %v11096_v50 = vld [vmem:[%s19558_s1 + $0x18e0] sm:$0xf0] }
 0x1c6   :  { %v12876_v51 = vld [vmem:[%s19558_s1 + $0x1ac4] sm:$0xf]  ;;  %v11099_v58 = vor.u32 %v12812_v49, %v11096_v50  ;;  %6646 = vmatpush.bf16.msrb.mxu3 %v11899_v62 }
 0x1c7   :  { %v11352_v53 = vld [vmem:[%s19558_s1 + $0x1ae0] sm:$0xf0] }
 0x1c8   :  { %v12940_v54 = vld [vmem:[%s19558_s1 + $0x1cc4] sm:$0xf]  ;;  %v11355_v59 = vor.u32 %v12876_v51, %v11352_v53  ;;  %6608 = vmatpush.bf16.msrb.mxu0 %v11099_v58  ;;  %v8158_v53 = vld [vmem:[%s19558_s1 + $0x1c8] sm:$0xf] }
 0x1c9   :  { %v11608_v55 = vld [vmem:[%s19558_s1 + $0x1ce0] sm:$0xf0]  ;;  %v12145_v58 = vld [vmem:[%s19558_s1 + $0x3e4] sm:$0xf0] }
 0x1ca   :  { %v13004_v56 = vld [vmem:[%s19558_s1 + $0x1ec4] sm:$0xf]  ;;  %v11611_v60 = vor.u32 %v12940_v54, %v11608_v55  ;;  %6621 = vmatpush.bf16.msrb.mxu1 %v11355_v59  ;;  %v12081_v54 = vld [vmem:[%s19558_s1 + $0x1e4] sm:$0xf0] }
 0x1cb   :  { %v11864_v57 = vld [vmem:[%s19558_s1 + $0x1ee0] sm:$0xf0]  ;;  %v8414_v55 = vld [vmem:[%s19558_s1 + $0x3c8] sm:$0xf] }
 0x1cc   :  { %v12804_v61 = vld [vmem:[%s19558_s1 + $0x1884] sm:$0xf]  ;;  %v11867_v1 = vor.u32 %v13004_v56, %v11864_v57  ;;  %6634 = vmatpush.bf16.msrb.mxu2 %v11611_v60  ;;  %v6394_v56 = vpop.f32.mrf.mxu3  ;;  %v8670_v59 = vld [vmem:[%s19558_s1 + $0x5c8] sm:$0xf] }
 0x1cd   :  { %v11064_v63 = vld [vmem:[%s19558_s1 + $0x18a0] sm:$0xf0]  ;;  %v12209_v60 = vld [vmem:[%s19558_s1 + $0x5e4] sm:$0xf0] }
 0x1ce   :  { %v12868_v0 = vld [vmem:[%s19558_s1 + $0x1a84] sm:$0xf]  ;;  %v11067_v14 = vor.u32 %v12804_v61, %v11064_v63  ;;  %6647 = vmatpush.bf16.msrb.mxu3 %v11867_v1  ;;  %v12273_v1 = vld [vmem:[%s19558_s1 + $0x7e4] sm:$0xf0] }
 0x1cf   :  { %v11320_v3 = vld [vmem:[%s19558_s1 + $0x1aa0] sm:$0xf0] }
 0x1d0   :  { %v12932_v5 = vld [vmem:[%s19558_s1 + $0x1c84] sm:$0xf]  ;;  %v11323_v17 = vor.u32 %v12868_v0, %v11320_v3  ;;  %6609 = vmatpush.bf16.msrb.mxu0 %v11067_v14  ;;  %v8926_v0 = vld [vmem:[%s19558_s1 + $0x7c8] sm:$0xf]  ;;  %v8159_v3 = vor.u32 %v12081_v54, %v8158_v53  ;;  %v6405_v53 = vpop.f32.mrf.mxu0 }
 0x1d1   :  { %v11576_v7 = vld [vmem:[%s19558_s1 + $0x1ca0] sm:$0xf0]  ;;  %v8638_v14 = vld [vmem:[%s19558_s1 + $0x588] sm:$0xf]  ;;  %v6406_v56 = vadd.f32 %v6405_v53, %v14651_v16 }
 0x1d2   :  { %v12996_v10 = vld [vmem:[%s19558_s1 + $0x1e84] sm:$0xf]  ;;  %v11579_v18 = vor.u32 %v12932_v5, %v11576_v7  ;;  %6622 = vmatpush.bf16.msrb.mxu1 %v11323_v17  ;;  %v8415_v5 = vor.u32 %v12145_v58, %v8414_v55  ;;  %v8671_v7 = vor.u32 %v12209_v60, %v8670_v59  ;;  %v8894_v17 = vld [vmem:[%s19558_s1 + $0x788] sm:$0xf]  ;;  %v6418_v58 = vpop.f32.mrf.mxu1 }
 0x1d3   :  { %v11832_v12 = vld [vmem:[%s19558_s1 + $0x1ea0] sm:$0xf0]  ;;  %v8830_v54 = vld [vmem:[%s19558_s1 + $0x708] sm:$0xf] }
 0x1d4   :  { %v12796_v19 = vld [vmem:[%s19558_s1 + $0x1844] sm:$0xf]  ;;  %v11835_v26 = vor.u32 %v12996_v10, %v11832_v12  ;;  %6635 = vmatpush.bf16.msrb.mxu2 %v11579_v18  ;;  %v8382_v10 = vld [vmem:[%s19558_s1 + $0x388] sm:$0xf]  ;;  %v8927_v12 = vor.u32 %v12273_v1, %v8926_v0  ;;  %v6419_v1 = vadd.f32 %v6418_v58, %v6406_v56 }
 0x1d5   :  { %v11032_v22 = vld [vmem:[%s19558_s1 + $0x1860] sm:$0xf0]  ;;  %v12265_v18 = vld [vmem:[%s19558_s1 + $0x7a4] sm:$0xf0] }
 0x1d6   :  { %v12860_v24 = vld [vmem:[%s19558_s1 + $0x1a44] sm:$0xf]  ;;  %v11035_v39 = vor.u32 %v12796_v19, %v11032_v22  ;;  %6648 = vmatpush.bf16.msrb.mxu3 %v11835_v26  ;;  %v8127_v19 = vor.u32 %v12073_v9, %v8126_v8  ;;  %v8383_v22 = vor.u32 %v12137_v13, %v8382_v10  ;;  %v8094_v26 = vld [vmem:[%s19558_s1 + $0x148] sm:$0xf] }
 0x1d7   :  { %v11288_v27 = vld [vmem:[%s19558_s1 + $0x1a60] sm:$0xf0]  ;;  %v12249_v55 = vld [vmem:[%s19558_s1 + $0x724] sm:$0xf0] }
 0x1d8   :  { %v12924_v32 = vld [vmem:[%s19558_s1 + $0x1c44] sm:$0xf]  ;;  %v11291_v11 = vor.u32 %v12860_v24, %v11288_v27  ;;  %6610 = vmatpush.bf16.msrb.mxu0 %v11035_v39  ;;  %v8639_v24 = vor.u32 %v12201_v15, %v8638_v14  ;;  %v12065_v27 = vld [vmem:[%s19558_s1 + $0x164] sm:$0xf0]  ;;  %v8831_v16 = vor.u32 %v12249_v55, %v8830_v54 }
 0x1d9   :  { %v11544_v34 = vld [vmem:[%s19558_s1 + $0x1c60] sm:$0xf0]  ;;  %v12193_v39 = vld [vmem:[%s19558_s1 + $0x564] sm:$0xf0] }
 0x1da   :  { %v12988_v36 = vld [vmem:[%s19558_s1 + $0x1e44] sm:$0xf]  ;;  %v11547_v45 = vor.u32 %v12924_v32, %v11544_v34  ;;  %6623 = vmatpush.bf16.msrb.mxu1 %v11291_v11  ;;  %v8350_v32 = vld [vmem:[%s19558_s1 + $0x348] sm:$0xf]  ;;  %v8895_v34 = vor.u32 %v12265_v18, %v8894_v17  ;;  %v8095_v11 = vor.u32 %v12065_v27, %v8094_v26  ;;  %v6431_v18 = vpop.f32.mrf.mxu2  ;;  %v6444_v27 = vpop.f32.mrf.mxu3 }
 0x1db   :  { %v11800_v37 = vld [vmem:[%s19558_s1 + $0x1e60] sm:$0xf0]  ;;  %v8286_v0 = vld [vmem:[%s19558_s1 + $0x2c8] sm:$0xf]  ;;  %v6432_v26 = vadd.f32 %v6431_v18, %v6419_v1 }
 0x1dc   :  { %v12788_v40 = vld [vmem:[%s19558_s1 + $0x1804] sm:$0xf]  ;;  %v11803_v49 = vor.u32 %v12988_v36, %v11800_v37  ;;  %6636 = vmatpush.bf16.msrb.mxu2 %v11547_v45  ;;  %v12129_v36 = vld [vmem:[%s19558_s1 + $0x364] sm:$0xf0] }
 0x1dd   :  { %v11000_v43 = vld [vmem:[%s19558_s1 + $0x1820] sm:$0xf0]  ;;  %v8606_v37 = vld [vmem:[%s19558_s1 + $0x548] sm:$0xf]  ;;  %v8351_v45 = vor.u32 %v12129_v36, %v8350_v32  ;;  %v6407_v36 = vpop.f32.mrf.mxu0 }
 0x1de   :  { %v12852_v46 = vld [vmem:[%s19558_s1 + $0x1a04] sm:$0xf]  ;;  %v11003_v57 = vor.u32 %v12788_v40, %v11000_v43  ;;  %6649 = vmatpush.bf16.msrb.mxu3 %v11803_v49  ;;  %v8862_v40 = vld [vmem:[%s19558_s1 + $0x748] sm:$0xf] }
 0x1df   :  { %v11256_v47 = vld [vmem:[%s19558_s1 + $0x1a20] sm:$0xf0]  ;;  %v12257_v43 = vld [vmem:[%s19558_s1 + $0x764] sm:$0xf0] }
 0x1e0   :  { %v12916_v48 = vld [vmem:[%s19558_s1 + $0x1c04] sm:$0xf]  ;;  %v11259_v61 = vor.u32 %v12852_v46, %v11256_v47  ;;  %6611 = vmatpush.bf16.msrb.mxu0 %v11003_v57  ;;  %v8607_v46 = vor.u32 %v12193_v39, %v8606_v37  ;;  %v8062_v47 = vld [vmem:[%s19558_s1 + $0x108] sm:$0xf]  ;;  %v6420_v39 = vpop.f32.mrf.mxu1 }
 0x1e1   :  { %v11512_v50 = vld [vmem:[%s19558_s1 + $0x1c20] sm:$0xf0]  ;;  %v8318_v49 = vld [vmem:[%s19558_s1 + $0x308] sm:$0xf] }
 0x1e2   :  { %v12980_v51 = vld [vmem:[%s19558_s1 + $0x1e04] sm:$0xf]  ;;  %v11515_v63 = vor.u32 %v12916_v48, %v11512_v50  ;;  %6624 = vmatpush.bf16.msrb.mxu1 %v11259_v61  ;;  %v12057_v48 = vld [vmem:[%s19558_s1 + $0x124] sm:$0xf0]  ;;  %v8863_v50 = vor.u32 %v12257_v43, %v8862_v40  ;;  %v14850_v40 = vadd.f32 %v6444_v27, %v6432_v26  ;;  %v6433_v1 = vpop.f32.mrf.mxu2 }
 0x1e3   :  { %v11768_v62 = vld [vmem:[%s19558_s1 + $0x1e20] sm:$0xf0]  ;;  %6612 = vmatmul.bf16.vlgmr.msrb.gmra.mxu0 %v13931_v23  ;;  %v8063_v57 = vor.u32 %v12057_v48, %v8062_v47  ;;  %v8030_v61 = vld [vmem:[%s19558_s1 + $0xc8] sm:$0xf] }
 0x1e4   :  { %v11771_v2 = vor.u32 %v12980_v51, %v11768_v62  ;;  %6637 = vmatpush.bf16.msrb.mxu2 %v11515_v63  ;;  %6656 = vmatpush.bf16.msra.mxu0 %v8159_v3  ;;  %v12121_v51 = vld [vmem:[%s19558_s1 + $0x324] sm:$0xf0] }
 0x1e5   :  { %6625 = vmatmul.bf16.vlgmr.msrb.gmra.mxu1 %v13944_v31  ;;  %v8574_v62 = vld [vmem:[%s19558_s1 + $0x508] sm:$0xf]  ;;  %v8319_v59 = vor.u32 %v12121_v51, %v8318_v49 }
 0x1e6   :  { %6650 = vmatpush.bf16.msrb.mxu3 %v11771_v2  ;;  %6669 = vmatpush.bf16.msra.mxu1 %v8415_v5  ;;  %v8575_v60 = vor.u32 %v12185_v52, %v8574_v62  ;;  %v12049_v63 = vld [vmem:[%s19558_s1 + $0xe4] sm:$0xf0] }
 0x1e7   :  { %6638 = vmatmul.bf16.vlgmr.msrb.gmra.mxu2 %v13942_v28  ;;  %v12113_v2 = vld [vmem:[%s19558_s1 + $0x2e4] sm:$0xf0]  ;;  %v8031_v9 = vor.u32 %v12049_v63, %v8030_v61 }
 0x1e8   :  { %6682 = vmatpush.bf16.msra.mxu2 %v8671_v7  ;;  %6657 = vmatpush.bf16.msra.mxu0 %v8127_v19  ;;  %v8542_v3 = vld [vmem:[%s19558_s1 + $0x4c8] sm:$0xf]  ;;  %v8287_v10 = vor.u32 %v12113_v2, %v8286_v0 }
 0x1e9   :  { %6651 = vmatmul.bf16.vlgmr.msrb.gmra.mxu3 %v13952_v35  ;;  %v12177_v5 = vld [vmem:[%s19558_s1 + $0x4e4] sm:$0xf0] }
 0x1ea   :  { %6695 = vmatpush.bf16.msra.mxu3 %v8927_v12  ;;  %6670 = vmatpush.bf16.msra.mxu1 %v8383_v22  ;;  %v8798_v7 = vld [vmem:[%s19558_s1 + $0x6c8] sm:$0xf]  ;;  %v8543_v12 = vor.u32 %v12177_v5, %v8542_v3 }
 0x1eb   :  { %v12241_v8 = vld [vmem:[%s19558_s1 + $0x6e4] sm:$0xf0] }
 0x1ec   :  { %6683 = vmatpush.bf16.msra.mxu2 %v8639_v24  ;;  %6658 = vmatpush.bf16.msra.mxu0 %v8095_v11  ;;  %v7998_v13 = vld [vmem:[%s19558_s1 + $0x88] sm:$0xf]  ;;  %v8799_v17 = vor.u32 %v12241_v8, %v8798_v7  ;;  %v6446_v7 = vpop.f32.mrf.mxu3 }
 0x1ed   :  { %v12041_v14 = vld [vmem:[%s19558_s1 + $0xa4] sm:$0xf0] }
 0x1ee   :  { %6696 = vmatpush.bf16.msra.mxu3 %v8895_v34  ;;  %6671 = vmatpush.bf16.msra.mxu1 %v8351_v45  ;;  %v8254_v15 = vld [vmem:[%s19558_s1 + $0x288] sm:$0xf]  ;;  %v7999_v37 = vor.u32 %v12041_v14, %v7998_v13 }
 0x1ef   :  { %v12105_v19 = vld [vmem:[%s19558_s1 + $0x2a4] sm:$0xf0] }
 0x1f0   :  { %6684 = vmatpush.bf16.msra.mxu2 %v8607_v46  ;;  %6659 = vmatpush.bf16.msra.mxu0 %v8063_v57  ;;  %v8510_v22 = vld [vmem:[%s19558_s1 + $0x488] sm:$0xf]  ;;  %v8255_v43 = vor.u32 %v12105_v19, %v8254_v15 }
 0x1f1   :  { %v12169_v24 = vld [vmem:[%s19558_s1 + $0x4a4] sm:$0xf0] }
 0x1f2   :  { %6697 = vmatpush.bf16.msra.mxu3 %v8863_v50  ;;  %6672 = vmatpush.bf16.msra.mxu1 %v8319_v59  ;;  %v8766_v32 = vld [vmem:[%s19558_s1 + $0x688] sm:$0xf]  ;;  %v8511_v11 = vor.u32 %v12169_v24, %v8510_v22 }
 0x1f3   :  { %v12233_v34 = vld [vmem:[%s19558_s1 + $0x6a4] sm:$0xf0] }
 0x1f4   :  { %6685 = vmatpush.bf16.msra.mxu2 %v8575_v60  ;;  %6660 = vmatpush.bf16.msra.mxu0 %v8031_v9  ;;  %v7966_v45 = vld [vmem:[%s19558_s1 + $0x48] sm:$0xf]  ;;  %v8767_v48 = vor.u32 %v12233_v34, %v8766_v32 }
 0x1f5   :  { %v12033_v46 = vld [vmem:[%s19558_s1 + $0x64] sm:$0xf0] }
 0x1f6   :  { %6698 = vmatpush.bf16.msra.mxu3 %v8831_v16  ;;  %6673 = vmatpush.bf16.msra.mxu1 %v8287_v10  ;;  %v8222_v47 = vld [vmem:[%s19558_s1 + $0x248] sm:$0xf]  ;;  %v7967_v53 = vor.u32 %v12033_v46, %v7966_v45 }
 0x1f7   :  { %v12097_v49 = vld [vmem:[%s19558_s1 + $0x264] sm:$0xf0] }
 0x1f8   :  { %6686 = vmatpush.bf16.msra.mxu2 %v8543_v12  ;;  %v8478_v50 = vld [vmem:[%s19558_s1 + $0x448] sm:$0xf]  ;;  %6661 = vmatpush.bf16.msra.mxu0 %v7999_v37  ;;  %v8223_v56 = vor.u32 %v12097_v49, %v8222_v47 }
 0x1f9   :  { %v12161_v51 = vld [vmem:[%s19558_s1 + $0x464] sm:$0xf0] }
 0x1fa   :  { %6699 = vmatpush.bf16.msra.mxu3 %v8799_v17  ;;  %v8734_v62 = vld [vmem:[%s19558_s1 + $0x648] sm:$0xf]  ;;  %6674 = vmatpush.bf16.msra.mxu1 %v8255_v43  ;;  %v8479_v57 = vor.u32 %v12161_v51, %v8478_v50 }
 0x1fb   :  { %v12225_v52 = vld [vmem:[%s19558_s1 + $0x664] sm:$0xf0] }
 0x1fc   :  { %v7934_v54 = vld [vmem:[%s19558_s1 + $0x8] sm:$0xf]  ;;  %6687 = vmatpush.bf16.msra.mxu2 %v8511_v11  ;;  %v8735_v61 = vor.u32 %v12225_v52, %v8734_v62  ;;  %6662 = vmatpush.bf16.msra.mxu0 %v7967_v53 }
 0x1fd   :  { %v12025_v55 = vld [vmem:[%s19558_s1 + $0x24] sm:$0xf0] }
 0x1fe   :  { %v8190_v58 = vld [vmem:[%s19558_s1 + $0x208] sm:$0xf]  ;;  %6700 = vmatpush.bf16.msra.mxu3 %v8767_v48  ;;  %v7935_v8 = vor.u32 %v12025_v55, %v7934_v54  ;;  %6675 = vmatpush.bf16.msra.mxu1 %v8223_v56 }
 0x1ff   :  { %v12089_v59 = vld [vmem:[%s19558_s1 + $0x224] sm:$0xf0] }
 0x200   :  { %v8446_v60 = vld [vmem:[%s19558_s1 + $0x408] sm:$0xf]  ;;  %6688 = vmatpush.bf16.msra.mxu2 %v8479_v57  ;;  %v8191_v13 = vor.u32 %v12089_v59, %v8190_v58  ;;  %6663 = vmatpush.bf16.msra.mxu0 %v7935_v8 }
 0x201   :  { %v12153_v63 = vld [vmem:[%s19558_s1 + $0x424] sm:$0xf0] }
 0x202   :  { %v8702_v0 = vld [vmem:[%s19558_s1 + $0x608] sm:$0xf]  ;;  %v8447_v14 = vor.u32 %v12153_v63, %v8446_v60  ;;  %6701 = vmatpush.bf16.msra.mxu3 %v8735_v61  ;;  %6676 = vmatpush.bf16.msra.mxu1 %v8191_v13  ;;  %v13044_v63 = vld [vmem:[%s19560_s2] sm:$0xff] }
 0x203   :  { %v12217_v16 = vld [vmem:[%s19558_s1 + $0x624] sm:$0xf0]  ;;  %6664 = vmatmul.bf16.vlgmr.msra.gmra.mxu0 %v13369_v20 }
 0x204   :  { %v9182_v2 = vld [vmem:[%s19558_s1 + $0x9c8] sm:$0xf]  ;;  %v8703_v18 = vor.u32 %v12217_v16, %v8702_v0  ;;  %6689 = vmatpush.bf16.msra.mxu2 %v8447_v14  ;;  %v1049_v0 = vperm.slane %v13044_v63, 1 }
 0x205   :  { %v12337_v3 = vld [vmem:[%s19558_s1 + $0x9e4] sm:$0xf0]  ;;  %6677 = vmatmul.bf16.vlgmr.msra.gmra.mxu1 %v13372_v21 }
 0x206   :  { %v9438_v5 = vld [vmem:[%s19558_s1 + $0xbc8] sm:$0xf]  ;;  %v9183_v19 = vor.u32 %v12337_v3, %v9182_v2  ;;  %6702 = vmatpush.bf16.msra.mxu3 %v8703_v18  ;;  %v6470_v18 = vpop.f32.mrf.mxu1 }
 0x207   :  { %v12401_v9 = vld [vmem:[%s19558_s1 + $0xbe4] sm:$0xf0]  ;;  %6690 = vmatmul.bf16.vlgmr.msra.gmra.mxu2 %v13337_v4 }
 0x208   :  { %v9694_v10 = vld [vmem:[%s19558_s1 + $0xdc8] sm:$0xf]  ;;  %v9439_v22 = vor.u32 %v12401_v9, %v9438_v5  ;;  %6708 = vmatpush.bf16.msrb.mxu0 %v9183_v19  ;;  %v6457_v9 = vpop.f32.mrf.mxu0 }
 0x209   :  { %v12465_v12 = vld [vmem:[%s19558_s1 + $0xde4] sm:$0xf0]  ;;  %6703 = vmatmul.bf16.vlgmr.msra.gmra.mxu3 %v13342_v6 }
 0x20a   :  { %v9950_v15 = vld [vmem:[%s19558_s1 + $0xfc8] sm:$0xf]  ;;  %v9695_v24 = vor.u32 %v12465_v12, %v9694_v10  ;;  %6721 = vmatpush.bf16.msrb.mxu1 %v9439_v22 }
 0x20b   :  { %v12529_v17 = vld [vmem:[%s19558_s1 + $0xfe4] sm:$0xf0] }
 0x20c   :  { %v9150_v26 = vld [vmem:[%s19558_s1 + $0x988] sm:$0xf]  ;;  %v9951_v34 = vor.u32 %v12529_v17, %v9950_v15  ;;  %6734 = vmatpush.bf16.msrb.mxu2 %v9695_v24  ;;  %v6458_v17 = vadd.f32 %v6457_v9, %v1049_v0 }
 0x20d   :  { %v12329_v27 = vld [vmem:[%s19558_s1 + $0x9a4] sm:$0xf0] }
 0x20e   :  { %v9406_v32 = vld [vmem:[%s19558_s1 + $0xb88] sm:$0xf]  ;;  %v9151_v45 = vor.u32 %v12329_v27, %v9150_v26  ;;  %6747 = vmatpush.bf16.msrb.mxu3 %v9951_v34  ;;  %v6471_v34 = vadd.f32 %v6470_v18, %v6458_v17  ;;  %v6472_v63 = vpop.f32.mrf.mxu1 }
 0x20f   :  { %v12393_v36 = vld [vmem:[%s19558_s1 + $0xba4] sm:$0xf0] }
 0x210   :  { %v9662_v37 = vld [vmem:[%s19558_s1 + $0xd88] sm:$0xf]  ;;  %v9407_v46 = vor.u32 %v12393_v36, %v9406_v32  ;;  %6709 = vmatpush.bf16.msrb.mxu0 %v9151_v45 }
 0x211   :  { %v12457_v39 = vld [vmem:[%s19558_s1 + $0xda4] sm:$0xf0] }
 0x212   :  { %v9918_v43 = vld [vmem:[%s19558_s1 + $0xf88] sm:$0xf]  ;;  %v9663_v47 = vor.u32 %v12457_v39, %v9662_v37  ;;  %6722 = vmatpush.bf16.msrb.mxu1 %v9407_v46  ;;  %v6483_v46 = vpop.f32.mrf.mxu2 }
 0x213   :  { %v12521_v11 = vld [vmem:[%s19558_s1 + $0xfa4] sm:$0xf0] }
 0x214   :  { %v9118_v48 = vld [vmem:[%s19558_s1 + $0x948] sm:$0xf]  ;;  %v9919_v51 = vor.u32 %v12521_v11, %v9918_v43  ;;  %6735 = vmatpush.bf16.msrb.mxu2 %v9663_v47 }
 0x215   :  { %v12321_v49 = vld [vmem:[%s19558_s1 + $0x964] sm:$0xf0] }
 0x216   :  { %v9374_v50 = vld [vmem:[%s19558_s1 + $0xb48] sm:$0xf]  ;;  %v9119_v56 = vor.u32 %v12321_v49, %v9118_v48  ;;  %6748 = vmatpush.bf16.msrb.mxu3 %v9919_v51  ;;  %v6484_v51 = vadd.f32 %v6483_v46, %v6471_v34 }
 0x217   :  { %v12385_v62 = vld [vmem:[%s19558_s1 + $0xb64] sm:$0xf0] }
 0x218   :  { %v9630_v52 = vld [vmem:[%s19558_s1 + $0xd48] sm:$0xf]  ;;  %v9375_v58 = vor.u32 %v12385_v62, %v9374_v50  ;;  %6710 = vmatpush.bf16.msrb.mxu0 %v9119_v56  ;;  %v6496_v62 = vpop.f32.mrf.mxu3  ;;  %v6459_v56 = vpop.f32.mrf.mxu0 }
 0x219   :  { %v12449_v53 = vld [vmem:[%s19558_s1 + $0xd64] sm:$0xf0] }
 0x21a   :  { %v9886_v54 = vld [vmem:[%s19558_s1 + $0xf48] sm:$0xf]  ;;  %v9631_v59 = vor.u32 %v12449_v53, %v9630_v52  ;;  %6723 = vmatpush.bf16.msrb.mxu1 %v9375_v58  ;;  %v6485_v17 = vpop.f32.mrf.mxu2 }
 0x21b   :  { %v12513_v55 = vld [vmem:[%s19558_s1 + $0xf64] sm:$0xf0] }
 0x21c   :  { %v9086_v57 = vld [vmem:[%s19558_s1 + $0x908] sm:$0xf]  ;;  %v9887_v16 = vor.u32 %v12513_v55, %v9886_v54  ;;  %6736 = vmatpush.bf16.msrb.mxu2 %v9631_v59  ;;  %v15051_v55 = vadd.f32 %v6496_v62, %v6484_v51 }
 0x21d   :  { %v12313_v60 = vld [vmem:[%s19558_s1 + $0x924] sm:$0xf0] }
 0x21e   :  { %v9342_v61 = vld [vmem:[%s19558_s1 + $0xb08] sm:$0xf]  ;;  %v9087_v8 = vor.u32 %v12313_v60, %v9086_v57  ;;  %6749 = vmatpush.bf16.msrb.mxu3 %v9887_v16 }
 0x21f   :  { %v12377_v1 = vld [vmem:[%s19558_s1 + $0xb24] sm:$0xf0] }
 0x220   :  { %v9598_v2 = vld [vmem:[%s19558_s1 + $0xd08] sm:$0xf]  ;;  %v9343_v10 = vor.u32 %v12377_v1, %v9342_v61  ;;  %6711 = vmatpush.bf16.msrb.mxu0 %v9087_v8 }
 0x221   :  { %v12441_v3 = vld [vmem:[%s19558_s1 + $0xd24] sm:$0xf0] }
 0x222   :  { %v9854_v5 = vld [vmem:[%s19558_s1 + $0xf08] sm:$0xf]  ;;  %v9599_v12 = vor.u32 %v12441_v3, %v9598_v2  ;;  %6724 = vmatpush.bf16.msrb.mxu1 %v9343_v10 }
 0x223   :  { %v12505_v7 = vld [vmem:[%s19558_s1 + $0xf24] sm:$0xf0] }
 0x224   :  { %v9054_v13 = vld [vmem:[%s19558_s1 + $0x8c8] sm:$0xf]  ;;  %v9855_v19 = vor.u32 %v12505_v7, %v9854_v5  ;;  %6737 = vmatpush.bf16.msrb.mxu2 %v9599_v12 }
 0x225   :  { %v12305_v14 = vld [vmem:[%s19558_s1 + $0x8e4] sm:$0xf0] }
 0x226   :  { %v9310_v15 = vld [vmem:[%s19558_s1 + $0xac8] sm:$0xf]  ;;  %v9055_v36 = vor.u32 %v12305_v14, %v9054_v13  ;;  %6750 = vmatpush.bf16.msrb.mxu3 %v9855_v19 }
 0x227   :  { %v12369_v22 = vld [vmem:[%s19558_s1 + $0xae4] sm:$0xf0] }
 0x228   :  { %v9566_v24 = vld [vmem:[%s19558_s1 + $0xcc8] sm:$0xf]  ;;  %v9311_v37 = vor.u32 %v12369_v22, %v9310_v15  ;;  %6712 = vmatpush.bf16.msrb.mxu0 %v9055_v36 }
 0x229   :  { %v12433_v26 = vld [vmem:[%s19558_s1 + $0xce4] sm:$0xf0] }
 0x22a   :  { %v9822_v27 = vld [vmem:[%s19558_s1 + $0xec8] sm:$0xf]  ;;  %v9567_v39 = vor.u32 %v12433_v26, %v9566_v24  ;;  %6725 = vmatpush.bf16.msrb.mxu1 %v9311_v37  ;;  %v6498_v26 = vpop.f32.mrf.mxu3 }
 0x22b   :  { %v12497_v32 = vld [vmem:[%s19558_s1 + $0xee4] sm:$0xf0] }
 0x22c   :  { %v9022_v43 = vld [vmem:[%s19558_s1 + $0x888] sm:$0xf]  ;;  %v9823_v47 = vor.u32 %v12497_v32, %v9822_v27  ;;  %6738 = vmatpush.bf16.msrb.mxu2 %v9567_v39 }
 0x22d   :  { %v12297_v11 = vld [vmem:[%s19558_s1 + $0x8a4] sm:$0xf0] }
 0x22e   :  { %v9278_v45 = vld [vmem:[%s19558_s1 + $0xa88] sm:$0xf]  ;;  %v9023_v54 = vor.u32 %v12297_v11, %v9022_v43  ;;  %6751 = vmatpush.bf16.msrb.mxu3 %v9823_v47 }
 0x22f   :  { %v12361_v48 = vld [vmem:[%s19558_s1 + $0xaa4] sm:$0xf0] }
 0x230   :  { %v9534_v49 = vld [vmem:[%s19558_s1 + $0xc88] sm:$0xf]  ;;  %v9279_v57 = vor.u32 %v12361_v48, %v9278_v45  ;;  %6713 = vmatpush.bf16.msrb.mxu0 %v9023_v54 }
 0x231   :  { %v12425_v50 = vld [vmem:[%s19558_s1 + $0xca4] sm:$0xf0] }
 0x232   :  { %v9790_v52 = vld [vmem:[%s19558_s1 + $0xe88] sm:$0xf]  ;;  %v9535_v58 = vor.u32 %v12425_v50, %v9534_v49  ;;  %6726 = vmatpush.bf16.msrb.mxu1 %v9279_v57 }
 0x233   :  { %v12489_v53 = vld [vmem:[%s19558_s1 + $0xea4] sm:$0xf0] }
 0x234   :  { %v8990_v59 = vld [vmem:[%s19558_s1 + $0x848] sm:$0xf]  ;;  %v9791_v0 = vor.u32 %v12489_v53, %v9790_v52  ;;  %6739 = vmatpush.bf16.msrb.mxu2 %v9535_v58 }
 0x235   :  { %v12289_v60 = vld [vmem:[%s19558_s1 + $0x864] sm:$0xf0] }
 0x236   :  { %v9246_v61 = vld [vmem:[%s19558_s1 + $0xa48] sm:$0xf]  ;;  %v8991_v7 = vor.u32 %v12289_v60, %v8990_v59  ;;  %6752 = vmatpush.bf16.msrb.mxu3 %v9791_v0 }
 0x237   :  { %v12353_v16 = vld [vmem:[%s19558_s1 + $0xa64] sm:$0xf0] }
 0x238   :  { %v9502_v1 = vld [vmem:[%s19558_s1 + $0xc48] sm:$0xf]  ;;  %v9247_v10 = vor.u32 %v12353_v16, %v9246_v61  ;;  %6714 = vmatpush.bf16.msrb.mxu0 %v8991_v7 }
 0x239   :  { %v12417_v2 = vld [vmem:[%s19558_s1 + $0xc64] sm:$0xf0] }
 0x23a   :  { %v9758_v3 = vld [vmem:[%s19558_s1 + $0xe48] sm:$0xf]  ;;  %v9503_v12 = vor.u32 %v12417_v2, %v9502_v1  ;;  %6727 = vmatpush.bf16.msrb.mxu1 %v9247_v10 }
 0x23b   :  { %v12481_v5 = vld [vmem:[%s19558_s1 + $0xe64] sm:$0xf0] }
 0x23c   :  { %v8958_v8 = vld [vmem:[%s19558_s1 + $0x808] sm:$0xf]  ;;  %v9759_v18 = vor.u32 %v12481_v5, %v9758_v3  ;;  %6740 = vmatpush.bf16.msrb.mxu2 %v9503_v12 }
 0x23d   :  { %v12281_v9 = vld [vmem:[%s19558_s1 + $0x824] sm:$0xf0] }
 0x23e   :  { %v9214_v13 = vld [vmem:[%s19558_s1 + $0xa08] sm:$0xf]  ;;  %v8959_v36 = vor.u32 %v12281_v9, %v8958_v8  ;;  %6753 = vmatpush.bf16.msrb.mxu3 %v9759_v18 }
 0x23f   :  { %v12345_v14 = vld [vmem:[%s19558_s1 + $0xa24] sm:$0xf0] }
 0x240   :  { %v9470_v15 = vld [vmem:[%s19558_s1 + $0xc08] sm:$0xf]  ;;  %v9215_v11 = vor.u32 %v12345_v14, %v9214_v13  ;;  %6715 = vmatpush.bf16.msrb.mxu0 %v8959_v36  ;;  %v15201_v36 = vpop.f32.mrf.mxu0 }
 0x241   :  { %v12409_v19 = vld [vmem:[%s19558_s1 + $0xc24] sm:$0xf0] }
 0x242   :  { %v9726_v22 = vld [vmem:[%s19558_s1 + $0xe08] sm:$0xf]  ;;  %v9471_v45 = vor.u32 %v12409_v19, %v9470_v15  ;;  %6728 = vmatpush.bf16.msrb.mxu1 %v9215_v11 }
 0x243   :  { %v12473_v24 = vld [vmem:[%s19558_s1 + $0xe24] sm:$0xf0]  ;;  %6716 = vmatmul.bf16.vlgmr.msrb.gmra.mxu0 %v13528_v41 }
 0x244   :  { %v10206_v27 = vld [vmem:[%s19558_s1 + $0x11c8] sm:$0xf]  ;;  %v9727_v48 = vor.u32 %v12473_v24, %v9726_v22  ;;  %6741 = vmatpush.bf16.msrb.mxu2 %v9471_v45 }
 0x245   :  { %v12593_v32 = vld [vmem:[%s19558_s1 + $0x11e4] sm:$0xf0]  ;;  %6729 = vmatmul.bf16.vlgmr.msrb.gmra.mxu1 %v13532_v44 }
 0x246   :  { %v10462_v34 = vld [vmem:[%s19558_s1 + $0x13c8] sm:$0xf]  ;;  %v10207_v49 = vor.u32 %v12593_v32, %v10206_v27  ;;  %6754 = vmatpush.bf16.msrb.mxu3 %v9727_v48 }
 0x247   :  { %v12657_v37 = vld [vmem:[%s19558_s1 + $0x13e4] sm:$0xf0]  ;;  %6742 = vmatmul.bf16.vlgmr.msrb.gmra.mxu2 %v13520_v38 }
 0x248   :  { %v10718_v39 = vld [vmem:[%s19558_s1 + $0x15c8] sm:$0xf]  ;;  %v10463_v50 = vor.u32 %v12657_v37, %v10462_v34  ;;  %6760 = vmatpush.bf16.msra.mxu0 %v10207_v49 }
 0x249   :  { %v12721_v43 = vld [vmem:[%s19558_s1 + $0x15e4] sm:$0xf0]  ;;  %6755 = vmatmul.bf16.vlgmr.msrb.gmra.mxu3 %v13530_v42 }
 0x24a   :  { %v10974_v46 = vld [vmem:[%s19558_s1 + $0x17c8] sm:$0xf]  ;;  %v10719_v51 = vor.u32 %v12721_v43, %v10718_v39  ;;  %6773 = vmatpush.bf16.msra.mxu1 %v10463_v50 }
 0x24b   :  { %v12785_v47 = vld [vmem:[%s19558_s1 + $0x17e4] sm:$0xf0] }
 0x24c   :  { %v10174_v62 = vld [vmem:[%s19558_s1 + $0x1188] sm:$0xf]  ;;  %v10975_v54 = vor.u32 %v12785_v47, %v10974_v46  ;;  %6786 = vmatpush.bf16.msra.mxu2 %v10719_v51  ;;  %v15212_v46 = vpop.f32.mrf.mxu1 }
 0x24d   :  { %v12585_v52 = vld [vmem:[%s19558_s1 + $0x11a4] sm:$0xf0] }
 0x24e   :  { %v10430_v53 = vld [vmem:[%s19558_s1 + $0x1388] sm:$0xf]  ;;  %v10175_v61 = vor.u32 %v12585_v52, %v10174_v62  ;;  %6799 = vmatpush.bf16.msra.mxu3 %v10975_v54 }
 0x24f   :  { %v12649_v56 = vld [vmem:[%s19558_s1 + $0x13a4] sm:$0xf0] }
 0x250   :  { %v10686_v57 = vld [vmem:[%s19558_s1 + $0x1588] sm:$0xf]  ;;  %v10431_v63 = vor.u32 %v12649_v56, %v10430_v53  ;;  %6761 = vmatpush.bf16.msra.mxu0 %v10175_v61 }
 0x251   :  { %v12713_v58 = vld [vmem:[%s19558_s1 + $0x15a4] sm:$0xf0] }
 0x252   :  { %v10942_v59 = vld [vmem:[%s19558_s1 + $0x1788] sm:$0xf]  ;;  %v10687_v0 = vor.u32 %v12713_v58, %v10686_v57  ;;  %6774 = vmatpush.bf16.msra.mxu1 %v10431_v63 }
 0x253   :  { %v12777_v60 = vld [vmem:[%s19558_s1 + $0x17a4] sm:$0xf0] }
 0x254   :  { %v10142_v16 = vld [vmem:[%s19558_s1 + $0x1148] sm:$0xf]  ;;  %v10943_v3 = vor.u32 %v12777_v60, %v10942_v59  ;;  %6787 = vmatpush.bf16.msra.mxu2 %v10687_v0  ;;  %v15238_v59 = vpop.f32.mrf.mxu2 }
 0x255   :  { %v12577_v1 = vld [vmem:[%s19558_s1 + $0x1164] sm:$0xf0] }
 0x256   :  { %v10398_v2 = vld [vmem:[%s19558_s1 + $0x1348] sm:$0xf]  ;;  %v10143_v12 = vor.u32 %v12577_v1, %v10142_v16  ;;  %6800 = vmatpush.bf16.msra.mxu3 %v10943_v3  ;;  %v15249_v16 = vpop.f32.mrf.mxu3 }
 0x257   :  { %v12641_v5 = vld [vmem:[%s19558_s1 + $0x1364] sm:$0xf0] }
 0x258   :  { %v10654_v7 = vld [vmem:[%s19558_s1 + $0x1548] sm:$0xf]  ;;  %v10399_v13 = vor.u32 %v12641_v5, %v10398_v2  ;;  %6762 = vmatpush.bf16.msra.mxu0 %v10143_v12  ;;  %v6511_v5 = vpop.f32.mrf.mxu0 }
 0x259   :  { %v12705_v8 = vld [vmem:[%s19558_s1 + $0x1564] sm:$0xf0] }
 0x25a   :  { %v10910_v9 = vld [vmem:[%s19558_s1 + $0x1748] sm:$0xf]  ;;  %v10655_v14 = vor.u32 %v12705_v8, %v10654_v7  ;;  %6775 = vmatpush.bf16.msra.mxu1 %v10399_v13  ;;  %v6524_v13 = vpop.f32.mrf.mxu1 }
 0x25b   :  { %v12769_v10 = vld [vmem:[%s19558_s1 + $0x1764] sm:$0xf0] }
 0x25c   :  { %v10110_v15 = vld [vmem:[%s19558_s1 + $0x1108] sm:$0xf]  ;;  %v10911_v19 = vor.u32 %v12769_v10, %v10910_v9  ;;  %6788 = vmatpush.bf16.msra.mxu2 %v10655_v14 }
 0x25d   :  { %v12569_v17 = vld [vmem:[%s19558_s1 + $0x1124] sm:$0xf0] }
 0x25e   :  { %v10366_v18 = vld [vmem:[%s19558_s1 + $0x1308] sm:$0xf]  ;;  %v10111_v34 = vor.u32 %v12569_v17, %v10110_v15  ;;  %6801 = vmatpush.bf16.msra.mxu3 %v10911_v19 }
 0x25f   :  { %v12633_v22 = vld [vmem:[%s19558_s1 + $0x1324] sm:$0xf0] }
 0x260   :  { %v10622_v24 = vld [vmem:[%s19558_s1 + $0x1508] sm:$0xf]  ;;  %v10367_v37 = vor.u32 %v12633_v22, %v10366_v18  ;;  %6763 = vmatpush.bf16.msra.mxu0 %v10111_v34 }
 0x261   :  { %v12697_v26 = vld [vmem:[%s19558_s1 + $0x1524] sm:$0xf0] }
 0x262   :  { %v10878_v27 = vld [vmem:[%s19558_s1 + $0x1708] sm:$0xf]  ;;  %v10623_v39 = vor.u32 %v12697_v26, %v10622_v24  ;;  %6776 = vmatpush.bf16.msra.mxu1 %v10367_v37 }
 0x263   :  { %v12761_v32 = vld [vmem:[%s19558_s1 + $0x1724] sm:$0xf0] }
 0x264   :  { %v10078_v43 = vld [vmem:[%s19558_s1 + $0x10c8] sm:$0xf]  ;;  %v10879_v47 = vor.u32 %v12761_v32, %v10878_v27  ;;  %6789 = vmatpush.bf16.msra.mxu2 %v10623_v39 }
 0x265   :  { %v12561_v11 = vld [vmem:[%s19558_s1 + $0x10e4] sm:$0xf0] }
 0x266   :  { %v10334_v45 = vld [vmem:[%s19558_s1 + $0x12c8] sm:$0xf]  ;;  %v10079_v52 = vor.u32 %v12561_v11, %v10078_v43  ;;  %6802 = vmatpush.bf16.msra.mxu3 %v10879_v47  ;;  %v6537_v11 = vpop.f32.mrf.mxu2 }
 0x267   :  { %v12625_v48 = vld [vmem:[%s19558_s1 + $0x12e4] sm:$0xf0] }
 0x268   :  { %v10590_v49 = vld [vmem:[%s19558_s1 + $0x14c8] sm:$0xf]  ;;  %v10335_v53 = vor.u32 %v12625_v48, %v10334_v45  ;;  %6764 = vmatpush.bf16.msra.mxu0 %v10079_v52 }
 0x269   :  { %v12689_v50 = vld [vmem:[%s19558_s1 + $0x14e4] sm:$0xf0] }
 0x26a   :  { %v10846_v51 = vld [vmem:[%s19558_s1 + $0x16c8] sm:$0xf]  ;;  %v10591_v54 = vor.u32 %v12689_v50, %v10590_v49  ;;  %6777 = vmatpush.bf16.msra.mxu1 %v10335_v53  ;;  %v6550_v50 = vpop.f32.mrf.mxu3 }
 0x26b   :  { %v12753_v62 = vld [vmem:[%s19558_s1 + $0x16e4] sm:$0xf0] }
 0x26c   :  { %v10046_v56 = vld [vmem:[%s19558_s1 + $0x1088] sm:$0xf]  ;;  %v10847_v60 = vor.u32 %v12753_v62, %v10846_v51  ;;  %6790 = vmatpush.bf16.msra.mxu2 %v10591_v54 }
 0x26d   :  { %v12553_v57 = vld [vmem:[%s19558_s1 + $0x10a4] sm:$0xf0] }
 0x26e   :  { %v10302_v58 = vld [vmem:[%s19558_s1 + $0x1288] sm:$0xf]  ;;  %v10047_v3 = vor.u32 %v12553_v57, %v10046_v56  ;;  %6803 = vmatpush.bf16.msra.mxu3 %v10847_v60 }
 0x26f   :  { %v12617_v61 = vld [vmem:[%s19558_s1 + $0x12a4] sm:$0xf0] }
 0x270   :  { %v10558_v63 = vld [vmem:[%s19558_s1 + $0x1488] sm:$0xf]  ;;  %v10303_v7 = vor.u32 %v12617_v61, %v10302_v58  ;;  %6765 = vmatpush.bf16.msra.mxu0 %v10047_v3 }
 0x271   :  { %v12681_v0 = vld [vmem:[%s19558_s1 + $0x14a4] sm:$0xf0] }
 0x272   :  { %v10814_v1 = vld [vmem:[%s19558_s1 + $0x1688] sm:$0xf]  ;;  %v10559_v8 = vor.u32 %v12681_v0, %v10558_v63  ;;  %6778 = vmatpush.bf16.msra.mxu1 %v10303_v7 }
 0x273   :  { %v12745_v2 = vld [vmem:[%s19558_s1 + $0x16a4] sm:$0xf0] }
 0x274   :  { %v10014_v9 = vld [vmem:[%s19558_s1 + $0x1048] sm:$0xf]  ;;  %v10815_v14 = vor.u32 %v12745_v2, %v10814_v1  ;;  %6791 = vmatpush.bf16.msra.mxu2 %v10559_v8 }
 0x275   :  { %v12545_v10 = vld [vmem:[%s19558_s1 + $0x1064] sm:$0xf0] }
 0x276   :  { %v10270_v12 = vld [vmem:[%s19558_s1 + $0x1248] sm:$0xf]  ;;  %v10015_v24 = vor.u32 %v12545_v10, %v10014_v9  ;;  %6804 = vmatpush.bf16.msra.mxu3 %v10815_v14 }
 0x277   :  { %v12609_v15 = vld [vmem:[%s19558_s1 + $0x1264] sm:$0xf0] }
 0x278   :  { %v10526_v17 = vld [vmem:[%s19558_s1 + $0x1448] sm:$0xf]  ;;  %v10271_v32 = vor.u32 %v12609_v15, %v10270_v12  ;;  %6766 = vmatpush.bf16.msra.mxu0 %v10015_v24 }
 0x279   :  { %v12673_v18 = vld [vmem:[%s19558_s1 + $0x1464] sm:$0xf0] }
 0x27a   :  { %v10782_v19 = vld [vmem:[%s19558_s1 + $0x1648] sm:$0xf]  ;;  %v10527_v34 = vor.u32 %v12673_v18, %v10526_v17  ;;  %6779 = vmatpush.bf16.msra.mxu1 %v10271_v32 }
 0x27b   :  { %v12737_v22 = vld [vmem:[%s19558_s1 + $0x1664] sm:$0xf0] }
 0x27c   :  { %v9982_v26 = vld [vmem:[%s19558_s1 + $0x1008] sm:$0xf]  ;;  %v10783_v45 = vor.u32 %v12737_v22, %v10782_v19  ;;  %6792 = vmatpush.bf16.msra.mxu2 %v10527_v34 }
 0x27d   :  { %v12537_v27 = vld [vmem:[%s19558_s1 + $0x1024] sm:$0xf0] }
 0x27e   :  { %v10238_v37 = vld [vmem:[%s19558_s1 + $0x1208] sm:$0xf]  ;;  %v9983_v53 = vor.u32 %v12537_v27, %v9982_v26  ;;  %6805 = vmatpush.bf16.msra.mxu3 %v10783_v45 }
 0x27f   :  { %v12601_v39 = vld [vmem:[%s19558_s1 + $0x1224] sm:$0xf0] }
 0x280   :  { %v10494_v43 = vld [vmem:[%s19558_s1 + $0x1408] sm:$0xf]  ;;  %v10239_v58 = vor.u32 %v12601_v39, %v10238_v37  ;;  %6767 = vmatpush.bf16.msra.mxu0 %v9983_v53 }
 0x281   :  { %v12665_v47 = vld [vmem:[%s19558_s1 + $0x1424] sm:$0xf0] }
 0x282   :  { %v10750_v48 = vld [vmem:[%s19558_s1 + $0x1608] sm:$0xf]  ;;  %v10495_v60 = vor.u32 %v12665_v47, %v10494_v43  ;;  %6780 = vmatpush.bf16.msra.mxu1 %v10239_v58 }
 0x283   :  { %v12729_v49 = vld [vmem:[%s19558_s1 + $0x1624] sm:$0xf0]  ;;  %6768 = vmatmul.bf16.vlgmr.msra.gmra.mxu0 %v13721_v25 }
 0x284   :  { %v11230_v51 = vld [vmem:[%s19558_s1 + $0x19c8] sm:$0xf]  ;;  %v10751_v0 = vor.u32 %v12729_v49, %v10750_v48  ;;  %6793 = vmatpush.bf16.msra.mxu2 %v10495_v60  ;;  %v15407_v60 = vpop.f32.mrf.mxu1 }
 0x285   :  { %v12849_v62 = vld [vmem:[%s19558_s1 + $0x19e4] sm:$0xf0]  ;;  %6781 = vmatmul.bf16.vlgmr.msra.gmra.mxu1 %v13734_v30 }
 0x286   :  { %v11486_v52 = vld [vmem:[%s19558_s1 + $0x1bc8] sm:$0xf]  ;;  %v11231_v1 = vor.u32 %v12849_v62, %v11230_v51  ;;  %6806 = vmatpush.bf16.msra.mxu3 %v10751_v0 }
 0x287   :  { %v12913_v54 = vld [vmem:[%s19558_s1 + $0x1be4] sm:$0xf0]  ;;  %6794 = vmatmul.bf16.vlgmr.msra.gmra.mxu2 %v13732_v29 }
 0x288   :  { %v11742_v56 = vld [vmem:[%s19558_s1 + $0x1dc8] sm:$0xf]  ;;  %v11487_v2 = vor.u32 %v12913_v54, %v11486_v52  ;;  %6812 = vmatpush.bf16.msrb.mxu0 %v11231_v1  ;;  %v15399_v54 = vpop.f32.mrf.mxu0 }
 0x289   :  { %v12977_v57 = vld [vmem:[%s19558_s1 + $0x1de4] sm:$0xf0]  ;;  %6807 = vmatmul.bf16.vlgmr.msra.gmra.mxu3 %v13742_v33 }
 0x28a   :  { %v11998_v61 = vld [vmem:[%s19558_s1 + $0x1fc8] sm:$0xf]  ;;  %v11743_v3 = vor.u32 %v12977_v57, %v11742_v56  ;;  %6825 = vmatpush.bf16.msrb.mxu1 %v11487_v2 }
 0x28b   :  { %v13041_v63 = vld [vmem:[%s19558_s1 + $0x1fe4] sm:$0xf0] }
 0x28c   :  { %v11198_v5 = vld [vmem:[%s19558_s1 + $0x1988] sm:$0xf]  ;;  %v11999_v9 = vor.u32 %v13041_v63, %v11998_v61  ;;  %6838 = vmatpush.bf16.msrb.mxu2 %v11743_v3 }
 0x28d   :  { %v12841_v7 = vld [vmem:[%s19558_s1 + $0x19a4] sm:$0xf0] }
 0x28e   :  { %v11454_v8 = vld [vmem:[%s19558_s1 + $0x1b88] sm:$0xf]  ;;  %v11199_v17 = vor.u32 %v12841_v7, %v11198_v5  ;;  %6851 = vmatpush.bf16.msrb.mxu3 %v11999_v9 }
 0x28f   :  { %v12905_v10 = vld [vmem:[%s19558_s1 + $0x1ba4] sm:$0xf0] }
 0x290   :  { %v11710_v12 = vld [vmem:[%s19558_s1 + $0x1d88] sm:$0xf]  ;;  %v11455_v18 = vor.u32 %v12905_v10, %v11454_v8  ;;  %6813 = vmatpush.bf16.msrb.mxu0 %v11199_v17 }
 0x291   :  { %v12969_v13 = vld [vmem:[%s19558_s1 + $0x1da4] sm:$0xf0] }
 0x292   :  { %v11966_v14 = vld [vmem:[%s19558_s1 + $0x1f88] sm:$0xf]  ;;  %v11711_v19 = vor.u32 %v12969_v13, %v11710_v12  ;;  %6826 = vmatpush.bf16.msrb.mxu1 %v11455_v18  ;;  %v6510_v13 = vadd.f32 %v15201_v36, %v15051_v55 }
 0x293   :  { %v13033_v15 = vld [vmem:[%s19558_s1 + $0x1fa4] sm:$0xf0] }
 0x294   :  { %v11166_v22 = vld [vmem:[%s19558_s1 + $0x1948] sm:$0xf]  ;;  %v11967_v27 = vor.u32 %v13033_v15, %v11966_v14  ;;  %6839 = vmatpush.bf16.msrb.mxu2 %v11711_v19 }
 0x295   :  { %v12833_v24 = vld [vmem:[%s19558_s1 + $0x1964] sm:$0xf0] }
 0x296   :  { %v11422_v26 = vld [vmem:[%s19558_s1 + $0x1b48] sm:$0xf]  ;;  %v11167_v11 = vor.u32 %v12833_v24, %v11166_v22  ;;  %6852 = vmatpush.bf16.msrb.mxu3 %v11967_v27  ;;  %v15444_v24 = vpop.f32.mrf.mxu2  ;;  %v15455_v27 = vpop.f32.mrf.mxu3 }
 0x297   :  { %v12897_v32 = vld [vmem:[%s19558_s1 + $0x1b64] sm:$0xf0] }
 0x298   :  { %v11678_v34 = vld [vmem:[%s19558_s1 + $0x1d48] sm:$0xf]  ;;  %v11423_v45 = vor.u32 %v12897_v32, %v11422_v26  ;;  %6814 = vmatpush.bf16.msrb.mxu0 %v11167_v11  ;;  %v6523_v11 = vadd.f32 %v15212_v46, %v6510_v13  ;;  %v8160_v13 = vld [vmem:[%s19558_s1 + $0x1e8] sm:$0xf0] }
 0x299   :  { %v12961_v37 = vld [vmem:[%s19558_s1 + $0x1d64] sm:$0xf0] }
 0x29a   :  { %v11934_v39 = vld [vmem:[%s19558_s1 + $0x1f48] sm:$0xf]  ;;  %v11679_v47 = vor.u32 %v12961_v37, %v11678_v34  ;;  %6827 = vmatpush.bf16.msrb.mxu1 %v11423_v45  ;;  %v6563_v37 = vpop.f32.mrf.mxu0 }
 0x29b   :  { %v13025_v43 = vld [vmem:[%s19558_s1 + $0x1f64] sm:$0xf0] }
 0x29c   :  { %v11134_v48 = vld [vmem:[%s19558_s1 + $0x1908] sm:$0xf]  ;;  %v11935_v51 = vor.u32 %v13025_v43, %v11934_v39  ;;  %6840 = vmatpush.bf16.msrb.mxu2 %v11679_v47  ;;  %v6576_v43 = vpop.f32.mrf.mxu1 }
 0x29d   :  { %v12825_v49 = vld [vmem:[%s19558_s1 + $0x1924] sm:$0xf0] }
 0x29e   :  { %v11390_v50 = vld [vmem:[%s19558_s1 + $0x1b08] sm:$0xf]  ;;  %v11135_v58 = vor.u32 %v12825_v49, %v11134_v48  ;;  %6853 = vmatpush.bf16.msrb.mxu3 %v11935_v51 }
 0x29f   :  { %v12889_v62 = vld [vmem:[%s19558_s1 + $0x1b24] sm:$0xf0] }
 0x2a0   :  { %v11646_v52 = vld [vmem:[%s19558_s1 + $0x1d08] sm:$0xf]  ;;  %v11391_v61 = vor.u32 %v12889_v62, %v11390_v50  ;;  %6815 = vmatpush.bf16.msrb.mxu0 %v11135_v58 }
 0x2a1   :  { %v12953_v53 = vld [vmem:[%s19558_s1 + $0x1d24] sm:$0xf0] }
 0x2a2   :  { %v11902_v56 = vld [vmem:[%s19558_s1 + $0x1f08] sm:$0xf]  ;;  %v11647_v63 = vor.u32 %v12953_v53, %v11646_v52  ;;  %6828 = vmatpush.bf16.msrb.mxu1 %v11391_v61 }
 0x2a3   :  { %v13017_v57 = vld [vmem:[%s19558_s1 + $0x1f24] sm:$0xf0] }
 0x2a4   :  { %v11102_v0 = vld [vmem:[%s19558_s1 + $0x18c8] sm:$0xf]  ;;  %v11903_v3 = vor.u32 %v13017_v57, %v11902_v56  ;;  %6841 = vmatpush.bf16.msrb.mxu2 %v11647_v63  ;;  %v6536_v63 = vadd.f32 %v15238_v59, %v6523_v11 }
 0x2a5   :  { %v12817_v1 = vld [vmem:[%s19558_s1 + $0x18e4] sm:$0xf0] }
 0x2a6   :  { %v11358_v2 = vld [vmem:[%s19558_s1 + $0x1ac8] sm:$0xf]  ;;  %v11103_v12 = vor.u32 %v12817_v1, %v11102_v0  ;;  %6854 = vmatpush.bf16.msrb.mxu3 %v11903_v3 }
 0x2a7   :  { %v12881_v5 = vld [vmem:[%s19558_s1 + $0x1ae4] sm:$0xf0] }
 0x2a8   :  { %v11614_v7 = vld [vmem:[%s19558_s1 + $0x1cc8] sm:$0xf]  ;;  %v11359_v14 = vor.u32 %v12881_v5, %v11358_v2  ;;  %6816 = vmatpush.bf16.msrb.mxu0 %v11103_v12  ;;  %v12077_v12 = vld [vmem:[%s19558_s1 + $0x1cc] sm:$0xf] }
 0x2a9   :  { %v12945_v8 = vld [vmem:[%s19558_s1 + $0x1ce4] sm:$0xf0] }
 0x2aa   :  { %v11870_v9 = vld [vmem:[%s19558_s1 + $0x1ec8] sm:$0xf]  ;;  %v11615_v15 = vor.u32 %v12945_v8, %v11614_v7  ;;  %6829 = vmatpush.bf16.msrb.mxu1 %v11359_v14  ;;  %v12141_v14 = vld [vmem:[%s19558_s1 + $0x3cc] sm:$0xf] }
 0x2ab   :  { %v13009_v10 = vld [vmem:[%s19558_s1 + $0x1ee4] sm:$0xf0] }
 0x2ac   :  { %v11070_v17 = vld [vmem:[%s19558_s1 + $0x1888] sm:$0xf]  ;;  %v11871_v22 = vor.u32 %v13009_v10, %v11870_v9  ;;  %6842 = vmatpush.bf16.msrb.mxu2 %v11615_v15  ;;  %v6589_v10 = vpop.f32.mrf.mxu2  ;;  %v6602_v15 = vpop.f32.mrf.mxu3 }
 0x2ad   :  { %v12809_v18 = vld [vmem:[%s19558_s1 + $0x18a4] sm:$0xf0]  ;;  %v8064_v10 = vld [vmem:[%s19558_s1 + $0x128] sm:$0xf0] }
 0x2ae   :  { %v11326_v19 = vld [vmem:[%s19558_s1 + $0x1a88] sm:$0xf]  ;;  %v11071_v39 = vor.u32 %v12809_v18, %v11070_v17  ;;  %6855 = vmatpush.bf16.msrb.mxu3 %v11871_v22  ;;  %v8416_v18 = vld [vmem:[%s19558_s1 + $0x3e8] sm:$0xf0] }
 0x2af   :  { %v12873_v55 = vld [vmem:[%s19558_s1 + $0x1aa4] sm:$0xf0]  ;;  %v8672_v22 = vld [vmem:[%s19558_s1 + $0x5e8] sm:$0xf0]  ;;  %v8419_v11 = vor.u32 %v12141_v14, %v8416_v18 }
 0x2b0   :  { %v11582_v36 = vld [vmem:[%s19558_s1 + $0x1c88] sm:$0xf]  ;;  %v11327_v45 = vor.u32 %v12873_v55, %v11326_v19  ;;  %6817 = vmatpush.bf16.msrb.mxu0 %v11071_v39  ;;  %v12205_v19 = vld [vmem:[%s19558_s1 + $0x5cc] sm:$0xf]  ;;  %v6549_v55 = vadd.f32 %v15249_v16, %v6536_v63  ;;  %v8163_v39 = vor.u32 %v12077_v12, %v8160_v13 }
 0x2b1   :  { %v12937_v26 = vld [vmem:[%s19558_s1 + $0x1ca4] sm:$0xf0]  ;;  %v12069_v16 = vld [vmem:[%s19558_s1 + $0x18c] sm:$0xf] }
 0x2b2   :  { %v11838_v32 = vld [vmem:[%s19558_s1 + $0x1e88] sm:$0xf]  ;;  %v11583_v47 = vor.u32 %v12937_v26, %v11582_v36  ;;  %6830 = vmatpush.bf16.msrb.mxu1 %v11327_v45  ;;  %v6562_v43 = vadd.f32 %v15399_v54, %v6549_v55  ;;  %v8675_v45 = vor.u32 %v12205_v19, %v8672_v22  ;;  %v8384_v54 = vld [vmem:[%s19558_s1 + $0x3a8] sm:$0xf0]  ;;  %v6613_v19 = vpop.f32.mrf.mxu0 }
 0x2b3   :  { %v13001_v34 = vld [vmem:[%s19558_s1 + $0x1ea4] sm:$0xf0]  ;;  %v12125_v63 = vld [vmem:[%s19558_s1 + $0x34c] sm:$0xf] }
 0x2b4   :  { %v11038_v48 = vld [vmem:[%s19558_s1 + $0x1848] sm:$0xf]  ;;  %v11839_v51 = vor.u32 %v13001_v34, %v11838_v32  ;;  %6843 = vmatpush.bf16.msrb.mxu2 %v11583_v47  ;;  %v12269_v32 = vld [vmem:[%s19558_s1 + $0x7cc] sm:$0xf] }
 0x2b5   :  { %v12801_v49 = vld [vmem:[%s19558_s1 + $0x1864] sm:$0xf0]  ;;  %v8928_v34 = vld [vmem:[%s19558_s1 + $0x7e8] sm:$0xf0] }
 0x2b6   :  { %v11294_v50 = vld [vmem:[%s19558_s1 + $0x1a48] sm:$0xf]  ;;  %v11039_v57 = vor.u32 %v12801_v49, %v11038_v48  ;;  %6856 = vmatpush.bf16.msrb.mxu3 %v11839_v51  ;;  %v8128_v47 = vld [vmem:[%s19558_s1 + $0x1a8] sm:$0xf0]  ;;  %v8931_v49 = vor.u32 %v12269_v32, %v8928_v34 }
 0x2b7   :  { %v12865_v46 = vld [vmem:[%s19558_s1 + $0x1a64] sm:$0xf0]  ;;  %v12133_v48 = vld [vmem:[%s19558_s1 + $0x38c] sm:$0xf] }
 0x2b8   :  { %v11550_v62 = vld [vmem:[%s19558_s1 + $0x1c48] sm:$0xf]  ;;  %v11295_v0 = vor.u32 %v12865_v46, %v11294_v50  ;;  %6818 = vmatpush.bf16.msrb.mxu0 %v11039_v57  ;;  %v12197_v50 = vld [vmem:[%s19558_s1 + $0x58c] sm:$0xf] }
 0x2b9   :  { %v12929_v52 = vld [vmem:[%s19558_s1 + $0x1c64] sm:$0xf0]  ;;  %v8640_v51 = vld [vmem:[%s19558_s1 + $0x5a8] sm:$0xf0] }
 0x2ba   :  { %v11806_v53 = vld [vmem:[%s19558_s1 + $0x1e48] sm:$0xf]  ;;  %v11551_v1 = vor.u32 %v12929_v52, %v11550_v62  ;;  %6831 = vmatpush.bf16.msrb.mxu1 %v11295_v0  ;;  %v12261_v46 = vld [vmem:[%s19558_s1 + $0x78c] sm:$0xf]  ;;  %v8131_v52 = vor.u32 %v12069_v16, %v8128_v47  ;;  %v8643_v57 = vor.u32 %v12197_v50, %v8640_v51 }
 0x2bb   :  { %v12993_v56 = vld [vmem:[%s19558_s1 + $0x1e64] sm:$0xf0]  ;;  %v8896_v62 = vld [vmem:[%s19558_s1 + $0x7a8] sm:$0xf0] }
 0x2bc   :  { %v11006_v58 = vld [vmem:[%s19558_s1 + $0x1808] sm:$0xf]  ;;  %v11807_v7 = vor.u32 %v12993_v56, %v11806_v53  ;;  %6844 = vmatpush.bf16.msrb.mxu2 %v11551_v1  ;;  %v6575_v53 = vadd.f32 %v15407_v60, %v6562_v43  ;;  %v8387_v56 = vor.u32 %v12133_v48, %v8384_v54  ;;  %v8899_v60 = vor.u32 %v12261_v46, %v8896_v62  ;;  %v8352_v0 = vld [vmem:[%s19558_s1 + $0x368] sm:$0xf0] }
 0x2bd   :  { %v12793_v61 = vld [vmem:[%s19558_s1 + $0x1824] sm:$0xf0]  ;;  %v12189_v1 = vld [vmem:[%s19558_s1 + $0x54c] sm:$0xf] }
 0x2be   :  { %v11262_v2 = vld [vmem:[%s19558_s1 + $0x1a08] sm:$0xf]  ;;  %v11007_v17 = vor.u32 %v12793_v61, %v11006_v58  ;;  %6857 = vmatpush.bf16.msrb.mxu3 %v11807_v7  ;;  %v12061_v58 = vld [vmem:[%s19558_s1 + $0x14c] sm:$0xf] }
 0x2bf   :  { %v12857_v3 = vld [vmem:[%s19558_s1 + $0x1a24] sm:$0xf0]  ;;  %v8096_v61 = vld [vmem:[%s19558_s1 + $0x168] sm:$0xf0] }
 0x2c0   :  { %v11518_v5 = vld [vmem:[%s19558_s1 + $0x1c08] sm:$0xf]  ;;  %v11263_v36 = vor.u32 %v12857_v3, %v11262_v2  ;;  %6819 = vmatpush.bf16.msrb.mxu0 %v11007_v17  ;;  %v8608_v2 = vld [vmem:[%s19558_s1 + $0x568] sm:$0xf0]  ;;  %v6588_v3 = vadd.f32 %v15444_v24, %v6575_v53 }
 0x2c1   :  { %v12921_v59 = vld [vmem:[%s19558_s1 + $0x1c24] sm:$0xf0]  ;;  %v8864_v7 = vld [vmem:[%s19558_s1 + $0x768] sm:$0xf0]  ;;  %v8611_v24 = vor.u32 %v12189_v1, %v8608_v2 }
 0x2c2   :  { %v11774_v8 = vld [vmem:[%s19558_s1 + $0x1e08] sm:$0xf]  ;;  %v11519_v26 = vor.u32 %v12921_v59, %v11518_v5  ;;  %6832 = vmatpush.bf16.msrb.mxu1 %v11263_v36  ;;  %v12253_v5 = vld [vmem:[%s19558_s1 + $0x74c] sm:$0xf]  ;;  %v8099_v59 = vor.u32 %v12061_v58, %v8096_v61  ;;  %v6601_v18 = vadd.f32 %v15455_v27, %v6588_v3  ;;  %v6615_v3 = vpop.f32.mrf.mxu0 }
 0x2c3   :  { %v12985_v9 = vld [vmem:[%s19558_s1 + $0x1e24] sm:$0xf0]  ;;  %6820 = vmatmul.bf16.vlgmr.msrb.gmra.mxu0 %v13931_v23  ;;  %v12117_v12 = vld [vmem:[%s19558_s1 + $0x30c] sm:$0xf]  ;;  %v8867_v13 = vor.u32 %v12253_v5, %v8864_v7 }
 0x2c4   :  { %v11775_v37 = vor.u32 %v12985_v9, %v11774_v8  ;;  %6845 = vmatpush.bf16.msrb.mxu2 %v11519_v26  ;;  %6864 = vmatpush.bf16.msra.mxu0 %v8163_v39  ;;  %v8355_v8 = vor.u32 %v12125_v63, %v8352_v0  ;;  %v12053_v9 = vld [vmem:[%s19558_s1 + $0x10c] sm:$0xf]  ;;  %v6626_v26 = vpop.f32.mrf.mxu1  ;;  %v6614_v32 = vadd.f32 %v6613_v19, %v6601_v18  ;;  %v6652_v0 = vpop.f32.mrf.mxu3  ;;  %v7904_v18 = vmax.f32 %v14850_v40, 0.0 }
 0x2c5   :  { %6833 = vmatmul.bf16.vlgmr.msrb.gmra.mxu1 %v13944_v31  ;;  %v8320_v14 = vld [vmem:[%s19558_s1 + $0x328] sm:$0xf0]  ;;  %v8067_v36 = vor.u32 %v12053_v9, %v8064_v10 }
 0x2c6   :  { %6858 = vmatpush.bf16.msrb.mxu3 %v11775_v37  ;;  %6877 = vmatpush.bf16.msra.mxu1 %v8419_v11  ;;  %v12181_v15 = vld [vmem:[%s19558_s1 + $0x50c] sm:$0xf]  ;;  %v8323_v34 = vor.u32 %v12117_v12, %v8320_v14  ;;  %v6627_v50 = vadd.f32 %v6626_v26, %v6614_v32 }
 0x2c7   :  { %6846 = vmatmul.bf16.vlgmr.msrb.gmra.mxu2 %v13942_v28  ;;  %v8576_v17 = vld [vmem:[%s19558_s1 + $0x528] sm:$0xf0] }
 0x2c8   :  { %6890 = vmatpush.bf16.msra.mxu2 %v8675_v45  ;;  %6865 = vmatpush.bf16.msra.mxu0 %v8131_v52  ;;  %v12245_v22 = vld [vmem:[%s19558_s1 + $0x70c] sm:$0xf]  ;;  %v8579_v37 = vor.u32 %v12181_v15, %v8576_v17 }
 0x2c9   :  { %6859 = vmatmul.bf16.vlgmr.msrb.gmra.mxu3 %v13952_v35  ;;  %v8832_v55 = vld [vmem:[%s19558_s1 + $0x728] sm:$0xf0] }
 0x2ca   :  { %6903 = vmatpush.bf16.msra.mxu3 %v8931_v49  ;;  %6878 = vmatpush.bf16.msra.mxu1 %v8387_v56  ;;  %v12045_v27 = vld [vmem:[%s19558_s1 + $0xcc] sm:$0xf]  ;;  %v8835_v11 = vor.u32 %v12245_v22, %v8832_v55 }
 0x2cb   :  { %v8032_v39 = vld [vmem:[%s19558_s1 + $0xe8] sm:$0xf0] }
 0x2cc   :  { %6891 = vmatpush.bf16.msra.mxu2 %v8643_v57  ;;  %6866 = vmatpush.bf16.msra.mxu0 %v8099_v59  ;;  %v12109_v43 = vld [vmem:[%s19558_s1 + $0x2cc] sm:$0xf]  ;;  %v8035_v54 = vor.u32 %v12045_v27, %v8032_v39  ;;  %v6639_v57 = vpop.f32.mrf.mxu2  ;;  %v6628_v7 = vpop.f32.mrf.mxu1 }
 0x2cd   :  { %v8288_v45 = vld [vmem:[%s19558_s1 + $0x2e8] sm:$0xf0] }
 0x2ce   :  { %6904 = vmatpush.bf16.msra.mxu3 %v8899_v60  ;;  %6879 = vmatpush.bf16.msra.mxu1 %v8355_v8  ;;  %v12173_v16 = vld [vmem:[%s19558_s1 + $0x4cc] sm:$0xf]  ;;  %v8291_v51 = vor.u32 %v12109_v43, %v8288_v45  ;;  %v6640_v60 = vadd.f32 %v6639_v57, %v6627_v50 }
 0x2cf   :  { %v8544_v47 = vld [vmem:[%s19558_s1 + $0x4e8] sm:$0xf0] }
 0x2d0   :  { %6892 = vmatpush.bf16.msra.mxu2 %v8611_v24  ;;  %v12237_v48 = vld [vmem:[%s19558_s1 + $0x6cc] sm:$0xf]  ;;  %6867 = vmatpush.bf16.msra.mxu0 %v8067_v36  ;;  %v8547_v46 = vor.u32 %v12173_v16, %v8544_v47  ;;  %v6653_v59 = vadd.f32 %v6652_v0, %v6640_v60 }
 0x2d1   :  { %v8800_v49 = vld [vmem:[%s19558_s1 + $0x6e8] sm:$0xf0] }
 0x2d2   :  { %6905 = vmatpush.bf16.msra.mxu3 %v8867_v13  ;;  %6880 = vmatpush.bf16.msra.mxu1 %v8323_v34  ;;  %v12037_v62 = vld [vmem:[%s19558_s1 + $0x8c] sm:$0xf]  ;;  %v8803_v56 = vor.u32 %v12237_v48, %v8800_v49  ;;  %v7905_v19 = vmax.f32 %v6653_v59, 0.0 }
 0x2d3   :  { %v8000_v52 = vld [vmem:[%s19558_s1 + $0xa8] sm:$0xf0] }
 0x2d4   :  { %6893 = vmatpush.bf16.msra.mxu2 %v8579_v37  ;;  %v12101_v53 = vld [vmem:[%s19558_s1 + $0x28c] sm:$0xf]  ;;  %6868 = vmatpush.bf16.msra.mxu0 %v8035_v54  ;;  %v8003_v5 = vor.u32 %v12037_v62, %v8000_v52  ;;  %v7912_v40 = vpack.c.bf16 %v7905_v19, %v7904_v18  ;;  %v6641_v48 = vpop.f32.mrf.mxu2 }
 0x2d5   :  { %v8256_v58 = vld [vmem:[%s19558_s1 + $0x2a8] sm:$0xf0] }
 0x2d6   :  { %6906 = vmatpush.bf16.msra.mxu3 %v8835_v11  ;;  %v12165_v61 = vld [vmem:[%s19558_s1 + $0x48c] sm:$0xf]  ;;  %6881 = vmatpush.bf16.msra.mxu1 %v8291_v51  ;;  %v8259_v8 = vor.u32 %v12101_v53, %v8256_v58  ;;  %7916 = vst [vmem:[%s19561_s3] sm:$0xff] %v7912_v40  ;;  %v6654_v51 = vpop.f32.mrf.mxu3 }
 0x2d7   :  { %v8512_v63 = vld [vmem:[%s19558_s1 + $0x4a8] sm:$0xf0] }
 0x2d8   :  { %v12229_v1 = vld [vmem:[%s19558_s1 + $0x68c] sm:$0xf]  ;;  %6894 = vmatpush.bf16.msra.mxu2 %v8547_v46  ;;  %v8515_v24 = vor.u32 %v12165_v61, %v8512_v63  ;;  %6869 = vmatpush.bf16.msra.mxu0 %v8003_v5 }
 0x2d9   :  { %v8768_v2 = vld [vmem:[%s19558_s1 + $0x6a8] sm:$0xf0] }
 0x2da   :  { %v12029_v9 = vld [vmem:[%s19558_s1 + $0x4c] sm:$0xf]  ;;  %6907 = vmatpush.bf16.msra.mxu3 %v8803_v56  ;;  %v8771_v13 = vor.u32 %v12229_v1, %v8768_v2  ;;  %6882 = vmatpush.bf16.msra.mxu1 %v8259_v8 }
 0x2db   :  { %v7968_v10 = vld [vmem:[%s19558_s1 + $0x68] sm:$0xf0] }
 0x2dc   :  { %v12093_v12 = vld [vmem:[%s19558_s1 + $0x24c] sm:$0xf]  ;;  %v7971_v36 = vor.u32 %v12029_v9, %v7968_v10  ;;  %6895 = vmatpush.bf16.msra.mxu2 %v8515_v24 }
 0x2dd   :  { %v8224_v14 = vld [vmem:[%s19558_s1 + $0x268] sm:$0xf0] }
 0x2de   :  { %v12157_v15 = vld [vmem:[%s19558_s1 + $0x44c] sm:$0xf]  ;;  %v8227_v34 = vor.u32 %v12093_v12, %v8224_v14  ;;  %6908 = vmatpush.bf16.msra.mxu3 %v8771_v13  ;;  %6870 = vmatpush.bf16.msra.mxu0 %v7971_v36 }
 0x2df   :  { %v8480_v17 = vld [vmem:[%s19558_s1 + $0x468] sm:$0xf0] }
 0x2e0   :  { %v12221_v22 = vld [vmem:[%s19558_s1 + $0x64c] sm:$0xf]  ;;  %v8483_v37 = vor.u32 %v12157_v15, %v8480_v17  ;;  %6883 = vmatpush.bf16.msra.mxu1 %v8227_v34 }
 0x2e1   :  { %v8736_v55 = vld [vmem:[%s19558_s1 + $0x668] sm:$0xf0] }
 0x2e2   :  { %v12021_v26 = vld [vmem:[%s19558_s1 + $0xc] sm:$0xf]  ;;  %v8739_v11 = vor.u32 %v12221_v22, %v8736_v55  ;;  %6896 = vmatpush.bf16.msra.mxu2 %v8483_v37 }
 0x2e3   :  { %v7936_v32 = vld [vmem:[%s19558_s1 + $0x28] sm:$0xf0] }
 0x2e4   :  { %v12085_v27 = vld [vmem:[%s19558_s1 + $0x20c] sm:$0xf]  ;;  %v7939_v46 = vor.u32 %v12021_v26, %v7936_v32  ;;  %6909 = vmatpush.bf16.msra.mxu3 %v8739_v11  ;;  %v13045_v11 = vld [vmem:[%s19560_s2] sm:$0xff] }
 0x2e5   :  { %v8192_v39 = vld [vmem:[%s19558_s1 + $0x228] sm:$0xf0] }
 0x2e6   :  { %v12149_v43 = vld [vmem:[%s19558_s1 + $0x40c] sm:$0xf]  ;;  %v8195_v56 = vor.u32 %v12085_v27, %v8192_v39  ;;  %6871 = vmatpush.bf16.msra.mxu0 %v7939_v46  ;;  %v6665_v46 = vpop.f32.mrf.mxu0 }
 0x2e7   :  { %v8448_v45 = vld [vmem:[%s19558_s1 + $0x428] sm:$0xf0] }
 0x2e8   :  { %v12213_v16 = vld [vmem:[%s19558_s1 + $0x60c] sm:$0xf]  ;;  %v8451_v57 = vor.u32 %v12149_v43, %v8448_v45  ;;  %6884 = vmatpush.bf16.msra.mxu1 %v8195_v56  ;;  %v1050_v45 = vperm.slane %v13045_v11, 2 }
 0x2e9   :  { %v8704_v47 = vld [vmem:[%s19558_s1 + $0x628] sm:$0xf0]  ;;  %6872 = vmatmul.bf16.vlgmr.msra.gmra.mxu0 %v13369_v20 }
 0x2ea   :  { %v12333_v49 = vld [vmem:[%s19558_s1 + $0x9cc] sm:$0xf]  ;;  %v8707_v63 = vor.u32 %v12213_v16, %v8704_v47  ;;  %6897 = vmatpush.bf16.msra.mxu2 %v8451_v57 }
 0x2eb   :  { %v9184_v54 = vld [vmem:[%s19558_s1 + $0x9e8] sm:$0xf0]  ;;  %6885 = vmatmul.bf16.vlgmr.msra.gmra.mxu1 %v13372_v21 }
 0x2ec   :  { %v12397_v50 = vld [vmem:[%s19558_s1 + $0xbcc] sm:$0xf]  ;;  %v9187_v60 = vor.u32 %v12333_v49, %v9184_v54  ;;  %6910 = vmatpush.bf16.msra.mxu3 %v8707_v63 }
 0x2ed   :  { %v9440_v62 = vld [vmem:[%s19558_s1 + $0xbe8] sm:$0xf0]  ;;  %6898 = vmatmul.bf16.vlgmr.msra.gmra.mxu2 %v13337_v4 }
 0x2ee   :  { %v12461_v52 = vld [vmem:[%s19558_s1 + $0xdcc] sm:$0xf]  ;;  %v9443_v0 = vor.u32 %v12397_v50, %v9440_v62  ;;  %6916 = vmatpush.bf16.msrb.mxu0 %v9187_v60 }
 0x2ef   :  { %v9696_v53 = vld [vmem:[%s19558_s1 + $0xde8] sm:$0xf0]  ;;  %6911 = vmatmul.bf16.vlgmr.msra.gmra.mxu3 %v13342_v6 }
 0x2f0   :  { %v12525_v58 = vld [vmem:[%s19558_s1 + $0xfcc] sm:$0xf]  ;;  %v9699_v1 = vor.u32 %v12461_v52, %v9696_v53  ;;  %6929 = vmatpush.bf16.msrb.mxu1 %v9443_v0 }
 0x2f1   :  { %v9952_v61 = vld [vmem:[%s19558_s1 + $0xfe8] sm:$0xf0] }
 0x2f2   :  { %v12325_v2 = vld [vmem:[%s19558_s1 + $0x98c] sm:$0xf]  ;;  %v9955_v7 = vor.u32 %v12525_v58, %v9952_v61  ;;  %6942 = vmatpush.bf16.msrb.mxu2 %v9699_v1  ;;  %v6666_v58 = vadd.f32 %v6665_v46, %v1050_v45  ;;  %v6678_v61 = vpop.f32.mrf.mxu1 }
 0x2f3   :  { %v9152_v3 = vld [vmem:[%s19558_s1 + $0x9a8] sm:$0xf0] }
 0x2f4   :  { %v12389_v5 = vld [vmem:[%s19558_s1 + $0xb8c] sm:$0xf]  ;;  %v9155_v12 = vor.u32 %v12325_v2, %v9152_v3  ;;  %6955 = vmatpush.bf16.msrb.mxu3 %v9955_v7 }
 0x2f5   :  { %v9408_v59 = vld [vmem:[%s19558_s1 + $0xba8] sm:$0xf0] }
 0x2f6   :  { %v12453_v8 = vld [vmem:[%s19558_s1 + $0xd8c] sm:$0xf]  ;;  %v9411_v13 = vor.u32 %v12389_v5, %v9408_v59  ;;  %6917 = vmatpush.bf16.msrb.mxu0 %v9155_v12  ;;  %v6679_v5 = vadd.f32 %v6678_v61, %v6666_v58  ;;  %v6691_v12 = vpop.f32.mrf.mxu2 }
 0x2f7   :  { %v9664_v24 = vld [vmem:[%s19558_s1 + $0xda8] sm:$0xf0] }
 0x2f8   :  { %v12517_v9 = vld [vmem:[%s19558_s1 + $0xf8c] sm:$0xf]  ;;  %v9667_v14 = vor.u32 %v12453_v8, %v9664_v24  ;;  %6930 = vmatpush.bf16.msrb.mxu1 %v9411_v13 }
 0x2f9   :  { %v9920_v10 = vld [vmem:[%s19558_s1 + $0xfa8] sm:$0xf0] }
 0x2fa   :  { %v12317_v15 = vld [vmem:[%s19558_s1 + $0x94c] sm:$0xf]  ;;  %v9923_v19 = vor.u32 %v12517_v9, %v9920_v10  ;;  %6943 = vmatpush.bf16.msrb.mxu2 %v9667_v14 }
 0x2fb   :  { %v9120_v17 = vld [vmem:[%s19558_s1 + $0x968] sm:$0xf0] }
 0x2fc   :  { %v12381_v18 = vld [vmem:[%s19558_s1 + $0xb4c] sm:$0xf]  ;;  %v9123_v40 = vor.u32 %v12317_v15, %v9120_v17  ;;  %6956 = vmatpush.bf16.msrb.mxu3 %v9923_v19  ;;  %v6704_v19 = vpop.f32.mrf.mxu3 }
 0x2fd   :  { %v9376_v22 = vld [vmem:[%s19558_s1 + $0xb68] sm:$0xf0] }
 0x2fe   :  { %v12445_v55 = vld [vmem:[%s19558_s1 + $0xd4c] sm:$0xf]  ;;  %v9379_v37 = vor.u32 %v12381_v18, %v9376_v22  ;;  %6918 = vmatpush.bf16.msrb.mxu0 %v9123_v40  ;;  %v6692_v18 = vadd.f32 %v6691_v12, %v6679_v5 }
 0x2ff   :  { %v9632_v36 = vld [vmem:[%s19558_s1 + $0xd68] sm:$0xf0] }
 0x300   :  { %v12509_v26 = vld [vmem:[%s19558_s1 + $0xf4c] sm:$0xf]  ;;  %v9635_v27 = vor.u32 %v12445_v55, %v9632_v36  ;;  %6931 = vmatpush.bf16.msrb.mxu1 %v9379_v37 }
 0x301   :  { %v9888_v32 = vld [vmem:[%s19558_s1 + $0xf68] sm:$0xf0] }
 0x302   :  { %v12309_v34 = vld [vmem:[%s19558_s1 + $0x90c] sm:$0xf]  ;;  %v9891_v16 = vor.u32 %v12509_v26, %v9888_v32  ;;  %6944 = vmatpush.bf16.msrb.mxu2 %v9635_v27  ;;  %v15869_v26 = vadd.f32 %v6704_v19, %v6692_v18  ;;  %v6667_v32 = vpop.f32.mrf.mxu0 }
 0x303   :  { %v9088_v39 = vld [vmem:[%s19558_s1 + $0x928] sm:$0xf0] }
 0x304   :  { %v12373_v43 = vld [vmem:[%s19558_s1 + $0xb0c] sm:$0xf]  ;;  %v9091_v51 = vor.u32 %v12309_v34, %v9088_v39  ;;  %6957 = vmatpush.bf16.msrb.mxu3 %v9891_v16 }
 0x305   :  { %v9344_v47 = vld [vmem:[%s19558_s1 + $0xb28] sm:$0xf0] }
 0x306   :  { %v12437_v48 = vld [vmem:[%s19558_s1 + $0xd0c] sm:$0xf]  ;;  %v9347_v62 = vor.u32 %v12373_v43, %v9344_v47  ;;  %6919 = vmatpush.bf16.msrb.mxu0 %v9091_v51  ;;  %v6680_v43 = vpop.f32.mrf.mxu1 }
 0x307   :  { %v9600_v49 = vld [vmem:[%s19558_s1 + $0xd28] sm:$0xf0] }
 0x308   :  { %v12501_v54 = vld [vmem:[%s19558_s1 + $0xf0c] sm:$0xf]  ;;  %v9603_v52 = vor.u32 %v12437_v48, %v9600_v49  ;;  %6932 = vmatpush.bf16.msrb.mxu1 %v9347_v62 }
 0x309   :  { %v9856_v50 = vld [vmem:[%s19558_s1 + $0xf28] sm:$0xf0] }
 0x30a   :  { %v12301_v53 = vld [vmem:[%s19558_s1 + $0x8cc] sm:$0xf]  ;;  %v9859_v63 = vor.u32 %v12501_v54, %v9856_v50  ;;  %6945 = vmatpush.bf16.msrb.mxu2 %v9603_v52 }
 0x30b   :  { %v9056_v56 = vld [vmem:[%s19558_s1 + $0x8e8] sm:$0xf0] }
 0x30c   :  { %v12365_v57 = vld [vmem:[%s19558_s1 + $0xacc] sm:$0xf]  ;;  %v9059_v7 = vor.u32 %v12301_v53, %v9056_v56  ;;  %6958 = vmatpush.bf16.msrb.mxu3 %v9859_v63 }
 0x30d   :  { %v9312_v60 = vld [vmem:[%s19558_s1 + $0xae8] sm:$0xf0] }
 0x30e   :  { %v12429_v0 = vld [vmem:[%s19558_s1 + $0xccc] sm:$0xf]  ;;  %v9315_v59 = vor.u32 %v12365_v57, %v9312_v60  ;;  %6920 = vmatpush.bf16.msrb.mxu0 %v9059_v7  ;;  %v6693_v57 = vpop.f32.mrf.mxu2 }
 0x30f   :  { %v9568_v1 = vld [vmem:[%s19558_s1 + $0xce8] sm:$0xf0] }
 0x310   :  { %v12493_v2 = vld [vmem:[%s19558_s1 + $0xecc] sm:$0xf]  ;;  %v9571_v8 = vor.u32 %v12429_v0, %v9568_v1  ;;  %6933 = vmatpush.bf16.msrb.mxu1 %v9315_v59  ;;  %v6706_v0 = vpop.f32.mrf.mxu3 }
 0x311   :  { %v9824_v3 = vld [vmem:[%s19558_s1 + $0xee8] sm:$0xf0] }
 0x312   :  { %v12293_v24 = vld [vmem:[%s19558_s1 + $0x88c] sm:$0xf]  ;;  %v9827_v13 = vor.u32 %v12493_v2, %v9824_v3  ;;  %6946 = vmatpush.bf16.msrb.mxu2 %v9571_v8 }
 0x313   :  { %v9024_v9 = vld [vmem:[%s19558_s1 + $0x8a8] sm:$0xf0] }
 0x314   :  { %v12357_v10 = vld [vmem:[%s19558_s1 + $0xa8c] sm:$0xf]  ;;  %v9027_v36 = vor.u32 %v12293_v24, %v9024_v9  ;;  %6959 = vmatpush.bf16.msrb.mxu3 %v9827_v13 }
 0x315   :  { %v9280_v14 = vld [vmem:[%s19558_s1 + $0xaa8] sm:$0xf0] }
 0x316   :  { %v12421_v15 = vld [vmem:[%s19558_s1 + $0xc8c] sm:$0xf]  ;;  %v9283_v40 = vor.u32 %v12357_v10, %v9280_v14  ;;  %6921 = vmatpush.bf16.msrb.mxu0 %v9027_v36 }
 0x317   :  { %v9536_v17 = vld [vmem:[%s19558_s1 + $0xca8] sm:$0xf0] }
 0x318   :  { %v12485_v22 = vld [vmem:[%s19558_s1 + $0xe8c] sm:$0xf]  ;;  %v9539_v34 = vor.u32 %v12421_v15, %v9536_v17  ;;  %6934 = vmatpush.bf16.msrb.mxu1 %v9283_v40 }
 0x319   :  { %v9792_v55 = vld [vmem:[%s19558_s1 + $0xea8] sm:$0xf0] }
 0x31a   :  { %v12285_v37 = vld [vmem:[%s19558_s1 + $0x84c] sm:$0xf]  ;;  %v9795_v11 = vor.u32 %v12485_v22, %v9792_v55  ;;  %6947 = vmatpush.bf16.msrb.mxu2 %v9539_v34 }
 0x31b   :  { %v8992_v27 = vld [vmem:[%s19558_s1 + $0x868] sm:$0xf0] }
 0x31c   :  { %v12349_v39 = vld [vmem:[%s19558_s1 + $0xa4c] sm:$0xf]  ;;  %v8995_v54 = vor.u32 %v12285_v37, %v8992_v27  ;;  %6960 = vmatpush.bf16.msrb.mxu3 %v9795_v11 }
 0x31d   :  { %v9248_v45 = vld [vmem:[%s19558_s1 + $0xa68] sm:$0xf0] }
 0x31e   :  { %v12413_v16 = vld [vmem:[%s19558_s1 + $0xc4c] sm:$0xf]  ;;  %v9251_v46 = vor.u32 %v12349_v39, %v9248_v45  ;;  %6922 = vmatpush.bf16.msrb.mxu0 %v8995_v54 }
 0x31f   :  { %v9504_v47 = vld [vmem:[%s19558_s1 + $0xc68] sm:$0xf0] }
 0x320   :  { %v12477_v48 = vld [vmem:[%s19558_s1 + $0xe4c] sm:$0xf]  ;;  %v9507_v62 = vor.u32 %v12413_v16, %v9504_v47  ;;  %6935 = vmatpush.bf16.msrb.mxu1 %v9251_v46 }
 0x321   :  { %v9760_v49 = vld [vmem:[%s19558_s1 + $0xe68] sm:$0xf0] }
 0x322   :  { %v12277_v50 = vld [vmem:[%s19558_s1 + $0x80c] sm:$0xf]  ;;  %v9763_v58 = vor.u32 %v12477_v48, %v9760_v49  ;;  %6948 = vmatpush.bf16.msrb.mxu2 %v9507_v62 }
 0x323   :  { %v8960_v51 = vld [vmem:[%s19558_s1 + $0x828] sm:$0xf0] }
 0x324   :  { %v12341_v52 = vld [vmem:[%s19558_s1 + $0xa0c] sm:$0xf]  ;;  %v8963_v5 = vor.u32 %v12277_v50, %v8960_v51  ;;  %6961 = vmatpush.bf16.msrb.mxu3 %v9763_v58 }
 0x325   :  { %v9216_v53 = vld [vmem:[%s19558_s1 + $0xa28] sm:$0xf0] }
 0x326   :  { %v12405_v56 = vld [vmem:[%s19558_s1 + $0xc0c] sm:$0xf]  ;;  %v9219_v24 = vor.u32 %v12341_v52, %v9216_v53  ;;  %6923 = vmatpush.bf16.msrb.mxu0 %v8963_v5 }
 0x327   :  { %v9472_v61 = vld [vmem:[%s19558_s1 + $0xc28] sm:$0xf0] }
 0x328   :  { %v12469_v63 = vld [vmem:[%s19558_s1 + $0xe0c] sm:$0xf]  ;;  %v9475_v9 = vor.u32 %v12405_v56, %v9472_v61  ;;  %6936 = vmatpush.bf16.msrb.mxu1 %v9219_v24 }
 0x329   :  { %v9728_v60 = vld [vmem:[%s19558_s1 + $0xe28] sm:$0xf0]  ;;  %6924 = vmatmul.bf16.vlgmr.msrb.gmra.mxu0 %v13528_v41 }
 0x32a   :  { %v12589_v1 = vld [vmem:[%s19558_s1 + $0x11cc] sm:$0xf]  ;;  %v9731_v13 = vor.u32 %v12469_v63, %v9728_v60  ;;  %6949 = vmatpush.bf16.msrb.mxu2 %v9475_v9 }
 0x32b   :  { %v10208_v2 = vld [vmem:[%s19558_s1 + $0x11e8] sm:$0xf0]  ;;  %6937 = vmatmul.bf16.vlgmr.msrb.gmra.mxu1 %v13532_v44 }
 0x32c   :  { %v12653_v3 = vld [vmem:[%s19558_s1 + $0x13cc] sm:$0xf]  ;;  %v10211_v14 = vor.u32 %v12589_v1, %v10208_v2  ;;  %6962 = vmatpush.bf16.msrb.mxu3 %v9731_v13 }
 0x32d   :  { %v10464_v7 = vld [vmem:[%s19558_s1 + $0x13e8] sm:$0xf0]  ;;  %6950 = vmatmul.bf16.vlgmr.msrb.gmra.mxu2 %v13520_v38 }
 0x32e   :  { %v12717_v59 = vld [vmem:[%s19558_s1 + $0x15cc] sm:$0xf]  ;;  %v10467_v15 = vor.u32 %v12653_v3, %v10464_v7  ;;  %6968 = vmatpush.bf16.msra.mxu0 %v10211_v14  ;;  %v6717_v3 = vpop.f32.mrf.mxu0 }
 0x32f   :  { %v10720_v8 = vld [vmem:[%s19558_s1 + $0x15e8] sm:$0xf0]  ;;  %6963 = vmatmul.bf16.vlgmr.msrb.gmra.mxu3 %v13530_v42  ;;  %v6718_v9 = vadd.f32 %v6717_v3, %v15869_v26 }
 0x330   :  { %v12781_v10 = vld [vmem:[%s19558_s1 + $0x17cc] sm:$0xf]  ;;  %v10723_v17 = vor.u32 %v12717_v59, %v10720_v8  ;;  %6981 = vmatpush.bf16.msra.mxu1 %v10467_v15 }
 0x331   :  { %v10976_v12 = vld [vmem:[%s19558_s1 + $0x17e8] sm:$0xf0] }
 0x332   :  { %v12581_v18 = vld [vmem:[%s19558_s1 + $0x118c] sm:$0xf]  ;;  %v10979_v55 = vor.u32 %v12781_v10, %v10976_v12  ;;  %6994 = vmatpush.bf16.msra.mxu2 %v10723_v17  ;;  %v6730_v10 = vpop.f32.mrf.mxu1 }
 0x333   :  { %v10176_v19 = vld [vmem:[%s19558_s1 + $0x11a8] sm:$0xf0] }
 0x334   :  { %v12645_v22 = vld [vmem:[%s19558_s1 + $0x138c] sm:$0xf]  ;;  %v10179_v27 = vor.u32 %v12581_v18, %v10176_v19  ;;  %7007 = vmatpush.bf16.msra.mxu3 %v10979_v55  ;;  %v6731_v18 = vadd.f32 %v6730_v10, %v6718_v9 }
 0x335   :  { %v10432_v36 = vld [vmem:[%s19558_s1 + $0x13a8] sm:$0xf0] }
 0x336   :  { %v12709_v32 = vld [vmem:[%s19558_s1 + $0x158c] sm:$0xf]  ;;  %v10435_v39 = vor.u32 %v12645_v22, %v10432_v36  ;;  %6969 = vmatpush.bf16.msra.mxu0 %v10179_v27 }
 0x337   :  { %v10688_v40 = vld [vmem:[%s19558_s1 + $0x15a8] sm:$0xf0] }
 0x338   :  { %v12773_v34 = vld [vmem:[%s19558_s1 + $0x178c] sm:$0xf]  ;;  %v10691_v43 = vor.u32 %v12709_v32, %v10688_v40  ;;  %6982 = vmatpush.bf16.msra.mxu1 %v10435_v39 }
 0x339   :  { %v10944_v37 = vld [vmem:[%s19558_s1 + $0x17a8] sm:$0xf0] }
 0x33a   :  { %v12573_v11 = vld [vmem:[%s19558_s1 + $0x114c] sm:$0xf]  ;;  %v10947_v47 = vor.u32 %v12773_v34, %v10944_v37  ;;  %6995 = vmatpush.bf16.msra.mxu2 %v10691_v43  ;;  %v6743_v34 = vpop.f32.mrf.mxu2 }
 0x33b   :  { %v10144_v45 = vld [vmem:[%s19558_s1 + $0x1168] sm:$0xf0] }
 0x33c   :  { %v12637_v16 = vld [vmem:[%s19558_s1 + $0x134c] sm:$0xf]  ;;  %v10147_v46 = vor.u32 %v12573_v11, %v10144_v45  ;;  %7008 = vmatpush.bf16.msra.mxu3 %v10947_v47  ;;  %v6744_v11 = vadd.f32 %v6743_v34, %v6731_v18  ;;  %v6756_v45 = vpop.f32.mrf.mxu3 }
 0x33d   :  { %v10400_v48 = vld [vmem:[%s19558_s1 + $0x1368] sm:$0xf0] }
 0x33e   :  { %v12701_v49 = vld [vmem:[%s19558_s1 + $0x154c] sm:$0xf]  ;;  %v10403_v62 = vor.u32 %v12637_v16, %v10400_v48  ;;  %6970 = vmatpush.bf16.msra.mxu0 %v10147_v46 }
 0x33f   :  { %v10656_v54 = vld [vmem:[%s19558_s1 + $0x1568] sm:$0xf0] }
 0x340   :  { %v12765_v50 = vld [vmem:[%s19558_s1 + $0x174c] sm:$0xf]  ;;  %v10659_v52 = vor.u32 %v12701_v49, %v10656_v54  ;;  %6983 = vmatpush.bf16.msra.mxu1 %v10403_v62  ;;  %v16068_v49 = vadd.f32 %v6756_v45, %v6744_v11  ;;  %v6719_v54 = vpop.f32.mrf.mxu0 }
 0x341   :  { %v10912_v51 = vld [vmem:[%s19558_s1 + $0x1768] sm:$0xf0] }
 0x342   :  { %v12565_v53 = vld [vmem:[%s19558_s1 + $0x110c] sm:$0xf]  ;;  %v10915_v58 = vor.u32 %v12765_v50, %v10912_v51  ;;  %6996 = vmatpush.bf16.msra.mxu2 %v10659_v52 }
 0x343   :  { %v10112_v56 = vld [vmem:[%s19558_s1 + $0x1128] sm:$0xf0] }
 0x344   :  { %v12629_v57 = vld [vmem:[%s19558_s1 + $0x130c] sm:$0xf]  ;;  %v10115_v2 = vor.u32 %v12565_v53, %v10112_v56  ;;  %7009 = vmatpush.bf16.msra.mxu3 %v10915_v58  ;;  %v6732_v53 = vpop.f32.mrf.mxu1 }
 0x345   :  { %v10368_v61 = vld [vmem:[%s19558_s1 + $0x1328] sm:$0xf0] }
 0x346   :  { %v12693_v63 = vld [vmem:[%s19558_s1 + $0x150c] sm:$0xf]  ;;  %v10371_v5 = vor.u32 %v12629_v57, %v10368_v61  ;;  %6971 = vmatpush.bf16.msra.mxu0 %v10115_v2 }
 0x347   :  { %v10624_v60 = vld [vmem:[%s19558_s1 + $0x1528] sm:$0xf0] }
 0x348   :  { %v12757_v0 = vld [vmem:[%s19558_s1 + $0x170c] sm:$0xf]  ;;  %v10627_v7 = vor.u32 %v12693_v63, %v10624_v60  ;;  %6984 = vmatpush.bf16.msra.mxu1 %v10371_v5 }
 0x349   :  { %v10880_v1 = vld [vmem:[%s19558_s1 + $0x1728] sm:$0xf0] }
 0x34a   :  { %v12557_v59 = vld [vmem:[%s19558_s1 + $0x10cc] sm:$0xf]  ;;  %v10883_v12 = vor.u32 %v12757_v0, %v10880_v1  ;;  %6997 = vmatpush.bf16.msra.mxu2 %v10627_v7 }
 0x34b   :  { %v10080_v8 = vld [vmem:[%s19558_s1 + $0x10e8] sm:$0xf0] }
 0x34c   :  { %v12621_v24 = vld [vmem:[%s19558_s1 + $0x12cc] sm:$0xf]  ;;  %v10083_v19 = vor.u32 %v12557_v59, %v10080_v8  ;;  %7010 = vmatpush.bf16.msra.mxu3 %v10883_v12 }
 0x34d   :  { %v10336_v13 = vld [vmem:[%s19558_s1 + $0x12e8] sm:$0xf0] }
 0x34e   :  { %v12685_v14 = vld [vmem:[%s19558_s1 + $0x14cc] sm:$0xf]  ;;  %v10339_v22 = vor.u32 %v12621_v24, %v10336_v13  ;;  %6972 = vmatpush.bf16.msra.mxu0 %v10083_v19  ;;  %v6745_v24 = vpop.f32.mrf.mxu2 }
 0x34f   :  { %v10592_v15 = vld [vmem:[%s19558_s1 + $0x14e8] sm:$0xf0] }
 0x350   :  { %v12749_v17 = vld [vmem:[%s19558_s1 + $0x16cc] sm:$0xf]  ;;  %v10595_v55 = vor.u32 %v12685_v14, %v10592_v15  ;;  %6985 = vmatpush.bf16.msra.mxu1 %v10339_v22  ;;  %v6758_v14 = vpop.f32.mrf.mxu3 }
 0x351   :  { %v10848_v26 = vld [vmem:[%s19558_s1 + $0x16e8] sm:$0xf0]  ;;  %v6769_v14 = vpop.f32.mrf.mxu0 }
 0x352   :  { %v12549_v36 = vld [vmem:[%s19558_s1 + $0x108c] sm:$0xf]  ;;  %v10851_v37 = vor.u32 %v12749_v17, %v10848_v26  ;;  %6998 = vmatpush.bf16.msra.mxu2 %v10595_v55 }
 0x353   :  { %v10048_v32 = vld [vmem:[%s19558_s1 + $0x10a8] sm:$0xf0] }
 0x354   :  { %v12613_v40 = vld [vmem:[%s19558_s1 + $0x128c] sm:$0xf]  ;;  %v10051_v48 = vor.u32 %v12549_v36, %v10048_v32  ;;  %7011 = vmatpush.bf16.msra.mxu3 %v10851_v37 }
 0x355   :  { %v10304_v27 = vld [vmem:[%s19558_s1 + $0x12a8] sm:$0xf0] }
 0x356   :  { %v12677_v39 = vld [vmem:[%s19558_s1 + $0x148c] sm:$0xf]  ;;  %v10307_v50 = vor.u32 %v12613_v40, %v10304_v27  ;;  %6973 = vmatpush.bf16.msra.mxu0 %v10051_v48 }
 0x357   :  { %v10560_v43 = vld [vmem:[%s19558_s1 + $0x14a8] sm:$0xf0] }
 0x358   :  { %v12741_v16 = vld [vmem:[%s19558_s1 + $0x168c] sm:$0xf]  ;;  %v10563_v51 = vor.u32 %v12677_v39, %v10560_v43  ;;  %6986 = vmatpush.bf16.msra.mxu1 %v10307_v50 }
 0x359   :  { %v10816_v47 = vld [vmem:[%s19558_s1 + $0x16a8] sm:$0xf0] }
 0x35a   :  { %v12541_v46 = vld [vmem:[%s19558_s1 + $0x104c] sm:$0xf]  ;;  %v10819_v56 = vor.u32 %v12741_v16, %v10816_v47  ;;  %6999 = vmatpush.bf16.msra.mxu2 %v10563_v51 }
 0x35b   :  { %v10016_v62 = vld [vmem:[%s19558_s1 + $0x1068] sm:$0xf0] }
 0x35c   :  { %v12605_v52 = vld [vmem:[%s19558_s1 + $0x124c] sm:$0xf]  ;;  %v10019_v0 = vor.u32 %v12541_v46, %v10016_v62  ;;  %7012 = vmatpush.bf16.msra.mxu3 %v10819_v56 }
 0x35d   :  { %v10272_v57 = vld [vmem:[%s19558_s1 + $0x1268] sm:$0xf0] }
 0x35e   :  { %v12669_v58 = vld [vmem:[%s19558_s1 + $0x144c] sm:$0xf]  ;;  %v10275_v3 = vor.u32 %v12605_v52, %v10272_v57  ;;  %6974 = vmatpush.bf16.msra.mxu0 %v10019_v0 }
 0x35f   :  { %v10528_v61 = vld [vmem:[%s19558_s1 + $0x1468] sm:$0xf0] }
 0x360   :  { %v12733_v63 = vld [vmem:[%s19558_s1 + $0x164c] sm:$0xf]  ;;  %v10531_v5 = vor.u32 %v12669_v58, %v10528_v61  ;;  %6987 = vmatpush.bf16.msra.mxu1 %v10275_v3 }
 0x361   :  { %v10784_v60 = vld [vmem:[%s19558_s1 + $0x1668] sm:$0xf0] }
 0x362   :  { %v12533_v1 = vld [vmem:[%s19558_s1 + $0x100c] sm:$0xf]  ;;  %v10787_v9 = vor.u32 %v12733_v63, %v10784_v60  ;;  %7000 = vmatpush.bf16.msra.mxu2 %v10531_v5 }
 0x363   :  { %v9984_v2 = vld [vmem:[%s19558_s1 + $0x1028] sm:$0xf0] }
 0x364   :  { %v12597_v7 = vld [vmem:[%s19558_s1 + $0x120c] sm:$0xf]  ;;  %v9987_v18 = vor.u32 %v12533_v1, %v9984_v2  ;;  %7013 = vmatpush.bf16.msra.mxu3 %v10787_v9 }
 0x365   :  { %v10240_v59 = vld [vmem:[%s19558_s1 + $0x1228] sm:$0xf0] }
 0x366   :  { %v12661_v8 = vld [vmem:[%s19558_s1 + $0x140c] sm:$0xf]  ;;  %v10243_v36 = vor.u32 %v12597_v7, %v10240_v59  ;;  %6975 = vmatpush.bf16.msra.mxu0 %v9987_v18 }
 0x367   :  { %v10496_v10 = vld [vmem:[%s19558_s1 + $0x1428] sm:$0xf0] }
 0x368   :  { %v12725_v12 = vld [vmem:[%s19558_s1 + $0x160c] sm:$0xf]  ;;  %v10499_v32 = vor.u32 %v12661_v8, %v10496_v10  ;;  %6988 = vmatpush.bf16.msra.mxu1 %v10243_v36 }
 0x369   :  { %v10752_v13 = vld [vmem:[%s19558_s1 + $0x1628] sm:$0xf0]  ;;  %6976 = vmatmul.bf16.vlgmr.msra.gmra.mxu0 %v13721_v25 }
 0x36a   :  { %v12845_v15 = vld [vmem:[%s19558_s1 + $0x19cc] sm:$0xf]  ;;  %v10755_v37 = vor.u32 %v12725_v12, %v10752_v13  ;;  %7001 = vmatpush.bf16.msra.mxu2 %v10499_v32 }
 0x36b   :  { %v11232_v17 = vld [vmem:[%s19558_s1 + $0x19e8] sm:$0xf0]  ;;  %6989 = vmatmul.bf16.vlgmr.msra.gmra.mxu1 %v13734_v30 }
 0x36c   :  { %v12909_v26 = vld [vmem:[%s19558_s1 + $0x1bcc] sm:$0xf]  ;;  %v11235_v27 = vor.u32 %v12845_v15, %v11232_v17  ;;  %7014 = vmatpush.bf16.msra.mxu3 %v10755_v37 }
 0x36d   :  { %v11488_v19 = vld [vmem:[%s19558_s1 + $0x1be8] sm:$0xf0]  ;;  %7002 = vmatmul.bf16.vlgmr.msra.gmra.mxu2 %v13732_v29 }
 0x36e   :  { %v12973_v22 = vld [vmem:[%s19558_s1 + $0x1dcc] sm:$0xf]  ;;  %v11491_v39 = vor.u32 %v12909_v26, %v11488_v19  ;;  %7020 = vmatpush.bf16.msrb.mxu0 %v11235_v27  ;;  %v6770_v26 = vadd.f32 %v6769_v14, %v16068_v49  ;;  %v6782_v19 = vpop.f32.mrf.mxu1 }
 0x36f   :  { %v11744_v55 = vld [vmem:[%s19558_s1 + $0x1de8] sm:$0xf0]  ;;  %7015 = vmatmul.bf16.vlgmr.msra.gmra.mxu3 %v13742_v33 }
 0x370   :  { %v13037_v40 = vld [vmem:[%s19558_s1 + $0x1fcc] sm:$0xf]  ;;  %v11747_v43 = vor.u32 %v12973_v22, %v11744_v55  ;;  %7033 = vmatpush.bf16.msrb.mxu1 %v11491_v39 }
 0x371   :  { %v12000_v34 = vld [vmem:[%s19558_s1 + $0x1fe8] sm:$0xf0] }
 0x372   :  { %v12837_v11 = vld [vmem:[%s19558_s1 + $0x198c] sm:$0xf]  ;;  %v12003_v47 = vor.u32 %v13037_v40, %v12000_v34  ;;  %7046 = vmatpush.bf16.msrb.mxu2 %v11747_v43  ;;  %v6783_v34 = vadd.f32 %v6782_v19, %v6770_v26 }
 0x373   :  { %v11200_v45 = vld [vmem:[%s19558_s1 + $0x19a8] sm:$0xf0] }
 0x374   :  { %v12901_v16 = vld [vmem:[%s19558_s1 + $0x1b8c] sm:$0xf]  ;;  %v11203_v62 = vor.u32 %v12837_v11, %v11200_v45  ;;  %7059 = vmatpush.bf16.msrb.mxu3 %v12003_v47 }
 0x375   :  { %v11456_v48 = vld [vmem:[%s19558_s1 + $0x1ba8] sm:$0xf0] }
 0x376   :  { %v12965_v54 = vld [vmem:[%s19558_s1 + $0x1d8c] sm:$0xf]  ;;  %v11459_v52 = vor.u32 %v12901_v16, %v11456_v48  ;;  %7021 = vmatpush.bf16.msrb.mxu0 %v11203_v62 }
 0x377   :  { %v11712_v50 = vld [vmem:[%s19558_s1 + $0x1da8] sm:$0xf0] }
 0x378   :  { %v13029_v51 = vld [vmem:[%s19558_s1 + $0x1f8c] sm:$0xf]  ;;  %v11715_v53 = vor.u32 %v12965_v54, %v11712_v50  ;;  %7034 = vmatpush.bf16.msrb.mxu1 %v11459_v52 }
 0x379   :  { %v11968_v46 = vld [vmem:[%s19558_s1 + $0x1fa8] sm:$0xf0] }
 0x37a   :  { %v12829_v56 = vld [vmem:[%s19558_s1 + $0x194c] sm:$0xf]  ;;  %v11971_v61 = vor.u32 %v13029_v51, %v11968_v46  ;;  %7047 = vmatpush.bf16.msrb.mxu2 %v11715_v53  ;;  %v6795_v46 = vpop.f32.mrf.mxu2 }
 0x37b   :  { %v11168_v57 = vld [vmem:[%s19558_s1 + $0x1968] sm:$0xf0] }
 0x37c   :  { %v12893_v58 = vld [vmem:[%s19558_s1 + $0x1b4c] sm:$0xf]  ;;  %v11171_v3 = vor.u32 %v12829_v56, %v11168_v57  ;;  %7060 = vmatpush.bf16.msrb.mxu3 %v11971_v61  ;;  %v6796_v56 = vadd.f32 %v6795_v46, %v6783_v34  ;;  %v6808_v57 = vpop.f32.mrf.mxu3 }
 0x37d   :  { %v11424_v63 = vld [vmem:[%s19558_s1 + $0x1b68] sm:$0xf0] }
 0x37e   :  { %v12957_v60 = vld [vmem:[%s19558_s1 + $0x1d4c] sm:$0xf]  ;;  %v11427_v5 = vor.u32 %v12893_v58, %v11424_v63  ;;  %7022 = vmatpush.bf16.msrb.mxu0 %v11171_v3  ;;  %v6771_v63 = vpop.f32.mrf.mxu0 }
 0x37f   :  { %v11680_v0 = vld [vmem:[%s19558_s1 + $0x1d68] sm:$0xf0]  ;;  %v12138_v63 = vld [vmem:[%s19558_s1 + $0x3ac] sm:$0xf0] }
 0x380   :  { %v13021_v1 = vld [vmem:[%s19558_s1 + $0x1f4c] sm:$0xf]  ;;  %v11683_v7 = vor.u32 %v12957_v60, %v11680_v0  ;;  %7035 = vmatpush.bf16.msrb.mxu1 %v11427_v5  ;;  %v6784_v0 = vpop.f32.mrf.mxu1 }
 0x381   :  { %v11936_v2 = vld [vmem:[%s19558_s1 + $0x1f68] sm:$0xf0]  ;;  %v12202_v0 = vld [vmem:[%s19558_s1 + $0x5ac] sm:$0xf0] }
 0x382   :  { %v12821_v59 = vld [vmem:[%s19558_s1 + $0x190c] sm:$0xf]  ;;  %v11939_v9 = vor.u32 %v13021_v1, %v11936_v2  ;;  %7048 = vmatpush.bf16.msrb.mxu2 %v11683_v7  ;;  %v16267_v1 = vadd.f32 %v6808_v57, %v6796_v56  ;;  %v6797_v34 = vpop.f32.mrf.mxu2  ;;  %v8134_v56 = vld [vmem:[%s19558_s1 + $0x190] sm:$0xf] }
 0x383   :  { %v11136_v8 = vld [vmem:[%s19558_s1 + $0x1928] sm:$0xf0]  ;;  %v12074_v57 = vld [vmem:[%s19558_s1 + $0x1ac] sm:$0xf0] }
 0x384   :  { %v12885_v24 = vld [vmem:[%s19558_s1 + $0x1b0c] sm:$0xf]  ;;  %v11139_v18 = vor.u32 %v12821_v59, %v11136_v8  ;;  %7061 = vmatpush.bf16.msrb.mxu3 %v11939_v9  ;;  %v12186_v34 = vld [vmem:[%s19558_s1 + $0x52c] sm:$0xf0] }
 0x385   :  { %v11392_v10 = vld [vmem:[%s19558_s1 + $0x1b28] sm:$0xf0] }
 0x386   :  { %v12949_v12 = vld [vmem:[%s19558_s1 + $0x1d0c] sm:$0xf]  ;;  %v11395_v22 = vor.u32 %v12885_v24, %v11392_v10  ;;  %7023 = vmatpush.bf16.msrb.mxu0 %v11139_v18 }
 0x387   :  { %v11648_v13 = vld [vmem:[%s19558_s1 + $0x1d28] sm:$0xf0] }
 0x388   :  { %v13013_v15 = vld [vmem:[%s19558_s1 + $0x1f0c] sm:$0xf]  ;;  %v11651_v55 = vor.u32 %v12949_v12, %v11648_v13  ;;  %7036 = vmatpush.bf16.msrb.mxu1 %v11395_v22 }
 0x389   :  { %v11904_v17 = vld [vmem:[%s19558_s1 + $0x1f28] sm:$0xf0] }
 0x38a   :  { %v12813_v36 = vld [vmem:[%s19558_s1 + $0x18cc] sm:$0xf]  ;;  %v11907_v49 = vor.u32 %v13013_v15, %v11904_v17  ;;  %7049 = vmatpush.bf16.msrb.mxu2 %v11651_v55 }
 0x38b   :  { %v11104_v32 = vld [vmem:[%s19558_s1 + $0x18e8] sm:$0xf0] }
 0x38c   :  { %v12877_v40 = vld [vmem:[%s19558_s1 + $0x1acc] sm:$0xf]  ;;  %v11107_v45 = vor.u32 %v12813_v36, %v11104_v32  ;;  %7062 = vmatpush.bf16.msrb.mxu3 %v11907_v49 }
 0x38d   :  { %v11360_v37 = vld [vmem:[%s19558_s1 + $0x1ae8] sm:$0xf0] }
 0x38e   :  { %v12941_v27 = vld [vmem:[%s19558_s1 + $0x1ccc] sm:$0xf]  ;;  %v11363_v16 = vor.u32 %v12877_v40, %v11360_v37  ;;  %7024 = vmatpush.bf16.msrb.mxu0 %v11107_v45  ;;  %v8166_v37 = vld [vmem:[%s19558_s1 + $0x1d0] sm:$0xf] }
 0x38f   :  { %v11616_v39 = vld [vmem:[%s19558_s1 + $0x1ce8] sm:$0xf0]  ;;  %v12146_v45 = vld [vmem:[%s19558_s1 + $0x3ec] sm:$0xf0] }
 0x390   :  { %v13005_v43 = vld [vmem:[%s19558_s1 + $0x1ecc] sm:$0xf]  ;;  %v11619_v47 = vor.u32 %v12941_v27, %v11616_v39  ;;  %7037 = vmatpush.bf16.msrb.mxu1 %v11363_v16  ;;  %v12082_v27 = vld [vmem:[%s19558_s1 + $0x1ec] sm:$0xf0] }
 0x391   :  { %v11872_v11 = vld [vmem:[%s19558_s1 + $0x1ee8] sm:$0xf0]  ;;  %v8422_v39 = vld [vmem:[%s19558_s1 + $0x3d0] sm:$0xf] }
 0x392   :  { %v12805_v48 = vld [vmem:[%s19558_s1 + $0x188c] sm:$0xf]  ;;  %v11875_v51 = vor.u32 %v13005_v43, %v11872_v11  ;;  %7050 = vmatpush.bf16.msrb.mxu2 %v11619_v47  ;;  %v6810_v43 = vpop.f32.mrf.mxu3  ;;  %v8678_v16 = vld [vmem:[%s19558_s1 + $0x5d0] sm:$0xf] }
 0x393   :  { %v11072_v54 = vld [vmem:[%s19558_s1 + $0x18a8] sm:$0xf0]  ;;  %v12210_v47 = vld [vmem:[%s19558_s1 + $0x5ec] sm:$0xf0] }
 0x394   :  { %v12869_v50 = vld [vmem:[%s19558_s1 + $0x1a8c] sm:$0xf]  ;;  %v11075_v60 = vor.u32 %v12805_v48, %v11072_v54  ;;  %7063 = vmatpush.bf16.msrb.mxu3 %v11875_v51  ;;  %v12274_v51 = vld [vmem:[%s19558_s1 + $0x7ec] sm:$0xf0] }
 0x395   :  { %v11328_v62 = vld [vmem:[%s19558_s1 + $0x1aa8] sm:$0xf0] }
 0x396   :  { %v12933_v52 = vld [vmem:[%s19558_s1 + $0x1c8c] sm:$0xf]  ;;  %v11331_v2 = vor.u32 %v12869_v50, %v11328_v62  ;;  %7025 = vmatpush.bf16.msrb.mxu0 %v11075_v60  ;;  %v8934_v50 = vld [vmem:[%s19558_s1 + $0x7d0] sm:$0xf]  ;;  %v8167_v62 = vor.u32 %v12082_v27, %v8166_v37  ;;  %v6821_v37 = vpop.f32.mrf.mxu0 }
 0x397   :  { %v11584_v53 = vld [vmem:[%s19558_s1 + $0x1ca8] sm:$0xf0]  ;;  %v8646_v60 = vld [vmem:[%s19558_s1 + $0x590] sm:$0xf]  ;;  %v6822_v43 = vadd.f32 %v6821_v37, %v16267_v1 }
 0x398   :  { %v12997_v58 = vld [vmem:[%s19558_s1 + $0x1e8c] sm:$0xf]  ;;  %v11587_v3 = vor.u32 %v12933_v52, %v11584_v53  ;;  %7038 = vmatpush.bf16.msrb.mxu1 %v11331_v2  ;;  %v8423_v52 = vor.u32 %v12146_v45, %v8422_v39  ;;  %v8679_v53 = vor.u32 %v12210_v47, %v8678_v16  ;;  %v8902_v2 = vld [vmem:[%s19558_s1 + $0x790] sm:$0xf]  ;;  %v6834_v45 = vpop.f32.mrf.mxu1 }
 0x399   :  { %v11840_v61 = vld [vmem:[%s19558_s1 + $0x1ea8] sm:$0xf0]  ;;  %v8838_v27 = vld [vmem:[%s19558_s1 + $0x710] sm:$0xf] }
 0x39a   :  { %v12797_v5 = vld [vmem:[%s19558_s1 + $0x184c] sm:$0xf]  ;;  %v11843_v8 = vor.u32 %v12997_v58, %v11840_v61  ;;  %7051 = vmatpush.bf16.msrb.mxu2 %v11587_v3  ;;  %v8390_v58 = vld [vmem:[%s19558_s1 + $0x390] sm:$0xf]  ;;  %v8935_v61 = vor.u32 %v12274_v51, %v8934_v50  ;;  %v6835_v51 = vadd.f32 %v6834_v45, %v6822_v43 }
 0x39b   :  { %v11040_v7 = vld [vmem:[%s19558_s1 + $0x1868] sm:$0xf0]  ;;  %v12266_v3 = vld [vmem:[%s19558_s1 + $0x7ac] sm:$0xf0] }
 0x39c   :  { %v12861_v59 = vld [vmem:[%s19558_s1 + $0x1a4c] sm:$0xf]  ;;  %v11043_v14 = vor.u32 %v12797_v5, %v11040_v7  ;;  %7064 = vmatpush.bf16.msrb.mxu3 %v11843_v8  ;;  %v8135_v5 = vor.u32 %v12074_v57, %v8134_v56  ;;  %v8391_v7 = vor.u32 %v12138_v63, %v8390_v58  ;;  %v8102_v8 = vld [vmem:[%s19558_s1 + $0x150] sm:$0xf] }
 0x39d   :  { %v11296_v24 = vld [vmem:[%s19558_s1 + $0x1a68] sm:$0xf0]  ;;  %v12250_v39 = vld [vmem:[%s19558_s1 + $0x72c] sm:$0xf0] }
 0x39e   :  { %v12925_v9 = vld [vmem:[%s19558_s1 + $0x1c4c] sm:$0xf]  ;;  %v11299_v26 = vor.u32 %v12861_v59, %v11296_v24  ;;  %7026 = vmatpush.bf16.msrb.mxu0 %v11043_v14  ;;  %v8647_v59 = vor.u32 %v12202_v0, %v8646_v60  ;;  %v12066_v24 = vld [vmem:[%s19558_s1 + $0x16c] sm:$0xf0]  ;;  %v8839_v1 = vor.u32 %v12250_v39, %v8838_v27 }
 0x39f   :  { %v11552_v10 = vld [vmem:[%s19558_s1 + $0x1c68] sm:$0xf0]  ;;  %v12194_v14 = vld [vmem:[%s19558_s1 + $0x56c] sm:$0xf0] }
 0x3a0   :  { %v12989_v12 = vld [vmem:[%s19558_s1 + $0x1e4c] sm:$0xf]  ;;  %v11555_v18 = vor.u32 %v12925_v9, %v11552_v10  ;;  %7039 = vmatpush.bf16.msrb.mxu1 %v11299_v26  ;;  %v8358_v9 = vld [vmem:[%s19558_s1 + $0x350] sm:$0xf]  ;;  %v8903_v10 = vor.u32 %v12266_v3, %v8902_v2  ;;  %v8103_v26 = vor.u32 %v12066_v24, %v8102_v8  ;;  %v6847_v3 = vpop.f32.mrf.mxu2  ;;  %v6860_v24 = vpop.f32.mrf.mxu3 }
 0x3a1   :  { %v11808_v13 = vld [vmem:[%s19558_s1 + $0x1e68] sm:$0xf0]  ;;  %v8294_v50 = vld [vmem:[%s19558_s1 + $0x2d0] sm:$0xf]  ;;  %v6848_v8 = vadd.f32 %v6847_v3, %v6835_v51 }
 0x3a2   :  { %v12789_v15 = vld [vmem:[%s19558_s1 + $0x180c] sm:$0xf]  ;;  %v11811_v36 = vor.u32 %v12989_v12, %v11808_v13  ;;  %7052 = vmatpush.bf16.msrb.mxu2 %v11555_v18  ;;  %v12130_v12 = vld [vmem:[%s19558_s1 + $0x36c] sm:$0xf0] }
 0x3a3   :  { %v11008_v17 = vld [vmem:[%s19558_s1 + $0x1828] sm:$0xf0]  ;;  %v8614_v13 = vld [vmem:[%s19558_s1 + $0x550] sm:$0xf]  ;;  %v8359_v18 = vor.u32 %v12130_v12, %v8358_v9  ;;  %v6823_v12 = vpop.f32.mrf.mxu0 }
 0x3a4   :  { %v12853_v19 = vld [vmem:[%s19558_s1 + $0x1a0c] sm:$0xf]  ;;  %v11011_v11 = vor.u32 %v12789_v15, %v11008_v17  ;;  %7065 = vmatpush.bf16.msrb.mxu3 %v11811_v36  ;;  %v8870_v15 = vld [vmem:[%s19558_s1 + $0x750] sm:$0xf] }
 0x3a5   :  { %v11264_v22 = vld [vmem:[%s19558_s1 + $0x1a28] sm:$0xf0]  ;;  %v12258_v17 = vld [vmem:[%s19558_s1 + $0x76c] sm:$0xf0] }
 0x3a6   :  { %v12917_v55 = vld [vmem:[%s19558_s1 + $0x1c0c] sm:$0xf]  ;;  %v11267_v48 = vor.u32 %v12853_v19, %v11264_v22  ;;  %7027 = vmatpush.bf16.msrb.mxu0 %v11011_v11  ;;  %v8615_v19 = vor.u32 %v12194_v14, %v8614_v13  ;;  %v8070_v22 = vld [vmem:[%s19558_s1 + $0x110] sm:$0xf]  ;;  %v6836_v14 = vpop.f32.mrf.mxu1 }
 0x3a7   :  { %v11520_v32 = vld [vmem:[%s19558_s1 + $0x1c28] sm:$0xf0]  ;;  %v8326_v36 = vld [vmem:[%s19558_s1 + $0x310] sm:$0xf] }
 0x3a8   :  { %v12981_v40 = vld [vmem:[%s19558_s1 + $0x1e0c] sm:$0xf]  ;;  %v11523_v54 = vor.u32 %v12917_v55, %v11520_v32  ;;  %7040 = vmatpush.bf16.msrb.mxu1 %v11267_v48  ;;  %v12058_v55 = vld [vmem:[%s19558_s1 + $0x12c] sm:$0xf0]  ;;  %v8871_v32 = vor.u32 %v12258_v17, %v8870_v15  ;;  %v16466_v15 = vadd.f32 %v6860_v24, %v6848_v8  ;;  %v6849_v51 = vpop.f32.mrf.mxu2 }
 0x3a9   :  { %v11776_v49 = vld [vmem:[%s19558_s1 + $0x1e28] sm:$0xf0]  ;;  %7028 = vmatmul.bf16.vlgmr.msrb.gmra.mxu0 %v13931_v23  ;;  %v8071_v11 = vor.u32 %v12058_v55, %v8070_v22  ;;  %v8038_v48 = vld [vmem:[%s19558_s1 + $0xd0] sm:$0xf] }
 0x3aa   :  { %v11779_v46 = vor.u32 %v12981_v40, %v11776_v49  ;;  %7053 = vmatpush.bf16.msrb.mxu2 %v11523_v54  ;;  %7072 = vmatpush.bf16.msra.mxu0 %v8167_v62  ;;  %v12122_v40 = vld [vmem:[%s19558_s1 + $0x32c] sm:$0xf0] }
 0x3ab   :  { %7041 = vmatmul.bf16.vlgmr.msrb.gmra.mxu1 %v13944_v31  ;;  %v8582_v49 = vld [vmem:[%s19558_s1 + $0x510] sm:$0xf]  ;;  %v8327_v16 = vor.u32 %v12122_v40, %v8326_v36 }
 0x3ac   :  { %7066 = vmatpush.bf16.msrb.mxu3 %v11779_v46  ;;  %7085 = vmatpush.bf16.msra.mxu1 %v8423_v52  ;;  %v8583_v47 = vor.u32 %v12186_v34, %v8582_v49  ;;  %v12050_v54 = vld [vmem:[%s19558_s1 + $0xec] sm:$0xf0] }
 0x3ad   :  { %7054 = vmatmul.bf16.vlgmr.msrb.gmra.mxu2 %v13942_v28  ;;  %v12114_v46 = vld [vmem:[%s19558_s1 + $0x2ec] sm:$0xf0]  ;;  %v8039_v57 = vor.u32 %v12050_v54, %v8038_v48 }
 0x3ae   :  { %7098 = vmatpush.bf16.msra.mxu2 %v8679_v53  ;;  %7073 = vmatpush.bf16.msra.mxu0 %v8135_v5  ;;  %v8550_v62 = vld [vmem:[%s19558_s1 + $0x4d0] sm:$0xf]  ;;  %v8295_v58 = vor.u32 %v12114_v46, %v8294_v50 }
 0x3af   :  { %7067 = vmatmul.bf16.vlgmr.msrb.gmra.mxu3 %v13952_v35  ;;  %v12178_v52 = vld [vmem:[%s19558_s1 + $0x4ec] sm:$0xf0] }
 0x3b0   :  { %7111 = vmatpush.bf16.msra.mxu3 %v8935_v61  ;;  %7086 = vmatpush.bf16.msra.mxu1 %v8391_v7  ;;  %v8806_v53 = vld [vmem:[%s19558_s1 + $0x6d0] sm:$0xf]  ;;  %v8551_v61 = vor.u32 %v12178_v52, %v8550_v62 }
 0x3b1   :  { %v12242_v56 = vld [vmem:[%s19558_s1 + $0x6ec] sm:$0xf0] }
 0x3b2   :  { %7099 = vmatpush.bf16.msra.mxu2 %v8647_v59  ;;  %7074 = vmatpush.bf16.msra.mxu0 %v8103_v26  ;;  %v8006_v63 = vld [vmem:[%s19558_s1 + $0x90] sm:$0xf]  ;;  %v8807_v2 = vor.u32 %v12242_v56, %v8806_v53  ;;  %v6862_v53 = vpop.f32.mrf.mxu3 }
 0x3b3   :  { %v12042_v60 = vld [vmem:[%s19558_s1 + $0xac] sm:$0xf0] }
 0x3b4   :  { %7112 = vmatpush.bf16.msra.mxu3 %v8903_v10  ;;  %7087 = vmatpush.bf16.msra.mxu1 %v8359_v18  ;;  %v8262_v0 = vld [vmem:[%s19558_s1 + $0x290] sm:$0xf]  ;;  %v8007_v13 = vor.u32 %v12042_v60, %v8006_v63 }
 0x3b5   :  { %v12106_v5 = vld [vmem:[%s19558_s1 + $0x2ac] sm:$0xf0] }
 0x3b6   :  { %7100 = vmatpush.bf16.msra.mxu2 %v8615_v19  ;;  %7075 = vmatpush.bf16.msra.mxu0 %v8071_v11  ;;  %v8518_v7 = vld [vmem:[%s19558_s1 + $0x490] sm:$0xf]  ;;  %v8263_v17 = vor.u32 %v12106_v5, %v8262_v0 }
 0x3b7   :  { %v12170_v59 = vld [vmem:[%s19558_s1 + $0x4ac] sm:$0xf0] }
 0x3b8   :  { %7113 = vmatpush.bf16.msra.mxu3 %v8871_v32  ;;  %7088 = vmatpush.bf16.msra.mxu1 %v8327_v16  ;;  %v8774_v9 = vld [vmem:[%s19558_s1 + $0x690] sm:$0xf]  ;;  %v8519_v26 = vor.u32 %v12170_v59, %v8518_v7 }
 0x3b9   :  { %v12234_v10 = vld [vmem:[%s19558_s1 + $0x6ac] sm:$0xf0] }
 0x3ba   :  { %7101 = vmatpush.bf16.msra.mxu2 %v8583_v47  ;;  %7076 = vmatpush.bf16.msra.mxu0 %v8039_v57  ;;  %v7974_v18 = vld [vmem:[%s19558_s1 + $0x50] sm:$0xf]  ;;  %v8775_v55 = vor.u32 %v12234_v10, %v8774_v9 }
 0x3bb   :  { %v12034_v19 = vld [vmem:[%s19558_s1 + $0x6c] sm:$0xf0] }
 0x3bc   :  { %7114 = vmatpush.bf16.msra.mxu3 %v8839_v1  ;;  %7089 = vmatpush.bf16.msra.mxu1 %v8295_v58  ;;  %v8230_v22 = vld [vmem:[%s19558_s1 + $0x250] sm:$0xf]  ;;  %v7975_v37 = vor.u32 %v12034_v19, %v7974_v18 }
 0x3bd   :  { %v12098_v36 = vld [vmem:[%s19558_s1 + $0x26c] sm:$0xf0] }
 0x3be   :  { %7102 = vmatpush.bf16.msra.mxu2 %v8551_v61  ;;  %v8486_v32 = vld [vmem:[%s19558_s1 + $0x450] sm:$0xf]  ;;  %7077 = vmatpush.bf16.msra.mxu0 %v8007_v13  ;;  %v8231_v43 = vor.u32 %v12098_v36, %v8230_v22 }
 0x3bf   :  { %v12162_v40 = vld [vmem:[%s19558_s1 + $0x46c] sm:$0xf0] }
 0x3c0   :  { %7115 = vmatpush.bf16.msra.mxu3 %v8807_v2  ;;  %v8742_v49 = vld [vmem:[%s19558_s1 + $0x650] sm:$0xf]  ;;  %7090 = vmatpush.bf16.msra.mxu1 %v8263_v17  ;;  %v8487_v11 = vor.u32 %v12162_v40, %v8486_v32 }
 0x3c1   :  { %v12226_v34 = vld [vmem:[%s19558_s1 + $0x66c] sm:$0xf0] }
 0x3c2   :  { %v7942_v27 = vld [vmem:[%s19558_s1 + $0x10] sm:$0xf]  ;;  %7103 = vmatpush.bf16.msra.mxu2 %v8519_v26  ;;  %v8743_v48 = vor.u32 %v12226_v34, %v8742_v49  ;;  %7078 = vmatpush.bf16.msra.mxu0 %v7975_v37 }
 0x3c3   :  { %v12026_v39 = vld [vmem:[%s19558_s1 + $0x2c] sm:$0xf0] }
 0x3c4   :  { %v8198_v45 = vld [vmem:[%s19558_s1 + $0x210] sm:$0xf]  ;;  %7116 = vmatpush.bf16.msra.mxu3 %v8775_v55  ;;  %v7943_v56 = vor.u32 %v12026_v39, %v7942_v27  ;;  %7091 = vmatpush.bf16.msra.mxu1 %v8231_v43 }
 0x3c5   :  { %v12090_v16 = vld [vmem:[%s19558_s1 + $0x22c] sm:$0xf0] }
 0x3c6   :  { %v8454_v47 = vld [vmem:[%s19558_s1 + $0x410] sm:$0xf]  ;;  %7104 = vmatpush.bf16.msra.mxu2 %v8487_v11  ;;  %v8199_v63 = vor.u32 %v12090_v16, %v8198_v45  ;;  %7079 = vmatpush.bf16.msra.mxu0 %v7943_v56 }
 0x3c7   :  { %v12154_v54 = vld [vmem:[%s19558_s1 + $0x42c] sm:$0xf0] }
 0x3c8   :  { %v8710_v50 = vld [vmem:[%s19558_s1 + $0x610] sm:$0xf]  ;;  %v8455_v60 = vor.u32 %v12154_v54, %v8454_v47  ;;  %7117 = vmatpush.bf16.msra.mxu3 %v8743_v48  ;;  %7092 = vmatpush.bf16.msra.mxu1 %v8199_v63  ;;  %v13046_v54 = vld [vmem:[%s19560_s2] sm:$0xff] }
 0x3c9   :  { %v12218_v1 = vld [vmem:[%s19558_s1 + $0x62c] sm:$0xf0]  ;;  %7080 = vmatmul.bf16.vlgmr.msra.gmra.mxu0 %v13369_v20 }
 0x3ca   :  { %v9190_v46 = vld [vmem:[%s19558_s1 + $0x9d0] sm:$0xf]  ;;  %v8711_v3 = vor.u32 %v12218_v1, %v8710_v50  ;;  %7105 = vmatpush.bf16.msra.mxu2 %v8455_v60  ;;  %v1051_v50 = vperm.slane %v13046_v54, 3 }
 0x3cb   :  { %v12338_v62 = vld [vmem:[%s19558_s1 + $0x9ec] sm:$0xf0]  ;;  %7093 = vmatmul.bf16.vlgmr.msra.gmra.mxu1 %v13372_v21 }
 0x3cc   :  { %v9446_v52 = vld [vmem:[%s19558_s1 + $0xbd0] sm:$0xf]  ;;  %v9191_v5 = vor.u32 %v12338_v62, %v9190_v46  ;;  %7118 = vmatpush.bf16.msra.mxu3 %v8711_v3  ;;  %v6886_v3 = vpop.f32.mrf.mxu1 }
 0x3cd   :  { %v12402_v57 = vld [vmem:[%s19558_s1 + $0xbec] sm:$0xf0]  ;;  %7106 = vmatmul.bf16.vlgmr.msra.gmra.mxu2 %v13337_v4 }
 0x3ce   :  { %v9702_v58 = vld [vmem:[%s19558_s1 + $0xdd0] sm:$0xf]  ;;  %v9447_v7 = vor.u32 %v12402_v57, %v9446_v52  ;;  %7124 = vmatpush.bf16.msrb.mxu0 %v9191_v5  ;;  %v6873_v57 = vpop.f32.mrf.mxu0 }
 0x3cf   :  { %v12466_v61 = vld [vmem:[%s19558_s1 + $0xdec] sm:$0xf0]  ;;  %7119 = vmatmul.bf16.vlgmr.msra.gmra.mxu3 %v13342_v6 }
 0x3d0   :  { %v9958_v0 = vld [vmem:[%s19558_s1 + $0xfd0] sm:$0xf]  ;;  %v9703_v59 = vor.u32 %v12466_v61, %v9702_v58  ;;  %7137 = vmatpush.bf16.msrb.mxu1 %v9447_v7 }
 0x3d1   :  { %v12530_v2 = vld [vmem:[%s19558_s1 + $0xfec] sm:$0xf0] }
 0x3d2   :  { %v9158_v8 = vld [vmem:[%s19558_s1 + $0x990] sm:$0xf]  ;;  %v9959_v10 = vor.u32 %v12530_v2, %v9958_v0  ;;  %7150 = vmatpush.bf16.msrb.mxu2 %v9703_v59  ;;  %v6874_v2 = vadd.f32 %v6873_v57, %v1051_v50 }
 0x3d3   :  { %v12330_v24 = vld [vmem:[%s19558_s1 + $0x9ac] sm:$0xf0] }
 0x3d4   :  { %v9414_v9 = vld [vmem:[%s19558_s1 + $0xb90] sm:$0xf]  ;;  %v9159_v18 = vor.u32 %v12330_v24, %v9158_v8  ;;  %7163 = vmatpush.bf16.msrb.mxu3 %v9959_v10  ;;  %v6887_v10 = vadd.f32 %v6886_v3, %v6874_v2  ;;  %v6888_v54 = vpop.f32.mrf.mxu1 }
 0x3d5   :  { %v12394_v12 = vld [vmem:[%s19558_s1 + $0xbac] sm:$0xf0] }
 0x3d6   :  { %v9670_v13 = vld [vmem:[%s19558_s1 + $0xd90] sm:$0xf]  ;;  %v9415_v19 = vor.u32 %v12394_v12, %v9414_v9  ;;  %7125 = vmatpush.bf16.msrb.mxu0 %v9159_v18 }
 0x3d7   :  { %v12458_v14 = vld [vmem:[%s19558_s1 + $0xdac] sm:$0xf0] }
 0x3d8   :  { %v9926_v17 = vld [vmem:[%s19558_s1 + $0xf90] sm:$0xf]  ;;  %v9671_v22 = vor.u32 %v12458_v14, %v9670_v13  ;;  %7138 = vmatpush.bf16.msrb.mxu1 %v9415_v19  ;;  %v6899_v19 = vpop.f32.mrf.mxu2 }
 0x3d9   :  { %v12522_v26 = vld [vmem:[%s19558_s1 + $0xfac] sm:$0xf0] }
 0x3da   :  { %v9126_v55 = vld [vmem:[%s19558_s1 + $0x950] sm:$0xf]  ;;  %v9927_v40 = vor.u32 %v12522_v26, %v9926_v17  ;;  %7151 = vmatpush.bf16.msrb.mxu2 %v9671_v22 }
 0x3db   :  { %v12322_v36 = vld [vmem:[%s19558_s1 + $0x96c] sm:$0xf0] }
 0x3dc   :  { %v9382_v32 = vld [vmem:[%s19558_s1 + $0xb50] sm:$0xf]  ;;  %v9127_v43 = vor.u32 %v12322_v36, %v9126_v55  ;;  %7164 = vmatpush.bf16.msrb.mxu3 %v9927_v40  ;;  %v6900_v40 = vadd.f32 %v6899_v19, %v6887_v10 }
 0x3dd   :  { %v12386_v49 = vld [vmem:[%s19558_s1 + $0xb6c] sm:$0xf0] }
 0x3de   :  { %v9638_v34 = vld [vmem:[%s19558_s1 + $0xd50] sm:$0xf]  ;;  %v9383_v45 = vor.u32 %v12386_v49, %v9382_v32  ;;  %7126 = vmatpush.bf16.msrb.mxu0 %v9127_v43  ;;  %v6912_v49 = vpop.f32.mrf.mxu3  ;;  %v6875_v43 = vpop.f32.mrf.mxu0 }
 0x3df   :  { %v12450_v37 = vld [vmem:[%s19558_s1 + $0xd6c] sm:$0xf0] }
 0x3e0   :  { %v9894_v27 = vld [vmem:[%s19558_s1 + $0xf50] sm:$0xf]  ;;  %v9639_v16 = vor.u32 %v12450_v37, %v9638_v34  ;;  %7139 = vmatpush.bf16.msrb.mxu1 %v9383_v45  ;;  %v6901_v2 = vpop.f32.mrf.mxu2 }
 0x3e1   :  { %v12514_v39 = vld [vmem:[%s19558_s1 + $0xf6c] sm:$0xf0] }
 0x3e2   :  { %v9094_v11 = vld [vmem:[%s19558_s1 + $0x910] sm:$0xf]  ;;  %v9895_v1 = vor.u32 %v12514_v39, %v9894_v27  ;;  %7152 = vmatpush.bf16.msrb.mxu2 %v9639_v16  ;;  %v16667_v39 = vadd.f32 %v6912_v49, %v6900_v40 }
 0x3e3   :  { %v12314_v47 = vld [vmem:[%s19558_s1 + $0x92c] sm:$0xf0] }
 0x3e4   :  { %v9350_v48 = vld [vmem:[%s19558_s1 + $0xb10] sm:$0xf]  ;;  %v9095_v56 = vor.u32 %v12314_v47, %v9094_v11  ;;  %7165 = vmatpush.bf16.msrb.mxu3 %v9895_v1 }
 0x3e5   :  { %v12378_v51 = vld [vmem:[%s19558_s1 + $0xb2c] sm:$0xf0] }
 0x3e6   :  { %v9606_v46 = vld [vmem:[%s19558_s1 + $0xd10] sm:$0xf]  ;;  %v9351_v58 = vor.u32 %v12378_v51, %v9350_v48  ;;  %7127 = vmatpush.bf16.msrb.mxu0 %v9095_v56 }
 0x3e7   :  { %v12442_v62 = vld [vmem:[%s19558_s1 + $0xd2c] sm:$0xf0] }
 0x3e8   :  { %v9862_v52 = vld [vmem:[%s19558_s1 + $0xf10] sm:$0xf]  ;;  %v9607_v61 = vor.u32 %v12442_v62, %v9606_v46  ;;  %7140 = vmatpush.bf16.msrb.mxu1 %v9351_v58 }
 0x3e9   :  { %v12506_v53 = vld [vmem:[%s19558_s1 + $0xf2c] sm:$0xf0] }
 0x3ea   :  { %v9062_v63 = vld [vmem:[%s19558_s1 + $0x8d0] sm:$0xf]  ;;  %v9863_v5 = vor.u32 %v12506_v53, %v9862_v52  ;;  %7153 = vmatpush.bf16.msrb.mxu2 %v9607_v61 }
 0x3eb   :  { %v12306_v60 = vld [vmem:[%s19558_s1 + $0x8ec] sm:$0xf0] }
 0x3ec   :  { %v9318_v0 = vld [vmem:[%s19558_s1 + $0xad0] sm:$0xf]  ;;  %v9063_v12 = vor.u32 %v12306_v60, %v9062_v63  ;;  %7166 = vmatpush.bf16.msrb.mxu3 %v9863_v5 }
 0x3ed   :  { %v12370_v7 = vld [vmem:[%s19558_s1 + $0xaec] sm:$0xf0] }
 0x3ee   :  { %v9574_v59 = vld [vmem:[%s19558_s1 + $0xcd0] sm:$0xf]  ;;  %v9319_v13 = vor.u32 %v12370_v7, %v9318_v0  ;;  %7128 = vmatpush.bf16.msrb.mxu0 %v9063_v12 }
 0x3ef   :  { %v12434_v8 = vld [vmem:[%s19558_s1 + $0xcec] sm:$0xf0] }
 0x3f0   :  { %v9830_v24 = vld [vmem:[%s19558_s1 + $0xed0] sm:$0xf]  ;;  %v9575_v14 = vor.u32 %v12434_v8, %v9574_v59  ;;  %7141 = vmatpush.bf16.msrb.mxu1 %v9319_v13  ;;  %v6914_v8 = vpop.f32.mrf.mxu3 }
 0x3f1   :  { %v12498_v9 = vld [vmem:[%s19558_s1 + $0xeec] sm:$0xf0] }
 0x3f2   :  { %v9030_v17 = vld [vmem:[%s19558_s1 + $0x890] sm:$0xf]  ;;  %v9831_v22 = vor.u32 %v12498_v9, %v9830_v24  ;;  %7154 = vmatpush.bf16.msrb.mxu2 %v9575_v14 }
 0x3f3   :  { %v12298_v26 = vld [vmem:[%s19558_s1 + $0x8ac] sm:$0xf0] }
 0x3f4   :  { %v9286_v18 = vld [vmem:[%s19558_s1 + $0xa90] sm:$0xf]  ;;  %v9031_v27 = vor.u32 %v12298_v26, %v9030_v17  ;;  %7167 = vmatpush.bf16.msrb.mxu3 %v9831_v22 }
 0x3f5   :  { %v12362_v55 = vld [vmem:[%s19558_s1 + $0xaac] sm:$0xf0] }
 0x3f6   :  { %v9542_v36 = vld [vmem:[%s19558_s1 + $0xc90] sm:$0xf]  ;;  %v9287_v11 = vor.u32 %v12362_v55, %v9286_v18  ;;  %7129 = vmatpush.bf16.msrb.mxu0 %v9031_v27 }
 0x3f7   :  { %v12426_v32 = vld [vmem:[%s19558_s1 + $0xcac] sm:$0xf0] }
 0x3f8   :  { %v9798_v34 = vld [vmem:[%s19558_s1 + $0xe90] sm:$0xf]  ;;  %v9543_v45 = vor.u32 %v12426_v32, %v9542_v36  ;;  %7142 = vmatpush.bf16.msrb.mxu1 %v9287_v11 }
 0x3f9   :  { %v12490_v37 = vld [vmem:[%s19558_s1 + $0xeac] sm:$0xf0] }
 0x3fa   :  { %v8998_v16 = vld [vmem:[%s19558_s1 + $0x850] sm:$0xf]  ;;  %v9799_v50 = vor.u32 %v12490_v37, %v9798_v34  ;;  %7155 = vmatpush.bf16.msrb.mxu2 %v9543_v45 }
 0x3fb   :  { %v12290_v47 = vld [vmem:[%s19558_s1 + $0x86c] sm:$0xf0] }
 0x3fc   :  { %v9254_v48 = vld [vmem:[%s19558_s1 + $0xa50] sm:$0xf]  ;;  %v8999_v53 = vor.u32 %v12290_v47, %v8998_v16  ;;  %7168 = vmatpush.bf16.msrb.mxu3 %v9799_v50 }
 0x3fd   :  { %v12354_v1 = vld [vmem:[%s19558_s1 + $0xa6c] sm:$0xf0] }
 0x3fe   :  { %v9510_v51 = vld [vmem:[%s19558_s1 + $0xc50] sm:$0xf]  ;;  %v9255_v58 = vor.u32 %v12354_v1, %v9254_v48  ;;  %7130 = vmatpush.bf16.msrb.mxu0 %v8999_v53 }
 0x3ff   :  { %v12418_v46 = vld [vmem:[%s19558_s1 + $0xc6c] sm:$0xf0] }
 0x400   :  { %v9766_v62 = vld [vmem:[%s19558_s1 + $0xe50] sm:$0xf]  ;;  %v9511_v61 = vor.u32 %v12418_v46, %v9510_v51  ;;  %7143 = vmatpush.bf16.msrb.mxu1 %v9255_v58 }
 0x401   :  { %v12482_v52 = vld [vmem:[%s19558_s1 + $0xe6c] sm:$0xf0] }
 0x402   :  { %v8966_v56 = vld [vmem:[%s19558_s1 + $0x810] sm:$0xf]  ;;  %v9767_v3 = vor.u32 %v12482_v52, %v9766_v62  ;;  %7156 = vmatpush.bf16.msrb.mxu2 %v9511_v61 }
 0x403   :  { %v12282_v57 = vld [vmem:[%s19558_s1 + $0x82c] sm:$0xf0] }
 0x404   :  { %v9222_v63 = vld [vmem:[%s19558_s1 + $0xa10] sm:$0xf]  ;;  %v8967_v12 = vor.u32 %v12282_v57, %v8966_v56  ;;  %7169 = vmatpush.bf16.msrb.mxu3 %v9767_v3 }
 0x405   :  { %v12346_v60 = vld [vmem:[%s19558_s1 + $0xa2c] sm:$0xf0] }
 0x406   :  { %v9478_v0 = vld [vmem:[%s19558_s1 + $0xc10] sm:$0xf]  ;;  %v9223_v26 = vor.u32 %v12346_v60, %v9222_v63  ;;  %7131 = vmatpush.bf16.msrb.mxu0 %v8967_v12  ;;  %v16817_v12 = vpop.f32.mrf.mxu0 }
 0x407   :  { %v12410_v5 = vld [vmem:[%s19558_s1 + $0xc2c] sm:$0xf0] }
 0x408   :  { %v9734_v7 = vld [vmem:[%s19558_s1 + $0xe10] sm:$0xf]  ;;  %v9479_v18 = vor.u32 %v12410_v5, %v9478_v0  ;;  %7144 = vmatpush.bf16.msrb.mxu1 %v9223_v26 }
 0x409   :  { %v12474_v59 = vld [vmem:[%s19558_s1 + $0xe2c] sm:$0xf0]  ;;  %7132 = vmatmul.bf16.vlgmr.msrb.gmra.mxu0 %v13528_v41 }
 0x40a   :  { %v10214_v24 = vld [vmem:[%s19558_s1 + $0x11d0] sm:$0xf]  ;;  %v9735_v55 = vor.u32 %v12474_v59, %v9734_v7  ;;  %7157 = vmatpush.bf16.msrb.mxu2 %v9479_v18 }
 0x40b   :  { %v12594_v9 = vld [vmem:[%s19558_s1 + $0x11ec] sm:$0xf0]  ;;  %7145 = vmatmul.bf16.vlgmr.msrb.gmra.mxu1 %v13532_v44 }
 0x40c   :  { %v10470_v10 = vld [vmem:[%s19558_s1 + $0x13d0] sm:$0xf]  ;;  %v10215_v36 = vor.u32 %v12594_v9, %v10214_v24  ;;  %7170 = vmatpush.bf16.msrb.mxu3 %v9735_v55 }
 0x40d   :  { %v12658_v13 = vld [vmem:[%s19558_s1 + $0x13ec] sm:$0xf0]  ;;  %7158 = vmatmul.bf16.vlgmr.msrb.gmra.mxu2 %v13520_v38 }
 0x40e   :  { %v10726_v14 = vld [vmem:[%s19558_s1 + $0x15d0] sm:$0xf]  ;;  %v10471_v32 = vor.u32 %v12658_v13, %v10470_v10  ;;  %7176 = vmatpush.bf16.msra.mxu0 %v10215_v36 }
 0x40f   :  { %v12722_v17 = vld [vmem:[%s19558_s1 + $0x15ec] sm:$0xf0]  ;;  %7171 = vmatmul.bf16.vlgmr.msrb.gmra.mxu3 %v13530_v42 }
 0x410   :  { %v10982_v19 = vld [vmem:[%s19558_s1 + $0x17d0] sm:$0xf]  ;;  %v10727_v40 = vor.u32 %v12722_v17, %v10726_v14  ;;  %7189 = vmatpush.bf16.msra.mxu1 %v10471_v32 }
 0x411   :  { %v12786_v22 = vld [vmem:[%s19558_s1 + $0x17ec] sm:$0xf0] }
 0x412   :  { %v10182_v49 = vld [vmem:[%s19558_s1 + $0x1190] sm:$0xf]  ;;  %v10983_v27 = vor.u32 %v12786_v22, %v10982_v19  ;;  %7202 = vmatpush.bf16.msra.mxu2 %v10727_v40  ;;  %v16828_v19 = vpop.f32.mrf.mxu1 }
 0x413   :  { %v12586_v34 = vld [vmem:[%s19558_s1 + $0x11ac] sm:$0xf0] }
 0x414   :  { %v10438_v37 = vld [vmem:[%s19558_s1 + $0x1390] sm:$0xf]  ;;  %v10183_v48 = vor.u32 %v12586_v34, %v10182_v49  ;;  %7215 = vmatpush.bf16.msra.mxu3 %v10983_v27 }
 0x415   :  { %v12650_v43 = vld [vmem:[%s19558_s1 + $0x13ac] sm:$0xf0] }
 0x416   :  { %v10694_v11 = vld [vmem:[%s19558_s1 + $0x1590] sm:$0xf]  ;;  %v10439_v54 = vor.u32 %v12650_v43, %v10438_v37  ;;  %7177 = vmatpush.bf16.msra.mxu0 %v10183_v48 }
 0x417   :  { %v12714_v45 = vld [vmem:[%s19558_s1 + $0x15ac] sm:$0xf0] }
 0x418   :  { %v10950_v16 = vld [vmem:[%s19558_s1 + $0x1790] sm:$0xf]  ;;  %v10695_v50 = vor.u32 %v12714_v45, %v10694_v11  ;;  %7190 = vmatpush.bf16.msra.mxu1 %v10439_v54 }
 0x419   :  { %v12778_v47 = vld [vmem:[%s19558_s1 + $0x17ac] sm:$0xf0] }
 0x41a   :  { %v10150_v1 = vld [vmem:[%s19558_s1 + $0x1150] sm:$0xf]  ;;  %v10951_v62 = vor.u32 %v12778_v47, %v10950_v16  ;;  %7203 = vmatpush.bf16.msra.mxu2 %v10695_v50  ;;  %v16854_v16 = vpop.f32.mrf.mxu2 }
 0x41b   :  { %v12578_v51 = vld [vmem:[%s19558_s1 + $0x116c] sm:$0xf0] }
 0x41c   :  { %v10406_v46 = vld [vmem:[%s19558_s1 + $0x1350] sm:$0xf]  ;;  %v10151_v61 = vor.u32 %v12578_v51, %v10150_v1  ;;  %7216 = vmatpush.bf16.msra.mxu3 %v10951_v62  ;;  %v16865_v1 = vpop.f32.mrf.mxu3 }
 0x41d   :  { %v12642_v52 = vld [vmem:[%s19558_s1 + $0x136c] sm:$0xf0] }
 0x41e   :  { %v10662_v53 = vld [vmem:[%s19558_s1 + $0x1550] sm:$0xf]  ;;  %v10407_v63 = vor.u32 %v12642_v52, %v10406_v46  ;;  %7178 = vmatpush.bf16.msra.mxu0 %v10151_v61  ;;  %v6927_v52 = vpop.f32.mrf.mxu0 }
 0x41f   :  { %v12706_v56 = vld [vmem:[%s19558_s1 + $0x156c] sm:$0xf0] }
 0x420   :  { %v10918_v57 = vld [vmem:[%s19558_s1 + $0x1750] sm:$0xf]  ;;  %v10663_v60 = vor.u32 %v12706_v56, %v10662_v53  ;;  %7191 = vmatpush.bf16.msra.mxu1 %v10407_v63  ;;  %v6940_v63 = vpop.f32.mrf.mxu1 }
 0x421   :  { %v12770_v58 = vld [vmem:[%s19558_s1 + $0x176c] sm:$0xf0] }
 0x422   :  { %v10118_v0 = vld [vmem:[%s19558_s1 + $0x1110] sm:$0xf]  ;;  %v10919_v5 = vor.u32 %v12770_v58, %v10918_v57  ;;  %7204 = vmatpush.bf16.msra.mxu2 %v10663_v60 }
 0x423   :  { %v12570_v2 = vld [vmem:[%s19558_s1 + $0x112c] sm:$0xf0] }
 0x424   :  { %v10374_v3 = vld [vmem:[%s19558_s1 + $0x1310] sm:$0xf]  ;;  %v10119_v10 = vor.u32 %v12570_v2, %v10118_v0  ;;  %7217 = vmatpush.bf16.msra.mxu3 %v10919_v5 }
 0x425   :  { %v12634_v7 = vld [vmem:[%s19558_s1 + $0x132c] sm:$0xf0] }
 0x426   :  { %v10630_v59 = vld [vmem:[%s19558_s1 + $0x1510] sm:$0xf]  ;;  %v10375_v13 = vor.u32 %v12634_v7, %v10374_v3  ;;  %7179 = vmatpush.bf16.msra.mxu0 %v10119_v10 }
 0x427   :  { %v12698_v8 = vld [vmem:[%s19558_s1 + $0x152c] sm:$0xf0] }
 0x428   :  { %v10886_v24 = vld [vmem:[%s19558_s1 + $0x1710] sm:$0xf]  ;;  %v10631_v14 = vor.u32 %v12698_v8, %v10630_v59  ;;  %7192 = vmatpush.bf16.msra.mxu1 %v10375_v13 }
 0x429   :  { %v12762_v9 = vld [vmem:[%s19558_s1 + $0x172c] sm:$0xf0] }
 0x42a   :  { %v10086_v17 = vld [vmem:[%s19558_s1 + $0x10d0] sm:$0xf]  ;;  %v10887_v22 = vor.u32 %v12762_v9, %v10886_v24  ;;  %7205 = vmatpush.bf16.msra.mxu2 %v10631_v14 }
 0x42b   :  { %v12562_v26 = vld [vmem:[%s19558_s1 + $0x10ec] sm:$0xf0] }
 0x42c   :  { %v10342_v18 = vld [vmem:[%s19558_s1 + $0x12d0] sm:$0xf]  ;;  %v10087_v34 = vor.u32 %v12562_v26, %v10086_v17  ;;  %7218 = vmatpush.bf16.msra.mxu3 %v10887_v22  ;;  %v6953_v26 = vpop.f32.mrf.mxu2 }
 0x42d   :  { %v12626_v55 = vld [vmem:[%s19558_s1 + $0x12ec] sm:$0xf0] }
 0x42e   :  { %v10598_v36 = vld [vmem:[%s19558_s1 + $0x14d0] sm:$0xf]  ;;  %v10343_v37 = vor.u32 %v12626_v55, %v10342_v18  ;;  %7180 = vmatpush.bf16.msra.mxu0 %v10087_v34 }
 0x42f   :  { %v12690_v32 = vld [vmem:[%s19558_s1 + $0x14ec] sm:$0xf0] }
 0x430   :  { %v10854_v40 = vld [vmem:[%s19558_s1 + $0x16d0] sm:$0xf]  ;;  %v10599_v27 = vor.u32 %v12690_v32, %v10598_v36  ;;  %7193 = vmatpush.bf16.msra.mxu1 %v10343_v37  ;;  %v6966_v32 = vpop.f32.mrf.mxu3 }
 0x431   :  { %v12754_v49 = vld [vmem:[%s19558_s1 + $0x16ec] sm:$0xf0] }
 0x432   :  { %v10054_v43 = vld [vmem:[%s19558_s1 + $0x1090] sm:$0xf]  ;;  %v10855_v47 = vor.u32 %v12754_v49, %v10854_v40  ;;  %7206 = vmatpush.bf16.msra.mxu2 %v10599_v27 }
 0x433   :  { %v12554_v11 = vld [vmem:[%s19558_s1 + $0x10ac] sm:$0xf0] }
 0x434   :  { %v10310_v45 = vld [vmem:[%s19558_s1 + $0x1290] sm:$0xf]  ;;  %v10055_v62 = vor.u32 %v12554_v11, %v10054_v43  ;;  %7219 = vmatpush.bf16.msra.mxu3 %v10855_v47 }
 0x435   :  { %v12618_v48 = vld [vmem:[%s19558_s1 + $0x12ac] sm:$0xf0] }
 0x436   :  { %v10566_v54 = vld [vmem:[%s19558_s1 + $0x1490] sm:$0xf]  ;;  %v10311_v53 = vor.u32 %v12618_v48, %v10310_v45  ;;  %7181 = vmatpush.bf16.msra.mxu0 %v10055_v62 }
 0x437   :  { %v12682_v50 = vld [vmem:[%s19558_s1 + $0x14ac] sm:$0xf0] }
 0x438   :  { %v10822_v51 = vld [vmem:[%s19558_s1 + $0x1690] sm:$0xf]  ;;  %v10567_v56 = vor.u32 %v12682_v50, %v10566_v54  ;;  %7194 = vmatpush.bf16.msra.mxu1 %v10311_v53 }
 0x439   :  { %v12746_v46 = vld [vmem:[%s19558_s1 + $0x16ac] sm:$0xf0] }
 0x43a   :  { %v10022_v57 = vld [vmem:[%s19558_s1 + $0x1050] sm:$0xf]  ;;  %v10823_v60 = vor.u32 %v12746_v46, %v10822_v51  ;;  %7207 = vmatpush.bf16.msra.mxu2 %v10567_v56 }
 0x43b   :  { %v12546_v58 = vld [vmem:[%s19558_s1 + $0x106c] sm:$0xf0] }
 0x43c   :  { %v10278_v61 = vld [vmem:[%s19558_s1 + $0x1250] sm:$0xf]  ;;  %v10023_v59 = vor.u32 %v12546_v58, %v10022_v57  ;;  %7220 = vmatpush.bf16.msra.mxu3 %v10823_v60 }
 0x43d   :  { %v12610_v0 = vld [vmem:[%s19558_s1 + $0x126c] sm:$0xf0] }
 0x43e   :  { %v10534_v2 = vld [vmem:[%s19558_s1 + $0x1450] sm:$0xf]  ;;  %v10279_v9 = vor.u32 %v12610_v0, %v10278_v61  ;;  %7182 = vmatpush.bf16.msra.mxu0 %v10023_v59 }
 0x43f   :  { %v12674_v3 = vld [vmem:[%s19558_s1 + $0x146c] sm:$0xf0] }
 0x440   :  { %v10790_v5 = vld [vmem:[%s19558_s1 + $0x1650] sm:$0xf]  ;;  %v10535_v10 = vor.u32 %v12674_v3, %v10534_v2  ;;  %7195 = vmatpush.bf16.msra.mxu1 %v10279_v9 }
 0x441   :  { %v12738_v7 = vld [vmem:[%s19558_s1 + $0x166c] sm:$0xf0] }
 0x442   :  { %v9990_v8 = vld [vmem:[%s19558_s1 + $0x1010] sm:$0xf]  ;;  %v10791_v18 = vor.u32 %v12738_v7, %v10790_v5  ;;  %7208 = vmatpush.bf16.msra.mxu2 %v10535_v10 }
 0x443   :  { %v12538_v24 = vld [vmem:[%s19558_s1 + $0x102c] sm:$0xf0] }
 0x444   :  { %v10246_v13 = vld [vmem:[%s19558_s1 + $0x1210] sm:$0xf]  ;;  %v9991_v37 = vor.u32 %v12538_v24, %v9990_v8  ;;  %7221 = vmatpush.bf16.msra.mxu3 %v10791_v18 }
 0x445   :  { %v12602_v14 = vld [vmem:[%s19558_s1 + $0x122c] sm:$0xf0] }
 0x446   :  { %v10502_v17 = vld [vmem:[%s19558_s1 + $0x1410] sm:$0xf]  ;;  %v10247_v45 = vor.u32 %v12602_v14, %v10246_v13  ;;  %7183 = vmatpush.bf16.msra.mxu0 %v9991_v37 }
 0x447   :  { %v12666_v22 = vld [vmem:[%s19558_s1 + $0x142c] sm:$0xf0] }
 0x448   :  { %v10758_v55 = vld [vmem:[%s19558_s1 + $0x1610] sm:$0xf]  ;;  %v10503_v47 = vor.u32 %v12666_v22, %v10502_v17  ;;  %7196 = vmatpush.bf16.msra.mxu1 %v10247_v45 }
 0x449   :  { %v12730_v36 = vld [vmem:[%s19558_s1 + $0x162c] sm:$0xf0]  ;;  %7184 = vmatmul.bf16.vlgmr.msra.gmra.mxu0 %v13721_v25 }
 0x44a   :  { %v11238_v40 = vld [vmem:[%s19558_s1 + $0x19d0] sm:$0xf]  ;;  %v10759_v50 = vor.u32 %v12730_v36, %v10758_v55  ;;  %7209 = vmatpush.bf16.msra.mxu2 %v10503_v47  ;;  %v17023_v47 = vpop.f32.mrf.mxu1 }
 0x44b   :  { %v12850_v49 = vld [vmem:[%s19558_s1 + $0x19ec] sm:$0xf0]  ;;  %7197 = vmatmul.bf16.vlgmr.msra.gmra.mxu1 %v13734_v30 }
 0x44c   :  { %v11494_v34 = vld [vmem:[%s19558_s1 + $0x1bd0] sm:$0xf]  ;;  %v11239_v51 = vor.u32 %v12850_v49, %v11238_v40  ;;  %7222 = vmatpush.bf16.msra.mxu3 %v10759_v50 }
 0x44d   :  { %v12914_v27 = vld [vmem:[%s19558_s1 + $0x1bec] sm:$0xf0]  ;;  %7210 = vmatmul.bf16.vlgmr.msra.gmra.mxu2 %v13732_v29 }
 0x44e   :  { %v11750_v43 = vld [vmem:[%s19558_s1 + $0x1dd0] sm:$0xf]  ;;  %v11495_v46 = vor.u32 %v12914_v27, %v11494_v34  ;;  %7228 = vmatpush.bf16.msrb.mxu0 %v11239_v51  ;;  %v17015_v27 = vpop.f32.mrf.mxu0 }
 0x44f   :  { %v12978_v11 = vld [vmem:[%s19558_s1 + $0x1dec] sm:$0xf0]  ;;  %7223 = vmatmul.bf16.vlgmr.msra.gmra.mxu3 %v13742_v33 }
 0x450   :  { %v12006_v48 = vld [vmem:[%s19558_s1 + $0x1fd0] sm:$0xf]  ;;  %v11751_v62 = vor.u32 %v12978_v11, %v11750_v43  ;;  %7241 = vmatpush.bf16.msrb.mxu1 %v11495_v46 }
 0x451   :  { %v13042_v54 = vld [vmem:[%s19558_s1 + $0x1fec] sm:$0xf0] }
 0x452   :  { %v11206_v52 = vld [vmem:[%s19558_s1 + $0x1990] sm:$0xf]  ;;  %v12007_v57 = vor.u32 %v13042_v54, %v12006_v48  ;;  %7254 = vmatpush.bf16.msrb.mxu2 %v11751_v62 }
 0x453   :  { %v12842_v53 = vld [vmem:[%s19558_s1 + $0x19ac] sm:$0xf0] }
 0x454   :  { %v11462_v56 = vld [vmem:[%s19558_s1 + $0x1b90] sm:$0xf]  ;;  %v11207_v2 = vor.u32 %v12842_v53, %v11206_v52  ;;  %7267 = vmatpush.bf16.msrb.mxu3 %v12007_v57 }
 0x455   :  { %v12906_v58 = vld [vmem:[%s19558_s1 + $0x1bac] sm:$0xf0] }
 0x456   :  { %v11718_v61 = vld [vmem:[%s19558_s1 + $0x1d90] sm:$0xf]  ;;  %v11463_v3 = vor.u32 %v12906_v58, %v11462_v56  ;;  %7229 = vmatpush.bf16.msrb.mxu0 %v11207_v2 }
 0x457   :  { %v12970_v63 = vld [vmem:[%s19558_s1 + $0x1dac] sm:$0xf0] }
 0x458   :  { %v11974_v60 = vld [vmem:[%s19558_s1 + $0x1f90] sm:$0xf]  ;;  %v11719_v5 = vor.u32 %v12970_v63, %v11718_v61  ;;  %7242 = vmatpush.bf16.msrb.mxu1 %v11463_v3  ;;  %v6926_v63 = vadd.f32 %v16817_v12, %v16667_v39 }
 0x459   :  { %v13034_v0 = vld [vmem:[%s19558_s1 + $0x1fac] sm:$0xf0] }
 0x45a   :  { %v11174_v7 = vld [vmem:[%s19558_s1 + $0x1950] sm:$0xf]  ;;  %v11975_v24 = vor.u32 %v13034_v0, %v11974_v60  ;;  %7255 = vmatpush.bf16.msrb.mxu2 %v11719_v5 }
 0x45b   :  { %v12834_v59 = vld [vmem:[%s19558_s1 + $0x196c] sm:$0xf0] }
 0x45c   :  { %v11430_v8 = vld [vmem:[%s19558_s1 + $0x1b50] sm:$0xf]  ;;  %v11175_v26 = vor.u32 %v12834_v59, %v11174_v7  ;;  %7268 = vmatpush.bf16.msrb.mxu3 %v11975_v24  ;;  %v17060_v59 = vpop.f32.mrf.mxu2  ;;  %v17071_v24 = vpop.f32.mrf.mxu3 }
 0x45d   :  { %v12898_v9 = vld [vmem:[%s19558_s1 + $0x1b6c] sm:$0xf0] }
 0x45e   :  { %v11686_v10 = vld [vmem:[%s19558_s1 + $0x1d50] sm:$0xf]  ;;  %v11431_v18 = vor.u32 %v12898_v9, %v11430_v8  ;;  %7230 = vmatpush.bf16.msrb.mxu0 %v11175_v26  ;;  %v6939_v26 = vadd.f32 %v16828_v19, %v6926_v63  ;;  %v8168_v63 = vld [vmem:[%s19558_s1 + $0x1f0] sm:$0xf0] }
 0x45f   :  { %v12962_v13 = vld [vmem:[%s19558_s1 + $0x1d6c] sm:$0xf0] }
 0x460   :  { %v11942_v14 = vld [vmem:[%s19558_s1 + $0x1f50] sm:$0xf]  ;;  %v11687_v22 = vor.u32 %v12962_v13, %v11686_v10  ;;  %7243 = vmatpush.bf16.msrb.mxu1 %v11431_v18  ;;  %v6979_v13 = vpop.f32.mrf.mxu0 }
 0x461   :  { %v13026_v17 = vld [vmem:[%s19558_s1 + $0x1f6c] sm:$0xf0] }
 0x462   :  { %v11142_v55 = vld [vmem:[%s19558_s1 + $0x1910] sm:$0xf]  ;;  %v11943_v40 = vor.u32 %v13026_v17, %v11942_v14  ;;  %7256 = vmatpush.bf16.msrb.mxu2 %v11687_v22  ;;  %v6992_v17 = vpop.f32.mrf.mxu1 }
 0x463   :  { %v12826_v36 = vld [vmem:[%s19558_s1 + $0x192c] sm:$0xf0] }
 0x464   :  { %v11398_v32 = vld [vmem:[%s19558_s1 + $0x1b10] sm:$0xf]  ;;  %v11143_v45 = vor.u32 %v12826_v36, %v11142_v55  ;;  %7269 = vmatpush.bf16.msrb.mxu3 %v11943_v40 }
 0x465   :  { %v12890_v49 = vld [vmem:[%s19558_s1 + $0x1b2c] sm:$0xf0] }
 0x466   :  { %v11654_v34 = vld [vmem:[%s19558_s1 + $0x1d10] sm:$0xf]  ;;  %v11399_v48 = vor.u32 %v12890_v49, %v11398_v32  ;;  %7231 = vmatpush.bf16.msrb.mxu0 %v11143_v45 }
 0x467   :  { %v12954_v37 = vld [vmem:[%s19558_s1 + $0x1d2c] sm:$0xf0] }
 0x468   :  { %v11910_v43 = vld [vmem:[%s19558_s1 + $0x1f10] sm:$0xf]  ;;  %v11655_v54 = vor.u32 %v12954_v37, %v11654_v34  ;;  %7244 = vmatpush.bf16.msrb.mxu1 %v11399_v48 }
 0x469   :  { %v13018_v11 = vld [vmem:[%s19558_s1 + $0x1f2c] sm:$0xf0] }
 0x46a   :  { %v11110_v50 = vld [vmem:[%s19558_s1 + $0x18d0] sm:$0xf]  ;;  %v11911_v62 = vor.u32 %v13018_v11, %v11910_v43  ;;  %7257 = vmatpush.bf16.msrb.mxu2 %v11655_v54  ;;  %v6952_v54 = vadd.f32 %v16854_v16, %v6939_v26 }
 0x46b   :  { %v12818_v51 = vld [vmem:[%s19558_s1 + $0x18ec] sm:$0xf0] }
 0x46c   :  { %v11366_v46 = vld [vmem:[%s19558_s1 + $0x1ad0] sm:$0xf]  ;;  %v11111_v61 = vor.u32 %v12818_v51, %v11110_v50  ;;  %7270 = vmatpush.bf16.msrb.mxu3 %v11911_v62 }
 0x46d   :  { %v12882_v52 = vld [vmem:[%s19558_s1 + $0x1aec] sm:$0xf0] }
 0x46e   :  { %v11622_v53 = vld [vmem:[%s19558_s1 + $0x1cd0] sm:$0xf]  ;;  %v11367_v60 = vor.u32 %v12882_v52, %v11366_v46  ;;  %7232 = vmatpush.bf16.msrb.mxu0 %v11111_v61  ;;  %v12078_v61 = vld [vmem:[%s19558_s1 + $0x1d4] sm:$0xf] }
 0x46f   :  { %v12946_v56 = vld [vmem:[%s19558_s1 + $0x1cec] sm:$0xf0] }
 0x470   :  { %v11878_v57 = vld [vmem:[%s19558_s1 + $0x1ed0] sm:$0xf]  ;;  %v11623_v0 = vor.u32 %v12946_v56, %v11622_v53  ;;  %7245 = vmatpush.bf16.msrb.mxu1 %v11367_v60  ;;  %v12142_v60 = vld [vmem:[%s19558_s1 + $0x3d4] sm:$0xf] }
 0x471   :  { %v13010_v58 = vld [vmem:[%s19558_s1 + $0x1eec] sm:$0xf0] }
 0x472   :  { %v11078_v2 = vld [vmem:[%s19558_s1 + $0x1890] sm:$0xf]  ;;  %v11879_v7 = vor.u32 %v13010_v58, %v11878_v57  ;;  %7258 = vmatpush.bf16.msrb.mxu2 %v11623_v0  ;;  %v7005_v58 = vpop.f32.mrf.mxu2  ;;  %v7018_v0 = vpop.f32.mrf.mxu3 }
 0x473   :  { %v12810_v3 = vld [vmem:[%s19558_s1 + $0x18ac] sm:$0xf0]  ;;  %v8072_v58 = vld [vmem:[%s19558_s1 + $0x130] sm:$0xf0] }
 0x474   :  { %v11334_v5 = vld [vmem:[%s19558_s1 + $0x1a90] sm:$0xf]  ;;  %v11079_v14 = vor.u32 %v12810_v3, %v11078_v2  ;;  %7271 = vmatpush.bf16.msrb.mxu3 %v11879_v7  ;;  %v8424_v3 = vld [vmem:[%s19558_s1 + $0x3f0] sm:$0xf0] }
 0x475   :  { %v12874_v39 = vld [vmem:[%s19558_s1 + $0x1aac] sm:$0xf0]  ;;  %v8680_v7 = vld [vmem:[%s19558_s1 + $0x5f0] sm:$0xf0]  ;;  %v8427_v26 = vor.u32 %v12142_v60, %v8424_v3 }
 0x476   :  { %v11590_v12 = vld [vmem:[%s19558_s1 + $0x1c90] sm:$0xf]  ;;  %v11335_v18 = vor.u32 %v12874_v39, %v11334_v5  ;;  %7233 = vmatpush.bf16.msrb.mxu0 %v11079_v14  ;;  %v12206_v5 = vld [vmem:[%s19558_s1 + $0x5d4] sm:$0xf]  ;;  %v6965_v39 = vadd.f32 %v16865_v1, %v6952_v54  ;;  %v8171_v14 = vor.u32 %v12078_v61, %v8168_v63 }
 0x477   :  { %v12938_v8 = vld [vmem:[%s19558_s1 + $0x1cac] sm:$0xf0]  ;;  %v12070_v1 = vld [vmem:[%s19558_s1 + $0x194] sm:$0xf] }
 0x478   :  { %v11846_v9 = vld [vmem:[%s19558_s1 + $0x1e90] sm:$0xf]  ;;  %v11591_v22 = vor.u32 %v12938_v8, %v11590_v12  ;;  %7246 = vmatpush.bf16.msrb.mxu1 %v11335_v18  ;;  %v6978_v17 = vadd.f32 %v17015_v27, %v6965_v39  ;;  %v8683_v18 = vor.u32 %v12206_v5, %v8680_v7  ;;  %v8392_v27 = vld [vmem:[%s19558_s1 + $0x3b0] sm:$0xf0]  ;;  %v7029_v5 = vpop.f32.mrf.mxu0 }
 0x479   :  { %v13002_v10 = vld [vmem:[%s19558_s1 + $0x1eac] sm:$0xf0]  ;;  %v12126_v54 = vld [vmem:[%s19558_s1 + $0x354] sm:$0xf] }
 0x47a   :  { %v11046_v55 = vld [vmem:[%s19558_s1 + $0x1850] sm:$0xf]  ;;  %v11847_v40 = vor.u32 %v13002_v10, %v11846_v9  ;;  %7259 = vmatpush.bf16.msrb.mxu2 %v11591_v22  ;;  %v12270_v9 = vld [vmem:[%s19558_s1 + $0x7d4] sm:$0xf] }
 0x47b   :  { %v12802_v36 = vld [vmem:[%s19558_s1 + $0x186c] sm:$0xf0]  ;;  %v8936_v10 = vld [vmem:[%s19558_s1 + $0x7f0] sm:$0xf0] }
 0x47c   :  { %v11302_v32 = vld [vmem:[%s19558_s1 + $0x1a50] sm:$0xf]  ;;  %v11047_v11 = vor.u32 %v12802_v36, %v11046_v55  ;;  %7272 = vmatpush.bf16.msrb.mxu3 %v11847_v40  ;;  %v8136_v22 = vld [vmem:[%s19558_s1 + $0x1b0] sm:$0xf0]  ;;  %v8939_v36 = vor.u32 %v12270_v9, %v8936_v10 }
 0x47d   :  { %v12866_v19 = vld [vmem:[%s19558_s1 + $0x1a6c] sm:$0xf0]  ;;  %v12134_v55 = vld [vmem:[%s19558_s1 + $0x394] sm:$0xf] }
 0x47e   :  { %v11558_v49 = vld [vmem:[%s19558_s1 + $0x1c50] sm:$0xf]  ;;  %v11303_v50 = vor.u32 %v12866_v19, %v11302_v32  ;;  %7234 = vmatpush.bf16.msrb.mxu0 %v11047_v11  ;;  %v12198_v32 = vld [vmem:[%s19558_s1 + $0x594] sm:$0xf] }
 0x47f   :  { %v12930_v34 = vld [vmem:[%s19558_s1 + $0x1c6c] sm:$0xf0]  ;;  %v8648_v40 = vld [vmem:[%s19558_s1 + $0x5b0] sm:$0xf0] }
 0x480   :  { %v11814_v37 = vld [vmem:[%s19558_s1 + $0x1e50] sm:$0xf]  ;;  %v11559_v51 = vor.u32 %v12930_v34, %v11558_v49  ;;  %7247 = vmatpush.bf16.msrb.mxu1 %v11303_v50  ;;  %v12262_v19 = vld [vmem:[%s19558_s1 + $0x794] sm:$0xf]  ;;  %v8139_v34 = vor.u32 %v12070_v1, %v8136_v22  ;;  %v8651_v11 = vor.u32 %v12198_v32, %v8648_v40 }
 0x481   :  { %v12994_v43 = vld [vmem:[%s19558_s1 + $0x1e6c] sm:$0xf0]  ;;  %v8904_v49 = vld [vmem:[%s19558_s1 + $0x7b0] sm:$0xf0] }
 0x482   :  { %v11014_v45 = vld [vmem:[%s19558_s1 + $0x1810] sm:$0xf]  ;;  %v11815_v53 = vor.u32 %v12994_v43, %v11814_v37  ;;  %7260 = vmatpush.bf16.msrb.mxu2 %v11559_v51  ;;  %v6991_v37 = vadd.f32 %v17023_v47, %v6978_v17  ;;  %v8395_v43 = vor.u32 %v12134_v55, %v8392_v27  ;;  %v8907_v47 = vor.u32 %v12262_v19, %v8904_v49  ;;  %v8360_v50 = vld [vmem:[%s19558_s1 + $0x370] sm:$0xf0] }
 0x483   :  { %v12794_v48 = vld [vmem:[%s19558_s1 + $0x182c] sm:$0xf0]  ;;  %v12190_v51 = vld [vmem:[%s19558_s1 + $0x554] sm:$0xf] }
 0x484   :  { %v11270_v46 = vld [vmem:[%s19558_s1 + $0x1a10] sm:$0xf]  ;;  %v11015_v2 = vor.u32 %v12794_v48, %v11014_v45  ;;  %7273 = vmatpush.bf16.msrb.mxu3 %v11815_v53  ;;  %v12062_v45 = vld [vmem:[%s19558_s1 + $0x154] sm:$0xf] }
 0x485   :  { %v12858_v62 = vld [vmem:[%s19558_s1 + $0x1a2c] sm:$0xf0]  ;;  %v8104_v48 = vld [vmem:[%s19558_s1 + $0x170] sm:$0xf0] }
 0x486   :  { %v11526_v52 = vld [vmem:[%s19558_s1 + $0x1c10] sm:$0xf]  ;;  %v11271_v12 = vor.u32 %v12858_v62, %v11270_v46  ;;  %7235 = vmatpush.bf16.msrb.mxu0 %v11015_v2  ;;  %v8616_v46 = vld [vmem:[%s19558_s1 + $0x570] sm:$0xf0]  ;;  %v7004_v62 = vadd.f32 %v17060_v59, %v6991_v37 }
 0x487   :  { %v12922_v16 = vld [vmem:[%s19558_s1 + $0x1c2c] sm:$0xf0]  ;;  %v8872_v53 = vld [vmem:[%s19558_s1 + $0x770] sm:$0xf0]  ;;  %v8619_v59 = vor.u32 %v12190_v51, %v8616_v46 }
 0x488   :  { %v11782_v56 = vld [vmem:[%s19558_s1 + $0x1e10] sm:$0xf]  ;;  %v11527_v8 = vor.u32 %v12922_v16, %v11526_v52  ;;  %7248 = vmatpush.bf16.msrb.mxu1 %v11271_v12  ;;  %v12254_v52 = vld [vmem:[%s19558_s1 + $0x754] sm:$0xf]  ;;  %v8107_v16 = vor.u32 %v12062_v45, %v8104_v48  ;;  %v7017_v3 = vadd.f32 %v17071_v24, %v7004_v62  ;;  %v7031_v62 = vpop.f32.mrf.mxu0 }
 0x489   :  { %v12986_v57 = vld [vmem:[%s19558_s1 + $0x1e2c] sm:$0xf0]  ;;  %7236 = vmatmul.bf16.vlgmr.msrb.gmra.mxu0 %v13931_v23  ;;  %v12118_v61 = vld [vmem:[%s19558_s1 + $0x314] sm:$0xf]  ;;  %v8875_v63 = vor.u32 %v12254_v52, %v8872_v53 }
 0x48a   :  { %v11783_v13 = vor.u32 %v12986_v57, %v11782_v56  ;;  %7261 = vmatpush.bf16.msrb.mxu2 %v11527_v8  ;;  %7280 = vmatpush.bf16.msra.mxu0 %v8171_v14  ;;  %v8363_v56 = vor.u32 %v12126_v54, %v8360_v50  ;;  %v12054_v57 = vld [vmem:[%s19558_s1 + $0x114] sm:$0xf]  ;;  %v7042_v8 = vpop.f32.mrf.mxu1  ;;  %v7030_v9 = vadd.f32 %v7029_v5, %v7017_v3  ;;  %v7068_v50 = vpop.f32.mrf.mxu3  ;;  %v7906_v3 = vmax.f32 %v16466_v15, 0.0 }
 0x48b   :  { %7249 = vmatmul.bf16.vlgmr.msrb.gmra.mxu1 %v13944_v31  ;;  %v8328_v60 = vld [vmem:[%s19558_s1 + $0x330] sm:$0xf0]  ;;  %v8075_v12 = vor.u32 %v12054_v57, %v8072_v58 }
 0x48c   :  { %7274 = vmatpush.bf16.msrb.mxu3 %v11783_v13  ;;  %7293 = vmatpush.bf16.msra.mxu1 %v8427_v26  ;;  %v12182_v0 = vld [vmem:[%s19558_s1 + $0x514] sm:$0xf]  ;;  %v8331_v10 = vor.u32 %v12118_v61, %v8328_v60  ;;  %v7043_v32 = vadd.f32 %v7042_v8, %v7030_v9 }
 0x48d   :  { %7262 = vmatmul.bf16.vlgmr.msrb.gmra.mxu2 %v13942_v28  ;;  %v8584_v2 = vld [vmem:[%s19558_s1 + $0x530] sm:$0xf0] }
 0x48e   :  { %7306 = vmatpush.bf16.msra.mxu2 %v8683_v18  ;;  %7281 = vmatpush.bf16.msra.mxu0 %v8139_v34  ;;  %v12246_v7 = vld [vmem:[%s19558_s1 + $0x714] sm:$0xf]  ;;  %v8587_v13 = vor.u32 %v12182_v0, %v8584_v2 }
 0x48f   :  { %7275 = vmatmul.bf16.vlgmr.msrb.gmra.mxu3 %v13952_v35  ;;  %v8840_v39 = vld [vmem:[%s19558_s1 + $0x730] sm:$0xf0] }
 0x490   :  { %7319 = vmatpush.bf16.msra.mxu3 %v8939_v36  ;;  %7294 = vmatpush.bf16.msra.mxu1 %v8395_v43  ;;  %v12046_v24 = vld [vmem:[%s19558_s1 + $0xd4] sm:$0xf]  ;;  %v8843_v26 = vor.u32 %v12246_v7, %v8840_v39 }
 0x491   :  { %v8040_v14 = vld [vmem:[%s19558_s1 + $0xf0] sm:$0xf0] }
 0x492   :  { %7307 = vmatpush.bf16.msra.mxu2 %v8651_v11  ;;  %7282 = vmatpush.bf16.msra.mxu0 %v8107_v16  ;;  %v12110_v17 = vld [vmem:[%s19558_s1 + $0x2d4] sm:$0xf]  ;;  %v8043_v27 = vor.u32 %v12046_v24, %v8040_v14  ;;  %v7055_v11 = vpop.f32.mrf.mxu2  ;;  %v7044_v53 = vpop.f32.mrf.mxu1 }
 0x493   :  { %v8296_v18 = vld [vmem:[%s19558_s1 + $0x2f0] sm:$0xf0] }
 0x494   :  { %7320 = vmatpush.bf16.msra.mxu3 %v8907_v47  ;;  %7295 = vmatpush.bf16.msra.mxu1 %v8363_v56  ;;  %v12174_v1 = vld [vmem:[%s19558_s1 + $0x4d4] sm:$0xf]  ;;  %v8299_v40 = vor.u32 %v12110_v17, %v8296_v18  ;;  %v7056_v47 = vadd.f32 %v7055_v11, %v7043_v32 }
 0x495   :  { %v8552_v22 = vld [vmem:[%s19558_s1 + $0x4f0] sm:$0xf0] }
 0x496   :  { %7308 = vmatpush.bf16.msra.mxu2 %v8619_v59  ;;  %v12238_v55 = vld [vmem:[%s19558_s1 + $0x6d4] sm:$0xf]  ;;  %7283 = vmatpush.bf16.msra.mxu0 %v8075_v12  ;;  %v8555_v19 = vor.u32 %v12174_v1, %v8552_v22  ;;  %v7069_v16 = vadd.f32 %v7068_v50, %v7056_v47 }
 0x497   :  { %v8808_v36 = vld [vmem:[%s19558_s1 + $0x6f0] sm:$0xf0] }
 0x498   :  { %7321 = vmatpush.bf16.msra.mxu3 %v8875_v63  ;;  %7296 = vmatpush.bf16.msra.mxu1 %v8331_v10  ;;  %v12038_v49 = vld [vmem:[%s19558_s1 + $0x94] sm:$0xf]  ;;  %v8811_v43 = vor.u32 %v12238_v55, %v8808_v36  ;;  %v7907_v5 = vmax.f32 %v7069_v16, 0.0 }
 0x499   :  { %v8008_v34 = vld [vmem:[%s19558_s1 + $0xb0] sm:$0xf0] }
 0x49a   :  { %7309 = vmatpush.bf16.msra.mxu2 %v8587_v13  ;;  %v12102_v37 = vld [vmem:[%s19558_s1 + $0x294] sm:$0xf]  ;;  %7284 = vmatpush.bf16.msra.mxu0 %v8043_v27  ;;  %v8011_v52 = vor.u32 %v12038_v49, %v8008_v34  ;;  %v7913_v10 = vpack.c.bf16 %v7907_v5, %v7906_v3  ;;  %v7057_v36 = vpop.f32.mrf.mxu2 }
 0x49b   :  { %v8264_v45 = vld [vmem:[%s19558_s1 + $0x2b0] sm:$0xf0] }
 0x49c   :  { %7322 = vmatpush.bf16.msra.mxu3 %v8843_v26  ;;  %v12166_v48 = vld [vmem:[%s19558_s1 + $0x494] sm:$0xf]  ;;  %7297 = vmatpush.bf16.msra.mxu1 %v8299_v40  ;;  %v8267_v56 = vor.u32 %v12102_v37, %v8264_v45  ;;  %7917 = vst [vmem:[%s19561_s3 + $0x8] sm:$0xff] %v7913_v10  ;;  %v7070_v40 = vpop.f32.mrf.mxu3 }
 0x49d   :  { %v8520_v54 = vld [vmem:[%s19558_s1 + $0x4b0] sm:$0xf0] }
 0x49e   :  { %v12230_v51 = vld [vmem:[%s19558_s1 + $0x694] sm:$0xf]  ;;  %7310 = vmatpush.bf16.msra.mxu2 %v8555_v19  ;;  %v8523_v59 = vor.u32 %v12166_v48, %v8520_v54  ;;  %7285 = vmatpush.bf16.msra.mxu0 %v8011_v52 }
 0x49f   :  { %v8776_v46 = vld [vmem:[%s19558_s1 + $0x6b0] sm:$0xf0] }
 0x4a0   :  { %v12030_v57 = vld [vmem:[%s19558_s1 + $0x54] sm:$0xf]  ;;  %7323 = vmatpush.bf16.msra.mxu3 %v8811_v43  ;;  %v8779_v63 = vor.u32 %v12230_v51, %v8776_v46  ;;  %7298 = vmatpush.bf16.msra.mxu1 %v8267_v56 }
 0x4a1   :  { %v7976_v58 = vld [vmem:[%s19558_s1 + $0x70] sm:$0xf0] }
 0x4a2   :  { %v12094_v61 = vld [vmem:[%s19558_s1 + $0x254] sm:$0xf]  ;;  %v7979_v12 = vor.u32 %v12030_v57, %v7976_v58  ;;  %7311 = vmatpush.bf16.msra.mxu2 %v8523_v59 }
 0x4a3   :  { %v8232_v60 = vld [vmem:[%s19558_s1 + $0x270] sm:$0xf0] }
 0x4a4   :  { %v12158_v0 = vld [vmem:[%s19558_s1 + $0x454] sm:$0xf]  ;;  %v8235_v13 = vor.u32 %v12094_v61, %v8232_v60  ;;  %7324 = vmatpush.bf16.msra.mxu3 %v8779_v63  ;;  %7286 = vmatpush.bf16.msra.mxu0 %v7979_v12 }
 0x4a5   :  { %v8488_v2 = vld [vmem:[%s19558_s1 + $0x470] sm:$0xf0] }
 0x4a6   :  { %v12222_v7 = vld [vmem:[%s19558_s1 + $0x654] sm:$0xf]  ;;  %v8491_v24 = vor.u32 %v12158_v0, %v8488_v2  ;;  %7299 = vmatpush.bf16.msra.mxu1 %v8235_v13 }
 0x4a7   :  { %v8744_v39 = vld [vmem:[%s19558_s1 + $0x670] sm:$0xf0] }
 0x4a8   :  { %v12022_v8 = vld [vmem:[%s19558_s1 + $0x14] sm:$0xf]  ;;  %v8747_v18 = vor.u32 %v12222_v7, %v8744_v39  ;;  %7312 = vmatpush.bf16.msra.mxu2 %v8491_v24 }
 0x4a9   :  { %v7944_v9 = vld [vmem:[%s19558_s1 + $0x30] sm:$0xf0] }
 0x4aa   :  { %v12086_v15 = vld [vmem:[%s19558_s1 + $0x214] sm:$0xf]  ;;  %v7947_v19 = vor.u32 %v12022_v8, %v7944_v9  ;;  %7325 = vmatpush.bf16.msra.mxu3 %v8747_v18 }
 0x4ab   :  { %v8200_v14 = vld [vmem:[%s19558_s1 + $0x230] sm:$0xf0] }
 0x4ac   :  { %v12150_v17 = vld [vmem:[%s19558_s1 + $0x414] sm:$0xf]  ;;  %v8203_v43 = vor.u32 %v12086_v15, %v8200_v14  ;;  %7287 = vmatpush.bf16.msra.mxu0 %v7947_v19  ;;  %v7081_v19 = vpop.f32.mrf.mxu0 }
 0x4ad   :  { %v8456_v26 = vld [vmem:[%s19558_s1 + $0x430] sm:$0xf0] }
 0x4ae   :  { %v12214_v1 = vld [vmem:[%s19558_s1 + $0x614] sm:$0xf]  ;;  %v8459_v11 = vor.u32 %v12150_v17, %v8456_v26  ;;  %7300 = vmatpush.bf16.msra.mxu1 %v8203_v43  ;;  %v13047_v26 = vld [vmem:[%s19560_s2] sm:$0xff] }
 0x4af   :  { %v8712_v22 = vld [vmem:[%s19558_s1 + $0x630] sm:$0xf0]  ;;  %7288 = vmatmul.bf16.vlgmr.msra.gmra.mxu0 %v13369_v20  ;;  %v1052_v18 = vperm.slane %v13047_v26, 4 }
 0x4b0   :  { %v12334_v55 = vld [vmem:[%s19558_s1 + $0x9d4] sm:$0xf]  ;;  %v8715_v54 = vor.u32 %v12214_v1, %v8712_v22  ;;  %7313 = vmatpush.bf16.msra.mxu2 %v8459_v11 }
 0x4b1   :  { %v9192_v27 = vld [vmem:[%s19558_s1 + $0x9f0] sm:$0xf0]  ;;  %7301 = vmatmul.bf16.vlgmr.msra.gmra.mxu1 %v13372_v21 }
 0x4b2   :  { %v12398_v32 = vld [vmem:[%s19558_s1 + $0xbd4] sm:$0xf]  ;;  %v9195_v47 = vor.u32 %v12334_v55, %v9192_v27  ;;  %7326 = vmatpush.bf16.msra.mxu3 %v8715_v54 }
 0x4b3   :  { %v9448_v49 = vld [vmem:[%s19558_s1 + $0xbf0] sm:$0xf0]  ;;  %7314 = vmatmul.bf16.vlgmr.msra.gmra.mxu2 %v13337_v4 }
 0x4b4   :  { %v12462_v34 = vld [vmem:[%s19558_s1 + $0xdd4] sm:$0xf]  ;;  %v9451_v50 = vor.u32 %v12398_v32, %v9448_v49  ;;  %7332 = vmatpush.bf16.msrb.mxu0 %v9195_v47 }
 0x4b5   :  { %v9704_v37 = vld [vmem:[%s19558_s1 + $0xdf0] sm:$0xf0]  ;;  %7327 = vmatmul.bf16.vlgmr.msra.gmra.mxu3 %v13342_v6 }
 0x4b6   :  { %v12526_v45 = vld [vmem:[%s19558_s1 + $0xfd4] sm:$0xf]  ;;  %v9707_v51 = vor.u32 %v12462_v34, %v9704_v37  ;;  %7345 = vmatpush.bf16.msrb.mxu1 %v9451_v50 }
 0x4b7   :  { %v9960_v48 = vld [vmem:[%s19558_s1 + $0xff0] sm:$0xf0] }
 0x4b8   :  { %v12326_v46 = vld [vmem:[%s19558_s1 + $0x994] sm:$0xf]  ;;  %v9963_v53 = vor.u32 %v12526_v45, %v9960_v48  ;;  %7358 = vmatpush.bf16.msrb.mxu2 %v9707_v51  ;;  %v7082_v45 = vadd.f32 %v7081_v19, %v1052_v18  ;;  %v7094_v48 = vpop.f32.mrf.mxu1 }
 0x4b9   :  { %v9160_v62 = vld [vmem:[%s19558_s1 + $0x9b0] sm:$0xf0] }
 0x4ba   :  { %v12390_v52 = vld [vmem:[%s19558_s1 + $0xb94] sm:$0xf]  ;;  %v9163_v61 = vor.u32 %v12326_v46, %v9160_v62  ;;  %7371 = vmatpush.bf16.msrb.mxu3 %v9963_v53 }
 0x4bb   :  { %v9416_v16 = vld [vmem:[%s19558_s1 + $0xbb0] sm:$0xf0] }
 0x4bc   :  { %v12454_v56 = vld [vmem:[%s19558_s1 + $0xd94] sm:$0xf]  ;;  %v9419_v63 = vor.u32 %v12390_v52, %v9416_v16  ;;  %7333 = vmatpush.bf16.msrb.mxu0 %v9163_v61  ;;  %v7095_v52 = vadd.f32 %v7094_v48, %v7082_v45  ;;  %v7107_v61 = vpop.f32.mrf.mxu2 }
 0x4bd   :  { %v9672_v59 = vld [vmem:[%s19558_s1 + $0xdb0] sm:$0xf0] }
 0x4be   :  { %v12518_v57 = vld [vmem:[%s19558_s1 + $0xf94] sm:$0xf]  ;;  %v9675_v60 = vor.u32 %v12454_v56, %v9672_v59  ;;  %7346 = vmatpush.bf16.msrb.mxu1 %v9419_v63 }
 0x4bf   :  { %v9928_v58 = vld [vmem:[%s19558_s1 + $0xfb0] sm:$0xf0] }
 0x4c0   :  { %v12318_v0 = vld [vmem:[%s19558_s1 + $0x954] sm:$0xf]  ;;  %v9931_v5 = vor.u32 %v12518_v57, %v9928_v58  ;;  %7359 = vmatpush.bf16.msrb.mxu2 %v9675_v60 }
 0x4c1   :  { %v9128_v2 = vld [vmem:[%s19558_s1 + $0x970] sm:$0xf0] }
 0x4c2   :  { %v12382_v3 = vld [vmem:[%s19558_s1 + $0xb54] sm:$0xf]  ;;  %v9131_v15 = vor.u32 %v12318_v0, %v9128_v2  ;;  %7372 = vmatpush.bf16.msrb.mxu3 %v9931_v5  ;;  %v7120_v5 = vpop.f32.mrf.mxu3 }
 0x4c3   :  { %v9384_v7 = vld [vmem:[%s19558_s1 + $0xb70] sm:$0xf0] }
 0x4c4   :  { %v12446_v39 = vld [vmem:[%s19558_s1 + $0xd54] sm:$0xf]  ;;  %v9387_v13 = vor.u32 %v12382_v3, %v9384_v7  ;;  %7334 = vmatpush.bf16.msrb.mxu0 %v9131_v15  ;;  %v7108_v3 = vadd.f32 %v7107_v61, %v7095_v52 }
 0x4c5   :  { %v9640_v12 = vld [vmem:[%s19558_s1 + $0xd70] sm:$0xf0] }
 0x4c6   :  { %v12510_v8 = vld [vmem:[%s19558_s1 + $0xf54] sm:$0xf]  ;;  %v9643_v24 = vor.u32 %v12446_v39, %v9640_v12  ;;  %7347 = vmatpush.bf16.msrb.mxu1 %v9387_v13 }
 0x4c7   :  { %v9896_v9 = vld [vmem:[%s19558_s1 + $0xf70] sm:$0xf0] }
 0x4c8   :  { %v12310_v10 = vld [vmem:[%s19558_s1 + $0x914] sm:$0xf]  ;;  %v9899_v1 = vor.u32 %v12510_v8, %v9896_v9  ;;  %7360 = vmatpush.bf16.msrb.mxu2 %v9643_v24  ;;  %v17485_v8 = vadd.f32 %v7120_v5, %v7108_v3  ;;  %v7083_v9 = vpop.f32.mrf.mxu0 }
 0x4c9   :  { %v9096_v14 = vld [vmem:[%s19558_s1 + $0x930] sm:$0xf0] }
 0x4ca   :  { %v12374_v17 = vld [vmem:[%s19558_s1 + $0xb14] sm:$0xf]  ;;  %v9099_v40 = vor.u32 %v12310_v10, %v9096_v14  ;;  %7373 = vmatpush.bf16.msrb.mxu3 %v9899_v1 }
 0x4cb   :  { %v9352_v22 = vld [vmem:[%s19558_s1 + $0xb30] sm:$0xf0] }
 0x4cc   :  { %v12438_v55 = vld [vmem:[%s19558_s1 + $0xd14] sm:$0xf]  ;;  %v9355_v49 = vor.u32 %v12374_v17, %v9352_v22  ;;  %7335 = vmatpush.bf16.msrb.mxu0 %v9099_v40  ;;  %v7096_v17 = vpop.f32.mrf.mxu1 }
 0x4cd   :  { %v9608_v36 = vld [vmem:[%s19558_s1 + $0xd30] sm:$0xf0] }
 0x4ce   :  { %v12502_v27 = vld [vmem:[%s19558_s1 + $0xf14] sm:$0xf]  ;;  %v9611_v34 = vor.u32 %v12438_v55, %v9608_v36  ;;  %7348 = vmatpush.bf16.msrb.mxu1 %v9355_v49 }
 0x4cf   :  { %v9864_v32 = vld [vmem:[%s19558_s1 + $0xf30] sm:$0xf0] }
 0x4d0   :  { %v12302_v37 = vld [vmem:[%s19558_s1 + $0x8d4] sm:$0xf]  ;;  %v9867_v54 = vor.u32 %v12502_v27, %v9864_v32  ;;  %7361 = vmatpush.bf16.msrb.mxu2 %v9611_v34 }
 0x4d1   :  { %v9064_v43 = vld [vmem:[%s19558_s1 + $0x8f0] sm:$0xf0] }
 0x4d2   :  { %v12366_v11 = vld [vmem:[%s19558_s1 + $0xad4] sm:$0xf]  ;;  %v9067_v53 = vor.u32 %v12302_v37, %v9064_v43  ;;  %7374 = vmatpush.bf16.msrb.mxu3 %v9867_v54 }
 0x4d3   :  { %v9320_v47 = vld [vmem:[%s19558_s1 + $0xaf0] sm:$0xf0] }
 0x4d4   :  { %v12430_v50 = vld [vmem:[%s19558_s1 + $0xcd4] sm:$0xf]  ;;  %v9323_v16 = vor.u32 %v12366_v11, %v9320_v47  ;;  %7336 = vmatpush.bf16.msrb.mxu0 %v9067_v53  ;;  %v7109_v11 = vpop.f32.mrf.mxu2 }
 0x4d5   :  { %v9576_v51 = vld [vmem:[%s19558_s1 + $0xcf0] sm:$0xf0] }
 0x4d6   :  { %v12494_v46 = vld [vmem:[%s19558_s1 + $0xed4] sm:$0xf]  ;;  %v9579_v56 = vor.u32 %v12430_v50, %v9576_v51  ;;  %7349 = vmatpush.bf16.msrb.mxu1 %v9323_v16  ;;  %v7122_v50 = vpop.f32.mrf.mxu3 }
 0x4d7   :  { %v9832_v62 = vld [vmem:[%s19558_s1 + $0xef0] sm:$0xf0] }
 0x4d8   :  { %v12294_v59 = vld [vmem:[%s19558_s1 + $0x894] sm:$0xf]  ;;  %v9835_v63 = vor.u32 %v12494_v46, %v9832_v62  ;;  %7362 = vmatpush.bf16.msrb.mxu2 %v9579_v56 }
 0x4d9   :  { %v9032_v57 = vld [vmem:[%s19558_s1 + $0x8b0] sm:$0xf0] }
 0x4da   :  { %v12358_v58 = vld [vmem:[%s19558_s1 + $0xa94] sm:$0xf]  ;;  %v9035_v12 = vor.u32 %v12294_v59, %v9032_v57  ;;  %7375 = vmatpush.bf16.msrb.mxu3 %v9835_v63 }
 0x4db   :  { %v9288_v60 = vld [vmem:[%s19558_s1 + $0xab0] sm:$0xf0] }
 0x4dc   :  { %v12422_v0 = vld [vmem:[%s19558_s1 + $0xc94] sm:$0xf]  ;;  %v9291_v15 = vor.u32 %v12358_v58, %v9288_v60  ;;  %7337 = vmatpush.bf16.msrb.mxu0 %v9035_v12 }
 0x4dd   :  { %v9544_v2 = vld [vmem:[%s19558_s1 + $0xcb0] sm:$0xf0] }
 0x4de   :  { %v12486_v7 = vld [vmem:[%s19558_s1 + $0xe94] sm:$0xf]  ;;  %v9547_v10 = vor.u32 %v12422_v0, %v9544_v2  ;;  %7350 = vmatpush.bf16.msrb.mxu1 %v9291_v15 }
 0x4df   :  { %v9800_v39 = vld [vmem:[%s19558_s1 + $0xeb0] sm:$0xf0] }
 0x4e0   :  { %v12286_v13 = vld [vmem:[%s19558_s1 + $0x854] sm:$0xf]  ;;  %v9803_v26 = vor.u32 %v12486_v7, %v9800_v39  ;;  %7363 = vmatpush.bf16.msrb.mxu2 %v9547_v10 }
 0x4e1   :  { %v9000_v24 = vld [vmem:[%s19558_s1 + $0x870] sm:$0xf0] }
 0x4e2   :  { %v12350_v14 = vld [vmem:[%s19558_s1 + $0xa54] sm:$0xf]  ;;  %v9003_v27 = vor.u32 %v12286_v13, %v9000_v24  ;;  %7376 = vmatpush.bf16.msrb.mxu3 %v9803_v26 }
 0x4e3   :  { %v9256_v18 = vld [vmem:[%s19558_s1 + $0xa70] sm:$0xf0] }
 0x4e4   :  { %v12414_v1 = vld [vmem:[%s19558_s1 + $0xc54] sm:$0xf]  ;;  %v9259_v19 = vor.u32 %v12350_v14, %v9256_v18  ;;  %7338 = vmatpush.bf16.msrb.mxu0 %v9003_v27 }
 0x4e5   :  { %v9512_v22 = vld [vmem:[%s19558_s1 + $0xc70] sm:$0xf0] }
 0x4e6   :  { %v12478_v55 = vld [vmem:[%s19558_s1 + $0xe54] sm:$0xf]  ;;  %v9515_v49 = vor.u32 %v12414_v1, %v9512_v22  ;;  %7351 = vmatpush.bf16.msrb.mxu1 %v9259_v19 }
 0x4e7   :  { %v9768_v36 = vld [vmem:[%s19558_s1 + $0xe70] sm:$0xf0] }
 0x4e8   :  { %v12278_v32 = vld [vmem:[%s19558_s1 + $0x814] sm:$0xf]  ;;  %v9771_v45 = vor.u32 %v12478_v55, %v9768_v36  ;;  %7364 = vmatpush.bf16.msrb.mxu2 %v9515_v49 }
 0x4e9   :  { %v8968_v40 = vld [vmem:[%s19558_s1 + $0x830] sm:$0xf0] }
 0x4ea   :  { %v12342_v34 = vld [vmem:[%s19558_s1 + $0xa14] sm:$0xf]  ;;  %v8971_v52 = vor.u32 %v12278_v32, %v8968_v40  ;;  %7377 = vmatpush.bf16.msrb.mxu3 %v9771_v45 }
 0x4eb   :  { %v9224_v37 = vld [vmem:[%s19558_s1 + $0xa30] sm:$0xf0] }
 0x4ec   :  { %v12406_v43 = vld [vmem:[%s19558_s1 + $0xc14] sm:$0xf]  ;;  %v9227_v59 = vor.u32 %v12342_v34, %v9224_v37  ;;  %7339 = vmatpush.bf16.msrb.mxu0 %v8971_v52 }
 0x4ed   :  { %v9480_v48 = vld [vmem:[%s19558_s1 + $0xc30] sm:$0xf0] }
 0x4ee   :  { %v12470_v54 = vld [vmem:[%s19558_s1 + $0xe14] sm:$0xf]  ;;  %v9483_v57 = vor.u32 %v12406_v43, %v9480_v48  ;;  %7352 = vmatpush.bf16.msrb.mxu1 %v9227_v59 }
 0x4ef   :  { %v9736_v47 = vld [vmem:[%s19558_s1 + $0xe30] sm:$0xf0]  ;;  %7340 = vmatmul.bf16.vlgmr.msrb.gmra.mxu0 %v13528_v41 }
 0x4f0   :  { %v12590_v51 = vld [vmem:[%s19558_s1 + $0x11d4] sm:$0xf]  ;;  %v9739_v63 = vor.u32 %v12470_v54, %v9736_v47  ;;  %7365 = vmatpush.bf16.msrb.mxu2 %v9483_v57 }
 0x4f1   :  { %v10216_v46 = vld [vmem:[%s19558_s1 + $0x11f0] sm:$0xf0]  ;;  %7353 = vmatmul.bf16.vlgmr.msrb.gmra.mxu1 %v13532_v44 }
 0x4f2   :  { %v12654_v62 = vld [vmem:[%s19558_s1 + $0x13d4] sm:$0xf]  ;;  %v10219_v60 = vor.u32 %v12590_v51, %v10216_v46  ;;  %7378 = vmatpush.bf16.msrb.mxu3 %v9739_v63 }
 0x4f3   :  { %v10472_v53 = vld [vmem:[%s19558_s1 + $0x13f0] sm:$0xf0]  ;;  %7366 = vmatmul.bf16.vlgmr.msrb.gmra.mxu2 %v13520_v38 }
 0x4f4   :  { %v12718_v16 = vld [vmem:[%s19558_s1 + $0x15d4] sm:$0xf]  ;;  %v10475_v0 = vor.u32 %v12654_v62, %v10472_v53  ;;  %7384 = vmatpush.bf16.msra.mxu0 %v10219_v60  ;;  %v7133_v62 = vpop.f32.mrf.mxu0 }
 0x4f5   :  { %v10728_v56 = vld [vmem:[%s19558_s1 + $0x15f0] sm:$0xf0]  ;;  %7379 = vmatmul.bf16.vlgmr.msrb.gmra.mxu3 %v13530_v42  ;;  %v7134_v57 = vadd.f32 %v7133_v62, %v17485_v8 }
 0x4f6   :  { %v12782_v58 = vld [vmem:[%s19558_s1 + $0x17d4] sm:$0xf]  ;;  %v10731_v2 = vor.u32 %v12718_v16, %v10728_v56  ;;  %7397 = vmatpush.bf16.msra.mxu1 %v10475_v0 }
 0x4f7   :  { %v10984_v61 = vld [vmem:[%s19558_s1 + $0x17f0] sm:$0xf0] }
 0x4f8   :  { %v12582_v3 = vld [vmem:[%s19558_s1 + $0x1194] sm:$0xf]  ;;  %v10987_v39 = vor.u32 %v12782_v58, %v10984_v61  ;;  %7410 = vmatpush.bf16.msra.mxu2 %v10731_v2  ;;  %v7146_v58 = vpop.f32.mrf.mxu1 }
 0x4f9   :  { %v10184_v5 = vld [vmem:[%s19558_s1 + $0x11b0] sm:$0xf0] }
 0x4fa   :  { %v12646_v7 = vld [vmem:[%s19558_s1 + $0x1394] sm:$0xf]  ;;  %v10187_v24 = vor.u32 %v12582_v3, %v10184_v5  ;;  %7423 = vmatpush.bf16.msra.mxu3 %v10987_v39  ;;  %v7147_v3 = vadd.f32 %v7146_v58, %v7134_v57 }
 0x4fb   :  { %v10440_v12 = vld [vmem:[%s19558_s1 + $0x13b0] sm:$0xf0] }
 0x4fc   :  { %v12710_v9 = vld [vmem:[%s19558_s1 + $0x1594] sm:$0xf]  ;;  %v10443_v14 = vor.u32 %v12646_v7, %v10440_v12  ;;  %7385 = vmatpush.bf16.msra.mxu0 %v10187_v24 }
 0x4fd   :  { %v10696_v15 = vld [vmem:[%s19558_s1 + $0x15b0] sm:$0xf0] }
 0x4fe   :  { %v12774_v10 = vld [vmem:[%s19558_s1 + $0x1794] sm:$0xf]  ;;  %v10699_v17 = vor.u32 %v12710_v9, %v10696_v15  ;;  %7398 = vmatpush.bf16.msra.mxu1 %v10443_v14 }
 0x4ff   :  { %v10952_v13 = vld [vmem:[%s19558_s1 + $0x17b0] sm:$0xf0] }
 0x500   :  { %v12574_v26 = vld [vmem:[%s19558_s1 + $0x1154] sm:$0xf]  ;;  %v10955_v22 = vor.u32 %v12774_v10, %v10952_v13  ;;  %7411 = vmatpush.bf16.msra.mxu2 %v10699_v17  ;;  %v7159_v10 = vpop.f32.mrf.mxu2 }
 0x501   :  { %v10152_v18 = vld [vmem:[%s19558_s1 + $0x1170] sm:$0xf0] }
 0x502   :  { %v12638_v1 = vld [vmem:[%s19558_s1 + $0x1354] sm:$0xf]  ;;  %v10155_v19 = vor.u32 %v12574_v26, %v10152_v18  ;;  %7424 = vmatpush.bf16.msra.mxu3 %v10955_v22  ;;  %v7160_v26 = vadd.f32 %v7159_v10, %v7147_v3  ;;  %v7172_v18 = vpop.f32.mrf.mxu3 }
 0x503   :  { %v10408_v55 = vld [vmem:[%s19558_s1 + $0x1370] sm:$0xf0] }
 0x504   :  { %v12702_v36 = vld [vmem:[%s19558_s1 + $0x1554] sm:$0xf]  ;;  %v10411_v49 = vor.u32 %v12638_v1, %v10408_v55  ;;  %7386 = vmatpush.bf16.msra.mxu0 %v10155_v19 }
 0x505   :  { %v10664_v27 = vld [vmem:[%s19558_s1 + $0x1570] sm:$0xf0] }
 0x506   :  { %v12766_v32 = vld [vmem:[%s19558_s1 + $0x1754] sm:$0xf]  ;;  %v10667_v34 = vor.u32 %v12702_v36, %v10664_v27  ;;  %7399 = vmatpush.bf16.msra.mxu1 %v10411_v49  ;;  %v17684_v36 = vadd.f32 %v7172_v18, %v7160_v26  ;;  %v7135_v27 = vpop.f32.mrf.mxu0 }
 0x507   :  { %v10920_v40 = vld [vmem:[%s19558_s1 + $0x1770] sm:$0xf0] }
 0x508   :  { %v12566_v37 = vld [vmem:[%s19558_s1 + $0x1114] sm:$0xf]  ;;  %v10923_v45 = vor.u32 %v12766_v32, %v10920_v40  ;;  %7412 = vmatpush.bf16.msra.mxu2 %v10667_v34 }
 0x509   :  { %v10120_v43 = vld [vmem:[%s19558_s1 + $0x1130] sm:$0xf0] }
 0x50a   :  { %v12630_v11 = vld [vmem:[%s19558_s1 + $0x1314] sm:$0xf]  ;;  %v10123_v46 = vor.u32 %v12566_v37, %v10120_v43  ;;  %7425 = vmatpush.bf16.msra.mxu3 %v10923_v45  ;;  %v7148_v37 = vpop.f32.mrf.mxu1 }
 0x50b   :  { %v10376_v48 = vld [vmem:[%s19558_s1 + $0x1330] sm:$0xf0] }
 0x50c   :  { %v12694_v54 = vld [vmem:[%s19558_s1 + $0x1514] sm:$0xf]  ;;  %v10379_v52 = vor.u32 %v12630_v11, %v10376_v48  ;;  %7387 = vmatpush.bf16.msra.mxu0 %v10123_v46 }
 0x50d   :  { %v10632_v47 = vld [vmem:[%s19558_s1 + $0x1530] sm:$0xf0] }
 0x50e   :  { %v12758_v50 = vld [vmem:[%s19558_s1 + $0x1714] sm:$0xf]  ;;  %v10635_v53 = vor.u32 %v12694_v54, %v10632_v47  ;;  %7400 = vmatpush.bf16.msra.mxu1 %v10379_v52 }
 0x50f   :  { %v10888_v51 = vld [vmem:[%s19558_s1 + $0x1730] sm:$0xf0] }
 0x510   :  { %v12558_v16 = vld [vmem:[%s19558_s1 + $0x10d4] sm:$0xf]  ;;  %v10891_v61 = vor.u32 %v12758_v50, %v10888_v51  ;;  %7413 = vmatpush.bf16.msra.mxu2 %v10635_v53 }
 0x511   :  { %v10088_v56 = vld [vmem:[%s19558_s1 + $0x10f0] sm:$0xf0] }
 0x512   :  { %v12622_v59 = vld [vmem:[%s19558_s1 + $0x12d4] sm:$0xf]  ;;  %v10091_v5 = vor.u32 %v12558_v16, %v10088_v56  ;;  %7426 = vmatpush.bf16.msra.mxu3 %v10891_v61 }
 0x513   :  { %v10344_v63 = vld [vmem:[%s19558_s1 + $0x12f0] sm:$0xf0] }
 0x514   :  { %v12686_v60 = vld [vmem:[%s19558_s1 + $0x14d4] sm:$0xf]  ;;  %v10347_v7 = vor.u32 %v12622_v59, %v10344_v63  ;;  %7388 = vmatpush.bf16.msra.mxu0 %v10091_v5  ;;  %v7161_v59 = vpop.f32.mrf.mxu2 }
 0x515   :  { %v10600_v0 = vld [vmem:[%s19558_s1 + $0x14f0] sm:$0xf0] }
 0x516   :  { %v12750_v2 = vld [vmem:[%s19558_s1 + $0x16d4] sm:$0xf]  ;;  %v10603_v39 = vor.u32 %v12686_v60, %v10600_v0  ;;  %7401 = vmatpush.bf16.msra.mxu1 %v10347_v7  ;;  %v7174_v60 = vpop.f32.mrf.mxu3 }
 0x517   :  { %v10856_v8 = vld [vmem:[%s19558_s1 + $0x16f0] sm:$0xf0]  ;;  %v7185_v60 = vpop.f32.mrf.mxu0 }
 0x518   :  { %v12550_v12 = vld [vmem:[%s19558_s1 + $0x1094] sm:$0xf]  ;;  %v10859_v13 = vor.u32 %v12750_v2, %v10856_v8  ;;  %7414 = vmatpush.bf16.msra.mxu2 %v10603_v39 }
 0x519   :  { %v10056_v9 = vld [vmem:[%s19558_s1 + $0x10b0] sm:$0xf0] }
 0x51a   :  { %v12614_v15 = vld [vmem:[%s19558_s1 + $0x1294] sm:$0xf]  ;;  %v10059_v55 = vor.u32 %v12550_v12, %v10056_v9  ;;  %7427 = vmatpush.bf16.msra.mxu3 %v10859_v13 }
 0x51b   :  { %v10312_v24 = vld [vmem:[%s19558_s1 + $0x12b0] sm:$0xf0] }
 0x51c   :  { %v12678_v14 = vld [vmem:[%s19558_s1 + $0x1494] sm:$0xf]  ;;  %v10315_v32 = vor.u32 %v12614_v15, %v10312_v24  ;;  %7389 = vmatpush.bf16.msra.mxu0 %v10059_v55 }
 0x51d   :  { %v10568_v17 = vld [vmem:[%s19558_s1 + $0x14b0] sm:$0xf0] }
 0x51e   :  { %v12742_v1 = vld [vmem:[%s19558_s1 + $0x1694] sm:$0xf]  ;;  %v10571_v40 = vor.u32 %v12678_v14, %v10568_v17  ;;  %7402 = vmatpush.bf16.msra.mxu1 %v10315_v32 }
 0x51f   :  { %v10824_v22 = vld [vmem:[%s19558_s1 + $0x16b0] sm:$0xf0] }
 0x520   :  { %v12542_v19 = vld [vmem:[%s19558_s1 + $0x1054] sm:$0xf]  ;;  %v10827_v43 = vor.u32 %v12742_v1, %v10824_v22  ;;  %7415 = vmatpush.bf16.msra.mxu2 %v10571_v40 }
 0x521   :  { %v10024_v49 = vld [vmem:[%s19558_s1 + $0x1070] sm:$0xf0] }
 0x522   :  { %v12606_v34 = vld [vmem:[%s19558_s1 + $0x1254] sm:$0xf]  ;;  %v10027_v50 = vor.u32 %v12542_v19, %v10024_v49  ;;  %7428 = vmatpush.bf16.msra.mxu3 %v10827_v43 }
 0x523   :  { %v10280_v11 = vld [vmem:[%s19558_s1 + $0x1270] sm:$0xf0] }
 0x524   :  { %v12670_v45 = vld [vmem:[%s19558_s1 + $0x1454] sm:$0xf]  ;;  %v10283_v62 = vor.u32 %v12606_v34, %v10280_v11  ;;  %7390 = vmatpush.bf16.msra.mxu0 %v10027_v50 }
 0x525   :  { %v10536_v48 = vld [vmem:[%s19558_s1 + $0x1470] sm:$0xf0] }
 0x526   :  { %v12734_v54 = vld [vmem:[%s19558_s1 + $0x1654] sm:$0xf]  ;;  %v10539_v52 = vor.u32 %v12670_v45, %v10536_v48  ;;  %7403 = vmatpush.bf16.msra.mxu1 %v10283_v62 }
 0x527   :  { %v10792_v47 = vld [vmem:[%s19558_s1 + $0x1670] sm:$0xf0] }
 0x528   :  { %v12534_v51 = vld [vmem:[%s19558_s1 + $0x1014] sm:$0xf]  ;;  %v10795_v57 = vor.u32 %v12734_v54, %v10792_v47  ;;  %7416 = vmatpush.bf16.msra.mxu2 %v10539_v52 }
 0x529   :  { %v9992_v46 = vld [vmem:[%s19558_s1 + $0x1030] sm:$0xf0] }
 0x52a   :  { %v12598_v53 = vld [vmem:[%s19558_s1 + $0x1214] sm:$0xf]  ;;  %v9995_v3 = vor.u32 %v12534_v51, %v9992_v46  ;;  %7429 = vmatpush.bf16.msra.mxu3 %v10795_v57 }
 0x52b   :  { %v10248_v16 = vld [vmem:[%s19558_s1 + $0x1230] sm:$0xf0] }
 0x52c   :  { %v12662_v56 = vld [vmem:[%s19558_s1 + $0x1414] sm:$0xf]  ;;  %v10251_v12 = vor.u32 %v12598_v53, %v10248_v16  ;;  %7391 = vmatpush.bf16.msra.mxu0 %v9995_v3 }
 0x52d   :  { %v10504_v58 = vld [vmem:[%s19558_s1 + $0x1430] sm:$0xf0] }
 0x52e   :  { %v12726_v61 = vld [vmem:[%s19558_s1 + $0x1614] sm:$0xf]  ;;  %v10507_v9 = vor.u32 %v12662_v56, %v10504_v58  ;;  %7404 = vmatpush.bf16.msra.mxu1 %v10251_v12 }
 0x52f   :  { %v10760_v63 = vld [vmem:[%s19558_s1 + $0x1630] sm:$0xf0]  ;;  %7392 = vmatmul.bf16.vlgmr.msra.gmra.mxu0 %v13721_v25 }
 0x530   :  { %v12846_v0 = vld [vmem:[%s19558_s1 + $0x19d4] sm:$0xf]  ;;  %v10763_v13 = vor.u32 %v12726_v61, %v10760_v63  ;;  %7417 = vmatpush.bf16.msra.mxu2 %v10507_v9 }
 0x531   :  { %v11240_v2 = vld [vmem:[%s19558_s1 + $0x19f0] sm:$0xf0]  ;;  %7405 = vmatmul.bf16.vlgmr.msra.gmra.mxu1 %v13734_v30 }
 0x532   :  { %v12910_v8 = vld [vmem:[%s19558_s1 + $0x1bd4] sm:$0xf]  ;;  %v11243_v24 = vor.u32 %v12846_v0, %v11240_v2  ;;  %7430 = vmatpush.bf16.msra.mxu3 %v10763_v13 }
 0x533   :  { %v11496_v5 = vld [vmem:[%s19558_s1 + $0x1bf0] sm:$0xf0]  ;;  %7418 = vmatmul.bf16.vlgmr.msra.gmra.mxu2 %v13732_v29 }
 0x534   :  { %v12974_v7 = vld [vmem:[%s19558_s1 + $0x1dd4] sm:$0xf]  ;;  %v11499_v14 = vor.u32 %v12910_v8, %v11496_v5  ;;  %7436 = vmatpush.bf16.msrb.mxu0 %v11243_v24  ;;  %v7186_v8 = vadd.f32 %v7185_v60, %v17684_v36  ;;  %v7198_v5 = vpop.f32.mrf.mxu1 }
 0x535   :  { %v11752_v39 = vld [vmem:[%s19558_s1 + $0x1df0] sm:$0xf0]  ;;  %7431 = vmatmul.bf16.vlgmr.msra.gmra.mxu3 %v13742_v33 }
 0x536   :  { %v13038_v15 = vld [vmem:[%s19558_s1 + $0x1fd4] sm:$0xf]  ;;  %v11755_v17 = vor.u32 %v12974_v7, %v11752_v39  ;;  %7449 = vmatpush.bf16.msrb.mxu1 %v11499_v14 }
 0x537   :  { %v12008_v10 = vld [vmem:[%s19558_s1 + $0x1ff0] sm:$0xf0] }
 0x538   :  { %v12838_v26 = vld [vmem:[%s19558_s1 + $0x1994] sm:$0xf]  ;;  %v12011_v22 = vor.u32 %v13038_v15, %v12008_v10  ;;  %7462 = vmatpush.bf16.msrb.mxu2 %v11755_v17  ;;  %v7199_v10 = vadd.f32 %v7198_v5, %v7186_v8 }
 0x539   :  { %v11208_v18 = vld [vmem:[%s19558_s1 + $0x19b0] sm:$0xf0] }
 0x53a   :  { %v12902_v1 = vld [vmem:[%s19558_s1 + $0x1b94] sm:$0xf]  ;;  %v11211_v49 = vor.u32 %v12838_v26, %v11208_v18  ;;  %7475 = vmatpush.bf16.msrb.mxu3 %v12011_v22 }
 0x53b   :  { %v11464_v55 = vld [vmem:[%s19558_s1 + $0x1bb0] sm:$0xf0] }
 0x53c   :  { %v12966_v27 = vld [vmem:[%s19558_s1 + $0x1d94] sm:$0xf]  ;;  %v11467_v34 = vor.u32 %v12902_v1, %v11464_v55  ;;  %7437 = vmatpush.bf16.msrb.mxu0 %v11211_v49 }
 0x53d   :  { %v11720_v32 = vld [vmem:[%s19558_s1 + $0x1db0] sm:$0xf0] }
 0x53e   :  { %v13030_v40 = vld [vmem:[%s19558_s1 + $0x1f94] sm:$0xf]  ;;  %v11723_v37 = vor.u32 %v12966_v27, %v11720_v32  ;;  %7450 = vmatpush.bf16.msrb.mxu1 %v11467_v34 }
 0x53f   :  { %v11976_v19 = vld [vmem:[%s19558_s1 + $0x1fb0] sm:$0xf0] }
 0x540   :  { %v12830_v43 = vld [vmem:[%s19558_s1 + $0x1954] sm:$0xf]  ;;  %v11979_v48 = vor.u32 %v13030_v40, %v11976_v19  ;;  %7463 = vmatpush.bf16.msrb.mxu2 %v11723_v37  ;;  %v7211_v19 = vpop.f32.mrf.mxu2 }
 0x541   :  { %v11176_v11 = vld [vmem:[%s19558_s1 + $0x1970] sm:$0xf0] }
 0x542   :  { %v12894_v45 = vld [vmem:[%s19558_s1 + $0x1b54] sm:$0xf]  ;;  %v11179_v62 = vor.u32 %v12830_v43, %v11176_v11  ;;  %7476 = vmatpush.bf16.msrb.mxu3 %v11979_v48  ;;  %v7212_v43 = vadd.f32 %v7211_v19, %v7199_v10  ;;  %v7224_v11 = vpop.f32.mrf.mxu3 }
 0x543   :  { %v11432_v54 = vld [vmem:[%s19558_s1 + $0x1b70] sm:$0xf0] }
 0x544   :  { %v12958_v47 = vld [vmem:[%s19558_s1 + $0x1d54] sm:$0xf]  ;;  %v11435_v52 = vor.u32 %v12894_v45, %v11432_v54  ;;  %7438 = vmatpush.bf16.msrb.mxu0 %v11179_v62  ;;  %v7187_v54 = vpop.f32.mrf.mxu0 }
 0x545   :  { %v11688_v50 = vld [vmem:[%s19558_s1 + $0x1d70] sm:$0xf0]  ;;  %v12139_v54 = vld [vmem:[%s19558_s1 + $0x3b4] sm:$0xf0] }
 0x546   :  { %v13022_v51 = vld [vmem:[%s19558_s1 + $0x1f54] sm:$0xf]  ;;  %v11691_v53 = vor.u32 %v12958_v47, %v11688_v50  ;;  %7451 = vmatpush.bf16.msrb.mxu1 %v11435_v52  ;;  %v7200_v50 = vpop.f32.mrf.mxu1 }
 0x547   :  { %v11944_v46 = vld [vmem:[%s19558_s1 + $0x1f70] sm:$0xf0]  ;;  %v12203_v50 = vld [vmem:[%s19558_s1 + $0x5b4] sm:$0xf0] }
 0x548   :  { %v12822_v16 = vld [vmem:[%s19558_s1 + $0x1914] sm:$0xf]  ;;  %v11947_v57 = vor.u32 %v13022_v51, %v11944_v46  ;;  %7464 = vmatpush.bf16.msrb.mxu2 %v11691_v53  ;;  %v17883_v51 = vadd.f32 %v7224_v11, %v7212_v43  ;;  %v7213_v10 = vpop.f32.mrf.mxu2  ;;  %v8142_v43 = vld [vmem:[%s19558_s1 + $0x198] sm:$0xf] }
 0x549   :  { %v11144_v56 = vld [vmem:[%s19558_s1 + $0x1930] sm:$0xf0]  ;;  %v12075_v11 = vld [vmem:[%s19558_s1 + $0x1b4] sm:$0xf0] }
 0x54a   :  { %v12886_v59 = vld [vmem:[%s19558_s1 + $0x1b14] sm:$0xf]  ;;  %v11147_v3 = vor.u32 %v12822_v16, %v11144_v56  ;;  %7477 = vmatpush.bf16.msrb.mxu3 %v11947_v57  ;;  %v12187_v10 = vld [vmem:[%s19558_s1 + $0x534] sm:$0xf0] }
 0x54b   :  { %v11400_v58 = vld [vmem:[%s19558_s1 + $0x1b30] sm:$0xf0] }
 0x54c   :  { %v12950_v61 = vld [vmem:[%s19558_s1 + $0x1d14] sm:$0xf]  ;;  %v11403_v7 = vor.u32 %v12886_v59, %v11400_v58  ;;  %7439 = vmatpush.bf16.msrb.mxu0 %v11147_v3 }
 0x54d   :  { %v11656_v63 = vld [vmem:[%s19558_s1 + $0x1d30] sm:$0xf0] }
 0x54e   :  { %v13014_v0 = vld [vmem:[%s19558_s1 + $0x1f14] sm:$0xf]  ;;  %v11659_v39 = vor.u32 %v12950_v61, %v11656_v63  ;;  %7452 = vmatpush.bf16.msrb.mxu1 %v11403_v7 }
 0x54f   :  { %v11912_v2 = vld [vmem:[%s19558_s1 + $0x1f30] sm:$0xf0] }
 0x550   :  { %v12814_v12 = vld [vmem:[%s19558_s1 + $0x18d4] sm:$0xf]  ;;  %v11915_v36 = vor.u32 %v13014_v0, %v11912_v2  ;;  %7465 = vmatpush.bf16.msrb.mxu2 %v11659_v39 }
 0x551   :  { %v11112_v9 = vld [vmem:[%s19558_s1 + $0x18f0] sm:$0xf0] }
 0x552   :  { %v12878_v15 = vld [vmem:[%s19558_s1 + $0x1ad4] sm:$0xf]  ;;  %v11115_v18 = vor.u32 %v12814_v12, %v11112_v9  ;;  %7478 = vmatpush.bf16.msrb.mxu3 %v11915_v36 }
 0x553   :  { %v11368_v13 = vld [vmem:[%s19558_s1 + $0x1af0] sm:$0xf0] }
 0x554   :  { %v12942_v24 = vld [vmem:[%s19558_s1 + $0x1cd4] sm:$0xf]  ;;  %v11371_v1 = vor.u32 %v12878_v15, %v11368_v13  ;;  %7440 = vmatpush.bf16.msrb.mxu0 %v11115_v18  ;;  %v8174_v13 = vld [vmem:[%s19558_s1 + $0x1d8] sm:$0xf] }
 0x555   :  { %v11624_v14 = vld [vmem:[%s19558_s1 + $0x1cf0] sm:$0xf0]  ;;  %v12147_v18 = vld [vmem:[%s19558_s1 + $0x3f4] sm:$0xf0] }
 0x556   :  { %v13006_v17 = vld [vmem:[%s19558_s1 + $0x1ed4] sm:$0xf]  ;;  %v11627_v22 = vor.u32 %v12942_v24, %v11624_v14  ;;  %7453 = vmatpush.bf16.msrb.mxu1 %v11371_v1  ;;  %v12083_v24 = vld [vmem:[%s19558_s1 + $0x1f4] sm:$0xf0] }
 0x557   :  { %v11880_v26 = vld [vmem:[%s19558_s1 + $0x1ef0] sm:$0xf0]  ;;  %v8430_v14 = vld [vmem:[%s19558_s1 + $0x3d8] sm:$0xf] }
 0x558   :  { %v12806_v55 = vld [vmem:[%s19558_s1 + $0x1894] sm:$0xf]  ;;  %v11883_v40 = vor.u32 %v13006_v17, %v11880_v26  ;;  %7466 = vmatpush.bf16.msrb.mxu2 %v11627_v22  ;;  %v7226_v17 = vpop.f32.mrf.mxu3  ;;  %v8686_v1 = vld [vmem:[%s19558_s1 + $0x5d8] sm:$0xf] }
 0x559   :  { %v11080_v27 = vld [vmem:[%s19558_s1 + $0x18b0] sm:$0xf0]  ;;  %v12211_v22 = vld [vmem:[%s19558_s1 + $0x5f4] sm:$0xf0] }
 0x55a   :  { %v12870_v32 = vld [vmem:[%s19558_s1 + $0x1a94] sm:$0xf]  ;;  %v11083_v47 = vor.u32 %v12806_v55, %v11080_v27  ;;  %7479 = vmatpush.bf16.msrb.mxu3 %v11883_v40  ;;  %v12275_v40 = vld [vmem:[%s19558_s1 + $0x7f4] sm:$0xf0] }
 0x55b   :  { %v11336_v49 = vld [vmem:[%s19558_s1 + $0x1ab0] sm:$0xf0] }
 0x55c   :  { %v12934_v34 = vld [vmem:[%s19558_s1 + $0x1c94] sm:$0xf]  ;;  %v11339_v46 = vor.u32 %v12870_v32, %v11336_v49  ;;  %7441 = vmatpush.bf16.msrb.mxu0 %v11083_v47  ;;  %v8942_v32 = vld [vmem:[%s19558_s1 + $0x7d8] sm:$0xf]  ;;  %v8175_v49 = vor.u32 %v12083_v24, %v8174_v13  ;;  %v7237_v13 = vpop.f32.mrf.mxu0 }
 0x55d   :  { %v11592_v37 = vld [vmem:[%s19558_s1 + $0x1cb0] sm:$0xf0]  ;;  %v8654_v47 = vld [vmem:[%s19558_s1 + $0x598] sm:$0xf]  ;;  %v7238_v17 = vadd.f32 %v7237_v13, %v17883_v51 }
 0x55e   :  { %v12998_v45 = vld [vmem:[%s19558_s1 + $0x1e94] sm:$0xf]  ;;  %v11595_v62 = vor.u32 %v12934_v34, %v11592_v37  ;;  %7454 = vmatpush.bf16.msrb.mxu1 %v11339_v46  ;;  %v8431_v34 = vor.u32 %v12147_v18, %v8430_v14  ;;  %v8687_v37 = vor.u32 %v12211_v22, %v8686_v1  ;;  %v8910_v46 = vld [vmem:[%s19558_s1 + $0x798] sm:$0xf]  ;;  %v7250_v18 = vpop.f32.mrf.mxu1 }
 0x55f   :  { %v11848_v48 = vld [vmem:[%s19558_s1 + $0x1eb0] sm:$0xf0]  ;;  %v8846_v24 = vld [vmem:[%s19558_s1 + $0x718] sm:$0xf] }
 0x560   :  { %v12798_v52 = vld [vmem:[%s19558_s1 + $0x1854] sm:$0xf]  ;;  %v11851_v56 = vor.u32 %v12998_v45, %v11848_v48  ;;  %7467 = vmatpush.bf16.msrb.mxu2 %v11595_v62  ;;  %v8398_v45 = vld [vmem:[%s19558_s1 + $0x398] sm:$0xf]  ;;  %v8943_v48 = vor.u32 %v12275_v40, %v8942_v32  ;;  %v7251_v40 = vadd.f32 %v7250_v18, %v7238_v17 }
 0x561   :  { %v11048_v53 = vld [vmem:[%s19558_s1 + $0x1870] sm:$0xf0]  ;;  %v12267_v62 = vld [vmem:[%s19558_s1 + $0x7b4] sm:$0xf0] }
 0x562   :  { %v12862_v16 = vld [vmem:[%s19558_s1 + $0x1a54] sm:$0xf]  ;;  %v11051_v60 = vor.u32 %v12798_v52, %v11048_v53  ;;  %7480 = vmatpush.bf16.msrb.mxu3 %v11851_v56  ;;  %v8143_v52 = vor.u32 %v12075_v11, %v8142_v43  ;;  %v8399_v53 = vor.u32 %v12139_v54, %v8398_v45  ;;  %v8110_v56 = vld [vmem:[%s19558_s1 + $0x158] sm:$0xf] }
 0x563   :  { %v11304_v59 = vld [vmem:[%s19558_s1 + $0x1a70] sm:$0xf0]  ;;  %v12251_v14 = vld [vmem:[%s19558_s1 + $0x734] sm:$0xf0] }
 0x564   :  { %v12926_v57 = vld [vmem:[%s19558_s1 + $0x1c54] sm:$0xf]  ;;  %v11307_v8 = vor.u32 %v12862_v16, %v11304_v59  ;;  %7442 = vmatpush.bf16.msrb.mxu0 %v11051_v60  ;;  %v8655_v16 = vor.u32 %v12203_v50, %v8654_v47  ;;  %v12067_v59 = vld [vmem:[%s19558_s1 + $0x174] sm:$0xf0]  ;;  %v8847_v51 = vor.u32 %v12251_v14, %v8846_v24 }
 0x565   :  { %v11560_v58 = vld [vmem:[%s19558_s1 + $0x1c70] sm:$0xf0]  ;;  %v12195_v60 = vld [vmem:[%s19558_s1 + $0x574] sm:$0xf0] }
 0x566   :  { %v12990_v61 = vld [vmem:[%s19558_s1 + $0x1e54] sm:$0xf]  ;;  %v11563_v3 = vor.u32 %v12926_v57, %v11560_v58  ;;  %7455 = vmatpush.bf16.msrb.mxu1 %v11307_v8  ;;  %v8366_v57 = vld [vmem:[%s19558_s1 + $0x358] sm:$0xf]  ;;  %v8911_v58 = vor.u32 %v12267_v62, %v8910_v46  ;;  %v8111_v8 = vor.u32 %v12067_v59, %v8110_v56  ;;  %v7263_v62 = vpop.f32.mrf.mxu2  ;;  %v7276_v59 = vpop.f32.mrf.mxu3 }
 0x567   :  { %v11816_v63 = vld [vmem:[%s19558_s1 + $0x1e70] sm:$0xf0]  ;;  %v8302_v32 = vld [vmem:[%s19558_s1 + $0x2d8] sm:$0xf]  ;;  %v7264_v56 = vadd.f32 %v7263_v62, %v7251_v40 }
 0x568   :  { %v12790_v0 = vld [vmem:[%s19558_s1 + $0x1814] sm:$0xf]  ;;  %v11819_v12 = vor.u32 %v12990_v61, %v11816_v63  ;;  %7468 = vmatpush.bf16.msrb.mxu2 %v11563_v3  ;;  %v12131_v61 = vld [vmem:[%s19558_s1 + $0x374] sm:$0xf0] }
 0x569   :  { %v11016_v2 = vld [vmem:[%s19558_s1 + $0x1830] sm:$0xf0]  ;;  %v8622_v63 = vld [vmem:[%s19558_s1 + $0x558] sm:$0xf]  ;;  %v8367_v3 = vor.u32 %v12131_v61, %v8366_v57  ;;  %v7239_v61 = vpop.f32.mrf.mxu0 }
 0x56a   :  { %v12854_v5 = vld [vmem:[%s19558_s1 + $0x1a14] sm:$0xf]  ;;  %v11019_v26 = vor.u32 %v12790_v0, %v11016_v2  ;;  %7481 = vmatpush.bf16.msrb.mxu3 %v11819_v12  ;;  %v8878_v0 = vld [vmem:[%s19558_s1 + $0x758] sm:$0xf] }
 0x56b   :  { %v11272_v7 = vld [vmem:[%s19558_s1 + $0x1a30] sm:$0xf0]  ;;  %v12259_v2 = vld [vmem:[%s19558_s1 + $0x774] sm:$0xf0] }
 0x56c   :  { %v12918_v39 = vld [vmem:[%s19558_s1 + $0x1c14] sm:$0xf]  ;;  %v11275_v55 = vor.u32 %v12854_v5, %v11272_v7  ;;  %7443 = vmatpush.bf16.msrb.mxu0 %v11019_v26  ;;  %v8623_v5 = vor.u32 %v12195_v60, %v8622_v63  ;;  %v8078_v7 = vld [vmem:[%s19558_s1 + $0x118] sm:$0xf]  ;;  %v7252_v60 = vpop.f32.mrf.mxu1 }
 0x56d   :  { %v11528_v9 = vld [vmem:[%s19558_s1 + $0x1c30] sm:$0xf0]  ;;  %v8334_v12 = vld [vmem:[%s19558_s1 + $0x318] sm:$0xf] }
 0x56e   :  { %v12982_v15 = vld [vmem:[%s19558_s1 + $0x1e14] sm:$0xf]  ;;  %v11531_v27 = vor.u32 %v12918_v39, %v11528_v9  ;;  %7456 = vmatpush.bf16.msrb.mxu1 %v11275_v55  ;;  %v12059_v39 = vld [vmem:[%s19558_s1 + $0x134] sm:$0xf0]  ;;  %v8879_v9 = vor.u32 %v12259_v2, %v8878_v0  ;;  %v18082_v0 = vadd.f32 %v7276_v59, %v7264_v56  ;;  %v7265_v40 = vpop.f32.mrf.mxu2 }
 0x56f   :  { %v11784_v36 = vld [vmem:[%s19558_s1 + $0x1e30] sm:$0xf0]  ;;  %7444 = vmatmul.bf16.vlgmr.msrb.gmra.mxu0 %v13931_v23  ;;  %v8079_v26 = vor.u32 %v12059_v39, %v8078_v7  ;;  %v8046_v55 = vld [vmem:[%s19558_s1 + $0xd8] sm:$0xf] }
 0x570   :  { %v11787_v19 = vor.u32 %v12982_v15, %v11784_v36  ;;  %7469 = vmatpush.bf16.msrb.mxu2 %v11531_v27  ;;  %7488 = vmatpush.bf16.msra.mxu0 %v8175_v49  ;;  %v12123_v15 = vld [vmem:[%s19558_s1 + $0x334] sm:$0xf0] }
 0x571   :  { %7457 = vmatmul.bf16.vlgmr.msrb.gmra.mxu1 %v13944_v31  ;;  %v8590_v36 = vld [vmem:[%s19558_s1 + $0x518] sm:$0xf]  ;;  %v8335_v1 = vor.u32 %v12123_v15, %v8334_v12 }
 0x572   :  { %7482 = vmatpush.bf16.msrb.mxu3 %v11787_v19  ;;  %7501 = vmatpush.bf16.msra.mxu1 %v8431_v34  ;;  %v8591_v22 = vor.u32 %v12187_v10, %v8590_v36  ;;  %v12051_v27 = vld [vmem:[%s19558_s1 + $0xf4] sm:$0xf0] }
 0x573   :  { %7470 = vmatmul.bf16.vlgmr.msrb.gmra.mxu2 %v13942_v28  ;;  %v12115_v19 = vld [vmem:[%s19558_s1 + $0x2f4] sm:$0xf0]  ;;  %v8047_v11 = vor.u32 %v12051_v27, %v8046_v55 }
 0x574   :  { %7514 = vmatpush.bf16.msra.mxu2 %v8687_v37  ;;  %7489 = vmatpush.bf16.msra.mxu0 %v8143_v52  ;;  %v8558_v49 = vld [vmem:[%s19558_s1 + $0x4d8] sm:$0xf]  ;;  %v8303_v45 = vor.u32 %v12115_v19, %v8302_v32 }
 0x575   :  { %7483 = vmatmul.bf16.vlgmr.msrb.gmra.mxu3 %v13952_v35  ;;  %v12179_v34 = vld [vmem:[%s19558_s1 + $0x4f4] sm:$0xf0] }
 0x576   :  { %7527 = vmatpush.bf16.msra.mxu3 %v8943_v48  ;;  %7502 = vmatpush.bf16.msra.mxu1 %v8399_v53  ;;  %v8814_v37 = vld [vmem:[%s19558_s1 + $0x6d8] sm:$0xf]  ;;  %v8559_v48 = vor.u32 %v12179_v34, %v8558_v49 }
 0x577   :  { %v12243_v43 = vld [vmem:[%s19558_s1 + $0x6f4] sm:$0xf0] }
 0x578   :  { %7515 = vmatpush.bf16.msra.mxu2 %v8655_v16  ;;  %7490 = vmatpush.bf16.msra.mxu0 %v8111_v8  ;;  %v8014_v54 = vld [vmem:[%s19558_s1 + $0x98] sm:$0xf]  ;;  %v8815_v46 = vor.u32 %v12243_v43, %v8814_v37  ;;  %v7278_v37 = vpop.f32.mrf.mxu3 }
 0x579   :  { %v12043_v47 = vld [vmem:[%s19558_s1 + $0xb4] sm:$0xf0] }
 0x57a   :  { %7528 = vmatpush.bf16.msra.mxu3 %v8911_v58  ;;  %7503 = vmatpush.bf16.msra.mxu1 %v8367_v3  ;;  %v8270_v50 = vld [vmem:[%s19558_s1 + $0x298] sm:$0xf]  ;;  %v8015_v63 = vor.u32 %v12043_v47, %v8014_v54 }
 0x57b   :  { %v12107_v52 = vld [vmem:[%s19558_s1 + $0x2b4] sm:$0xf0] }
 0x57c   :  { %7516 = vmatpush.bf16.msra.mxu2 %v8623_v5  ;;  %7491 = vmatpush.bf16.msra.mxu0 %v8079_v26  ;;  %v8526_v53 = vld [vmem:[%s19558_s1 + $0x498] sm:$0xf]  ;;  %v8271_v2 = vor.u32 %v12107_v52, %v8270_v50 }
 0x57d   :  { %v12171_v16 = vld [vmem:[%s19558_s1 + $0x4b4] sm:$0xf0] }
 0x57e   :  { %7529 = vmatpush.bf16.msra.mxu3 %v8879_v9  ;;  %7504 = vmatpush.bf16.msra.mxu1 %v8335_v1  ;;  %v8782_v57 = vld [vmem:[%s19558_s1 + $0x698] sm:$0xf]  ;;  %v8527_v8 = vor.u32 %v12171_v16, %v8526_v53 }
 0x57f   :  { %v12235_v58 = vld [vmem:[%s19558_s1 + $0x6b4] sm:$0xf0] }
 0x580   :  { %7517 = vmatpush.bf16.msra.mxu2 %v8591_v22  ;;  %7492 = vmatpush.bf16.msra.mxu0 %v8047_v11  ;;  %v7982_v3 = vld [vmem:[%s19558_s1 + $0x58] sm:$0xf]  ;;  %v8783_v39 = vor.u32 %v12235_v58, %v8782_v57 }
 0x581   :  { %v12035_v5 = vld [vmem:[%s19558_s1 + $0x74] sm:$0xf0] }
 0x582   :  { %7530 = vmatpush.bf16.msra.mxu3 %v8847_v51  ;;  %7505 = vmatpush.bf16.msra.mxu1 %v8303_v45  ;;  %v8238_v7 = vld [vmem:[%s19558_s1 + $0x258] sm:$0xf]  ;;  %v7983_v13 = vor.u32 %v12035_v5, %v7982_v3 }
 0x583   :  { %v12099_v12 = vld [vmem:[%s19558_s1 + $0x274] sm:$0xf0] }
 0x584   :  { %7518 = vmatpush.bf16.msra.mxu2 %v8559_v48  ;;  %v8494_v9 = vld [vmem:[%s19558_s1 + $0x458] sm:$0xf]  ;;  %7493 = vmatpush.bf16.msra.mxu0 %v8015_v63  ;;  %v8239_v17 = vor.u32 %v12099_v12, %v8238_v7 }
 0x585   :  { %v12163_v15 = vld [vmem:[%s19558_s1 + $0x474] sm:$0xf0] }
 0x586   :  { %7531 = vmatpush.bf16.msra.mxu3 %v8815_v46  ;;  %v8750_v36 = vld [vmem:[%s19558_s1 + $0x658] sm:$0xf]  ;;  %7506 = vmatpush.bf16.msra.mxu1 %v8271_v2  ;;  %v8495_v26 = vor.u32 %v12163_v15, %v8494_v9 }
 0x587   :  { %v12227_v10 = vld [vmem:[%s19558_s1 + $0x674] sm:$0xf0] }
 0x588   :  { %v7950_v24 = vld [vmem:[%s19558_s1 + $0x18] sm:$0xf]  ;;  %7519 = vmatpush.bf16.msra.mxu2 %v8527_v8  ;;  %v8751_v55 = vor.u32 %v12227_v10, %v8750_v36  ;;  %7494 = vmatpush.bf16.msra.mxu0 %v7983_v13 }
 0x589   :  { %v12027_v14 = vld [vmem:[%s19558_s1 + $0x34] sm:$0xf0] }
 0x58a   :  { %v8206_v18 = vld [vmem:[%s19558_s1 + $0x218] sm:$0xf]  ;;  %7532 = vmatpush.bf16.msra.mxu3 %v8783_v39  ;;  %v7951_v43 = vor.u32 %v12027_v14, %v7950_v24  ;;  %7507 = vmatpush.bf16.msra.mxu1 %v8239_v17 }
 0x58b   :  { %v12091_v1 = vld [vmem:[%s19558_s1 + $0x234] sm:$0xf0] }
 0x58c   :  { %v8462_v22 = vld [vmem:[%s19558_s1 + $0x418] sm:$0xf]  ;;  %7520 = vmatpush.bf16.msra.mxu2 %v8495_v26  ;;  %v8207_v54 = vor.u32 %v12091_v1, %v8206_v18  ;;  %7495 = vmatpush.bf16.msra.mxu0 %v7951_v43 }
 0x58d   :  { %v12155_v27 = vld [vmem:[%s19558_s1 + $0x434] sm:$0xf0] }
 0x58e   :  { %v8718_v32 = vld [vmem:[%s19558_s1 + $0x618] sm:$0xf]  ;;  %v8463_v47 = vor.u32 %v12155_v27, %v8462_v22  ;;  %7533 = vmatpush.bf16.msra.mxu3 %v8751_v55  ;;  %7508 = vmatpush.bf16.msra.mxu1 %v8207_v54  ;;  %v13048_v27 = vld [vmem:[%s19560_s2] sm:$0xff] }
 0x58f   :  { %v12219_v51 = vld [vmem:[%s19558_s1 + $0x634] sm:$0xf0]  ;;  %7496 = vmatmul.bf16.vlgmr.msra.gmra.mxu0 %v13369_v20 }
 0x590   :  { %v9198_v19 = vld [vmem:[%s19558_s1 + $0x9d8] sm:$0xf]  ;;  %v8719_v62 = vor.u32 %v12219_v51, %v8718_v32  ;;  %7521 = vmatpush.bf16.msra.mxu2 %v8463_v47  ;;  %v1053_v32 = vperm.slane %v13048_v27, 5 }
 0x591   :  { %v12339_v49 = vld [vmem:[%s19558_s1 + $0x9f4] sm:$0xf0]  ;;  %7509 = vmatmul.bf16.vlgmr.msra.gmra.mxu1 %v13372_v21 }
 0x592   :  { %v9454_v34 = vld [vmem:[%s19558_s1 + $0xbd8] sm:$0xf]  ;;  %v9199_v52 = vor.u32 %v12339_v49, %v9198_v19  ;;  %7534 = vmatpush.bf16.msra.mxu3 %v8719_v62  ;;  %v7302_v62 = vpop.f32.mrf.mxu1 }
 0x593   :  { %v12403_v11 = vld [vmem:[%s19558_s1 + $0xbf4] sm:$0xf0]  ;;  %7522 = vmatmul.bf16.vlgmr.msra.gmra.mxu2 %v13337_v4 }
 0x594   :  { %v9710_v45 = vld [vmem:[%s19558_s1 + $0xdd8] sm:$0xf]  ;;  %v9455_v53 = vor.u32 %v12403_v11, %v9454_v34  ;;  %7540 = vmatpush.bf16.msrb.mxu0 %v9199_v52  ;;  %v7289_v11 = vpop.f32.mrf.mxu0 }
 0x595   :  { %v12467_v48 = vld [vmem:[%s19558_s1 + $0xdf4] sm:$0xf0]  ;;  %7535 = vmatmul.bf16.vlgmr.msra.gmra.mxu3 %v13342_v6 }
 0x596   :  { %v9966_v50 = vld [vmem:[%s19558_s1 + $0xfd8] sm:$0xf]  ;;  %v9711_v16 = vor.u32 %v12467_v48, %v9710_v45  ;;  %7553 = vmatpush.bf16.msrb.mxu1 %v9455_v53 }
 0x597   :  { %v12531_v46 = vld [vmem:[%s19558_s1 + $0xff4] sm:$0xf0] }
 0x598   :  { %v9166_v56 = vld [vmem:[%s19558_s1 + $0x998] sm:$0xf]  ;;  %v9967_v58 = vor.u32 %v12531_v46, %v9966_v50  ;;  %7566 = vmatpush.bf16.msrb.mxu2 %v9711_v16  ;;  %v7290_v46 = vadd.f32 %v7289_v11, %v1053_v32 }
 0x599   :  { %v12331_v59 = vld [vmem:[%s19558_s1 + $0x9b4] sm:$0xf0] }
 0x59a   :  { %v9422_v57 = vld [vmem:[%s19558_s1 + $0xb98] sm:$0xf]  ;;  %v9167_v3 = vor.u32 %v12331_v59, %v9166_v56  ;;  %7579 = vmatpush.bf16.msrb.mxu3 %v9967_v58  ;;  %v7303_v58 = vadd.f32 %v7302_v62, %v7290_v46  ;;  %v7304_v27 = vpop.f32.mrf.mxu1 }
 0x59b   :  { %v12395_v61 = vld [vmem:[%s19558_s1 + $0xbb4] sm:$0xf0] }
 0x59c   :  { %v9678_v63 = vld [vmem:[%s19558_s1 + $0xd98] sm:$0xf]  ;;  %v9423_v5 = vor.u32 %v12395_v61, %v9422_v57  ;;  %7541 = vmatpush.bf16.msrb.mxu0 %v9167_v3 }
 0x59d   :  { %v12459_v60 = vld [vmem:[%s19558_s1 + $0xdb4] sm:$0xf0] }
 0x59e   :  { %v9934_v2 = vld [vmem:[%s19558_s1 + $0xf98] sm:$0xf]  ;;  %v9679_v7 = vor.u32 %v12459_v60, %v9678_v63  ;;  %7554 = vmatpush.bf16.msrb.mxu1 %v9423_v5  ;;  %v7315_v5 = vpop.f32.mrf.mxu2 }
 0x59f   :  { %v12523_v8 = vld [vmem:[%s19558_s1 + $0xfb4] sm:$0xf0] }
 0x5a0   :  { %v9134_v39 = vld [vmem:[%s19558_s1 + $0x958] sm:$0xf]  ;;  %v9935_v15 = vor.u32 %v12523_v8, %v9934_v2  ;;  %7567 = vmatpush.bf16.msrb.mxu2 %v9679_v7 }
 0x5a1   :  { %v12323_v12 = vld [vmem:[%s19558_s1 + $0x974] sm:$0xf0] }
 0x5a2   :  { %v9390_v9 = vld [vmem:[%s19558_s1 + $0xb58] sm:$0xf]  ;;  %v9135_v17 = vor.u32 %v12323_v12, %v9134_v39  ;;  %7580 = vmatpush.bf16.msrb.mxu3 %v9935_v15  ;;  %v7316_v15 = vadd.f32 %v7315_v5, %v7303_v58 }
 0x5a3   :  { %v12387_v36 = vld [vmem:[%s19558_s1 + $0xb74] sm:$0xf0] }
 0x5a4   :  { %v9646_v10 = vld [vmem:[%s19558_s1 + $0xd58] sm:$0xf]  ;;  %v9391_v18 = vor.u32 %v12387_v36, %v9390_v9  ;;  %7542 = vmatpush.bf16.msrb.mxu0 %v9135_v17  ;;  %v7328_v36 = vpop.f32.mrf.mxu3  ;;  %v7291_v17 = vpop.f32.mrf.mxu0 }
 0x5a5   :  { %v12451_v13 = vld [vmem:[%s19558_s1 + $0xd74] sm:$0xf0] }
 0x5a6   :  { %v9902_v24 = vld [vmem:[%s19558_s1 + $0xf58] sm:$0xf]  ;;  %v9647_v1 = vor.u32 %v12451_v13, %v9646_v10  ;;  %7555 = vmatpush.bf16.msrb.mxu1 %v9391_v18  ;;  %v7317_v46 = vpop.f32.mrf.mxu2 }
 0x5a7   :  { %v12515_v14 = vld [vmem:[%s19558_s1 + $0xf74] sm:$0xf0] }
 0x5a8   :  { %v9102_v26 = vld [vmem:[%s19558_s1 + $0x918] sm:$0xf]  ;;  %v9903_v51 = vor.u32 %v12515_v14, %v9902_v24  ;;  %7568 = vmatpush.bf16.msrb.mxu2 %v9647_v1  ;;  %v18283_v14 = vadd.f32 %v7328_v36, %v7316_v15 }
 0x5a9   :  { %v12315_v22 = vld [vmem:[%s19558_s1 + $0x934] sm:$0xf0] }
 0x5aa   :  { %v9358_v55 = vld [vmem:[%s19558_s1 + $0xb18] sm:$0xf]  ;;  %v9103_v43 = vor.u32 %v12315_v22, %v9102_v26  ;;  %7581 = vmatpush.bf16.msrb.mxu3 %v9903_v51 }
 0x5ab   :  { %v12379_v40 = vld [vmem:[%s19558_s1 + $0xb34] sm:$0xf0] }
 0x5ac   :  { %v9614_v19 = vld [vmem:[%s19558_s1 + $0xd18] sm:$0xf]  ;;  %v9359_v45 = vor.u32 %v12379_v40, %v9358_v55  ;;  %7543 = vmatpush.bf16.msrb.mxu0 %v9103_v43 }
 0x5ad   :  { %v12443_v49 = vld [vmem:[%s19558_s1 + $0xd34] sm:$0xf0] }
 0x5ae   :  { %v9870_v34 = vld [vmem:[%s19558_s1 + $0xf18] sm:$0xf]  ;;  %v9615_v48 = vor.u32 %v12443_v49, %v9614_v19  ;;  %7556 = vmatpush.bf16.msrb.mxu1 %v9359_v45 }
 0x5af   :  { %v12507_v37 = vld [vmem:[%s19558_s1 + $0xf34] sm:$0xf0] }
 0x5b0   :  { %v9070_v54 = vld [vmem:[%s19558_s1 + $0x8d8] sm:$0xf]  ;;  %v9871_v52 = vor.u32 %v12507_v37, %v9870_v34  ;;  %7569 = vmatpush.bf16.msrb.mxu2 %v9615_v48 }
 0x5b1   :  { %v12307_v47 = vld [vmem:[%s19558_s1 + $0x8f4] sm:$0xf0] }
 0x5b2   :  { %v9326_v50 = vld [vmem:[%s19558_s1 + $0xad8] sm:$0xf]  ;;  %v9071_v61 = vor.u32 %v12307_v47, %v9070_v54  ;;  %7582 = vmatpush.bf16.msrb.mxu3 %v9871_v52 }
 0x5b3   :  { %v12371_v53 = vld [vmem:[%s19558_s1 + $0xaf4] sm:$0xf0] }
 0x5b4   :  { %v9582_v16 = vld [vmem:[%s19558_s1 + $0xcd8] sm:$0xf]  ;;  %v9327_v63 = vor.u32 %v12371_v53, %v9326_v50  ;;  %7544 = vmatpush.bf16.msrb.mxu0 %v9071_v61 }
 0x5b5   :  { %v12435_v56 = vld [vmem:[%s19558_s1 + $0xcf4] sm:$0xf0] }
 0x5b6   :  { %v9838_v59 = vld [vmem:[%s19558_s1 + $0xed8] sm:$0xf]  ;;  %v9583_v60 = vor.u32 %v12435_v56, %v9582_v16  ;;  %7557 = vmatpush.bf16.msrb.mxu1 %v9327_v63  ;;  %v7330_v56 = vpop.f32.mrf.mxu3 }
 0x5b7   :  { %v12499_v57 = vld [vmem:[%s19558_s1 + $0xef4] sm:$0xf0] }
 0x5b8   :  { %v9038_v2 = vld [vmem:[%s19558_s1 + $0x898] sm:$0xf]  ;;  %v9839_v7 = vor.u32 %v12499_v57, %v9838_v59  ;;  %7570 = vmatpush.bf16.msrb.mxu2 %v9583_v60 }
 0x5b9   :  { %v12299_v8 = vld [vmem:[%s19558_s1 + $0x8b4] sm:$0xf0] }
 0x5ba   :  { %v9294_v3 = vld [vmem:[%s19558_s1 + $0xa98] sm:$0xf]  ;;  %v9039_v24 = vor.u32 %v12299_v8, %v9038_v2  ;;  %7583 = vmatpush.bf16.msrb.mxu3 %v9839_v7 }
 0x5bb   :  { %v12363_v39 = vld [vmem:[%s19558_s1 + $0xab4] sm:$0xf0] }
 0x5bc   :  { %v9550_v12 = vld [vmem:[%s19558_s1 + $0xc98] sm:$0xf]  ;;  %v9295_v26 = vor.u32 %v12363_v39, %v9294_v3  ;;  %7545 = vmatpush.bf16.msrb.mxu0 %v9039_v24 }
 0x5bd   :  { %v12427_v9 = vld [vmem:[%s19558_s1 + $0xcb4] sm:$0xf0] }
 0x5be   :  { %v9806_v10 = vld [vmem:[%s19558_s1 + $0xe98] sm:$0xf]  ;;  %v9551_v18 = vor.u32 %v12427_v9, %v9550_v12  ;;  %7558 = vmatpush.bf16.msrb.mxu1 %v9295_v26 }
 0x5bf   :  { %v12491_v13 = vld [vmem:[%s19558_s1 + $0xeb4] sm:$0xf0] }
 0x5c0   :  { %v9006_v1 = vld [vmem:[%s19558_s1 + $0x858] sm:$0xf]  ;;  %v9807_v32 = vor.u32 %v12491_v13, %v9806_v10  ;;  %7571 = vmatpush.bf16.msrb.mxu2 %v9551_v18 }
 0x5c1   :  { %v12291_v22 = vld [vmem:[%s19558_s1 + $0x874] sm:$0xf0] }
 0x5c2   :  { %v9262_v55 = vld [vmem:[%s19558_s1 + $0xa58] sm:$0xf]  ;;  %v9007_v37 = vor.u32 %v12291_v22, %v9006_v1  ;;  %7584 = vmatpush.bf16.msrb.mxu3 %v9807_v32 }
 0x5c3   :  { %v12355_v51 = vld [vmem:[%s19558_s1 + $0xa74] sm:$0xf0] }
 0x5c4   :  { %v9518_v40 = vld [vmem:[%s19558_s1 + $0xc58] sm:$0xf]  ;;  %v9263_v45 = vor.u32 %v12355_v51, %v9262_v55  ;;  %7546 = vmatpush.bf16.msrb.mxu0 %v9007_v37 }
 0x5c5   :  { %v12419_v19 = vld [vmem:[%s19558_s1 + $0xc74] sm:$0xf0] }
 0x5c6   :  { %v9774_v49 = vld [vmem:[%s19558_s1 + $0xe58] sm:$0xf]  ;;  %v9519_v48 = vor.u32 %v12419_v19, %v9518_v40  ;;  %7559 = vmatpush.bf16.msrb.mxu1 %v9263_v45 }
 0x5c7   :  { %v12483_v34 = vld [vmem:[%s19558_s1 + $0xe74] sm:$0xf0] }
 0x5c8   :  { %v8974_v43 = vld [vmem:[%s19558_s1 + $0x818] sm:$0xf]  ;;  %v9775_v62 = vor.u32 %v12483_v34, %v9774_v49  ;;  %7572 = vmatpush.bf16.msrb.mxu2 %v9519_v48 }
 0x5c9   :  { %v12283_v11 = vld [vmem:[%s19558_s1 + $0x834] sm:$0xf0] }
 0x5ca   :  { %v9230_v54 = vld [vmem:[%s19558_s1 + $0xa18] sm:$0xf]  ;;  %v8975_v61 = vor.u32 %v12283_v11, %v8974_v43  ;;  %7585 = vmatpush.bf16.msrb.mxu3 %v9775_v62 }
 0x5cb   :  { %v12347_v47 = vld [vmem:[%s19558_s1 + $0xa34] sm:$0xf0] }
 0x5cc   :  { %v9486_v50 = vld [vmem:[%s19558_s1 + $0xc18] sm:$0xf]  ;;  %v9231_v8 = vor.u32 %v12347_v47, %v9230_v54  ;;  %7547 = vmatpush.bf16.msrb.mxu0 %v8975_v61  ;;  %v18433_v61 = vpop.f32.mrf.mxu0 }
 0x5cd   :  { %v12411_v52 = vld [vmem:[%s19558_s1 + $0xc34] sm:$0xf0] }
 0x5ce   :  { %v9742_v53 = vld [vmem:[%s19558_s1 + $0xe18] sm:$0xf]  ;;  %v9487_v3 = vor.u32 %v12411_v52, %v9486_v50  ;;  %7560 = vmatpush.bf16.msrb.mxu1 %v9231_v8 }
 0x5cf   :  { %v12475_v16 = vld [vmem:[%s19558_s1 + $0xe34] sm:$0xf0]  ;;  %7548 = vmatmul.bf16.vlgmr.msrb.gmra.mxu0 %v13528_v41 }
 0x5d0   :  { %v10222_v59 = vld [vmem:[%s19558_s1 + $0x11d8] sm:$0xf]  ;;  %v9743_v39 = vor.u32 %v12475_v16, %v9742_v53  ;;  %7573 = vmatpush.bf16.msrb.mxu2 %v9487_v3 }
 0x5d1   :  { %v12595_v57 = vld [vmem:[%s19558_s1 + $0x11f4] sm:$0xf0]  ;;  %7561 = vmatmul.bf16.vlgmr.msrb.gmra.mxu1 %v13532_v44 }
 0x5d2   :  { %v10478_v58 = vld [vmem:[%s19558_s1 + $0x13d8] sm:$0xf]  ;;  %v10223_v12 = vor.u32 %v12595_v57, %v10222_v59  ;;  %7586 = vmatpush.bf16.msrb.mxu3 %v9743_v39 }
 0x5d3   :  { %v12659_v63 = vld [vmem:[%s19558_s1 + $0x13f4] sm:$0xf0]  ;;  %7574 = vmatmul.bf16.vlgmr.msrb.gmra.mxu2 %v13520_v38 }
 0x5d4   :  { %v10734_v60 = vld [vmem:[%s19558_s1 + $0x15d8] sm:$0xf]  ;;  %v10479_v9 = vor.u32 %v12659_v63, %v10478_v58  ;;  %7592 = vmatpush.bf16.msra.mxu0 %v10223_v12 }
 0x5d5   :  { %v12723_v2 = vld [vmem:[%s19558_s1 + $0x15f4] sm:$0xf0]  ;;  %7587 = vmatmul.bf16.vlgmr.msrb.gmra.mxu3 %v13530_v42 }
 0x5d6   :  { %v10990_v5 = vld [vmem:[%s19558_s1 + $0x17d8] sm:$0xf]  ;;  %v10735_v15 = vor.u32 %v12723_v2, %v10734_v60  ;;  %7605 = vmatpush.bf16.msra.mxu1 %v10479_v9 }
 0x5d7   :  { %v12787_v7 = vld [vmem:[%s19558_s1 + $0x17f4] sm:$0xf0] }
 0x5d8   :  { %v10190_v36 = vld [vmem:[%s19558_s1 + $0x1198] sm:$0xf]  ;;  %v10991_v24 = vor.u32 %v12787_v7, %v10990_v5  ;;  %7618 = vmatpush.bf16.msra.mxu2 %v10735_v15  ;;  %v18444_v5 = vpop.f32.mrf.mxu1 }
 0x5d9   :  { %v12587_v10 = vld [vmem:[%s19558_s1 + $0x11b4] sm:$0xf0] }
 0x5da   :  { %v10446_v13 = vld [vmem:[%s19558_s1 + $0x1398] sm:$0xf]  ;;  %v10191_v55 = vor.u32 %v12587_v10, %v10190_v36  ;;  %7631 = vmatpush.bf16.msra.mxu3 %v10991_v24 }
 0x5db   :  { %v12651_v17 = vld [vmem:[%s19558_s1 + $0x13b4] sm:$0xf0] }
 0x5dc   :  { %v10702_v26 = vld [vmem:[%s19558_s1 + $0x1598] sm:$0xf]  ;;  %v10447_v27 = vor.u32 %v12651_v17, %v10446_v13  ;;  %7593 = vmatpush.bf16.msra.mxu0 %v10191_v55 }
 0x5dd   :  { %v12715_v18 = vld [vmem:[%s19558_s1 + $0x15b4] sm:$0xf0] }
 0x5de   :  { %v10958_v1 = vld [vmem:[%s19558_s1 + $0x1798] sm:$0xf]  ;;  %v10703_v32 = vor.u32 %v12715_v18, %v10702_v26  ;;  %7606 = vmatpush.bf16.msra.mxu1 %v10447_v27 }
 0x5df   :  { %v12779_v22 = vld [vmem:[%s19558_s1 + $0x17b4] sm:$0xf0] }
 0x5e0   :  { %v10158_v51 = vld [vmem:[%s19558_s1 + $0x1158] sm:$0xf]  ;;  %v10959_v49 = vor.u32 %v12779_v22, %v10958_v1  ;;  %7619 = vmatpush.bf16.msra.mxu2 %v10703_v32  ;;  %v18470_v1 = vpop.f32.mrf.mxu2 }
 0x5e1   :  { %v12579_v40 = vld [vmem:[%s19558_s1 + $0x1174] sm:$0xf0] }
 0x5e2   :  { %v10414_v19 = vld [vmem:[%s19558_s1 + $0x1358] sm:$0xf]  ;;  %v10159_v48 = vor.u32 %v12579_v40, %v10158_v51  ;;  %7632 = vmatpush.bf16.msra.mxu3 %v10959_v49  ;;  %v18481_v51 = vpop.f32.mrf.mxu3 }
 0x5e3   :  { %v12643_v34 = vld [vmem:[%s19558_s1 + $0x1374] sm:$0xf0] }
 0x5e4   :  { %v10670_v37 = vld [vmem:[%s19558_s1 + $0x1558] sm:$0xf]  ;;  %v10415_v54 = vor.u32 %v12643_v34, %v10414_v19  ;;  %7594 = vmatpush.bf16.msra.mxu0 %v10159_v48  ;;  %v7343_v34 = vpop.f32.mrf.mxu0 }
 0x5e5   :  { %v12707_v43 = vld [vmem:[%s19558_s1 + $0x1574] sm:$0xf0] }
 0x5e6   :  { %v10926_v11 = vld [vmem:[%s19558_s1 + $0x1758] sm:$0xf]  ;;  %v10671_v47 = vor.u32 %v12707_v43, %v10670_v37  ;;  %7607 = vmatpush.bf16.msra.mxu1 %v10415_v54  ;;  %v7356_v54 = vpop.f32.mrf.mxu1 }
 0x5e7   :  { %v12771_v45 = vld [vmem:[%s19558_s1 + $0x1774] sm:$0xf0] }
 0x5e8   :  { %v10126_v50 = vld [vmem:[%s19558_s1 + $0x1118] sm:$0xf]  ;;  %v10927_v52 = vor.u32 %v12771_v45, %v10926_v11  ;;  %7620 = vmatpush.bf16.msra.mxu2 %v10671_v47 }
 0x5e9   :  { %v12571_v46 = vld [vmem:[%s19558_s1 + $0x1134] sm:$0xf0] }
 0x5ea   :  { %v10382_v62 = vld [vmem:[%s19558_s1 + $0x1318] sm:$0xf]  ;;  %v10127_v58 = vor.u32 %v12571_v46, %v10126_v50  ;;  %7633 = vmatpush.bf16.msra.mxu3 %v10927_v52 }
 0x5eb   :  { %v12635_v53 = vld [vmem:[%s19558_s1 + $0x1334] sm:$0xf0] }
 0x5ec   :  { %v10638_v16 = vld [vmem:[%s19558_s1 + $0x1518] sm:$0xf]  ;;  %v10383_v63 = vor.u32 %v12635_v53, %v10382_v62  ;;  %7595 = vmatpush.bf16.msra.mxu0 %v10127_v58 }
 0x5ed   :  { %v12699_v56 = vld [vmem:[%s19558_s1 + $0x1534] sm:$0xf0] }
 0x5ee   :  { %v10894_v59 = vld [vmem:[%s19558_s1 + $0x1718] sm:$0xf]  ;;  %v10639_v60 = vor.u32 %v12699_v56, %v10638_v16  ;;  %7608 = vmatpush.bf16.msra.mxu1 %v10383_v63 }
 0x5ef   :  { %v12763_v57 = vld [vmem:[%s19558_s1 + $0x1734] sm:$0xf0] }
 0x5f0   :  { %v10094_v2 = vld [vmem:[%s19558_s1 + $0x10d8] sm:$0xf]  ;;  %v10895_v7 = vor.u32 %v12763_v57, %v10894_v59  ;;  %7621 = vmatpush.bf16.msra.mxu2 %v10639_v60 }
 0x5f1   :  { %v12563_v8 = vld [vmem:[%s19558_s1 + $0x10f4] sm:$0xf0] }
 0x5f2   :  { %v10350_v3 = vld [vmem:[%s19558_s1 + $0x12d8] sm:$0xf]  ;;  %v10095_v10 = vor.u32 %v12563_v8, %v10094_v2  ;;  %7634 = vmatpush.bf16.msra.mxu3 %v10895_v7  ;;  %v7369_v8 = vpop.f32.mrf.mxu2 }
 0x5f3   :  { %v12627_v39 = vld [vmem:[%s19558_s1 + $0x12f4] sm:$0xf0] }
 0x5f4   :  { %v10606_v12 = vld [vmem:[%s19558_s1 + $0x14d8] sm:$0xf]  ;;  %v10351_v13 = vor.u32 %v12627_v39, %v10350_v3  ;;  %7596 = vmatpush.bf16.msra.mxu0 %v10095_v10 }
 0x5f5   :  { %v12691_v9 = vld [vmem:[%s19558_s1 + $0x14f4] sm:$0xf0] }
 0x5f6   :  { %v10862_v15 = vld [vmem:[%s19558_s1 + $0x16d8] sm:$0xf]  ;;  %v10607_v24 = vor.u32 %v12691_v9, %v10606_v12  ;;  %7609 = vmatpush.bf16.msra.mxu1 %v10351_v13  ;;  %v7382_v9 = vpop.f32.mrf.mxu3 }
 0x5f7   :  { %v12755_v36 = vld [vmem:[%s19558_s1 + $0x16f4] sm:$0xf0] }
 0x5f8   :  { %v10062_v17 = vld [vmem:[%s19558_s1 + $0x1098] sm:$0xf]  ;;  %v10863_v22 = vor.u32 %v12755_v36, %v10862_v15  ;;  %7622 = vmatpush.bf16.msra.mxu2 %v10607_v24 }
 0x5f9   :  { %v12555_v26 = vld [vmem:[%s19558_s1 + $0x10b4] sm:$0xf0] }
 0x5fa   :  { %v10318_v18 = vld [vmem:[%s19558_s1 + $0x1298] sm:$0xf]  ;;  %v10063_v49 = vor.u32 %v12555_v26, %v10062_v17  ;;  %7635 = vmatpush.bf16.msra.mxu3 %v10863_v22 }
 0x5fb   :  { %v12619_v55 = vld [vmem:[%s19558_s1 + $0x12b4] sm:$0xf0] }
 0x5fc   :  { %v10574_v27 = vld [vmem:[%s19558_s1 + $0x1498] sm:$0xf]  ;;  %v10319_v37 = vor.u32 %v12619_v55, %v10318_v18  ;;  %7597 = vmatpush.bf16.msra.mxu0 %v10063_v49 }
 0x5fd   :  { %v12683_v32 = vld [vmem:[%s19558_s1 + $0x14b4] sm:$0xf0] }
 0x5fe   :  { %v10830_v40 = vld [vmem:[%s19558_s1 + $0x1698] sm:$0xf]  ;;  %v10575_v43 = vor.u32 %v12683_v32, %v10574_v27  ;;  %7610 = vmatpush.bf16.msra.mxu1 %v10319_v37 }
 0x5ff   :  { %v12747_v19 = vld [vmem:[%s19558_s1 + $0x16b4] sm:$0xf0] }
 0x600   :  { %v10030_v11 = vld [vmem:[%s19558_s1 + $0x1058] sm:$0xf]  ;;  %v10831_v47 = vor.u32 %v12747_v19, %v10830_v40  ;;  %7623 = vmatpush.bf16.msra.mxu2 %v10575_v43 }
 0x601   :  { %v12547_v45 = vld [vmem:[%s19558_s1 + $0x1074] sm:$0xf0] }
 0x602   :  { %v10286_v48 = vld [vmem:[%s19558_s1 + $0x1258] sm:$0xf]  ;;  %v10031_v16 = vor.u32 %v12547_v45, %v10030_v11  ;;  %7636 = vmatpush.bf16.msra.mxu3 %v10831_v47 }
 0x603   :  { %v12611_v50 = vld [vmem:[%s19558_s1 + $0x1274] sm:$0xf0] }
 0x604   :  { %v10542_v46 = vld [vmem:[%s19558_s1 + $0x1458] sm:$0xf]  ;;  %v10287_v57 = vor.u32 %v12611_v50, %v10286_v48  ;;  %7598 = vmatpush.bf16.msra.mxu0 %v10031_v16 }
 0x605   :  { %v12675_v62 = vld [vmem:[%s19558_s1 + $0x1474] sm:$0xf0] }
 0x606   :  { %v10798_v52 = vld [vmem:[%s19558_s1 + $0x1658] sm:$0xf]  ;;  %v10543_v58 = vor.u32 %v12675_v62, %v10542_v46  ;;  %7611 = vmatpush.bf16.msra.mxu1 %v10287_v57 }
 0x607   :  { %v12739_v53 = vld [vmem:[%s19558_s1 + $0x1674] sm:$0xf0] }
 0x608   :  { %v9998_v56 = vld [vmem:[%s19558_s1 + $0x1018] sm:$0xf]  ;;  %v10799_v3 = vor.u32 %v12739_v53, %v10798_v52  ;;  %7624 = vmatpush.bf16.msra.mxu2 %v10543_v58 }
 0x609   :  { %v12539_v59 = vld [vmem:[%s19558_s1 + $0x1034] sm:$0xf0] }
 0x60a   :  { %v10254_v63 = vld [vmem:[%s19558_s1 + $0x1218] sm:$0xf]  ;;  %v9999_v13 = vor.u32 %v12539_v59, %v9998_v56  ;;  %7637 = vmatpush.bf16.msra.mxu3 %v10799_v3 }
 0x60b   :  { %v12603_v60 = vld [vmem:[%s19558_s1 + $0x1234] sm:$0xf0] }
 0x60c   :  { %v10510_v2 = vld [vmem:[%s19558_s1 + $0x1418] sm:$0xf]  ;;  %v10255_v18 = vor.u32 %v12603_v60, %v10254_v63  ;;  %7599 = vmatpush.bf16.msra.mxu0 %v9999_v13 }
 0x60d   :  { %v12667_v7 = vld [vmem:[%s19558_s1 + $0x1434] sm:$0xf0] }
 0x60e   :  { %v10766_v39 = vld [vmem:[%s19558_s1 + $0x1618] sm:$0xf]  ;;  %v10511_v22 = vor.u32 %v12667_v7, %v10510_v2  ;;  %7612 = vmatpush.bf16.msra.mxu1 %v10255_v18 }
 0x60f   :  { %v12731_v12 = vld [vmem:[%s19558_s1 + $0x1634] sm:$0xf0]  ;;  %7600 = vmatmul.bf16.vlgmr.msra.gmra.mxu0 %v13721_v25 }
 0x610   :  { %v11246_v15 = vld [vmem:[%s19558_s1 + $0x19d8] sm:$0xf]  ;;  %v10767_v32 = vor.u32 %v12731_v12, %v10766_v39  ;;  %7625 = vmatpush.bf16.msra.mxu2 %v10511_v22  ;;  %v18639_v22 = vpop.f32.mrf.mxu1 }
 0x611   :  { %v12851_v36 = vld [vmem:[%s19558_s1 + $0x19f4] sm:$0xf0]  ;;  %7613 = vmatmul.bf16.vlgmr.msra.gmra.mxu1 %v13734_v30 }
 0x612   :  { %v11502_v10 = vld [vmem:[%s19558_s1 + $0x1bd8] sm:$0xf]  ;;  %v11247_v40 = vor.u32 %v12851_v36, %v11246_v15  ;;  %7638 = vmatpush.bf16.msra.mxu3 %v10767_v32 }
 0x613   :  { %v12915_v24 = vld [vmem:[%s19558_s1 + $0x1bf4] sm:$0xf0]  ;;  %7626 = vmatmul.bf16.vlgmr.msra.gmra.mxu2 %v13732_v29 }
 0x614   :  { %v11758_v17 = vld [vmem:[%s19558_s1 + $0x1dd8] sm:$0xf]  ;;  %v11503_v19 = vor.u32 %v12915_v24, %v11502_v10  ;;  %7644 = vmatpush.bf16.msrb.mxu0 %v11247_v40  ;;  %v18631_v24 = vpop.f32.mrf.mxu0 }
 0x615   :  { %v12979_v26 = vld [vmem:[%s19558_s1 + $0x1df4] sm:$0xf0]  ;;  %7639 = vmatmul.bf16.vlgmr.msra.gmra.mxu3 %v13742_v33 }
 0x616   :  { %v12014_v55 = vld [vmem:[%s19558_s1 + $0x1fd8] sm:$0xf]  ;;  %v11759_v49 = vor.u32 %v12979_v26, %v11758_v17  ;;  %7657 = vmatpush.bf16.msrb.mxu1 %v11503_v19 }
 0x617   :  { %v13043_v27 = vld [vmem:[%s19558_s1 + $0x1ff4] sm:$0xf0] }
 0x618   :  { %v11214_v34 = vld [vmem:[%s19558_s1 + $0x1998] sm:$0xf]  ;;  %v12015_v11 = vor.u32 %v13043_v27, %v12014_v55  ;;  %7670 = vmatpush.bf16.msrb.mxu2 %v11759_v49 }
 0x619   :  { %v12843_v37 = vld [vmem:[%s19558_s1 + $0x19b4] sm:$0xf0] }
 0x61a   :  { %v11470_v43 = vld [vmem:[%s19558_s1 + $0x1b98] sm:$0xf]  ;;  %v11215_v46 = vor.u32 %v12843_v37, %v11214_v34  ;;  %7683 = vmatpush.bf16.msrb.mxu3 %v12015_v11 }
 0x61b   :  { %v12907_v45 = vld [vmem:[%s19558_s1 + $0x1bb4] sm:$0xf0] }
 0x61c   :  { %v11726_v48 = vld [vmem:[%s19558_s1 + $0x1d98] sm:$0xf]  ;;  %v11471_v62 = vor.u32 %v12907_v45, %v11470_v43  ;;  %7645 = vmatpush.bf16.msrb.mxu0 %v11215_v46 }
 0x61d   :  { %v12971_v54 = vld [vmem:[%s19558_s1 + $0x1db4] sm:$0xf0] }
 0x61e   :  { %v11982_v47 = vld [vmem:[%s19558_s1 + $0x1f98] sm:$0xf]  ;;  %v11727_v52 = vor.u32 %v12971_v54, %v11726_v48  ;;  %7658 = vmatpush.bf16.msrb.mxu1 %v11471_v62  ;;  %v7342_v54 = vadd.f32 %v18433_v61, %v18283_v14 }
 0x61f   :  { %v13035_v50 = vld [vmem:[%s19558_s1 + $0x1fb4] sm:$0xf0] }
 0x620   :  { %v11182_v53 = vld [vmem:[%s19558_s1 + $0x1958] sm:$0xf]  ;;  %v11983_v59 = vor.u32 %v13035_v50, %v11982_v47  ;;  %7671 = vmatpush.bf16.msrb.mxu2 %v11727_v52 }
 0x621   :  { %v12835_v16 = vld [vmem:[%s19558_s1 + $0x1974] sm:$0xf0] }
 0x622   :  { %v11438_v56 = vld [vmem:[%s19558_s1 + $0x1b58] sm:$0xf]  ;;  %v11183_v8 = vor.u32 %v12835_v16, %v11182_v53  ;;  %7684 = vmatpush.bf16.msrb.mxu3 %v11983_v59  ;;  %v18676_v16 = vpop.f32.mrf.mxu2  ;;  %v18687_v59 = vpop.f32.mrf.mxu3 }
 0x623   :  { %v12899_v57 = vld [vmem:[%s19558_s1 + $0x1b74] sm:$0xf0] }
 0x624   :  { %v11694_v58 = vld [vmem:[%s19558_s1 + $0x1d58] sm:$0xf]  ;;  %v11439_v3 = vor.u32 %v12899_v57, %v11438_v56  ;;  %7646 = vmatpush.bf16.msrb.mxu0 %v11183_v8  ;;  %v7355_v8 = vadd.f32 %v18444_v5, %v7342_v54  ;;  %v8176_v54 = vld [vmem:[%s19558_s1 + $0x1f8] sm:$0xf0] }
 0x625   :  { %v12963_v63 = vld [vmem:[%s19558_s1 + $0x1d74] sm:$0xf0] }
 0x626   :  { %v11950_v60 = vld [vmem:[%s19558_s1 + $0x1f58] sm:$0xf]  ;;  %v11695_v7 = vor.u32 %v12963_v63, %v11694_v58  ;;  %7659 = vmatpush.bf16.msrb.mxu1 %v11439_v3  ;;  %v7395_v63 = vpop.f32.mrf.mxu0 }
 0x627   :  { %v13027_v2 = vld [vmem:[%s19558_s1 + $0x1f74] sm:$0xf0] }
 0x628   :  { %v11150_v39 = vld [vmem:[%s19558_s1 + $0x1918] sm:$0xf]  ;;  %v11951_v15 = vor.u32 %v13027_v2, %v11950_v60  ;;  %7672 = vmatpush.bf16.msrb.mxu2 %v11695_v7  ;;  %v7408_v2 = vpop.f32.mrf.mxu1 }
 0x629   :  { %v12827_v12 = vld [vmem:[%s19558_s1 + $0x1934] sm:$0xf0] }
 0x62a   :  { %v11406_v9 = vld [vmem:[%s19558_s1 + $0x1b18] sm:$0xf]  ;;  %v11151_v18 = vor.u32 %v12827_v12, %v11150_v39  ;;  %7685 = vmatpush.bf16.msrb.mxu3 %v11951_v15 }
 0x62b   :  { %v12891_v36 = vld [vmem:[%s19558_s1 + $0x1b34] sm:$0xf0] }
 0x62c   :  { %v11662_v10 = vld [vmem:[%s19558_s1 + $0x1d18] sm:$0xf]  ;;  %v11407_v55 = vor.u32 %v12891_v36, %v11406_v9  ;;  %7647 = vmatpush.bf16.msrb.mxu0 %v11151_v18 }
 0x62d   :  { %v12955_v13 = vld [vmem:[%s19558_s1 + $0x1d34] sm:$0xf0] }
 0x62e   :  { %v11918_v17 = vld [vmem:[%s19558_s1 + $0x1f18] sm:$0xf]  ;;  %v11663_v27 = vor.u32 %v12955_v13, %v11662_v10  ;;  %7660 = vmatpush.bf16.msrb.mxu1 %v11407_v55 }
 0x62f   :  { %v13019_v26 = vld [vmem:[%s19558_s1 + $0x1f34] sm:$0xf0] }
 0x630   :  { %v11118_v32 = vld [vmem:[%s19558_s1 + $0x18d8] sm:$0xf]  ;;  %v11919_v49 = vor.u32 %v13019_v26, %v11918_v17  ;;  %7673 = vmatpush.bf16.msrb.mxu2 %v11663_v27  ;;  %v7368_v27 = vadd.f32 %v18470_v1, %v7355_v8 }
 0x631   :  { %v12819_v40 = vld [vmem:[%s19558_s1 + $0x18f4] sm:$0xf0] }
 0x632   :  { %v11374_v19 = vld [vmem:[%s19558_s1 + $0x1ad8] sm:$0xf]  ;;  %v11119_v48 = vor.u32 %v12819_v40, %v11118_v32  ;;  %7686 = vmatpush.bf16.msrb.mxu3 %v11919_v49 }
 0x633   :  { %v12883_v34 = vld [vmem:[%s19558_s1 + $0x1af4] sm:$0xf0] }
 0x634   :  { %v11630_v37 = vld [vmem:[%s19558_s1 + $0x1cd8] sm:$0xf]  ;;  %v11375_v47 = vor.u32 %v12883_v34, %v11374_v19  ;;  %7648 = vmatpush.bf16.msrb.mxu0 %v11119_v48  ;;  %v12079_v48 = vld [vmem:[%s19558_s1 + $0x1dc] sm:$0xf] }
 0x635   :  { %v12947_v43 = vld [vmem:[%s19558_s1 + $0x1cf4] sm:$0xf0] }
 0x636   :  { %v11886_v11 = vld [vmem:[%s19558_s1 + $0x1ed8] sm:$0xf]  ;;  %v11631_v50 = vor.u32 %v12947_v43, %v11630_v37  ;;  %7661 = vmatpush.bf16.msrb.mxu1 %v11375_v47  ;;  %v12143_v47 = vld [vmem:[%s19558_s1 + $0x3dc] sm:$0xf] }
 0x637   :  { %v13011_v45 = vld [vmem:[%s19558_s1 + $0x1ef4] sm:$0xf0] }
 0x638   :  { %v11086_v46 = vld [vmem:[%s19558_s1 + $0x1898] sm:$0xf]  ;;  %v11887_v53 = vor.u32 %v13011_v45, %v11886_v11  ;;  %7674 = vmatpush.bf16.msrb.mxu2 %v11631_v50  ;;  %v7421_v45 = vpop.f32.mrf.mxu2  ;;  %v7434_v50 = vpop.f32.mrf.mxu3 }
 0x639   :  { %v12811_v62 = vld [vmem:[%s19558_s1 + $0x18b4] sm:$0xf0]  ;;  %v8080_v45 = vld [vmem:[%s19558_s1 + $0x138] sm:$0xf0] }
 0x63a   :  { %v11342_v52 = vld [vmem:[%s19558_s1 + $0x1a98] sm:$0xf]  ;;  %v11087_v60 = vor.u32 %v12811_v62, %v11086_v46  ;;  %7687 = vmatpush.bf16.msrb.mxu3 %v11887_v53  ;;  %v8432_v62 = vld [vmem:[%s19558_s1 + $0x3f8] sm:$0xf0] }
 0x63b   :  { %v12875_v14 = vld [vmem:[%s19558_s1 + $0x1ab4] sm:$0xf0]  ;;  %v8688_v53 = vld [vmem:[%s19558_s1 + $0x5f8] sm:$0xf0]  ;;  %v8435_v8 = vor.u32 %v12143_v47, %v8432_v62 }
 0x63c   :  { %v11598_v61 = vld [vmem:[%s19558_s1 + $0x1c98] sm:$0xf]  ;;  %v11343_v3 = vor.u32 %v12875_v14, %v11342_v52  ;;  %7649 = vmatpush.bf16.msrb.mxu0 %v11087_v60  ;;  %v12207_v52 = vld [vmem:[%s19558_s1 + $0x5dc] sm:$0xf]  ;;  %v7381_v14 = vadd.f32 %v18481_v51, %v7368_v27  ;;  %v8179_v60 = vor.u32 %v12079_v48, %v8176_v54 }
 0x63d   :  { %v12939_v56 = vld [vmem:[%s19558_s1 + $0x1cb4] sm:$0xf0]  ;;  %v12071_v51 = vld [vmem:[%s19558_s1 + $0x19c] sm:$0xf] }
 0x63e   :  { %v11854_v57 = vld [vmem:[%s19558_s1 + $0x1e98] sm:$0xf]  ;;  %v11599_v7 = vor.u32 %v12939_v56, %v11598_v61  ;;  %7662 = vmatpush.bf16.msrb.mxu1 %v11343_v3  ;;  %v7394_v2 = vadd.f32 %v18631_v24, %v7381_v14  ;;  %v8691_v3 = vor.u32 %v12207_v52, %v8688_v53  ;;  %v8400_v24 = vld [vmem:[%s19558_s1 + $0x3b8] sm:$0xf0]  ;;  %v7445_v52 = vpop.f32.mrf.mxu0 }
 0x63f   :  { %v13003_v58 = vld [vmem:[%s19558_s1 + $0x1eb4] sm:$0xf0]  ;;  %v12127_v27 = vld [vmem:[%s19558_s1 + $0x35c] sm:$0xf] }
 0x640   :  { %v11054_v39 = vld [vmem:[%s19558_s1 + $0x1858] sm:$0xf]  ;;  %v11855_v15 = vor.u32 %v13003_v58, %v11854_v57  ;;  %7675 = vmatpush.bf16.msrb.mxu2 %v11599_v7  ;;  %v12271_v57 = vld [vmem:[%s19558_s1 + $0x7dc] sm:$0xf] }
 0x641   :  { %v12803_v12 = vld [vmem:[%s19558_s1 + $0x1874] sm:$0xf0]  ;;  %v8944_v58 = vld [vmem:[%s19558_s1 + $0x7f8] sm:$0xf0] }
 0x642   :  { %v11310_v9 = vld [vmem:[%s19558_s1 + $0x1a58] sm:$0xf]  ;;  %v11055_v26 = vor.u32 %v12803_v12, %v11054_v39  ;;  %7688 = vmatpush.bf16.msrb.mxu3 %v11855_v15  ;;  %v8144_v7 = vld [vmem:[%s19558_s1 + $0x1b8] sm:$0xf0]  ;;  %v8947_v12 = vor.u32 %v12271_v57, %v8944_v58 }
 0x643   :  { %v12867_v5 = vld [vmem:[%s19558_s1 + $0x1a74] sm:$0xf0]  ;;  %v12135_v39 = vld [vmem:[%s19558_s1 + $0x39c] sm:$0xf] }
 0x644   :  { %v11566_v36 = vld [vmem:[%s19558_s1 + $0x1c58] sm:$0xf]  ;;  %v11311_v32 = vor.u32 %v12867_v5, %v11310_v9  ;;  %7650 = vmatpush.bf16.msrb.mxu0 %v11055_v26  ;;  %v12199_v9 = vld [vmem:[%s19558_s1 + $0x59c] sm:$0xf] }
 0x645   :  { %v12931_v10 = vld [vmem:[%s19558_s1 + $0x1c74] sm:$0xf0]  ;;  %v8656_v15 = vld [vmem:[%s19558_s1 + $0x5b8] sm:$0xf0] }
 0x646   :  { %v11822_v13 = vld [vmem:[%s19558_s1 + $0x1e58] sm:$0xf]  ;;  %v11567_v40 = vor.u32 %v12931_v10, %v11566_v36  ;;  %7663 = vmatpush.bf16.msrb.mxu1 %v11311_v32  ;;  %v12263_v5 = vld [vmem:[%s19558_s1 + $0x79c] sm:$0xf]  ;;  %v8147_v10 = vor.u32 %v12071_v51, %v8144_v7  ;;  %v8659_v26 = vor.u32 %v12199_v9, %v8656_v15 }
 0x647   :  { %v12995_v17 = vld [vmem:[%s19558_s1 + $0x1e74] sm:$0xf0]  ;;  %v8912_v36 = vld [vmem:[%s19558_s1 + $0x7b8] sm:$0xf0] }
 0x648   :  { %v11022_v18 = vld [vmem:[%s19558_s1 + $0x1818] sm:$0xf]  ;;  %v11823_v37 = vor.u32 %v12995_v17, %v11822_v13  ;;  %7676 = vmatpush.bf16.msrb.mxu2 %v11567_v40  ;;  %v7407_v13 = vadd.f32 %v18639_v22, %v7394_v2  ;;  %v8403_v17 = vor.u32 %v12135_v39, %v8400_v24  ;;  %v8915_v22 = vor.u32 %v12263_v5, %v8912_v36  ;;  %v8368_v32 = vld [vmem:[%s19558_s1 + $0x378] sm:$0xf0] }
 0x649   :  { %v12795_v55 = vld [vmem:[%s19558_s1 + $0x1834] sm:$0xf0]  ;;  %v12191_v40 = vld [vmem:[%s19558_s1 + $0x55c] sm:$0xf] }
 0x64a   :  { %v11278_v19 = vld [vmem:[%s19558_s1 + $0x1a18] sm:$0xf]  ;;  %v11023_v46 = vor.u32 %v12795_v55, %v11022_v18  ;;  %7689 = vmatpush.bf16.msrb.mxu3 %v11823_v37  ;;  %v12063_v18 = vld [vmem:[%s19558_s1 + $0x15c] sm:$0xf] }
 0x64b   :  { %v12859_v49 = vld [vmem:[%s19558_s1 + $0x1a34] sm:$0xf0]  ;;  %v8112_v55 = vld [vmem:[%s19558_s1 + $0x178] sm:$0xf0] }
 0x64c   :  { %v11534_v34 = vld [vmem:[%s19558_s1 + $0x1c18] sm:$0xf]  ;;  %v11279_v61 = vor.u32 %v12859_v49, %v11278_v19  ;;  %7651 = vmatpush.bf16.msrb.mxu0 %v11023_v46  ;;  %v8624_v19 = vld [vmem:[%s19558_s1 + $0x578] sm:$0xf0]  ;;  %v7420_v49 = vadd.f32 %v18676_v16, %v7407_v13 }
 0x64d   :  { %v12923_v1 = vld [vmem:[%s19558_s1 + $0x1c34] sm:$0xf0]  ;;  %v8880_v37 = vld [vmem:[%s19558_s1 + $0x778] sm:$0xf0]  ;;  %v8627_v16 = vor.u32 %v12191_v40, %v8624_v19 }
 0x64e   :  { %v11790_v43 = vld [vmem:[%s19558_s1 + $0x1e18] sm:$0xf]  ;;  %v11535_v56 = vor.u32 %v12923_v1, %v11534_v34  ;;  %7664 = vmatpush.bf16.msrb.mxu1 %v11279_v61  ;;  %v12255_v34 = vld [vmem:[%s19558_s1 + $0x75c] sm:$0xf]  ;;  %v8115_v1 = vor.u32 %v12063_v18, %v8112_v55  ;;  %v7433_v62 = vadd.f32 %v18687_v59, %v7420_v49  ;;  %v7447_v49 = vpop.f32.mrf.mxu0 }
 0x64f   :  { %v12987_v11 = vld [vmem:[%s19558_s1 + $0x1e34] sm:$0xf0]  ;;  %7652 = vmatmul.bf16.vlgmr.msrb.gmra.mxu0 %v13931_v23  ;;  %v12119_v48 = vld [vmem:[%s19558_s1 + $0x31c] sm:$0xf]  ;;  %v8883_v54 = vor.u32 %v12255_v34, %v8880_v37 }
 0x650   :  { %v11791_v63 = vor.u32 %v12987_v11, %v11790_v43  ;;  %7677 = vmatpush.bf16.msrb.mxu2 %v11535_v56  ;;  %7696 = vmatpush.bf16.msra.mxu0 %v8179_v60  ;;  %v8371_v43 = vor.u32 %v12127_v27, %v8368_v32  ;;  %v12055_v11 = vld [vmem:[%s19558_s1 + $0x11c] sm:$0xf]  ;;  %v7458_v56 = vpop.f32.mrf.mxu1  ;;  %v7446_v57 = vadd.f32 %v7445_v52, %v7433_v62  ;;  %v7484_v32 = vpop.f32.mrf.mxu3  ;;  %v7908_v62 = vmax.f32 %v18082_v0, 0.0 }
 0x651   :  { %7665 = vmatmul.bf16.vlgmr.msrb.gmra.mxu1 %v13944_v31  ;;  %v8336_v47 = vld [vmem:[%s19558_s1 + $0x338] sm:$0xf0]  ;;  %v8083_v61 = vor.u32 %v12055_v11, %v8080_v45 }
 0x652   :  { %7690 = vmatpush.bf16.msrb.mxu3 %v11791_v63  ;;  %7709 = vmatpush.bf16.msra.mxu1 %v8435_v8  ;;  %v12183_v50 = vld [vmem:[%s19558_s1 + $0x51c] sm:$0xf]  ;;  %v8339_v58 = vor.u32 %v12119_v48, %v8336_v47  ;;  %v7459_v9 = vadd.f32 %v7458_v56, %v7446_v57 }
 0x653   :  { %7678 = vmatmul.bf16.vlgmr.msrb.gmra.mxu2 %v13942_v28  ;;  %v8592_v46 = vld [vmem:[%s19558_s1 + $0x538] sm:$0xf0] }
 0x654   :  { %7722 = vmatpush.bf16.msra.mxu2 %v8691_v3  ;;  %7697 = vmatpush.bf16.msra.mxu0 %v8147_v10  ;;  %v12247_v53 = vld [vmem:[%s19558_s1 + $0x71c] sm:$0xf]  ;;  %v8595_v63 = vor.u32 %v12183_v50, %v8592_v46 }
 0x655   :  { %7691 = vmatmul.bf16.vlgmr.msrb.gmra.mxu3 %v13952_v35  ;;  %v8848_v14 = vld [vmem:[%s19558_s1 + $0x738] sm:$0xf0] }
 0x656   :  { %7735 = vmatpush.bf16.msra.mxu3 %v8947_v12  ;;  %7710 = vmatpush.bf16.msra.mxu1 %v8403_v17  ;;  %v12047_v59 = vld [vmem:[%s19558_s1 + $0xdc] sm:$0xf]  ;;  %v8851_v8 = vor.u32 %v12247_v53, %v8848_v14 }
 0x657   :  { %v8048_v60 = vld [vmem:[%s19558_s1 + $0xf8] sm:$0xf0] }
 0x658   :  { %7723 = vmatpush.bf16.msra.mxu2 %v8659_v26  ;;  %7698 = vmatpush.bf16.msra.mxu0 %v8115_v1  ;;  %v12111_v2 = vld [vmem:[%s19558_s1 + $0x2dc] sm:$0xf]  ;;  %v8051_v24 = vor.u32 %v12047_v59, %v8048_v60  ;;  %v7471_v26 = vpop.f32.mrf.mxu2  ;;  %v7460_v37 = vpop.f32.mrf.mxu1 }
 0x659   :  { %v8304_v3 = vld [vmem:[%s19558_s1 + $0x2f8] sm:$0xf0] }
 0x65a   :  { %7736 = vmatpush.bf16.msra.mxu3 %v8915_v22  ;;  %7711 = vmatpush.bf16.msra.mxu1 %v8371_v43  ;;  %v12175_v51 = vld [vmem:[%s19558_s1 + $0x4dc] sm:$0xf]  ;;  %v8307_v15 = vor.u32 %v12111_v2, %v8304_v3  ;;  %v7472_v22 = vadd.f32 %v7471_v26, %v7459_v9 }
 0x65b   :  { %v8560_v7 = vld [vmem:[%s19558_s1 + $0x4f8] sm:$0xf0] }
 0x65c   :  { %7724 = vmatpush.bf16.msra.mxu2 %v8627_v16  ;;  %v12239_v39 = vld [vmem:[%s19558_s1 + $0x6dc] sm:$0xf]  ;;  %7699 = vmatpush.bf16.msra.mxu0 %v8083_v61  ;;  %v8563_v5 = vor.u32 %v12175_v51, %v8560_v7  ;;  %v7485_v1 = vadd.f32 %v7484_v32, %v7472_v22 }
 0x65d   :  { %v8816_v12 = vld [vmem:[%s19558_s1 + $0x6f8] sm:$0xf0] }
 0x65e   :  { %7737 = vmatpush.bf16.msra.mxu3 %v8883_v54  ;;  %7712 = vmatpush.bf16.msra.mxu1 %v8339_v58  ;;  %v12039_v36 = vld [vmem:[%s19558_s1 + $0x9c] sm:$0xf]  ;;  %v8819_v17 = vor.u32 %v12239_v39, %v8816_v12  ;;  %v7909_v52 = vmax.f32 %v7485_v1, 0.0 }
 0x65f   :  { %v8016_v10 = vld [vmem:[%s19558_s1 + $0xb8] sm:$0xf0] }
 0x660   :  { %7725 = vmatpush.bf16.msra.mxu2 %v8595_v63  ;;  %v12103_v13 = vld [vmem:[%s19558_s1 + $0x29c] sm:$0xf]  ;;  %7700 = vmatpush.bf16.msra.mxu0 %v8051_v24  ;;  %v8019_v34 = vor.u32 %v12039_v36, %v8016_v10  ;;  %v7914_v58 = vpack.c.bf16 %v7909_v52, %v7908_v62  ;;  %v7473_v12 = vpop.f32.mrf.mxu2 }
 0x661   :  { %v8272_v18 = vld [vmem:[%s19558_s1 + $0x2b8] sm:$0xf0]  ;;  %v7497_v12 = vpop.f32.mrf.mxu0 }
 0x662   :  { %7738 = vmatpush.bf16.msra.mxu3 %v8851_v8  ;;  %v12167_v55 = vld [vmem:[%s19558_s1 + $0x49c] sm:$0xf]  ;;  %7713 = vmatpush.bf16.msra.mxu1 %v8307_v15  ;;  %v8275_v43 = vor.u32 %v12103_v13, %v8272_v18  ;;  %7918 = vst [vmem:[%s19561_s3 + $0x10] sm:$0xff] %v7914_v58  ;;  %v7486_v15 = vpop.f32.mrf.mxu3 }
 0x663   :  { %v8528_v27 = vld [vmem:[%s19558_s1 + $0x4b8] sm:$0xf0] }
 0x664   :  { %v12231_v40 = vld [vmem:[%s19558_s1 + $0x69c] sm:$0xf]  ;;  %7726 = vmatpush.bf16.msra.mxu2 %v8563_v5  ;;  %v8531_v16 = vor.u32 %v12167_v55, %v8528_v27  ;;  %7701 = vmatpush.bf16.msra.mxu0 %v8019_v34 }
 0x665   :  { %v8784_v19 = vld [vmem:[%s19558_s1 + $0x6b8] sm:$0xf0] }
 0x666   :  { %v12031_v11 = vld [vmem:[%s19558_s1 + $0x5c] sm:$0xf]  ;;  %7739 = vmatpush.bf16.msra.mxu3 %v8819_v17  ;;  %v8787_v54 = vor.u32 %v12231_v40, %v8784_v19  ;;  %7714 = vmatpush.bf16.msra.mxu1 %v8275_v43 }
 0x667   :  { %v7984_v45 = vld [vmem:[%s19558_s1 + $0x78] sm:$0xf0] }
 0x668   :  { %v12095_v48 = vld [vmem:[%s19558_s1 + $0x25c] sm:$0xf]  ;;  %v7987_v61 = vor.u32 %v12031_v11, %v7984_v45  ;;  %7727 = vmatpush.bf16.msra.mxu2 %v8531_v16 }
 0x669   :  { %v8240_v47 = vld [vmem:[%s19558_s1 + $0x278] sm:$0xf0] }
 0x66a   :  { %v12159_v50 = vld [vmem:[%s19558_s1 + $0x45c] sm:$0xf]  ;;  %v8243_v63 = vor.u32 %v12095_v48, %v8240_v47  ;;  %7740 = vmatpush.bf16.msra.mxu3 %v8787_v54  ;;  %7702 = vmatpush.bf16.msra.mxu0 %v7987_v61 }
 0x66b   :  { %v8496_v46 = vld [vmem:[%s19558_s1 + $0x478] sm:$0xf0] }
 0x66c   :  { %v12223_v53 = vld [vmem:[%s19558_s1 + $0x65c] sm:$0xf]  ;;  %v8499_v59 = vor.u32 %v12159_v50, %v8496_v46  ;;  %7715 = vmatpush.bf16.msra.mxu1 %v8243_v63 }
 0x66d   :  { %v8752_v14 = vld [vmem:[%s19558_s1 + $0x678] sm:$0xf0] }
 0x66e   :  { %v12023_v56 = vld [vmem:[%s19558_s1 + $0x1c] sm:$0xf]  ;;  %v8755_v3 = vor.u32 %v12223_v53, %v8752_v14  ;;  %7728 = vmatpush.bf16.msra.mxu2 %v8499_v59 }
 0x66f   :  { %v7952_v57 = vld [vmem:[%s19558_s1 + $0x38] sm:$0xf0] }
 0x670   :  { %v12087_v0 = vld [vmem:[%s19558_s1 + $0x21c] sm:$0xf]  ;;  %v7955_v5 = vor.u32 %v12023_v56, %v7952_v57  ;;  %7741 = vmatpush.bf16.msra.mxu3 %v8755_v3 }
 0x671   :  { %v8208_v60 = vld [vmem:[%s19558_s1 + $0x238] sm:$0xf0] }
 0x672   :  { %v12151_v2 = vld [vmem:[%s19558_s1 + $0x41c] sm:$0xf]  ;;  %v8211_v17 = vor.u32 %v12087_v0, %v8208_v60  ;;  %7703 = vmatpush.bf16.msra.mxu0 %v7955_v5 }
 0x673   :  { %v8464_v8 = vld [vmem:[%s19558_s1 + $0x438] sm:$0xf0] }
 0x674   :  { %v12215_v51 = vld [vmem:[%s19558_s1 + $0x61c] sm:$0xf]  ;;  %v8467_v26 = vor.u32 %v12151_v2, %v8464_v8  ;;  %7716 = vmatpush.bf16.msra.mxu1 %v8211_v17 }
 0x675   :  { %v8720_v7 = vld [vmem:[%s19558_s1 + $0x638] sm:$0xf0]  ;;  %7704 = vmatmul.bf16.vlgmr.msra.gmra.mxu0 %v13369_v20  ;;  %v19038_v20 = vld [vmem:[%s19560_s2] sm:$0xff] }
 0x676   :  { %v12335_v39 = vld [vmem:[%s19558_s1 + $0x9dc] sm:$0xf]  ;;  %v8723_v27 = vor.u32 %v12215_v51, %v8720_v7  ;;  %7729 = vmatpush.bf16.msra.mxu2 %v8467_v26  ;;  %v1054_v60 = vperm.slane %v19038_v20, 6 }
 0x677   :  { %v9200_v24 = vld [vmem:[%s19558_s1 + $0x9f8] sm:$0xf0]  ;;  %7717 = vmatmul.bf16.vlgmr.msra.gmra.mxu1 %v13372_v21 }
 0x678   :  { %v12399_v9 = vld [vmem:[%s19558_s1 + $0xbdc] sm:$0xf]  ;;  %v9203_v22 = vor.u32 %v12335_v39, %v9200_v24  ;;  %7742 = vmatpush.bf16.msra.mxu3 %v8723_v27 }
 0x679   :  { %v9456_v36 = vld [vmem:[%s19558_s1 + $0xbf8] sm:$0xf0]  ;;  %7730 = vmatmul.bf16.vlgmr.msra.gmra.mxu2 %v13337_v4 }
 0x67a   :  { %v12463_v10 = vld [vmem:[%s19558_s1 + $0xddc] sm:$0xf]  ;;  %v9459_v32 = vor.u32 %v12399_v9, %v9456_v36  ;;  %7748 = vmatpush.bf16.msrb.mxu0 %v9203_v22 }
 0x67b   :  { %v9712_v13 = vld [vmem:[%s19558_s1 + $0xdf8] sm:$0xf0]  ;;  %7743 = vmatmul.bf16.vlgmr.msra.gmra.mxu3 %v13342_v6 }
 0x67c   :  { %v12527_v18 = vld [vmem:[%s19558_s1 + $0xfdc] sm:$0xf]  ;;  %v9715_v40 = vor.u32 %v12463_v10, %v9712_v13  ;;  %7761 = vmatpush.bf16.msrb.mxu1 %v9459_v32  ;;  %v7498_v10 = vadd.f32 %v7497_v12, %v1054_v60  ;;  %v7510_v13 = vpop.f32.mrf.mxu1 }
 0x67d   :  { %v9968_v55 = vld [vmem:[%s19558_s1 + $0xff8] sm:$0xf0] }
 0x67e   :  { %v12327_v19 = vld [vmem:[%s19558_s1 + $0x99c] sm:$0xf]  ;;  %v9971_v37 = vor.u32 %v12527_v18, %v9968_v55  ;;  %7774 = vmatpush.bf16.msrb.mxu2 %v9715_v40  ;;  %v7511_v32 = vadd.f32 %v7510_v13, %v7498_v10 }
 0x67f   :  { %v9168_v49 = vld [vmem:[%s19558_s1 + $0x9b8] sm:$0xf0] }
 0x680   :  { %v12391_v34 = vld [vmem:[%s19558_s1 + $0xb9c] sm:$0xf]  ;;  %v9171_v48 = vor.u32 %v12327_v19, %v9168_v49  ;;  %7787 = vmatpush.bf16.msrb.mxu3 %v9971_v37 }
 0x681   :  { %v9424_v1 = vld [vmem:[%s19558_s1 + $0xbb8] sm:$0xf0] }
 0x682   :  { %v12455_v43 = vld [vmem:[%s19558_s1 + $0xd9c] sm:$0xf]  ;;  %v9427_v54 = vor.u32 %v12391_v34, %v9424_v1  ;;  %7749 = vmatpush.bf16.msrb.mxu0 %v9171_v48 }
 0x683   :  { %v9680_v16 = vld [vmem:[%s19558_s1 + $0xdb8] sm:$0xf0] }
 0x684   :  { %v12519_v11 = vld [vmem:[%s19558_s1 + $0xf9c] sm:$0xf]  ;;  %v9683_v47 = vor.u32 %v12455_v43, %v9680_v16  ;;  %7762 = vmatpush.bf16.msrb.mxu1 %v9427_v54  ;;  %v7523_v43 = vpop.f32.mrf.mxu2 }
 0x685   :  { %v9936_v45 = vld [vmem:[%s19558_s1 + $0xfb8] sm:$0xf0]  ;;  %v7524_v54 = vadd.f32 %v7523_v43, %v7511_v32 }
 0x686   :  { %v12319_v50 = vld [vmem:[%s19558_s1 + $0x95c] sm:$0xf]  ;;  %v9939_v52 = vor.u32 %v12519_v11, %v9936_v45  ;;  %7775 = vmatpush.bf16.msrb.mxu2 %v9683_v47  ;;  %v7536_v47 = vpop.f32.mrf.mxu3 }
 0x687   :  { %v9136_v46 = vld [vmem:[%s19558_s1 + $0x978] sm:$0xf0] }
 0x688   :  { %v12383_v62 = vld [vmem:[%s19558_s1 + $0xb5c] sm:$0xf]  ;;  %v9139_v0 = vor.u32 %v12319_v50, %v9136_v46  ;;  %7788 = vmatpush.bf16.msrb.mxu3 %v9939_v52  ;;  %v19104_v52 = vadd.f32 %v7536_v47, %v7524_v54 }
 0x689   :  { %v9392_v53 = vld [vmem:[%s19558_s1 + $0xb78] sm:$0xf0] }
 0x68a   :  { %v12447_v14 = vld [vmem:[%s19558_s1 + $0xd5c] sm:$0xf]  ;;  %v9395_v4 = vor.u32 %v12383_v62, %v9392_v53  ;;  %7750 = vmatpush.bf16.msrb.mxu0 %v9139_v0  ;;  %v7499_v53 = vpop.f32.mrf.mxu0 }
 0x68b   :  { %v9648_v61 = vld [vmem:[%s19558_s1 + $0xd78] sm:$0xf0] }
 0x68c   :  { %v12511_v56 = vld [vmem:[%s19558_s1 + $0xf5c] sm:$0xf]  ;;  %v9651_v63 = vor.u32 %v12447_v14, %v9648_v61  ;;  %7763 = vmatpush.bf16.msrb.mxu1 %v9395_v4 }
 0x68d   :  { %v9904_v57 = vld [vmem:[%s19558_s1 + $0xf78] sm:$0xf0] }
 0x68e   :  { %v12311_v58 = vld [vmem:[%s19558_s1 + $0x91c] sm:$0xf]  ;;  %v9907_v21 = vor.u32 %v12511_v56, %v9904_v57  ;;  %7776 = vmatpush.bf16.msrb.mxu2 %v9651_v63  ;;  %v7538_v13 = vpop.f32.mrf.mxu3 }
 0x68f   :  { %v9104_v59 = vld [vmem:[%s19558_s1 + $0x938] sm:$0xf0] }
 0x690   :  { %v12375_v6 = vld [vmem:[%s19558_s1 + $0xb1c] sm:$0xf]  ;;  %v9107_v39 = vor.u32 %v12311_v58, %v9104_v59  ;;  %7789 = vmatpush.bf16.msrb.mxu3 %v9907_v21  ;;  %v7512_v58 = vpop.f32.mrf.mxu1 }
 0x691   :  { %v9360_v2 = vld [vmem:[%s19558_s1 + $0xb38] sm:$0xf0] }
 0x692   :  { %v12439_v8 = vld [vmem:[%s19558_s1 + $0xd1c] sm:$0xf]  ;;  %v9363_v24 = vor.u32 %v12375_v6, %v9360_v2  ;;  %7751 = vmatpush.bf16.msrb.mxu0 %v9107_v39 }
 0x693   :  { %v9616_v3 = vld [vmem:[%s19558_s1 + $0xd38] sm:$0xf0] }
 0x694   :  { %v12503_v51 = vld [vmem:[%s19558_s1 + $0xf1c] sm:$0xf]  ;;  %v9619_v9 = vor.u32 %v12439_v8, %v9616_v3  ;;  %7764 = vmatpush.bf16.msrb.mxu1 %v9363_v24 }
 0x695   :  { %v9872_v7 = vld [vmem:[%s19558_s1 + $0xf38] sm:$0xf0] }
 0x696   :  { %v12303_v15 = vld [vmem:[%s19558_s1 + $0x8dc] sm:$0xf]  ;;  %v9875_v17 = vor.u32 %v12503_v51, %v9872_v7  ;;  %7777 = vmatpush.bf16.msrb.mxu2 %v9619_v9  ;;  %v7525_v9 = vpop.f32.mrf.mxu2 }
 0x697   :  { %v9072_v5 = vld [vmem:[%s19558_s1 + $0x8f8] sm:$0xf0] }
 0x698   :  { %v12367_v36 = vld [vmem:[%s19558_s1 + $0xadc] sm:$0xf]  ;;  %v9075_v40 = vor.u32 %v12303_v15, %v9072_v5  ;;  %7790 = vmatpush.bf16.msrb.mxu3 %v9875_v17 }
 0x699   :  { %v9328_v26 = vld [vmem:[%s19558_s1 + $0xaf8] sm:$0xf0] }
 0x69a   :  { %v12431_v18 = vld [vmem:[%s19558_s1 + $0xcdc] sm:$0xf]  ;;  %v9331_v19 = vor.u32 %v12367_v36, %v9328_v26  ;;  %7752 = vmatpush.bf16.msrb.mxu0 %v9075_v40 }
 0x69b   :  { %v9584_v55 = vld [vmem:[%s19558_s1 + $0xcf8] sm:$0xf0] }
 0x69c   :  { %v12495_v27 = vld [vmem:[%s19558_s1 + $0xedc] sm:$0xf]  ;;  %v9587_v49 = vor.u32 %v12431_v18, %v9584_v55  ;;  %7765 = vmatpush.bf16.msrb.mxu1 %v9331_v19 }
 0x69d   :  { %v9840_v22 = vld [vmem:[%s19558_s1 + $0xef8] sm:$0xf0] }
 0x69e   :  { %v12295_v34 = vld [vmem:[%s19558_s1 + $0x89c] sm:$0xf]  ;;  %v9843_v16 = vor.u32 %v12495_v27, %v9840_v22  ;;  %7778 = vmatpush.bf16.msrb.mxu2 %v9587_v49 }
 0x69f   :  { %v9040_v37 = vld [vmem:[%s19558_s1 + $0x8b8] sm:$0xf0] }
 0x6a0   :  { %v12359_v1 = vld [vmem:[%s19558_s1 + $0xa9c] sm:$0xf]  ;;  %v9043_v62 = vor.u32 %v12295_v34, %v9040_v37  ;;  %7791 = vmatpush.bf16.msrb.mxu3 %v9843_v16 }
 0x6a1   :  { %v9296_v11 = vld [vmem:[%s19558_s1 + $0xab8] sm:$0xf0] }
 0x6a2   :  { %v12423_v45 = vld [vmem:[%s19558_s1 + $0xc9c] sm:$0xf]  ;;  %v9299_v14 = vor.u32 %v12359_v1, %v9296_v11  ;;  %7753 = vmatpush.bf16.msrb.mxu0 %v9043_v62 }
 0x6a3   :  { %v9552_v48 = vld [vmem:[%s19558_s1 + $0xcb8] sm:$0xf0] }
 0x6a4   :  { %v12487_v50 = vld [vmem:[%s19558_s1 + $0xe9c] sm:$0xf]  ;;  %v9555_v61 = vor.u32 %v12423_v45, %v9552_v48  ;;  %7766 = vmatpush.bf16.msrb.mxu1 %v9299_v14 }
 0x6a5   :  { %v9808_v46 = vld [vmem:[%s19558_s1 + $0xeb8] sm:$0xf0] }
 0x6a6   :  { %v12287_v56 = vld [vmem:[%s19558_s1 + $0x85c] sm:$0xf]  ;;  %v9811_v4 = vor.u32 %v12487_v50, %v9808_v46  ;;  %7779 = vmatpush.bf16.msrb.mxu2 %v9555_v61 }
 0x6a7   :  { %v9008_v57 = vld [vmem:[%s19558_s1 + $0x878] sm:$0xf0] }
 0x6a8   :  { %v12351_v0 = vld [vmem:[%s19558_s1 + $0xa5c] sm:$0xf]  ;;  %v9011_v2 = vor.u32 %v12287_v56, %v9008_v57  ;;  %7792 = vmatpush.bf16.msrb.mxu3 %v9811_v4 }
 0x6a9   :  { %v9264_v63 = vld [vmem:[%s19558_s1 + $0xa78] sm:$0xf0] }
 0x6aa   :  { %v12415_v59 = vld [vmem:[%s19558_s1 + $0xc5c] sm:$0xf]  ;;  %v9267_v51 = vor.u32 %v12351_v0, %v9264_v63  ;;  %7754 = vmatpush.bf16.msrb.mxu0 %v9011_v2 }
 0x6ab   :  { %v9520_v6 = vld [vmem:[%s19558_s1 + $0xc78] sm:$0xf0] }
 0x6ac   :  { %v12479_v60 = vld [vmem:[%s19558_s1 + $0xe5c] sm:$0xf]  ;;  %v9523_v7 = vor.u32 %v12415_v59, %v9520_v6  ;;  %7767 = vmatpush.bf16.msrb.mxu1 %v9267_v51 }
 0x6ad   :  { %v9776_v21 = vld [vmem:[%s19558_s1 + $0xe78] sm:$0xf0] }
 0x6ae   :  { %v12279_v8 = vld [vmem:[%s19558_s1 + $0x81c] sm:$0xf]  ;;  %v9779_v15 = vor.u32 %v12479_v60, %v9776_v21  ;;  %7780 = vmatpush.bf16.msrb.mxu2 %v9523_v7 }
 0x6af   :  { %v8976_v3 = vld [vmem:[%s19558_s1 + $0x838] sm:$0xf0] }
 0x6b0   :  { %v12343_v39 = vld [vmem:[%s19558_s1 + $0xa1c] sm:$0xf]  ;;  %v8979_v55 = vor.u32 %v12279_v8, %v8976_v3  ;;  %7793 = vmatpush.bf16.msrb.mxu3 %v9779_v15  ;;  %v7549_v15 = vpop.f32.mrf.mxu0 }
 0x6b1   :  { %v9232_v12 = vld [vmem:[%s19558_s1 + $0xa38] sm:$0xf0] }
 0x6b2   :  { %v12407_v24 = vld [vmem:[%s19558_s1 + $0xc1c] sm:$0xf]  ;;  %v9235_v40 = vor.u32 %v12343_v39, %v9232_v12  ;;  %7755 = vmatpush.bf16.msrb.mxu0 %v8979_v55 }
 0x6b3   :  { %v9488_v5 = vld [vmem:[%s19558_s1 + $0xc38] sm:$0xf0] }
 0x6b4   :  { %v12471_v36 = vld [vmem:[%s19558_s1 + $0xe1c] sm:$0xf]  ;;  %v9491_v19 = vor.u32 %v12407_v24, %v9488_v5  ;;  %7768 = vmatpush.bf16.msrb.mxu1 %v9235_v40 }
 0x6b5   :  { %v9744_v10 = vld [vmem:[%s19558_s1 + $0xe38] sm:$0xf0]  ;;  %7756 = vmatmul.bf16.vlgmr.msrb.gmra.mxu0 %v13528_v41 }
 0x6b6   :  { %v12591_v17 = vld [vmem:[%s19558_s1 + $0x11dc] sm:$0xf]  ;;  %v9747_v37 = vor.u32 %v12471_v36, %v9744_v10  ;;  %7781 = vmatpush.bf16.msrb.mxu2 %v9491_v19 }
 0x6b7   :  { %v10224_v26 = vld [vmem:[%s19558_s1 + $0x11f8] sm:$0xf0]  ;;  %7769 = vmatmul.bf16.vlgmr.msrb.gmra.mxu1 %v13532_v44 }
 0x6b8   :  { %v12655_v18 = vld [vmem:[%s19558_s1 + $0x13dc] sm:$0xf]  ;;  %v10227_v1 = vor.u32 %v12591_v17, %v10224_v26  ;;  %7794 = vmatpush.bf16.msrb.mxu3 %v9747_v37  ;;  %v7550_v26 = vadd.f32 %v7549_v15, %v19104_v52 }
 0x6b9   :  { %v10480_v27 = vld [vmem:[%s19558_s1 + $0x13f8] sm:$0xf0]  ;;  %7782 = vmatmul.bf16.vlgmr.msrb.gmra.mxu2 %v13520_v38 }
 0x6ba   :  { %v12719_v22 = vld [vmem:[%s19558_s1 + $0x15dc] sm:$0xf]  ;;  %v10483_v43 = vor.u32 %v12655_v18, %v10480_v27  ;;  %7800 = vmatpush.bf16.msra.mxu0 %v10227_v1  ;;  %v7562_v18 = vpop.f32.mrf.mxu1 }
 0x6bb   :  { %v10736_v32 = vld [vmem:[%s19558_s1 + $0x15f8] sm:$0xf0]  ;;  %7795 = vmatmul.bf16.vlgmr.msrb.gmra.mxu3 %v13530_v42  ;;  %v7563_v19 = vadd.f32 %v7562_v18, %v7550_v26 }
 0x6bc   :  { %v12783_v49 = vld [vmem:[%s19558_s1 + $0x17dc] sm:$0xf]  ;;  %v10739_v16 = vor.u32 %v12719_v22, %v10736_v32  ;;  %7813 = vmatpush.bf16.msra.mxu1 %v10483_v43 }
 0x6bd   :  { %v10992_v34 = vld [vmem:[%s19558_s1 + $0x17f8] sm:$0xf0] }
 0x6be   :  { %v12583_v11 = vld [vmem:[%s19558_s1 + $0x119c] sm:$0xf]  ;;  %v10995_v54 = vor.u32 %v12783_v49, %v10992_v34  ;;  %7826 = vmatpush.bf16.msra.mxu2 %v10739_v16 }
 0x6bf   :  { %v10192_v45 = vld [vmem:[%s19558_s1 + $0x11b8] sm:$0xf0] }
 0x6c0   :  { %v12647_v48 = vld [vmem:[%s19558_s1 + $0x139c] sm:$0xf]  ;;  %v10195_v14 = vor.u32 %v12583_v11, %v10192_v45  ;;  %7839 = vmatpush.bf16.msra.mxu3 %v10995_v54  ;;  %v7575_v11 = vpop.f32.mrf.mxu2 }
 0x6c1   :  { %v10448_v47 = vld [vmem:[%s19558_s1 + $0x13b8] sm:$0xf0] }
 0x6c2   :  { %v12711_v50 = vld [vmem:[%s19558_s1 + $0x159c] sm:$0xf]  ;;  %v10451_v61 = vor.u32 %v12647_v48, %v10448_v47  ;;  %7801 = vmatpush.bf16.msra.mxu0 %v10195_v14 }
 0x6c3   :  { %v10704_v46 = vld [vmem:[%s19558_s1 + $0x15b8] sm:$0xf0] }
 0x6c4   :  { %v12775_v62 = vld [vmem:[%s19558_s1 + $0x179c] sm:$0xf]  ;;  %v10707_v56 = vor.u32 %v12711_v50, %v10704_v46  ;;  %7814 = vmatpush.bf16.msra.mxu1 %v10451_v61  ;;  %v7576_v50 = vadd.f32 %v7575_v11, %v7563_v19  ;;  %v7588_v46 = vpop.f32.mrf.mxu3 }
 0x6c5   :  { %v10960_v53 = vld [vmem:[%s19558_s1 + $0x17b8] sm:$0xf0] }
 0x6c6   :  { %v12575_v57 = vld [vmem:[%s19558_s1 + $0x115c] sm:$0xf]  ;;  %v10963_v4 = vor.u32 %v12775_v62, %v10960_v53  ;;  %7827 = vmatpush.bf16.msra.mxu2 %v10707_v56  ;;  %v19303_v61 = vadd.f32 %v7588_v46, %v7576_v50  ;;  %v7551_v56 = vpop.f32.mrf.mxu0 }
 0x6c7   :  { %v10160_v0 = vld [vmem:[%s19558_s1 + $0x1178] sm:$0xf0] }
 0x6c8   :  { %v12639_v58 = vld [vmem:[%s19558_s1 + $0x135c] sm:$0xf]  ;;  %v10163_v21 = vor.u32 %v12575_v57, %v10160_v0  ;;  %7840 = vmatpush.bf16.msra.mxu3 %v10963_v4 }
 0x6c9   :  { %v10416_v63 = vld [vmem:[%s19558_s1 + $0x1378] sm:$0xf0] }
 0x6ca   :  { %v12703_v59 = vld [vmem:[%s19558_s1 + $0x155c] sm:$0xf]  ;;  %v10419_v2 = vor.u32 %v12639_v58, %v10416_v63  ;;  %7802 = vmatpush.bf16.msra.mxu0 %v10163_v21 }
 0x6cb   :  { %v10672_v6 = vld [vmem:[%s19558_s1 + $0x1578] sm:$0xf0] }
 0x6cc   :  { %v12767_v60 = vld [vmem:[%s19558_s1 + $0x175c] sm:$0xf]  ;;  %v10675_v8 = vor.u32 %v12703_v59, %v10672_v6  ;;  %7815 = vmatpush.bf16.msra.mxu1 %v10419_v2  ;;  %v7564_v59 = vpop.f32.mrf.mxu1 }
 0x6cd   :  { %v10928_v38 = vld [vmem:[%s19558_s1 + $0x1778] sm:$0xf0] }
 0x6ce   :  { %v12567_v3 = vld [vmem:[%s19558_s1 + $0x111c] sm:$0xf]  ;;  %v10931_v42 = vor.u32 %v12767_v60, %v10928_v38  ;;  %7828 = vmatpush.bf16.msra.mxu2 %v10675_v8 }
 0x6cf   :  { %v10128_v51 = vld [vmem:[%s19558_s1 + $0x1138] sm:$0xf0] }
 0x6d0   :  { %v12631_v41 = vld [vmem:[%s19558_s1 + $0x131c] sm:$0xf]  ;;  %v10131_v9 = vor.u32 %v12567_v3, %v10128_v51  ;;  %7841 = vmatpush.bf16.msra.mxu3 %v10931_v42 }
 0x6d1   :  { %v10384_v44 = vld [vmem:[%s19558_s1 + $0x1338] sm:$0xf0] }
 0x6d2   :  { %v12695_v7 = vld [vmem:[%s19558_s1 + $0x151c] sm:$0xf]  ;;  %v10387_v5 = vor.u32 %v12631_v41, %v10384_v44  ;;  %7803 = vmatpush.bf16.msra.mxu0 %v10131_v9 }
 0x6d3   :  { %v10640_v39 = vld [vmem:[%s19558_s1 + $0x1538] sm:$0xf0] }
 0x6d4   :  { %v12759_v12 = vld [vmem:[%s19558_s1 + $0x171c] sm:$0xf]  ;;  %v10643_v36 = vor.u32 %v12695_v7, %v10640_v39  ;;  %7816 = vmatpush.bf16.msra.mxu1 %v10387_v5 }
 0x6d5   :  { %v10896_v24 = vld [vmem:[%s19558_s1 + $0x1738] sm:$0xf0] }
 0x6d6   :  { %v12559_v10 = vld [vmem:[%s19558_s1 + $0x10dc] sm:$0xf]  ;;  %v10899_v55 = vor.u32 %v12759_v12, %v10896_v24  ;;  %7829 = vmatpush.bf16.msra.mxu2 %v10643_v36  ;;  %v7577_v24 = vpop.f32.mrf.mxu2 }
 0x6d7   :  { %v10096_v13 = vld [vmem:[%s19558_s1 + $0x10f8] sm:$0xf0] }
 0x6d8   :  { %v12623_v17 = vld [vmem:[%s19558_s1 + $0x12dc] sm:$0xf]  ;;  %v10099_v49 = vor.u32 %v12559_v10, %v10096_v13  ;;  %7842 = vmatpush.bf16.msra.mxu3 %v10899_v55  ;;  %v7590_v10 = vpop.f32.mrf.mxu3 }
 0x6d9   :  { %v10352_v27 = vld [vmem:[%s19558_s1 + $0x12f8] sm:$0xf0] }
 0x6da   :  { %v12687_v22 = vld [vmem:[%s19558_s1 + $0x14dc] sm:$0xf]  ;;  %v10355_v34 = vor.u32 %v12623_v17, %v10352_v27  ;;  %7804 = vmatpush.bf16.msra.mxu0 %v10099_v49 }
 0x6db   :  { %v10608_v32 = vld [vmem:[%s19558_s1 + $0x14f8] sm:$0xf0] }
 0x6dc   :  { %v12751_v40 = vld [vmem:[%s19558_s1 + $0x16dc] sm:$0xf]  ;;  %v10611_v37 = vor.u32 %v12687_v22, %v10608_v32  ;;  %7817 = vmatpush.bf16.msra.mxu1 %v10355_v34 }
 0x6dd   :  { %v10864_v52 = vld [vmem:[%s19558_s1 + $0x16f8] sm:$0xf0] }
 0x6de   :  { %v12551_v1 = vld [vmem:[%s19558_s1 + $0x109c] sm:$0xf]  ;;  %v10867_v45 = vor.u32 %v12751_v40, %v10864_v52  ;;  %7830 = vmatpush.bf16.msra.mxu2 %v10611_v37 }
 0x6df   :  { %v10064_v43 = vld [vmem:[%s19558_s1 + $0x10b8] sm:$0xf0] }
 0x6e0   :  { %v12615_v16 = vld [vmem:[%s19558_s1 + $0x129c] sm:$0xf]  ;;  %v10067_v14 = vor.u32 %v12551_v1, %v10064_v43  ;;  %7843 = vmatpush.bf16.msra.mxu3 %v10867_v45 }
 0x6e1   :  { %v10320_v48 = vld [vmem:[%s19558_s1 + $0x12b8] sm:$0xf0] }
 0x6e2   :  { %v12679_v54 = vld [vmem:[%s19558_s1 + $0x149c] sm:$0xf]  ;;  %v10323_v57 = vor.u32 %v12615_v16, %v10320_v48  ;;  %7805 = vmatpush.bf16.msra.mxu0 %v10067_v14 }
 0x6e3   :  { %v10576_v47 = vld [vmem:[%s19558_s1 + $0x14b8] sm:$0xf0] }
 0x6e4   :  { %v12743_v62 = vld [vmem:[%s19558_s1 + $0x169c] sm:$0xf]  ;;  %v10579_v0 = vor.u32 %v12679_v54, %v10576_v47  ;;  %7818 = vmatpush.bf16.msra.mxu1 %v10323_v57 }
 0x6e5   :  { %v10832_v53 = vld [vmem:[%s19558_s1 + $0x16b8] sm:$0xf0] }
 0x6e6   :  { %v12543_v58 = vld [vmem:[%s19558_s1 + $0x105c] sm:$0xf]  ;;  %v10835_v6 = vor.u32 %v12743_v62, %v10832_v53  ;;  %7831 = vmatpush.bf16.msra.mxu2 %v10579_v0 }
 0x6e7   :  { %v10032_v4 = vld [vmem:[%s19558_s1 + $0x1078] sm:$0xf0] }
 0x6e8   :  { %v12607_v63 = vld [vmem:[%s19558_s1 + $0x125c] sm:$0xf]  ;;  %v10035_v3 = vor.u32 %v12543_v58, %v10032_v4  ;;  %7844 = vmatpush.bf16.msra.mxu3 %v10835_v6 }
 0x6e9   :  { %v10288_v60 = vld [vmem:[%s19558_s1 + $0x1278] sm:$0xf0] }
 0x6ea   :  { %v12671_v38 = vld [vmem:[%s19558_s1 + $0x145c] sm:$0xf]  ;;  %v10291_v42 = vor.u32 %v12607_v63, %v10288_v60  ;;  %7806 = vmatpush.bf16.msra.mxu0 %v10035_v3 }
 0x6eb   :  { %v10544_v21 = vld [vmem:[%s19558_s1 + $0x1478] sm:$0xf0] }
 0x6ec   :  { %v12735_v2 = vld [vmem:[%s19558_s1 + $0x165c] sm:$0xf]  ;;  %v10547_v44 = vor.u32 %v12671_v38, %v10544_v21  ;;  %7819 = vmatpush.bf16.msra.mxu1 %v10291_v42 }
 0x6ed   :  { %v10800_v8 = vld [vmem:[%s19558_s1 + $0x1678] sm:$0xf0] }
 0x6ee   :  { %v12535_v51 = vld [vmem:[%s19558_s1 + $0x101c] sm:$0xf]  ;;  %v10803_v9 = vor.u32 %v12735_v2, %v10800_v8  ;;  %7832 = vmatpush.bf16.msra.mxu2 %v10547_v44 }
 0x6ef   :  { %v10000_v41 = vld [vmem:[%s19558_s1 + $0x1038] sm:$0xf0] }
 0x6f0   :  { %v12599_v7 = vld [vmem:[%s19558_s1 + $0x121c] sm:$0xf]  ;;  %v10003_v18 = vor.u32 %v12535_v51, %v10000_v41  ;;  %7845 = vmatpush.bf16.msra.mxu3 %v10803_v9  ;;  %v7601_v41 = vpop.f32.mrf.mxu0 }
 0x6f1   :  { %v10256_v39 = vld [vmem:[%s19558_s1 + $0x1238] sm:$0xf0] }
 0x6f2   :  { %v12663_v12 = vld [vmem:[%s19558_s1 + $0x141c] sm:$0xf]  ;;  %v10259_v32 = vor.u32 %v12599_v7, %v10256_v39  ;;  %7807 = vmatpush.bf16.msra.mxu0 %v10003_v18  ;;  %v7602_v7 = vadd.f32 %v7601_v41, %v19303_v61 }
 0x6f3   :  { %v10512_v15 = vld [vmem:[%s19558_s1 + $0x1438] sm:$0xf0] }
 0x6f4   :  { %v12727_v5 = vld [vmem:[%s19558_s1 + $0x161c] sm:$0xf]  ;;  %v10515_v40 = vor.u32 %v12663_v12, %v10512_v15  ;;  %7820 = vmatpush.bf16.msra.mxu1 %v10259_v32  ;;  %v7614_v12 = vpop.f32.mrf.mxu1 }
 0x6f5   :  { %v10768_v36 = vld [vmem:[%s19558_s1 + $0x1638] sm:$0xf0]  ;;  %7808 = vmatmul.bf16.vlgmr.msra.gmra.mxu0 %v13721_v25  ;;  %v7615_v10 = vadd.f32 %v7614_v12, %v7602_v7 }
 0x6f6   :  { %v12847_v13 = vld [vmem:[%s19558_s1 + $0x19dc] sm:$0xf]  ;;  %v10771_v49 = vor.u32 %v12727_v5, %v10768_v36  ;;  %7833 = vmatpush.bf16.msra.mxu2 %v10515_v40 }
 0x6f7   :  { %v11248_v17 = vld [vmem:[%s19558_s1 + $0x19f8] sm:$0xf0]  ;;  %7821 = vmatmul.bf16.vlgmr.msra.gmra.mxu1 %v13734_v30 }
 0x6f8   :  { %v12911_v26 = vld [vmem:[%s19558_s1 + $0x1bdc] sm:$0xf]  ;;  %v11251_v34 = vor.u32 %v12847_v13, %v11248_v17  ;;  %7846 = vmatpush.bf16.msra.mxu3 %v10771_v49 }
 0x6f9   :  { %v11504_v55 = vld [vmem:[%s19558_s1 + $0x1bf8] sm:$0xf0]  ;;  %7834 = vmatmul.bf16.vlgmr.msra.gmra.mxu2 %v13732_v29 }
 0x6fa   :  { %v12975_v27 = vld [vmem:[%s19558_s1 + $0x1ddc] sm:$0xf]  ;;  %v11507_v37 = vor.u32 %v12911_v26, %v11504_v55  ;;  %7852 = vmatpush.bf16.msrb.mxu0 %v11251_v34  ;;  %v7627_v34 = vpop.f32.mrf.mxu2 }
 0x6fb   :  { %v11760_v22 = vld [vmem:[%s19558_s1 + $0x1df8] sm:$0xf0]  ;;  %7847 = vmatmul.bf16.vlgmr.msra.gmra.mxu3 %v13742_v33 }
 0x6fc   :  { %v13039_v52 = vld [vmem:[%s19558_s1 + $0x1fdc] sm:$0xf]  ;;  %v11763_v1 = vor.u32 %v12975_v27, %v11760_v22  ;;  %7865 = vmatpush.bf16.msrb.mxu1 %v11507_v37 }
 0x6fd   :  { %v12016_v19 = vld [vmem:[%s19558_s1 + $0x1ff8] sm:$0xf0] }
 0x6fe   :  { %v12839_v43 = vld [vmem:[%s19558_s1 + $0x199c] sm:$0xf]  ;;  %v12019_v45 = vor.u32 %v13039_v52, %v12016_v19  ;;  %7878 = vmatpush.bf16.msrb.mxu2 %v11763_v1 }
 0x6ff   :  { %v11216_v16 = vld [vmem:[%s19558_s1 + $0x19b8] sm:$0xf0] }
 0x700   :  { %v12903_v11 = vld [vmem:[%s19558_s1 + $0x1b9c] sm:$0xf]  ;;  %v11219_v62 = vor.u32 %v12839_v43, %v11216_v16  ;;  %7891 = vmatpush.bf16.msrb.mxu3 %v12019_v45  ;;  %v7628_v16 = vadd.f32 %v7627_v34, %v7615_v10 }
 0x701   :  { %v11472_v48 = vld [vmem:[%s19558_s1 + $0x1bb8] sm:$0xf0] }
 0x702   :  { %v12967_v54 = vld [vmem:[%s19558_s1 + $0x1d9c] sm:$0xf]  ;;  %v11475_v53 = vor.u32 %v12903_v11, %v11472_v48  ;;  %7853 = vmatpush.bf16.msrb.mxu0 %v11219_v62  ;;  %v7640_v11 = vpop.f32.mrf.mxu3 }
 0x703   :  { %v11728_v47 = vld [vmem:[%s19558_s1 + $0x1db8] sm:$0xf0] }
 0x704   :  { %v13031_v50 = vld [vmem:[%s19558_s1 + $0x1f9c] sm:$0xf]  ;;  %v11731_v14 = vor.u32 %v12967_v54, %v11728_v47  ;;  %7866 = vmatpush.bf16.msrb.mxu1 %v11475_v53  ;;  %v7603_v54 = vpop.f32.mrf.mxu0 }
 0x705   :  { %v11984_v46 = vld [vmem:[%s19558_s1 + $0x1fb8] sm:$0xf0] }
 0x706   :  { %v12831_v56 = vld [vmem:[%s19558_s1 + $0x195c] sm:$0xf]  ;;  %v11987_v58 = vor.u32 %v13031_v50, %v11984_v46  ;;  %7879 = vmatpush.bf16.msrb.mxu2 %v11731_v14  ;;  %v7616_v50 = vpop.f32.mrf.mxu1  ;;  %v7641_v46 = vadd.f32 %v7640_v11, %v7628_v16 }
 0x707   :  { %v11184_v57 = vld [vmem:[%s19558_s1 + $0x1978] sm:$0xf0] }
 0x708   :  { %v12895_v0 = vld [vmem:[%s19558_s1 + $0x1b5c] sm:$0xf]  ;;  %v11187_v60 = vor.u32 %v12831_v56, %v11184_v57  ;;  %7892 = vmatpush.bf16.msrb.mxu3 %v11987_v58 }
 0x709   :  { %v11440_v4 = vld [vmem:[%s19558_s1 + $0x1b78] sm:$0xf0] }
 0x70a   :  { %v12959_v63 = vld [vmem:[%s19558_s1 + $0x1d5c] sm:$0xf]  ;;  %v11443_v38 = vor.u32 %v12895_v0, %v11440_v4  ;;  %7854 = vmatpush.bf16.msrb.mxu0 %v11187_v60 }
 0x70b   :  { %v11696_v59 = vld [vmem:[%s19558_s1 + $0x1d78] sm:$0xf0] }
 0x70c   :  { %v13023_v25 = vld [vmem:[%s19558_s1 + $0x1f5c] sm:$0xf]  ;;  %v11699_v21 = vor.u32 %v12959_v63, %v11696_v59  ;;  %7867 = vmatpush.bf16.msrb.mxu1 %v11443_v38 }
 0x70d   :  { %v11952_v6 = vld [vmem:[%s19558_s1 + $0x1f78] sm:$0xf0] }
 0x70e   :  { %v12823_v29 = vld [vmem:[%s19558_s1 + $0x191c] sm:$0xf]  ;;  %v11955_v33 = vor.u32 %v13023_v25, %v11952_v6  ;;  %7880 = vmatpush.bf16.msrb.mxu2 %v11699_v21 }
 0x70f   :  { %v11152_v30 = vld [vmem:[%s19558_s1 + $0x1938] sm:$0xf0] }
 0x710   :  { %v12887_v2 = vld [vmem:[%s19558_s1 + $0x1b1c] sm:$0xf]  ;;  %v11155_v39 = vor.u32 %v12823_v29, %v11152_v30  ;;  %7893 = vmatpush.bf16.msrb.mxu3 %v11955_v33 }
 0x711   :  { %v11408_v8 = vld [vmem:[%s19558_s1 + $0x1b38] sm:$0xf0] }
 0x712   :  { %v12951_v3 = vld [vmem:[%s19558_s1 + $0x1d1c] sm:$0xf]  ;;  %v11411_v24 = vor.u32 %v12887_v2, %v11408_v8  ;;  %7855 = vmatpush.bf16.msrb.mxu0 %v11155_v39 }
 0x713   :  { %v11664_v51 = vld [vmem:[%s19558_s1 + $0x1d38] sm:$0xf0] }
 0x714   :  { %v13015_v42 = vld [vmem:[%s19558_s1 + $0x1f1c] sm:$0xf]  ;;  %v11667_v9 = vor.u32 %v12951_v3, %v11664_v51  ;;  %7868 = vmatpush.bf16.msrb.mxu1 %v11411_v24  ;;  %v7629_v51 = vpop.f32.mrf.mxu2 }
 0x715   :  { %v11920_v44 = vld [vmem:[%s19558_s1 + $0x1f38] sm:$0xf0] }
 0x716   :  { %v12815_v15 = vld [vmem:[%s19558_s1 + $0x18dc] sm:$0xf]  ;;  %v11923_v61 = vor.u32 %v13015_v42, %v11920_v44  ;;  %7881 = vmatpush.bf16.msrb.mxu2 %v11667_v9  ;;  %v7642_v44 = vpop.f32.mrf.mxu3  ;;  %v7653_v9 = vpop.f32.mrf.mxu0 }
 0x717   :  { %v11120_v5 = vld [vmem:[%s19558_s1 + $0x18f8] sm:$0xf0] }
 0x718   :  { %v12879_v36 = vld [vmem:[%s19558_s1 + $0x1adc] sm:$0xf]  ;;  %v11123_v27 = vor.u32 %v12815_v15, %v11120_v5  ;;  %7894 = vmatpush.bf16.msrb.mxu3 %v11923_v61  ;;  %v7654_v15 = vadd.f32 %v7653_v9, %v7641_v46  ;;  %v7666_v5 = vpop.f32.mrf.mxu1 }
 0x719   :  { %v11376_v13 = vld [vmem:[%s19558_s1 + $0x1af8] sm:$0xf0] }
 0x71a   :  { %v12943_v17 = vld [vmem:[%s19558_s1 + $0x1cdc] sm:$0xf]  ;;  %v11379_v22 = vor.u32 %v12879_v36, %v11376_v13  ;;  %7856 = vmatpush.bf16.msrb.mxu0 %v11123_v27  ;;  %v7667_v36 = vadd.f32 %v7666_v5, %v7654_v15 }
 0x71b   :  { %v11632_v26 = vld [vmem:[%s19558_s1 + $0x1cf8] sm:$0xf0] }
 0x71c   :  { %v13007_v18 = vld [vmem:[%s19558_s1 + $0x1edc] sm:$0xf]  ;;  %v11635_v32 = vor.u32 %v12943_v17, %v11632_v26  ;;  %7869 = vmatpush.bf16.msrb.mxu1 %v11379_v22  ;;  %v7679_v61 = vpop.f32.mrf.mxu2 }
 0x71d   :  { %v11888_v55 = vld [vmem:[%s19558_s1 + $0x1ef8] sm:$0xf0]  ;;  %v7680_v10 = vadd.f32 %v7679_v61, %v7667_v36 }
 0x71e   :  { %v12807_v40 = vld [vmem:[%s19558_s1 + $0x189c] sm:$0xf]  ;;  %v11891_v49 = vor.u32 %v13007_v18, %v11888_v55  ;;  %7882 = vmatpush.bf16.msrb.mxu2 %v11635_v32  ;;  %v7692_v13 = vpop.f32.mrf.mxu3  ;;  %v7655_v17 = vpop.f32.mrf.mxu0 }
 0x71f   :  { %v11088_v52 = vld [vmem:[%s19558_s1 + $0x18b8] sm:$0xf0]  ;;  %v7693_v18 = vadd.f32 %v7692_v13, %v7680_v10 }
 0x720   :  { %v12871_v19 = vld [vmem:[%s19558_s1 + $0x1a9c] sm:$0xf]  ;;  %v11091_v47 = vor.u32 %v12807_v40, %v11088_v52  ;;  %7895 = vmatpush.bf16.msrb.mxu3 %v11891_v49  ;;  %v7668_v26 = vpop.f32.mrf.mxu1 }
 0x721   :  { %v11344_v37 = vld [vmem:[%s19558_s1 + $0x1ab8] sm:$0xf0]  ;;  %v7910_v44 = vmax.f32 %v7693_v18, 0.0 }
 0x722   :  { %v12935_v1 = vld [vmem:[%s19558_s1 + $0x1c9c] sm:$0xf]  ;;  %v11347_v62 = vor.u32 %v12871_v19, %v11344_v37  ;;  %7857 = vmatpush.bf16.msrb.mxu0 %v11091_v47 }
 0x723   :  { %v11600_v43 = vld [vmem:[%s19558_s1 + $0x1cb8] sm:$0xf0] }
 0x724   :  { %v12999_v45 = vld [vmem:[%s19558_s1 + $0x1e9c] sm:$0xf]  ;;  %v11603_v53 = vor.u32 %v12935_v1, %v11600_v43  ;;  %7870 = vmatpush.bf16.msrb.mxu1 %v11347_v62  ;;  %v7681_v55 = vpop.f32.mrf.mxu2 }
 0x725   :  { %v11856_v48 = vld [vmem:[%s19558_s1 + $0x1eb8] sm:$0xf0] }
 0x726   :  { %v12799_v14 = vld [vmem:[%s19558_s1 + $0x185c] sm:$0xf]  ;;  %v11859_v0 = vor.u32 %v12999_v45, %v11856_v48  ;;  %7883 = vmatpush.bf16.msrb.mxu2 %v11603_v53  ;;  %v7694_v27 = vpop.f32.mrf.mxu3  ;;  %v7705_v22 = vpop.f32.mrf.mxu0 }
 0x727   :  { %v11056_v56 = vld [vmem:[%s19558_s1 + $0x1878] sm:$0xf0] }
 0x728   :  { %v12863_v57 = vld [vmem:[%s19558_s1 + $0x1a5c] sm:$0xf]  ;;  %v11059_v6 = vor.u32 %v12799_v14, %v11056_v56  ;;  %7896 = vmatpush.bf16.msrb.mxu3 %v11859_v0  ;;  %v7718_v32 = vpop.f32.mrf.mxu1 }
 0x729   :  { %v11312_v58 = vld [vmem:[%s19558_s1 + $0x1a78] sm:$0xf0] }
 0x72a   :  { %v12927_v4 = vld [vmem:[%s19558_s1 + $0x1c5c] sm:$0xf]  ;;  %v11315_v60 = vor.u32 %v12863_v57, %v11312_v58  ;;  %7858 = vmatpush.bf16.msrb.mxu0 %v11059_v6 }
 0x72b   :  { %v11568_v63 = vld [vmem:[%s19558_s1 + $0x1c78] sm:$0xf0] }
 0x72c   :  { %v12991_v59 = vld [vmem:[%s19558_s1 + $0x1e5c] sm:$0xf]  ;;  %v11571_v38 = vor.u32 %v12927_v4, %v11568_v63  ;;  %7871 = vmatpush.bf16.msrb.mxu1 %v11315_v60  ;;  %v7731_v40 = vpop.f32.mrf.mxu2 }
 0x72d   :  { %v11824_v25 = vld [vmem:[%s19558_s1 + $0x1e78] sm:$0xf0] }
 0x72e   :  { %v12791_v21 = vld [vmem:[%s19558_s1 + $0x181c] sm:$0xf]  ;;  %v11827_v2 = vor.u32 %v12991_v59, %v11824_v25  ;;  %7884 = vmatpush.bf16.msrb.mxu2 %v11571_v38  ;;  %v7744_v52 = vpop.f32.mrf.mxu3  ;;  %v7707_v49 = vpop.f32.mrf.mxu0 }
 0x72f   :  { %v11024_v29 = vld [vmem:[%s19558_s1 + $0x1838] sm:$0xf0] }
 0x730   :  { %v12855_v30 = vld [vmem:[%s19558_s1 + $0x1a1c] sm:$0xf]  ;;  %v11027_v7 = vor.u32 %v12791_v21, %v11024_v29  ;;  %7897 = vmatpush.bf16.msrb.mxu3 %v11827_v2  ;;  %v7720_v34 = vpop.f32.mrf.mxu1 }
 0x731   :  { %v11280_v33 = vld [vmem:[%s19558_s1 + $0x1a38] sm:$0xf0] }
 0x732   :  { %v12919_v8 = vld [vmem:[%s19558_s1 + $0x1c1c] sm:$0xf]  ;;  %v11283_v39 = vor.u32 %v12855_v30, %v11280_v33  ;;  %7859 = vmatpush.bf16.msrb.mxu0 %v11027_v7 }
 0x733   :  { %v11536_v3 = vld [vmem:[%s19558_s1 + $0x1c38] sm:$0xf0] }
 0x734   :  { %v12983_v41 = vld [vmem:[%s19558_s1 + $0x1e1c] sm:$0xf]  ;;  %v11539_v12 = vor.u32 %v12919_v8, %v11536_v3  ;;  %7872 = vmatpush.bf16.msrb.mxu1 %v11283_v39  ;;  %v7733_v37 = vpop.f32.mrf.mxu2 }
 0x735   :  { %v11792_v42 = vld [vmem:[%s19558_s1 + $0x1e38] sm:$0xf0]  ;;  %7860 = vmatmul.bf16.vlgmr.msrb.gmra.mxu0 %v13931_v23  ;;  %v1055_v23 = vperm.slane %v19038_v20, 7 }
 0x736   :  { %v11795_v24 = vor.u32 %v12983_v41, %v11792_v42  ;;  %7885 = vmatpush.bf16.msrb.mxu2 %v11539_v12  ;;  %v7746_v1 = vpop.f32.mrf.mxu3  ;;  %v7757_v43 = vpop.f32.mrf.mxu0 }
 0x737   :  { %7873 = vmatmul.bf16.vlgmr.msrb.gmra.mxu1 %v13944_v31  ;;  %v7706_v31 = vadd.f32 %v7705_v22, %v1055_v23 }
 0x738   :  { %7898 = vmatpush.bf16.msrb.mxu3 %v11795_v24  ;;  %v7770_v16 = vpop.f32.mrf.mxu1 }
 0x739   :  { %7886 = vmatmul.bf16.vlgmr.msrb.gmra.mxu2 %v13942_v28  ;;  %v7719_v28 = vadd.f32 %v7718_v32, %v7706_v31 }
 0x73b   :  { %7899 = vmatmul.bf16.vlgmr.msrb.gmra.mxu3 %v13952_v35  ;;  %v7732_v35 = vadd.f32 %v7731_v40, %v7719_v28 }
 0x73c   :  { %v7783_v11 = vpop.f32.mrf.mxu2 }
 0x73d   :  { %v7745_v19 = vadd.f32 %v7744_v52, %v7732_v35 }
 0x73e   :  { %v7796_v45 = vpop.f32.mrf.mxu3  ;;  %v7759_v48 = vpop.f32.mrf.mxu0 }
 0x73f   :  { %v7758_v62 = vadd.f32 %v7757_v43, %v7745_v19 }
 0x740   :  { %v7772_v54 = vpop.f32.mrf.mxu1 }
 0x741   :  { %v7771_v57 = vadd.f32 %v7770_v16, %v7758_v62 }
 0x743   :  { %v7784_v58 = vadd.f32 %v7783_v11, %v7771_v57 }
 0x744   :  { %v7785_v47 = vpop.f32.mrf.mxu2 }
 0x745   :  { %v7797_v59 = vadd.f32 %v7796_v45, %v7784_v58 }
 0x746   :  { %v7798_v20 = vpop.f32.mrf.mxu3 }
 0x772   :  { %v7809_v50 = vpop.f32.mrf.mxu0 }
 0x773   :  { %v7810_v25 = vadd.f32 %v7809_v50, %v7797_v59 }
 0x774   :  { %v7822_v46 = vpop.f32.mrf.mxu1 }
 0x775   :  { %v7823_v6 = vadd.f32 %v7822_v46, %v7810_v25 }
 0x77a   :  { %v7811_v56 = vpop.f32.mrf.mxu0 }
 0x77c   :  { %v7835_v53 = vpop.f32.mrf.mxu2  ;;  %v7824_v0 = vpop.f32.mrf.mxu1 }
 0x77d   :  { %v7836_v60 = vadd.f32 %v7835_v53, %v7823_v6 }
 0x77e   :  { %v7848_v14 = vpop.f32.mrf.mxu3 }
 0x77f   :  { %v7849_v38 = vadd.f32 %v7848_v14, %v7836_v60 }
 0x784   :  { %v7837_v4 = vpop.f32.mrf.mxu2 }
 0x786   :  { %v7850_v63 = vpop.f32.mrf.mxu3 }
 0x7b2   :  { %v7861_v21 = vpop.f32.mrf.mxu0 }
 0x7b3   :  { %v7862_v30 = vadd.f32 %v7861_v21, %v7849_v38 }
 0x7b4   :  { %v7874_v29 = vpop.f32.mrf.mxu1 }
 0x7b5   :  { %v7875_v2 = vadd.f32 %v7874_v29, %v7862_v30 }
 0x7ba   :  { %v7863_v51 = vpop.f32.mrf.mxu0 }
 0x7bc   :  { %v7887_v33 = vpop.f32.mrf.mxu2  ;;  %v7876_v41 = vpop.f32.mrf.mxu1 }
 0x7bd   :  { %v7888_v8 = vadd.f32 %v7887_v33, %v7875_v2 }
 0x7be   :  { %v7900_v3 = vpop.f32.mrf.mxu3 }
 0x7bf   :  { %v7901_v42 = vadd.f32 %v7900_v3, %v7888_v8 }
 0x7c1   :  { %v7911_v7 = vmax.f32 %v7901_v42, 0.0 }
 0x7c3   :  { %v7915_v39 = vpack.c.bf16 %v7911_v7, %v7910_v44 }
 0x7c4   :  { %v7889_v12 = vpop.f32.mrf.mxu2 }
 0x7c5   :  { %7919 = vst [vmem:[%s19561_s3 + $0x18] sm:$0xff] %v7915_v39 }
 0x7c6   :  { %v7902_v24 = vpop.f32.mrf.mxu3 }

</bundles_post_ra>
